<compile_context>
chip_gen: v7x
topology: tpu7x:2x2x1
jax: 0.10.0
libtpu: 0.0.40
codegen_flags: <defaults>
</compile_context>

<pallas_src>
import functools

import jax
import jax.numpy as jnp
from jax import lax
from jax.experimental import pallas as pl
from jax.experimental.pallas import tpu as pltpu

_GUARD = 8   # guard rows around the row-padded VMEM activation frames


# ---------------------------------------------------------------------------
# Fused kernel: concat + 1x1 + ReLU + 3x3 + ReLU + deconv(4x4, s2, p1)
# ---------------------------------------------------------------------------
def _upsample_fused_kernel(up_ref, sc_ref, w1_ref, b1_ref, w3_ref, b3_ref,
                           wdm_ref, bd_ref, o_ref,
                           t1f_ref, t2f_ref, acc_ref, *, H, W):
    HW = H * W
    Cmid = t1f_ref.shape[-1]
    Co = acc_ref.shape[-1]
    base = _GUARD + W                     # frame row of image pixel (0, 0)
    ph = pl.program_id(1)                 # output-row parity handled this step

    # Column-boundary masks shared by the 3x3 conv and deconv taps.
    col = lax.broadcasted_iota(jnp.int32, (HW, 1), 0) % W
    not_left = col != 0                   # source col j-1 invalid at j == 0
    not_right = col != (W - 1)            # source col j+1 invalid at j == W-1

    # -------- stages 1 + 2: run once per image (first parity step) ----------
    @pl.when(ph == 0)
    def _stages_1_2():
        # Zero the top/bottom halo rows of both frames (folded-in zero padding).
        t1f_ref[pl.ds(_GUARD, W), :] = jnp.zeros((W, Cmid), jnp.float32)
        t1f_ref[pl.ds(base + HW, W), :] = jnp.zeros((W, Cmid), jnp.float32)
        t2f_ref[pl.ds(_GUARD, W), :] = jnp.zeros((W, Co), jnp.float32)
        t2f_ref[pl.ds(base + HW, W), :] = jnp.zeros((W, Co), jnp.float32)

        # Stage 1: fused channel concat + 1x1 conv + bias + ReLU
        # (single K = C1 + C2 MXU dot; concatenated tensor never hits HBM).
        xcat = jnp.concatenate([up_ref[0], sc_ref[0]], axis=-1)     # (HW, Cin)
        t1 = jnp.dot(xcat, w1_ref[...], preferred_element_type=jnp.float32)
        t1f_ref[pl.ds(base, HW), :] = jnp.maximum(t1 + b1_ref[...], 0.0)

        # Stage 2: 3x3 conv (pad=1) + bias + ReLU.
        # 9 taps = contiguous flat row-slices of the row-padded frame; the
        # left/right column taps are corrected with a row mask.
        acc_ref[...] = jnp.zeros_like(acc_ref)
        for dh in range(3):
            for dw in range(3):
                start = _GUARD + dh * W + (dw - 1)
                p = t1f_ref[pl.ds(start, HW), :]
                if dw == 0:
                    p = jnp.where(not_left, p, 0.0)
                elif dw == 2:
                    p = jnp.where(not_right, p, 0.0)
                acc_ref[...] += jnp.dot(p, w3_ref[dh * 3 + dw],
                                        preferred_element_type=jnp.float32)
        t2f_ref[pl.ds(base, HW), :] = jnp.maximum(acc_ref[...] + b3_ref[...],
                                                  0.0)

    # -------- stage 3: ConvTranspose2d(k=4, s=2, p=1), row parity `ph` -------
    # out[2i+ph, 2j+pw] = bd + sum_{dr,dc} t2pad[i+ph+dr, j+pw+dc] @ wd[3-ph-2dr, 3-pw-2dc]
    # The (dr=0, dr=1) tap pair is merged along K (lane concat -> K = 2*Co).
    for pw in range(2):
        acc_ref[...] = jnp.zeros_like(acc_ref)
        for dc in range(2):
            coff = pw + dc - 1            # column offset in {-1, 0, +1}
            sA = _GUARD + ph * W + coff          # dr = 0 slice start
            sB = _GUARD + (ph + 1) * W + coff    # dr = 1 slice start
            if coff == 0 and W % 8 == 0:
                sA = pl.multiple_of(sA, 8)
                sB = pl.multiple_of(sB, 8)
            pA = t2f_ref[pl.ds(sA, HW), :]
            pB = t2f_ref[pl.ds(sB, HW), :]
            pp = jnp.concatenate([pA, pB], axis=-1)          # (HW, 2*Co)
            if coff == -1:
                pp = jnp.where(not_left, pp, 0.0)
            elif coff == 1:
                pp = jnp.where(not_right, pp, 0.0)
            acc_ref[...] += jnp.dot(pp, wdm_ref[ph * 4 + pw * 2 + dc],
                                    preferred_element_type=jnp.float32)
        y = (acc_ref[...] + bd_ref[...]).astype(o_ref.dtype)
        # Parity-packed store: lanes [pw*Co : (pw+1)*Co] of the 2*Co lane dim.
        o_ref[0, :, 0, :, pl.ds(pw * Co, Co)] = y.reshape(H, W, Co)


def upsample_fused(up_nhwc, sc_nhwc, w1, b1, w3, b3, wd, bd):
    """Fused Upsample block.

    up_nhwc:(N,H,W,C1), sc_nhwc:(N,H,W,C2), w1:(C1+C2,Cmid), w3:(3,3,Cmid,Co),
    wd:(4,4,Co,Co) [kh,kw,ci,co].  Returns (N, 2H, 2W, Co) in NHWC.
    """
    N, H, W, C1 = up_nhwc.shape
    C2 = sc_nhwc.shape[-1]
    Cin = C1 + C2
    Cmid = w1.shape[1]
    Co = w3.shape[-1]
    assert w1.shape[0] == Cin and wd.shape[2] == Co and wd.shape[3] == Co
    HW = H * W

    # Free HBM views: (N, H, W, C) -> (N, H*W, C)
    up2 = up_nhwc.reshape(N, HW, C1)
    sc2 = sc_nhwc.reshape(N, HW, C2)

    # conv3x3 weight packed as (9, Cmid, Co), index = dh*3 + dw.
    w3p = w3.reshape(9, Cmid, Co)

    # deconv weight, parity-decomposed and K-merged over dr:
    #   wdm[(ph*2+pw)*2+dc] = concat_ci(wd[3-ph, 3-pw-2dc], wd[1-ph, 3-pw-2dc])
    parts = []
    for ph in range(2):
        for pw in range(2):
            for dc in range(2):
                parts.append(jnp.concatenate(
                    [wd[3 - ph, 3 - pw - 2 * dc], wd[1 - ph, 3 - pw - 2 * dc]],
                    axis=0))
    wdm = jnp.stack(parts, axis=0)                       # (8, 2*Co, Co)

    frame_rows = 2 * _GUARD + (H + 2) * W
    kernel = functools.partial(_upsample_fused_kernel, H=H, W=W)

    out = pl.pallas_call(
        kernel,
        out_shape=jax.ShapeDtypeStruct((N, H, 2, W, 2 * Co), up_nhwc.dtype),
        grid_spec=pltpu.PrefetchScalarGridSpec(
            num_scalar_prefetch=0,
            grid=(N, 2),
            in_specs=[
                pl.BlockSpec((1, HW, C1), lambda n, s: (n, 0, 0)),
                pl.BlockSpec((1, HW, C2), lambda n, s: (n, 0, 0)),
                pl.BlockSpec((Cin, Cmid), lambda n, s: (0, 0)),
                pl.BlockSpec((1, Cmid), lambda n, s: (0, 0)),
                pl.BlockSpec((9, Cmid, Co), lambda n, s: (0, 0, 0)),
                pl.BlockSpec((1, Co), lambda n, s: (0, 0)),
                pl.BlockSpec((8, 2 * Co, Co), lambda n, s: (0, 0, 0)),
                pl.BlockSpec((1, Co), lambda n, s: (0, 0)),
            ],
            out_specs=pl.BlockSpec((1, H, 1, W, 2 * Co),
                                   lambda n, s: (n, 0, s, 0, 0)),
            scratch_shapes=[
                pltpu.VMEM((frame_rows, Cmid), jnp.float32),   # conv1x1 frame
                pltpu.VMEM((frame_rows, Co), jnp.float32),     # conv3x3 frame
                pltpu.VMEM((HW, Co), jnp.float32),             # f32 accumulator
            ],
        ),
        compiler_params=pltpu.CompilerParams(
            dimension_semantics=("parallel", "arbitrary")),
    )(up2, sc2, w1, b1.reshape(1, Cmid), w3p, b3.reshape(1, Co),
      wdm, bd.reshape(1, Co))

    # (N, H, 2, W, 2, Co) parity-packed -> (N, 2H, 2W, Co): free reshape view.
    return out.reshape(N, 2 * H, 2 * W, Co)


# ---------------------------------------------------------------------------
# Upsample module
# ---------------------------------------------------------------------------
class UpsamplePallas:
    def __init__(self, in_channels, out_channels, key):
        k = jax.random.split(key, 6)

        def uinit(kk, shape, fan_in):
            bound = 1.0 / float(fan_in) ** 0.5
            return jax.random.uniform(kk, shape, jnp.float32, -bound, bound)

        # conv1x1: (cin, cout)
        self.w1 = uinit(k[0], (in_channels, in_channels), in_channels)
        self.b1 = uinit(k[1], (in_channels,), in_channels)
        # conv3x3: (kh, kw, cin, cout)
        self.w3 = uinit(k[2], (3, 3, in_channels, out_channels), in_channels * 9)
        self.b3 = uinit(k[3], (out_channels,), in_channels * 9)
        # deconv 4x4: (kh, kw, cin, cout)
        self.wd = uinit(k[4], (4, 4, out_channels, out_channels), out_channels * 16)
        self.bd = uinit(k[5], (out_channels,), out_channels * 16)

    def __call__(self, upsampled_nchw, shortcut_nchw):
        # NCHW <-> NHWC only at the module boundary (drop if the net is NHWC).
        up = jnp.transpose(upsampled_nchw, (0, 2, 3, 1))
        sc = jnp.transpose(shortcut_nchw, (0, 2, 3, 1))
        x = upsample_fused(up, sc, self.w1, self.b1, self.w3, self.b3,
                           self.wd, self.bd)
        return jnp.transpose(x, (0, 3, 1, 2))


# ---------------------------------------------------------------------------
# Pure-JAX (XLA) reference for verification
# ---------------------------------------------------------------------------
def upsample_ref(model, upsampled_nchw, shortcut_nchw):
    dn = ("NHWC", "HWIO", "NHWC")
    up = jnp.transpose(upsampled_nchw, (0, 2, 3, 1))
    sc = jnp.transpose(shortcut_nchw, (0, 2, 3, 1))
    x = jnp.concatenate([up, sc], axis=-1)
    cin = x.shape[-1]
    x = lax.conv_general_dilated(
        x, model.w1.reshape(1, 1, cin, cin), (1, 1), ((0, 0), (0, 0)),
        dimension_numbers=dn) + model.b1
    x = jnp.maximum(x, 0.0)
    x = lax.conv_general_dilated(
        x, model.w3, (1, 1), ((1, 1), (1, 1)),
        dimension_numbers=dn) + model.b3
    x = jnp.maximum(x, 0.0)
    x = lax.conv_general_dilated(
        x, model.wd[::-1, ::-1], (1, 1), ((2, 2), (2, 2)),
        lhs_dilation=(2, 2), dimension_numbers=dn) + model.bd
    return jnp.transpose(x, (0, 3, 1, 2))


if __name__ == "__main__":
    key = jax.random.PRNGKey(0)
    k_up, k_sc, k_param = jax.random.split(key, 3)

    N, H, W = 2, 16, 16
    c_up, c_sc = 128, 128          # upsampled + shortcut channels (lane-dense)
    in_channels = c_up + c_sc      # 256
    out_channels = 128

    model = UpsamplePallas(in_channels, out_channels, key=k_param)
    upsampled = jax.random.normal(k_up, (N, c_up, H, W), jnp.float32)
    shortcut = jax.random.normal(k_sc, (N, c_sc, H, W), jnp.float32)

    fwd = jax.jit(model.__call__)
    out = jax.block_until_ready(fwd(upsampled, shortcut))
    assert out.shape == (N, out_channels, 2 * H, 2 * W), out.shape
    assert out.dtype == jnp.float32

    ref = jax.block_until_ready(upsample_ref(model, upsampled, shortcut))
    err = float(jnp.max(jnp.abs(out - ref)))
    assert err < 5e-3, f"max abs error {err}"

    print("KERNEL_OK")
</pallas_src>

<mosaic_0001>
module attributes {stable_mosaic.version = 11 : i64} {
  func.func @_upsample_fused_kernel(%arg0: i32, %arg1: i32, %arg2: memref<1x256x128xf32, #tpu.memory_space<vmem>>, %arg3: memref<1x256x128xf32, #tpu.memory_space<vmem>>, %arg4: memref<256x256xf32, #tpu.memory_space<vmem>>, %arg5: memref<1x256xf32, #tpu.memory_space<vmem>>, %arg6: memref<9x256x128xf32, #tpu.memory_space<vmem>>, %arg7: memref<1x128xf32, #tpu.memory_space<vmem>>, %arg8: memref<8x256x128xf32, #tpu.memory_space<vmem>>, %arg9: memref<1x128xf32, #tpu.memory_space<vmem>>, %arg10: memref<1x16x1x16x256xf32, #tpu.memory_space<vmem>>, %arg11: memref<304x256xf32, #tpu.memory_space<vmem>>, %arg12: memref<304x128xf32, #tpu.memory_space<vmem>>, %arg13: memref<256x128xf32, #tpu.memory_space<vmem>>) attributes {dimension_semantics = [#tpu.dimension_semantics<parallel>, #tpu.dimension_semantics<arbitrary>], iteration_bounds = array<i64: 2, 2>, scalar_prefetch = 0 : i64, scratch_operands = 3 : i64, tpu.core_type = #tpu.core_type<tc>, window_params = [{transform_indices = @transform_0, window_bounds = array<i64: 1, 256, 128>}, {transform_indices = @transform_1, window_bounds = array<i64: 1, 256, 128>}, {pipeline_mode = #tpu.pipeline_mode<synchronous>, transform_indices = @transform_2, window_bounds = array<i64: 256, 256>}, {pipeline_mode = #tpu.pipeline_mode<synchronous>, transform_indices = @transform_3, window_bounds = array<i64: 1, 256>}, {pipeline_mode = #tpu.pipeline_mode<synchronous>, transform_indices = @transform_4, window_bounds = array<i64: 9, 256, 128>}, {pipeline_mode = #tpu.pipeline_mode<synchronous>, transform_indices = @transform_5, window_bounds = array<i64: 1, 128>}, {pipeline_mode = #tpu.pipeline_mode<synchronous>, transform_indices = @transform_6, window_bounds = array<i64: 8, 256, 128>}, {pipeline_mode = #tpu.pipeline_mode<synchronous>, transform_indices = @transform_7, window_bounds = array<i64: 1, 128>}, {transform_indices = @transform_8, window_bounds = array<i64: 1, 16, 1, 16, 256>}]} {
    %0 = tpu.iota {dimensions = array<i32: 0>} : vector<256x1xi32>
    %c16_i32 = arith.constant 16 : i32
    %c0_i32 = arith.constant 0 : i32
    %1 = arith.cmpi eq, %c16_i32, %c0_i32 : i32
    %c1_i32 = arith.constant 1 : i32
    %2 = arith.select %1, %c1_i32, %c16_i32 : i32
    %3 = vector.broadcast %2 : i32 to vector<256x1xi32>
    %4 = arith.remsi %0, %3 : vector<256x1xi32>
    %c0_i32_0 = arith.constant 0 : i32
    %5 = vector.broadcast %c0_i32_0 : i32 to vector<256x1xi32>
    %6 = arith.cmpi ne, %4, %5 : vector<256x1xi32>
    %c0_i32_1 = arith.constant 0 : i32
    %7 = vector.broadcast %c0_i32_1 : i32 to vector<256x1xi32>
    %8 = arith.cmpi slt, %4, %7 : vector<256x1xi32>
    %c0_i32_2 = arith.constant 0 : i32
    %9 = arith.cmpi slt, %2, %c0_i32_2 : i32
    %10 = vector.broadcast %9 : i1 to vector<256x1xi1>
    %11 = vector.broadcast %10 : vector<256x1xi1> to vector<256x1xi1>
    %12 = arith.xori %8, %11 : vector<256x1xi1>
    %13 = arith.andi %12, %6 : vector<256x1xi1>
    %14 = vector.broadcast %2 : i32 to vector<256x1xi32>
    %15 = arith.addi %4, %14 : vector<256x1xi32>
    %16 = arith.select %13, %15, %4 : vector<256x1xi1>, vector<256x1xi32>
    %c0_i32_3 = arith.constant 0 : i32
    %17 = vector.broadcast %c0_i32_3 : i32 to vector<256x1xi32>
    %18 = arith.cmpi ne, %16, %17 : vector<256x1xi32>
    %c15_i32 = arith.constant 15 : i32
    %19 = vector.broadcast %c15_i32 : i32 to vector<256x1xi32>
    %20 = arith.cmpi ne, %16, %19 : vector<256x1xi32>
    %c0_i32_4 = arith.constant 0 : i32
    %21 = arith.cmpi eq, %arg1, %c0_i32_4 : i32
    %22 = arith.extui %21 : i1 to i32
    %c0_i32_5 = arith.constant 0 : i32
    %23 = arith.cmpi ne, %22, %c0_i32_5 : i32
    scf.if %23 {
      %cst_101 = arith.constant 0.000000e+00 : f32
      %144 = vector.broadcast %cst_101 : f32 to vector<16x256xf32>
      %c8 = arith.constant 8 : index
      %c0_102 = arith.constant 0 : index
      %145 = vector.load %arg11[%c8, %c0_102] : memref<304x256xf32, #tpu.memory_space<vmem>>, vector<16x256xf32>
      tpu.vector_store %arg11[%c8, %c0_102], %144 {strides = array<i32>} : memref<304x256xf32, #tpu.memory_space<vmem>>, vector<16x256xf32>,
      %cst_103 = arith.constant 0.000000e+00 : f32
      %146 = vector.broadcast %cst_103 : f32 to vector<16x256xf32>
      %c280 = arith.constant 280 : index
      %c0_104 = arith.constant 0 : index
      %147 = vector.load %arg11[%c280, %c0_104] : memref<304x256xf32, #tpu.memory_space<vmem>>, vector<16x256xf32>
      tpu.vector_store %arg11[%c280, %c0_104], %146 {strides = array<i32>} : memref<304x256xf32, #tpu.memory_space<vmem>>, vector<16x256xf32>,
      %cst_105 = arith.constant 0.000000e+00 : f32
      %148 = vector.broadcast %cst_105 : f32 to vector<16x128xf32>
      %c8_106 = arith.constant 8 : index
      %c0_107 = arith.constant 0 : index
      %149 = vector.load %arg12[%c8_106, %c0_107] : memref<304x128xf32, #tpu.memory_space<vmem>>, vector<16x128xf32>
      tpu.vector_store %arg12[%c8_106, %c0_107], %148 {strides = array<i32>} : memref<304x128xf32, #tpu.memory_space<vmem>>, vector<16x128xf32>,
      %cst_108 = arith.constant 0.000000e+00 : f32
      %150 = vector.broadcast %cst_108 : f32 to vector<16x128xf32>
      %c280_109 = arith.constant 280 : index
      %c0_110 = arith.constant 0 : index
      %151 = vector.load %arg12[%c280_109, %c0_110] : memref<304x128xf32, #tpu.memory_space<vmem>>, vector<16x128xf32>
      tpu.vector_store %arg12[%c280_109, %c0_110], %150 {strides = array<i32>} : memref<304x128xf32, #tpu.memory_space<vmem>>, vector<16x128xf32>,
      %c0_111 = arith.constant 0 : index
      %c0_112 = arith.constant 0 : index
      %c0_113 = arith.constant 0 : index
      %152 = vector.load %arg2[%c0_111, %c0_112, %c0_113] : memref<1x256x128xf32, #tpu.memory_space<vmem>>, vector<1x256x128xf32>
      %153 = vector.shape_cast %152 : vector<1x256x128xf32> to vector<256x128xf32>
      %c0_114 = arith.constant 0 : index
      %c0_115 = arith.constant 0 : index
      %c0_116 = arith.constant 0 : index
      %154 = vector.load %arg3[%c0_114, %c0_115, %c0_116] : memref<1x256x128xf32, #tpu.memory_space<vmem>>, vector<1x256x128xf32>
      %155 = vector.shape_cast %154 : vector<1x256x128xf32> to vector<256x128xf32>
      %156 = tpu.concatenate %153, %155 in 1 : vector<256x128xf32>, vector<256x128xf32> -> vector<256x256xf32>
      %c0_117 = arith.constant 0 : index
      %c0_118 = arith.constant 0 : index
      %157 = vector.load %arg4[%c0_117, %c0_118] : memref<256x256xf32, #tpu.memory_space<vmem>>, vector<256x256xf32>
      %cst_119 = arith.constant dense<0.000000e+00> : vector<256x256xf32>
      %158 = tpu.matmul %156, %157, %cst_119 {dimension_numbers = #tpu.dot_dimension_numbers<[1], [0], [0], [1], [0, 0, 1, 1], [], []>} : vector<256x256xf32>, vector<256x256xf32>, vector<256x256xf32> -> vector<256x256xf32>
      %c0_120 = arith.constant 0 : index
      %c0_121 = arith.constant 0 : index
      %159 = vector.load %arg5[%c0_120, %c0_121] : memref<1x256xf32, #tpu.memory_space<vmem>>, vector<1x256xf32>
      %160 = vector.broadcast %159 : vector<1x256xf32> to vector<256x256xf32>
      %161 = arith.addf %158, %160 : vector<256x256xf32>
      %cst_122 = arith.constant 0.000000e+00 : f32
      %162 = vector.broadcast %cst_122 : f32 to vector<256x256xf32>
      %163 = arith.maximumf %161, %162 : vector<256x256xf32>
      %c24 = arith.constant 24 : index
      %c0_123 = arith.constant 0 : index
      %164 = vector.load %arg11[%c24, %c0_123] : memref<304x256xf32, #tpu.memory_space<vmem>>, vector<256x256xf32>
      tpu.vector_store %arg11[%c24, %c0_123], %163 {strides = array<i32>} : memref<304x256xf32, #tpu.memory_space<vmem>>, vector<256x256xf32>,
      %cst_124 = arith.constant 0.000000e+00 : f32
      %165 = vector.broadcast %cst_124 : f32 to vector<256x128xf32>
      %c0_125 = arith.constant 0 : index
      %c0_126 = arith.constant 0 : index
      %166 = vector.load %arg13[%c0_125, %c0_126] : memref<256x128xf32, #tpu.memory_space<vmem>>, vector<256x128xf32>
      tpu.vector_store %arg13[%c0_125, %c0_126], %165 {strides = array<i32>} : memref<256x128xf32, #tpu.memory_space<vmem>>, vector<256x128xf32>,
      %c7 = arith.constant 7 : index
      %c0_127 = arith.constant 0 : index
      %167 = vector.load %arg11[%c7, %c0_127] : memref<304x256xf32, #tpu.memory_space<vmem>>, vector<256x256xf32>
      %cst_128 = arith.constant 0.000000e+00 : f32
      %168 = vector.shape_cast %18 : vector<256x1xi1> to vector<256x1xi1>
      %169 = vector.broadcast %168 : vector<256x1xi1> to vector<256x256xi1>
      %170 = vector.broadcast %cst_128 : f32 to vector<256x256xf32>
      %171 = arith.select %169, %167, %170 : vector<256x256xi1>, vector<256x256xf32>
      %c0_129 = arith.constant 0 : index
      %c0_130 = arith.constant 0 : index
      %172 = vector.load %arg13[%c0_129, %c0_130] : memref<256x128xf32, #tpu.memory_space<vmem>>, vector<256x128xf32>
      %c0_131 = arith.constant 0 : index
      %c0_132 = arith.constant 0 : index
      %c0_133 = arith.constant 0 : index
      %173 = vector.load %arg6[%c0_131, %c0_132, %c0_133] : memref<9x256x128xf32, #tpu.memory_space<vmem>>, vector<1x256x128xf32>
      %174 = vector.shape_cast %173 : vector<1x256x128xf32> to vector<256x128xf32>
      %cst_134 = arith.constant dense<0.000000e+00> : vector<256x128xf32>
      %175 = tpu.matmul %171, %174, %cst_134 {dimension_numbers = #tpu.dot_dimension_numbers<[1], [0], [0], [1], [0, 0, 1, 1], [], []>} : vector<256x256xf32>, vector<256x128xf32>, vector<256x128xf32> -> vector<256x128xf32>
      %176 = arith.addf %172, %175 : vector<256x128xf32>
      %c0_135 = arith.constant 0 : index
      %c0_136 = arith.constant 0 : index
      %177 = vector.load %arg13[%c0_135, %c0_136] : memref<256x128xf32, #tpu.memory_space<vmem>>, vector<256x128xf32>
      tpu.vector_store %arg13[%c0_135, %c0_136], %176 {strides = array<i32>} : memref<256x128xf32, #tpu.memory_space<vmem>>, vector<256x128xf32>,
      %c8_137 = arith.constant 8 : index
      %c0_138 = arith.constant 0 : index
      %178 = vector.load %arg11[%c8_137, %c0_138] : memref<304x256xf32, #tpu.memory_space<vmem>>, vector<256x256xf32>
      %c0_139 = arith.constant 0 : index
      %c0_140 = arith.constant 0 : index
      %179 = vector.load %arg13[%c0_139, %c0_140] : memref<256x128xf32, #tpu.memory_space<vmem>>, vector<256x128xf32>
      %c1 = arith.constant 1 : index
      %c0_141 = arith.constant 0 : index
      %c0_142 = arith.constant 0 : index
      %180 = vector.load %arg6[%c1, %c0_141, %c0_142] : memref<9x256x128xf32, #tpu.memory_space<vmem>>, vector<1x256x128xf32>
      %181 = vector.shape_cast %180 : vector<1x256x128xf32> to vector<256x128xf32>
      %cst_143 = arith.constant dense<0.000000e+00> : vector<256x128xf32>
      %182 = tpu.matmul %178, %181, %cst_143 {dimension_numbers = #tpu.dot_dimension_numbers<[1], [0], [0], [1], [0, 0, 1, 1], [], []>} : vector<256x256xf32>, vector<256x128xf32>, vector<256x128xf32> -> vector<256x128xf32>
      %183 = arith.addf %179, %182 : vector<256x128xf32>
      %c0_144 = arith.constant 0 : index
      %c0_145 = arith.constant 0 : index
      %184 = vector.load %arg13[%c0_144, %c0_145] : memref<256x128xf32, #tpu.memory_space<vmem>>, vector<256x128xf32>
      tpu.vector_store %arg13[%c0_144, %c0_145], %183 {strides = array<i32>} : memref<256x128xf32, #tpu.memory_space<vmem>>, vector<256x128xf32>,
      %c9 = arith.constant 9 : index
      %c0_146 = arith.constant 0 : index
      %185 = vector.load %arg11[%c9, %c0_146] : memref<304x256xf32, #tpu.memory_space<vmem>>, vector<256x256xf32>
      %cst_147 = arith.constant 0.000000e+00 : f32
      %186 = vector.shape_cast %20 : vector<256x1xi1> to vector<256x1xi1>
      %187 = vector.broadcast %186 : vector<256x1xi1> to vector<256x256xi1>
      %188 = vector.broadcast %cst_147 : f32 to vector<256x256xf32>
      %189 = arith.select %187, %185, %188 : vector<256x256xi1>, vector<256x256xf32>
      %c0_148 = arith.constant 0 : index
      %c0_149 = arith.constant 0 : index
      %190 = vector.load %arg13[%c0_148, %c0_149] : memref<256x128xf32, #tpu.memory_space<vmem>>, vector<256x128xf32>
      %c2 = arith.constant 2 : index
      %c0_150 = arith.constant 0 : index
      %c0_151 = arith.constant 0 : index
      %191 = vector.load %arg6[%c2, %c0_150, %c0_151] : memref<9x256x128xf32, #tpu.memory_space<vmem>>, vector<1x256x128xf32>
      %192 = vector.shape_cast %191 : vector<1x256x128xf32> to vector<256x128xf32>
      %cst_152 = arith.constant dense<0.000000e+00> : vector<256x128xf32>
      %193 = tpu.matmul %189, %192, %cst_152 {dimension_numbers = #tpu.dot_dimension_numbers<[1], [0], [0], [1], [0, 0, 1, 1], [], []>} : vector<256x256xf32>, vector<256x128xf32>, vector<256x128xf32> -> vector<256x128xf32>
      %194 = arith.addf %190, %193 : vector<256x128xf32>
      %c0_153 = arith.constant 0 : index
      %c0_154 = arith.constant 0 : index
      %195 = vector.load %arg13[%c0_153, %c0_154] : memref<256x128xf32, #tpu.memory_space<vmem>>, vector<256x128xf32>
      tpu.vector_store %arg13[%c0_153, %c0_154], %194 {strides = array<i32>} : memref<256x128xf32, #tpu.memory_space<vmem>>, vector<256x128xf32>,
      %c23 = arith.constant 23 : index
      %c0_155 = arith.constant 0 : index
      %196 = vector.load %arg11[%c23, %c0_155] : memref<304x256xf32, #tpu.memory_space<vmem>>, vector<256x256xf32>
      %cst_156 = arith.constant 0.000000e+00 : f32
      %197 = vector.shape_cast %18 : vector<256x1xi1> to vector<256x1xi1>
      %198 = vector.broadcast %197 : vector<256x1xi1> to vector<256x256xi1>
      %199 = vector.broadcast %cst_156 : f32 to vector<256x256xf32>
      %200 = arith.select %198, %196, %199 : vector<256x256xi1>, vector<256x256xf32>
      %c0_157 = arith.constant 0 : index
      %c0_158 = arith.constant 0 : index
      %201 = vector.load %arg13[%c0_157, %c0_158] : memref<256x128xf32, #tpu.memory_space<vmem>>, vector<256x128xf32>
      %c3 = arith.constant 3 : index
      %c0_159 = arith.constant 0 : index
      %c0_160 = arith.constant 0 : index
      %202 = vector.load %arg6[%c3, %c0_159, %c0_160] : memref<9x256x128xf32, #tpu.memory_space<vmem>>, vector<1x256x128xf32>
      %203 = vector.shape_cast %202 : vector<1x256x128xf32> to vector<256x128xf32>
      %cst_161 = arith.constant dense<0.000000e+00> : vector<256x128xf32>
      %204 = tpu.matmul %200, %203, %cst_161 {dimension_numbers = #tpu.dot_dimension_numbers<[1], [0], [0], [1], [0, 0, 1, 1], [], []>} : vector<256x256xf32>, vector<256x128xf32>, vector<256x128xf32> -> vector<256x128xf32>
      %205 = arith.addf %201, %204 : vector<256x128xf32>
      %c0_162 = arith.constant 0 : index
      %c0_163 = arith.constant 0 : index
      %206 = vector.load %arg13[%c0_162, %c0_163] : memref<256x128xf32, #tpu.memory_space<vmem>>, vector<256x128xf32>
      tpu.vector_store %arg13[%c0_162, %c0_163], %205 {strides = array<i32>} : memref<256x128xf32, #tpu.memory_space<vmem>>, vector<256x128xf32>,
      %c24_164 = arith.constant 24 : index
      %c0_165 = arith.constant 0 : index
      %207 = vector.load %arg11[%c24_164, %c0_165] : memref<304x256xf32, #tpu.memory_space<vmem>>, vector<256x256xf32>
      %c0_166 = arith.constant 0 : index
      %c0_167 = arith.constant 0 : index
      %208 = vector.load %arg13[%c0_166, %c0_167] : memref<256x128xf32, #tpu.memory_space<vmem>>, vector<256x128xf32>
      %c4 = arith.constant 4 : index
      %c0_168 = arith.constant 0 : index
      %c0_169 = arith.constant 0 : index
      %209 = vector.load %arg6[%c4, %c0_168, %c0_169] : memref<9x256x128xf32, #tpu.memory_space<vmem>>, vector<1x256x128xf32>
      %210 = vector.shape_cast %209 : vector<1x256x128xf32> to vector<256x128xf32>
      %cst_170 = arith.constant dense<0.000000e+00> : vector<256x128xf32>
      %211 = tpu.matmul %207, %210, %cst_170 {dimension_numbers = #tpu.dot_dimension_numbers<[1], [0], [0], [1], [0, 0, 1, 1], [], []>} : vector<256x256xf32>, vector<256x128xf32>, vector<256x128xf32> -> vector<256x128xf32>
      %212 = arith.addf %208, %211 : vector<256x128xf32>
      %c0_171 = arith.constant 0 : index
      %c0_172 = arith.constant 0 : index
      %213 = vector.load %arg13[%c0_171, %c0_172] : memref<256x128xf32, #tpu.memory_space<vmem>>, vector<256x128xf32>
      tpu.vector_store %arg13[%c0_171, %c0_172], %212 {strides = array<i32>} : memref<256x128xf32, #tpu.memory_space<vmem>>, vector<256x128xf32>,
      %c25 = arith.constant 25 : index
      %c0_173 = arith.constant 0 : index
      %214 = vector.load %arg11[%c25, %c0_173] : memref<304x256xf32, #tpu.memory_space<vmem>>, vector<256x256xf32>
      %cst_174 = arith.constant 0.000000e+00 : f32
      %215 = vector.shape_cast %20 : vector<256x1xi1> to vector<256x1xi1>
      %216 = vector.broadcast %215 : vector<256x1xi1> to vector<256x256xi1>
      %217 = vector.broadcast %cst_174 : f32 to vector<256x256xf32>
      %218 = arith.select %216, %214, %217 : vector<256x256xi1>, vector<256x256xf32>
      %c0_175 = arith.constant 0 : index
      %c0_176 = arith.constant 0 : index
      %219 = vector.load %arg13[%c0_175, %c0_176] : memref<256x128xf32, #tpu.memory_space<vmem>>, vector<256x128xf32>
      %c5 = arith.constant 5 : index
      %c0_177 = arith.constant 0 : index
      %c0_178 = arith.constant 0 : index
      %220 = vector.load %arg6[%c5, %c0_177, %c0_178] : memref<9x256x128xf32, #tpu.memory_space<vmem>>, vector<1x256x128xf32>
      %221 = vector.shape_cast %220 : vector<1x256x128xf32> to vector<256x128xf32>
      %cst_179 = arith.constant dense<0.000000e+00> : vector<256x128xf32>
      %222 = tpu.matmul %218, %221, %cst_179 {dimension_numbers = #tpu.dot_dimension_numbers<[1], [0], [0], [1], [0, 0, 1, 1], [], []>} : vector<256x256xf32>, vector<256x128xf32>, vector<256x128xf32> -> vector<256x128xf32>
      %223 = arith.addf %219, %222 : vector<256x128xf32>
      %c0_180 = arith.constant 0 : index
      %c0_181 = arith.constant 0 : index
      %224 = vector.load %arg13[%c0_180, %c0_181] : memref<256x128xf32, #tpu.memory_space<vmem>>, vector<256x128xf32>
      tpu.vector_store %arg13[%c0_180, %c0_181], %223 {strides = array<i32>} : memref<256x128xf32, #tpu.memory_space<vmem>>, vector<256x128xf32>,
      %c39 = arith.constant 39 : index
      %c0_182 = arith.constant 0 : index
      %225 = vector.load %arg11[%c39, %c0_182] : memref<304x256xf32, #tpu.memory_space<vmem>>, vector<256x256xf32>
      %cst_183 = arith.constant 0.000000e+00 : f32
      %226 = vector.shape_cast %18 : vector<256x1xi1> to vector<256x1xi1>
      %227 = vector.broadcast %226 : vector<256x1xi1> to vector<256x256xi1>
      %228 = vector.broadcast %cst_183 : f32 to vector<256x256xf32>
      %229 = arith.select %227, %225, %228 : vector<256x256xi1>, vector<256x256xf32>
      %c0_184 = arith.constant 0 : index
      %c0_185 = arith.constant 0 : index
      %230 = vector.load %arg13[%c0_184, %c0_185] : memref<256x128xf32, #tpu.memory_space<vmem>>, vector<256x128xf32>
      %c6 = arith.constant 6 : index
      %c0_186 = arith.constant 0 : index
      %c0_187 = arith.constant 0 : index
      %231 = vector.load %arg6[%c6, %c0_186, %c0_187] : memref<9x256x128xf32, #tpu.memory_space<vmem>>, vector<1x256x128xf32>
      %232 = vector.shape_cast %231 : vector<1x256x128xf32> to vector<256x128xf32>
      %cst_188 = arith.constant dense<0.000000e+00> : vector<256x128xf32>
      %233 = tpu.matmul %229, %232, %cst_188 {dimension_numbers = #tpu.dot_dimension_numbers<[1], [0], [0], [1], [0, 0, 1, 1], [], []>} : vector<256x256xf32>, vector<256x128xf32>, vector<256x128xf32> -> vector<256x128xf32>
      %234 = arith.addf %230, %233 : vector<256x128xf32>
      %c0_189 = arith.constant 0 : index
      %c0_190 = arith.constant 0 : index
      %235 = vector.load %arg13[%c0_189, %c0_190] : memref<256x128xf32, #tpu.memory_space<vmem>>, vector<256x128xf32>
      tpu.vector_store %arg13[%c0_189, %c0_190], %234 {strides = array<i32>} : memref<256x128xf32, #tpu.memory_space<vmem>>, vector<256x128xf32>,
      %c40 = arith.constant 40 : index
      %c0_191 = arith.constant 0 : index
      %236 = vector.load %arg11[%c40, %c0_191] : memref<304x256xf32, #tpu.memory_space<vmem>>, vector<256x256xf32>
      %c0_192 = arith.constant 0 : index
      %c0_193 = arith.constant 0 : index
      %237 = vector.load %arg13[%c0_192, %c0_193] : memref<256x128xf32, #tpu.memory_space<vmem>>, vector<256x128xf32>
      %c7_194 = arith.constant 7 : index
      %c0_195 = arith.constant 0 : index
      %c0_196 = arith.constant 0 : index
      %238 = vector.load %arg6[%c7_194, %c0_195, %c0_196] : memref<9x256x128xf32, #tpu.memory_space<vmem>>, vector<1x256x128xf32>
      %239 = vector.shape_cast %238 : vector<1x256x128xf32> to vector<256x128xf32>
      %cst_197 = arith.constant dense<0.000000e+00> : vector<256x128xf32>
      %240 = tpu.matmul %236, %239, %cst_197 {dimension_numbers = #tpu.dot_dimension_numbers<[1], [0], [0], [1], [0, 0, 1, 1], [], []>} : vector<256x256xf32>, vector<256x128xf32>, vector<256x128xf32> -> vector<256x128xf32>
      %241 = arith.addf %237, %240 : vector<256x128xf32>
      %c0_198 = arith.constant 0 : index
      %c0_199 = arith.constant 0 : index
      %242 = vector.load %arg13[%c0_198, %c0_199] : memref<256x128xf32, #tpu.memory_space<vmem>>, vector<256x128xf32>
      tpu.vector_store %arg13[%c0_198, %c0_199], %241 {strides = array<i32>} : memref<256x128xf32, #tpu.memory_space<vmem>>, vector<256x128xf32>,
      %c41 = arith.constant 41 : index
      %c0_200 = arith.constant 0 : index
      %243 = vector.load %arg11[%c41, %c0_200] : memref<304x256xf32, #tpu.memory_space<vmem>>, vector<256x256xf32>
      %cst_201 = arith.constant 0.000000e+00 : f32
      %244 = vector.shape_cast %20 : vector<256x1xi1> to vector<256x1xi1>
      %245 = vector.broadcast %244 : vector<256x1xi1> to vector<256x256xi1>
      %246 = vector.broadcast %cst_201 : f32 to vector<256x256xf32>
      %247 = arith.select %245, %243, %246 : vector<256x256xi1>, vector<256x256xf32>
      %c0_202 = arith.constant 0 : index
      %c0_203 = arith.constant 0 : index
      %248 = vector.load %arg13[%c0_202, %c0_203] : memref<256x128xf32, #tpu.memory_space<vmem>>, vector<256x128xf32>
      %c8_204 = arith.constant 8 : index
      %c0_205 = arith.constant 0 : index
      %c0_206 = arith.constant 0 : index
      %249 = vector.load %arg6[%c8_204, %c0_205, %c0_206] : memref<9x256x128xf32, #tpu.memory_space<vmem>>, vector<1x256x128xf32>
      %250 = vector.shape_cast %249 : vector<1x256x128xf32> to vector<256x128xf32>
      %cst_207 = arith.constant dense<0.000000e+00> : vector<256x128xf32>
      %251 = tpu.matmul %247, %250, %cst_207 {dimension_numbers = #tpu.dot_dimension_numbers<[1], [0], [0], [1], [0, 0, 1, 1], [], []>} : vector<256x256xf32>, vector<256x128xf32>, vector<256x128xf32> -> vector<256x128xf32>
      %252 = arith.addf %248, %251 : vector<256x128xf32>
      %c0_208 = arith.constant 0 : index
      %c0_209 = arith.constant 0 : index
      %253 = vector.load %arg13[%c0_208, %c0_209] : memref<256x128xf32, #tpu.memory_space<vmem>>, vector<256x128xf32>
      tpu.vector_store %arg13[%c0_208, %c0_209], %252 {strides = array<i32>} : memref<256x128xf32, #tpu.memory_space<vmem>>, vector<256x128xf32>,
      %c0_210 = arith.constant 0 : index
      %c0_211 = arith.constant 0 : index
      %254 = vector.load %arg13[%c0_210, %c0_211] : memref<256x128xf32, #tpu.memory_space<vmem>>, vector<256x128xf32>
      %c0_212 = arith.constant 0 : index
      %c0_213 = arith.constant 0 : index
      %255 = vector.load %arg7[%c0_212, %c0_213] : memref<1x128xf32, #tpu.memory_space<vmem>>, vector<1x128xf32>
      %256 = vector.broadcast %255 : vector<1x128xf32> to vector<256x128xf32>
      %257 = arith.addf %254, %256 : vector<256x128xf32>
      %cst_214 = arith.constant 0.000000e+00 : f32
      %258 = vector.broadcast %cst_214 : f32 to vector<256x128xf32>
      %259 = arith.maximumf %257, %258 : vector<256x128xf32>
      %c24_215 = arith.constant 24 : index
      %c0_216 = arith.constant 0 : index
      %260 = vector.load %arg12[%c24_215, %c0_216] : memref<304x128xf32, #tpu.memory_space<vmem>>, vector<256x128xf32>
      tpu.vector_store %arg12[%c24_215, %c0_216], %259 {strides = array<i32>} : memref<304x128xf32, #tpu.memory_space<vmem>>, vector<256x128xf32>,
    } else {
    }
    %cst = arith.constant 0.000000e+00 : f32
    %24 = vector.broadcast %cst : f32 to vector<256x128xf32>
    %c0 = arith.constant 0 : index
    %c0_6 = arith.constant 0 : index
    %25 = vector.load %arg13[%c0, %c0_6] : memref<256x128xf32, #tpu.memory_space<vmem>>, vector<256x128xf32>
    tpu.vector_store %arg13[%c0, %c0_6], %24 {strides = array<i32>} : memref<256x128xf32, #tpu.memory_space<vmem>>, vector<256x128xf32>,
    %c16_i32_7 = arith.constant 16 : i32
    %26 = arith.muli %arg1, %c16_i32_7 : i32
    %c8_i32 = arith.constant 8 : i32
    %27 = arith.addi %c8_i32, %26 : i32
    %c-1_i32 = arith.constant -1 : i32
    %28 = arith.addi %27, %c-1_i32 : i32
    %c1_i32_8 = arith.constant 1 : i32
    %29 = arith.addi %arg1, %c1_i32_8 : i32
    %c16_i32_9 = arith.constant 16 : i32
    %30 = arith.muli %29, %c16_i32_9 : i32
    %c8_i32_10 = arith.constant 8 : i32
    %31 = arith.addi %c8_i32_10, %30 : i32
    %c-1_i32_11 = arith.constant -1 : i32
    %32 = arith.addi %31, %c-1_i32_11 : i32
    %33 = arith.index_cast %28 : i32 to index
    %c0_12 = arith.constant 0 : index
    %34 = vector.load %arg12[%33, %c0_12] : memref<304x128xf32, #tpu.memory_space<vmem>>, vector<256x128xf32>
    %35 = arith.index_cast %32 : i32 to index
    %c0_13 = arith.constant 0 : index
    %36 = vector.load %arg12[%35, %c0_13] : memref<304x128xf32, #tpu.memory_space<vmem>>, vector<256x128xf32>
    %37 = tpu.concatenate %34, %36 in 1 : vector<256x128xf32>, vector<256x128xf32> -> vector<256x256xf32>
    %cst_14 = arith.constant 0.000000e+00 : f32
    %38 = vector.shape_cast %18 : vector<256x1xi1> to vector<256x1xi1>
    %39 = vector.broadcast %38 : vector<256x1xi1> to vector<256x256xi1>
    %40 = vector.broadcast %cst_14 : f32 to vector<256x256xf32>
    %41 = arith.select %39, %37, %40 : vector<256x256xi1>, vector<256x256xf32>
    %c0_15 = arith.constant 0 : index
    %c0_16 = arith.constant 0 : index
    %42 = vector.load %arg13[%c0_15, %c0_16] : memref<256x128xf32, #tpu.memory_space<vmem>>, vector<256x128xf32>
    %c4_i32 = arith.constant 4 : i32
    %43 = arith.muli %arg1, %c4_i32 : i32
    %c0_i32_17 = arith.constant 0 : i32
    %44 = arith.addi %43, %c0_i32_17 : i32
    %c0_i32_18 = arith.constant 0 : i32
    %45 = arith.addi %44, %c0_i32_18 : i32
    %46 = arith.index_cast %45 : i32 to index
    %c0_19 = arith.constant 0 : index
    %c0_20 = arith.constant 0 : index
    %47 = vector.load %arg8[%46, %c0_19, %c0_20] : memref<8x256x128xf32, #tpu.memory_space<vmem>>, vector<1x256x128xf32>
    %48 = vector.shape_cast %47 : vector<1x256x128xf32> to vector<256x128xf32>
    %cst_21 = arith.constant dense<0.000000e+00> : vector<256x128xf32>
    %49 = tpu.matmul %41, %48, %cst_21 {dimension_numbers = #tpu.dot_dimension_numbers<[1], [0], [0], [1], [0, 0, 1, 1], [], []>} : vector<256x256xf32>, vector<256x128xf32>, vector<256x128xf32> -> vector<256x128xf32>
    %50 = arith.addf %42, %49 : vector<256x128xf32>
    %c0_22 = arith.constant 0 : index
    %c0_23 = arith.constant 0 : index
    %51 = vector.load %arg13[%c0_22, %c0_23] : memref<256x128xf32, #tpu.memory_space<vmem>>, vector<256x128xf32>
    tpu.vector_store %arg13[%c0_22, %c0_23], %50 {strides = array<i32>} : memref<256x128xf32, #tpu.memory_space<vmem>>, vector<256x128xf32>,
    %c16_i32_24 = arith.constant 16 : i32
    %52 = arith.muli %arg1, %c16_i32_24 : i32
    %c8_i32_25 = arith.constant 8 : i32
    %53 = arith.addi %c8_i32_25, %52 : i32
    %c0_i32_26 = arith.constant 0 : i32
    %54 = arith.addi %53, %c0_i32_26 : i32
    %c1_i32_27 = arith.constant 1 : i32
    %55 = arith.addi %arg1, %c1_i32_27 : i32
    %c16_i32_28 = arith.constant 16 : i32
    %56 = arith.muli %55, %c16_i32_28 : i32
    %c8_i32_29 = arith.constant 8 : i32
    %57 = arith.addi %c8_i32_29, %56 : i32
    %c0_i32_30 = arith.constant 0 : i32
    %58 = arith.addi %57, %c0_i32_30 : i32
    %59 = tpu.assume_multiple %54, 8 : i32
    %60 = tpu.assume_multiple %58, 8 : i32
    %61 = arith.index_cast %59 : i32 to index
    %c0_31 = arith.constant 0 : index
    %62 = vector.load %arg12[%61, %c0_31] : memref<304x128xf32, #tpu.memory_space<vmem>>, vector<256x128xf32>
    %63 = arith.index_cast %60 : i32 to index
    %c0_32 = arith.constant 0 : index
    %64 = vector.load %arg12[%63, %c0_32] : memref<304x128xf32, #tpu.memory_space<vmem>>, vector<256x128xf32>
    %65 = tpu.concatenate %62, %64 in 1 : vector<256x128xf32>, vector<256x128xf32> -> vector<256x256xf32>
    %c0_33 = arith.constant 0 : index
    %c0_34 = arith.constant 0 : index
    %66 = vector.load %arg13[%c0_33, %c0_34] : memref<256x128xf32, #tpu.memory_space<vmem>>, vector<256x128xf32>
    %c4_i32_35 = arith.constant 4 : i32
    %67 = arith.muli %arg1, %c4_i32_35 : i32
    %c0_i32_36 = arith.constant 0 : i32
    %68 = arith.addi %67, %c0_i32_36 : i32
    %c1_i32_37 = arith.constant 1 : i32
    %69 = arith.addi %68, %c1_i32_37 : i32
    %70 = arith.index_cast %69 : i32 to index
    %c0_38 = arith.constant 0 : index
    %c0_39 = arith.constant 0 : index
    %71 = vector.load %arg8[%70, %c0_38, %c0_39] : memref<8x256x128xf32, #tpu.memory_space<vmem>>, vector<1x256x128xf32>
    %72 = vector.shape_cast %71 : vector<1x256x128xf32> to vector<256x128xf32>
    %cst_40 = arith.constant dense<0.000000e+00> : vector<256x128xf32>
    %73 = tpu.matmul %65, %72, %cst_40 {dimension_numbers = #tpu.dot_dimension_numbers<[1], [0], [0], [1], [0, 0, 1, 1], [], []>} : vector<256x256xf32>, vector<256x128xf32>, vector<256x128xf32> -> vector<256x128xf32>
    %74 = arith.addf %66, %73 : vector<256x128xf32>
    %c0_41 = arith.constant 0 : index
    %c0_42 = arith.constant 0 : index
    %75 = vector.load %arg13[%c0_41, %c0_42] : memref<256x128xf32, #tpu.memory_space<vmem>>, vector<256x128xf32>
    tpu.vector_store %arg13[%c0_41, %c0_42], %74 {strides = array<i32>} : memref<256x128xf32, #tpu.memory_space<vmem>>, vector<256x128xf32>,
    %c0_43 = arith.constant 0 : index
    %c0_44 = arith.constant 0 : index
    %76 = vector.load %arg13[%c0_43, %c0_44] : memref<256x128xf32, #tpu.memory_space<vmem>>, vector<256x128xf32>
    %c0_45 = arith.constant 0 : index
    %c0_46 = arith.constant 0 : index
    %77 = vector.load %arg9[%c0_45, %c0_46] : memref<1x128xf32, #tpu.memory_space<vmem>>, vector<1x128xf32>
    %78 = vector.broadcast %77 : vector<1x128xf32> to vector<256x128xf32>
    %79 = arith.addf %76, %78 : vector<256x128xf32>
    %80 = vector.shape_cast %79 : vector<256x128xf32> to vector<16x16x128xf32>
    %c0_47 = arith.constant 0 : index
    %c0_48 = arith.constant 0 : index
    %c0_49 = arith.constant 0 : index
    %c0_50 = arith.constant 0 : index
    %c0_51 = arith.constant 0 : index
    %81 = vector.load %arg10[%c0_47, %c0_48, %c0_49, %c0_50, %c0_51] : memref<1x16x1x16x256xf32, #tpu.memory_space<vmem>>, vector<1x16x1x16x128xf32>
    %82 = vector.shape_cast %81 : vector<1x16x1x16x128xf32> to vector<16x16x128xf32>
    %83 = vector.shape_cast %80 : vector<16x16x128xf32> to vector<1x16x1x16x128xf32>
    tpu.vector_store %arg10[%c0_47, %c0_48, %c0_49, %c0_50, %c0_51], %83 {strides = array<i32>} : memref<1x16x1x16x256xf32, #tpu.memory_space<vmem>>, vector<1x16x1x16x128xf32>,
    %cst_52 = arith.constant 0.000000e+00 : f32
    %84 = vector.broadcast %cst_52 : f32 to vector<256x128xf32>
    %c0_53 = arith.constant 0 : index
    %c0_54 = arith.constant 0 : index
    %85 = vector.load %arg13[%c0_53, %c0_54] : memref<256x128xf32, #tpu.memory_space<vmem>>, vector<256x128xf32>
    tpu.vector_store %arg13[%c0_53, %c0_54], %84 {strides = array<i32>} : memref<256x128xf32, #tpu.memory_space<vmem>>, vector<256x128xf32>,
    %c16_i32_55 = arith.constant 16 : i32
    %86 = arith.muli %arg1, %c16_i32_55 : i32
    %c8_i32_56 = arith.constant 8 : i32
    %87 = arith.addi %c8_i32_56, %86 : i32
    %c0_i32_57 = arith.constant 0 : i32
    %88 = arith.addi %87, %c0_i32_57 : i32
    %c1_i32_58 = arith.constant 1 : i32
    %89 = arith.addi %arg1, %c1_i32_58 : i32
    %c16_i32_59 = arith.constant 16 : i32
    %90 = arith.muli %89, %c16_i32_59 : i32
    %c8_i32_60 = arith.constant 8 : i32
    %91 = arith.addi %c8_i32_60, %90 : i32
    %c0_i32_61 = arith.constant 0 : i32
    %92 = arith.addi %91, %c0_i32_61 : i32
    %93 = tpu.assume_multiple %88, 8 : i32
    %94 = tpu.assume_multiple %92, 8 : i32
    %95 = arith.index_cast %93 : i32 to index
    %c0_62 = arith.constant 0 : index
    %96 = vector.load %arg12[%95, %c0_62] : memref<304x128xf32, #tpu.memory_space<vmem>>, vector<256x128xf32>
    %97 = arith.index_cast %94 : i32 to index
    %c0_63 = arith.constant 0 : index
    %98 = vector.load %arg12[%97, %c0_63] : memref<304x128xf32, #tpu.memory_space<vmem>>, vector<256x128xf32>
    %99 = tpu.concatenate %96, %98 in 1 : vector<256x128xf32>, vector<256x128xf32> -> vector<256x256xf32>
    %c0_64 = arith.constant 0 : index
    %c0_65 = arith.constant 0 : index
    %100 = vector.load %arg13[%c0_64, %c0_65] : memref<256x128xf32, #tpu.memory_space<vmem>>, vector<256x128xf32>
    %c4_i32_66 = arith.constant 4 : i32
    %101 = arith.muli %arg1, %c4_i32_66 : i32
    %c2_i32 = arith.constant 2 : i32
    %102 = arith.addi %101, %c2_i32 : i32
    %c0_i32_67 = arith.constant 0 : i32
    %103 = arith.addi %102, %c0_i32_67 : i32
    %104 = arith.index_cast %103 : i32 to index
    %c0_68 = arith.constant 0 : index
    %c0_69 = arith.constant 0 : index
    %105 = vector.load %arg8[%104, %c0_68, %c0_69] : memref<8x256x128xf32, #tpu.memory_space<vmem>>, vector<1x256x128xf32>
    %106 = vector.shape_cast %105 : vector<1x256x128xf32> to vector<256x128xf32>
    %cst_70 = arith.constant dense<0.000000e+00> : vector<256x128xf32>
    %107 = tpu.matmul %99, %106, %cst_70 {dimension_numbers = #tpu.dot_dimension_numbers<[1], [0], [0], [1], [0, 0, 1, 1], [], []>} : vector<256x256xf32>, vector<256x128xf32>, vector<256x128xf32> -> vector<256x128xf32>
    %108 = arith.addf %100, %107 : vector<256x128xf32>
    %c0_71 = arith.constant 0 : index
    %c0_72 = arith.constant 0 : index
    %109 = vector.load %arg13[%c0_71, %c0_72] : memref<256x128xf32, #tpu.memory_space<vmem>>, vector<256x128xf32>
    tpu.vector_store %arg13[%c0_71, %c0_72], %108 {strides = array<i32>} : memref<256x128xf32, #tpu.memory_space<vmem>>, vector<256x128xf32>,
    %c16_i32_73 = arith.constant 16 : i32
    %110 = arith.muli %arg1, %c16_i32_73 : i32
    %c8_i32_74 = arith.constant 8 : i32
    %111 = arith.addi %c8_i32_74, %110 : i32
    %c1_i32_75 = arith.constant 1 : i32
    %112 = arith.addi %111, %c1_i32_75 : i32
    %c1_i32_76 = arith.constant 1 : i32
    %113 = arith.addi %arg1, %c1_i32_76 : i32
    %c16_i32_77 = arith.constant 16 : i32
    %114 = arith.muli %113, %c16_i32_77 : i32
    %c8_i32_78 = arith.constant 8 : i32
    %115 = arith.addi %c8_i32_78, %114 : i32
    %c1_i32_79 = arith.constant 1 : i32
    %116 = arith.addi %115, %c1_i32_79 : i32
    %117 = arith.index_cast %112 : i32 to index
    %c0_80 = arith.constant 0 : index
    %118 = vector.load %arg12[%117, %c0_80] : memref<304x128xf32, #tpu.memory_space<vmem>>, vector<256x128xf32>
    %119 = arith.index_cast %116 : i32 to index
    %c0_81 = arith.constant 0 : index
    %120 = vector.load %arg12[%119, %c0_81] : memref<304x128xf32, #tpu.memory_space<vmem>>, vector<256x128xf32>
    %121 = tpu.concatenate %118, %120 in 1 : vector<256x128xf32>, vector<256x128xf32> -> vector<256x256xf32>
    %cst_82 = arith.constant 0.000000e+00 : f32
    %122 = vector.shape_cast %20 : vector<256x1xi1> to vector<256x1xi1>
    %123 = vector.broadcast %122 : vector<256x1xi1> to vector<256x256xi1>
    %124 = vector.broadcast %cst_82 : f32 to vector<256x256xf32>
    %125 = arith.select %123, %121, %124 : vector<256x256xi1>, vector<256x256xf32>
    %c0_83 = arith.constant 0 : index
    %c0_84 = arith.constant 0 : index
    %126 = vector.load %arg13[%c0_83, %c0_84] : memref<256x128xf32, #tpu.memory_space<vmem>>, vector<256x128xf32>
    %c4_i32_85 = arith.constant 4 : i32
    %127 = arith.muli %arg1, %c4_i32_85 : i32
    %c2_i32_86 = arith.constant 2 : i32
    %128 = arith.addi %127, %c2_i32_86 : i32
    %c1_i32_87 = arith.constant 1 : i32
    %129 = arith.addi %128, %c1_i32_87 : i32
    %130 = arith.index_cast %129 : i32 to index
    %c0_88 = arith.constant 0 : index
    %c0_89 = arith.constant 0 : index
    %131 = vector.load %arg8[%130, %c0_88, %c0_89] : memref<8x256x128xf32, #tpu.memory_space<vmem>>, vector<1x256x128xf32>
    %132 = vector.shape_cast %131 : vector<1x256x128xf32> to vector<256x128xf32>
    %cst_90 = arith.constant dense<0.000000e+00> : vector<256x128xf32>
    %133 = tpu.matmul %125, %132, %cst_90 {dimension_numbers = #tpu.dot_dimension_numbers<[1], [0], [0], [1], [0, 0, 1, 1], [], []>} : vector<256x256xf32>, vector<256x128xf32>, vector<256x128xf32> -> vector<256x128xf32>
    %134 = arith.addf %126, %133 : vector<256x128xf32>
    %c0_91 = arith.constant 0 : index
    %c0_92 = arith.constant 0 : index
    %135 = vector.load %arg13[%c0_91, %c0_92] : memref<256x128xf32, #tpu.memory_space<vmem>>, vector<256x128xf32>
    tpu.vector_store %arg13[%c0_91, %c0_92], %134 {strides = array<i32>} : memref<256x128xf32, #tpu.memory_space<vmem>>, vector<256x128xf32>,
    %c0_93 = arith.constant 0 : index
    %c0_94 = arith.constant 0 : index
    %136 = vector.load %arg13[%c0_93, %c0_94] : memref<256x128xf32, #tpu.memory_space<vmem>>, vector<256x128xf32>
    %c0_95 = arith.constant 0 : index
    %c0_96 = arith.constant 0 : index
    %137 = vector.load %arg9[%c0_95, %c0_96] : memref<1x128xf32, #tpu.memory_space<vmem>>, vector<1x128xf32>
    %138 = vector.broadcast %137 : vector<1x128xf32> to vector<256x128xf32>
    %139 = arith.addf %136, %138 : vector<256x128xf32>
    %140 = vector.shape_cast %139 : vector<256x128xf32> to vector<16x16x128xf32>
    %c0_97 = arith.constant 0 : index
    %c0_98 = arith.constant 0 : index
    %c0_99 = arith.constant 0 : index
    %c0_100 = arith.constant 0 : index
    %c128 = arith.constant 128 : index
    %141 = vector.load %arg10[%c0_97, %c0_98, %c0_99, %c0_100, %c128] : memref<1x16x1x16x256xf32, #tpu.memory_space<vmem>>, vector<1x16x1x16x128xf32>
    %142 = vector.shape_cast %141 : vector<1x16x1x16x128xf32> to vector<16x16x128xf32>
    %143 = vector.shape_cast %140 : vector<16x16x128xf32> to vector<1x16x1x16x128xf32>
    tpu.vector_store %arg10[%c0_97, %c0_98, %c0_99, %c0_100, %c128], %143 {strides = array<i32>} : memref<1x16x1x16x256xf32, #tpu.memory_space<vmem>>, vector<1x16x1x16x128xf32>,
    return
  }
  func.func @transform_0(%arg0: i32, %arg1: i32) -> (i32, i32, i32) {
    %c0_i32 = arith.constant 0 : i32
    %c0_i32_0 = arith.constant 0 : i32
    %c0_i32_1 = arith.constant 0 : i32
    return %arg0, %c0_i32, %c0_i32_0 : i32, i32, i32
  }
  func.func @transform_1(%arg0: i32, %arg1: i32) -> (i32, i32, i32) {
    %c0_i32 = arith.constant 0 : i32
    %c0_i32_0 = arith.constant 0 : i32
    %c0_i32_1 = arith.constant 0 : i32
    return %arg0, %c0_i32, %c0_i32_0 : i32, i32, i32
  }
  func.func @transform_2(%arg0: i32, %arg1: i32) -> (i32, i32) {
    %c0_i32 = arith.constant 0 : i32
    %c0_i32_0 = arith.constant 0 : i32
    %c0_i32_1 = arith.constant 0 : i32
    return %c0_i32, %c0_i32_0 : i32, i32
  }
  func.func @transform_3(%arg0: i32, %arg1: i32) -> (i32, i32) {
    %c0_i32 = arith.constant 0 : i32
    %c0_i32_0 = arith.constant 0 : i32
    %c0_i32_1 = arith.constant 0 : i32
    return %c0_i32, %c0_i32_0 : i32, i32
  }
  func.func @transform_4(%arg0: i32, %arg1: i32) -> (i32, i32, i32) {
    %c0_i32 = arith.constant 0 : i32
    %c0_i32_0 = arith.constant 0 : i32
    %c0_i32_1 = arith.constant 0 : i32
    %c0_i32_2 = arith.constant 0 : i32
    return %c0_i32, %c0_i32_0, %c0_i32_1 : i32, i32, i32
  }
  func.func @transform_5(%arg0: i32, %arg1: i32) -> (i32, i32) {
    %c0_i32 = arith.constant 0 : i32
    %c0_i32_0 = arith.constant 0 : i32
    %c0_i32_1 = arith.constant 0 : i32
    return %c0_i32, %c0_i32_0 : i32, i32
  }
  func.func @transform_6(%arg0: i32, %arg1: i32) -> (i32, i32, i32) {
    %c0_i32 = arith.constant 0 : i32
    %c0_i32_0 = arith.constant 0 : i32
    %c0_i32_1 = arith.constant 0 : i32
    %c0_i32_2 = arith.constant 0 : i32
    return %c0_i32, %c0_i32_0, %c0_i32_1 : i32, i32, i32
  }
  func.func @transform_7(%arg0: i32, %arg1: i32) -> (i32, i32) {
    %c0_i32 = arith.constant 0 : i32
    %c0_i32_0 = arith.constant 0 : i32
    %c0_i32_1 = arith.constant 0 : i32
    return %c0_i32, %c0_i32_0 : i32, i32
  }
  func.func @transform_8(%arg0: i32, %arg1: i32) -> (i32, i32, i32, i32, i32) {
    %c0_i32 = arith.constant 0 : i32
    %c0_i32_0 = arith.constant 0 : i32
    %c0_i32_1 = arith.constant 0 : i32
    %c0_i32_2 = arith.constant 0 : i32
    return %arg0, %c0_i32, %arg1, %c0_i32_0, %c0_i32_1 : i32, i32, i32, i32, i32
  }
}

</mosaic_0001>

<bundles_post_ra>
// kernel: a_call__.1
= control target key start
LH: loop header
LB: loop body
LE: loop exit
PB: predicated region body
PF: predicated region fallthrough
CT: control target
= control target key end

     0   :  { %s16282_s0 = inlined_call_operand.hbm [shape: f32[2,256,128], index: 0, kind: input, shape index: {}]   ;;  %s16283_s1 = inlined_call_operand.hbm [shape: f32[2,256,128], index: 1, kind: input, shape index: {}]   ;;  %s16284_s2 = inlined_call_operand.hbm [shape: f32[256,256], index: 2, kind: input, shape index: {}]   ;;  %s16285_s3 = inlined_call_operand.hbm [shape: f32[1,256], index: 3, kind: input, shape index: {}]   ;;  %s16286_s4 = inlined_call_operand.hbm [shape: f32[9,256,128], index: 4, kind: input, shape index: {}]   ;;  %s16287_s5 = inlined_call_operand.hbm [shape: f32[1,128], index: 5, kind: input, shape index: {}]   ;;  %s16288_s6 = inlined_call_operand.hbm [shape: f32[8,256,128], index: 6, kind: input, shape index: {}]   ;;  %s16289_s7 = inlined_call_operand.hbm [shape: f32[1,128], index: 7, kind: input, shape index: {}]   ;;  %s16290_s8 = inlined_call_operand.vmem [shape: f32[2,16,2,16,256], index: 8, kind: output, shape index: {}]  }
   0x1   :  { %16483 = sst [smem:[#allocation72_spill]] %s16282_s0 }
   0x2   :  { %16484 = sst [smem:[#allocation73_spill]] %s16283_s1 }
   0x3   :  { %16485 = sst [smem:[#allocation74_spill]] %s16284_s2 }
   0x4   :  { %16486 = sst [smem:[#allocation75_spill]] %s16285_s3 }
   0x5   :  { %16487 = sst [smem:[#allocation76_spill]] %s16286_s4 }
   0x6   :  { %16488 = sst [smem:[#allocation77_spill]] %s16287_s5 }
   0x7   :  { %16489 = sst [smem:[#allocation78_spill]] %s16288_s6 }
   0x8   :  { %16490 = sst [smem:[#allocation79_spill]] %s16289_s7 }
   0x9   :  { %16491 = sst [smem:[#allocation80_spill]] %s16290_s8 }
   0xa   :  { %13 = vsyncpa [#allocation6], 0 }
   0xb   :  { %15 = vsyncpa [#allocation6 + $0x1], 0 }
   0xc   :  { %16 = vsyncpa [#allocation8], 0 }
   0xd   :  { %18 = vsyncpa [#allocation8 + $0x1], 0 }
   0xe   :  { %19 = vsyncpa [#allocation11], 0 }
   0xf   :  { %20 = vsyncpa [#allocation14], 0 }
  0x10   :  { %21 = vsyncpa [#allocation17], 0  ;;  %s12763_s27 = smov 0   ;;  %s12765_s28 = smov 0  }
  0x11   :  { %s12767_s29 = smov 0   ;;  %s12769_s30 = smov 0  }
  0x12   :  { %s12771_s9 = smov 0   ;;  %s12773_s10 = smov 0  }
  0x13   :  { %s12775_s11 = smov 0   ;;  %s12777_s12 = smov 0  }
  0x14   :  { %s12779_s13 = smov 0   ;;  %s12781_s14 = smov 0  }
  0x15 LB: > { %16492 = sst [smem:[#allocation25_spill]] %s12685_s10  ;;  %s12814_s15 = sadd.s32 4294967295, %s12701_s14   ;;  %s12701_s14 = sphi %s12781_s14, %s27_s14   ;;  %s12697_s13 = sphi %s12779_s13, %s16968_s13   ;;  %s12693_s12 = sphi %s12777_s12, %s16967_s12   ;;  %s12689_s11 = sphi %s12775_s11, %s16966_s11   ;;  %s12685_s10 = sphi %s12773_s10, %s16965_s10   ;;  %s12681_s9 = sphi %s12771_s9, %s16964_s9   ;;  %s12677_s30 = sphi %s12769_s30, %s16963_s30   ;;  %s12673_s29 = sphi %s12767_s29, %s16962_s29   ;;  %s12669_s28 = sphi %s12765_s28, %s16961_s28   ;;  %s12665_s27 = sphi %s12763_s27, %s16960_s27  }
  0x16   : > { %16493 = sst [smem:[#allocation26_spill]] %s12689_s11  ;;  %p10057_p0 = scmp.ge.s32.totalorder %s12701_s14, 1 }
  0x17   : > { %p16295_p1 = scmp.eq.s32.totalorder %s12814_s15, 0  ;;  %p250_p3 = scmp.lt.s32.totalorder %s12701_s14, 5 }
  0x18   : > { %s12703_s17 = smov [#allocation9]   ;;  %s12704_s20 = smov [#allocation10]  }
  0x19   : > { %p12820_p4 = pnand %p10057_p0, %p250_p3  ;;  %s262_s18 = sshll.u32 %s12703_s17, 4  ;;  %s12824_s18 = int_to_ptr.vmem [resolvable:$true] %s262_s18 }
  0x1a   : > { %s276_s21 = sshll.u32 %s12704_s20, 4  ;;  %s12705_s22 = smov [#allocation13]   ;;  %s12834_s21 = int_to_ptr.vmem [resolvable:$true] %s276_s21 }
  0x1b   : > { %s16494_s16 = scalar_select %p12820_p4, 1, 0 }
  0x1c   : > { %p12235_p5 = pneg %p12820_p4  ;;  %s300_s23 = sshll.u32 %s12705_s22, 4  ;;  %s12836_s23 = int_to_ptr.vmem [resolvable:$true] %s300_s23 }
  0x1d   : > { %16495 = sst [smem:[#allocation27_spill]] %s16494_s16  ;;  %s16497_s2 = sld [smem:[#allocation74_spill]] }
  0x1e   : > { %p12830_p6 = pnand %p12235_p5, %p16295_p1 }
  0x20   : > { %p12846_p8 = pneg %p12830_p6 }
  0x23   : > { %s12371_s26 = scalar_lea.hbm %s16497_s2, 8192 }
  0x24   : > { %p12372_p7 = scmp.ne.s32.totalorder %s16497_s2, %s12371_s26  ;;  %p12378_p11 = scmp.lt.u32.totalorder %s12371_s26, %s16497_s2 }
  0x26   : > { %p12374_p9 = pnand %p12846_p8, %p12372_p7 }
  0x28   : > { %p12375_p10 = pneg %p12374_p9 }
  0x2a   : > { %p12380_p12 = pnand %p12378_p11, %p12375_p10 }
  0x2c   : > { %12383 = shalt.err (!%p12380_p12)
}
  0x2d   : > { %s12384_s8 = scalar_lea.vmem %s12824_s18, 8192  ;;  %p12392_p5 = scmp.lt.s32.totalorder %s12824_s18, %s12824_s18 }
  0x2e   : > { %p12385_p13 = scmp.ne.s32.totalorder %s12824_s18, %s12384_s8  ;;  %p12393_p2 = scmp.lt.s32.totalorder %s12384_s8, %s12384_s8 }
  0x30   : > { %p12387_p0 = pnand %p12385_p13, %p12846_p8  ;;  %p12394_p7 = por %p12393_p2, %p12392_p5 }
  0x32   : > { %p12388_p3 = pneg %p12387_p0 }
  0x34   : > { %p12395_p9 = pnand %p12394_p7, %p12388_p3 }
  0x36   : > { %12398 = shalt.err (!%p12395_p9)
}
  0x37   : > { %s12706_s24 = smov 256   ;;  %s12707_s25 = smov 16  }
  0x38   : > { %12238 = dma.hbm_to_vmem [thread:$0]  (!%p12830_p6), %s16497_s2, 8192, %s12824_s18, [#allocation8], %s12706_s24, %s12706_s24, %s12707_s25  }
  0x39   : > { %s16499_s3 = sld [smem:[#allocation75_spill]] }
  0x3f   : > { %s12399_s10 = scalar_lea.hbm %s16499_s3, 32 }
  0x40   : > { %p12400_p2 = scmp.ne.s32.totalorder %s16499_s3, %s12399_s10  ;;  %p12406_p12 = scmp.lt.u32.totalorder %s12399_s10, %s16499_s3 }
  0x42   : > { %p12402_p10 = pnand %p12400_p2, %p12846_p8 }
  0x44   : > { %p12403_p11 = pneg %p12402_p10 }
  0x46   : > { %p12408_p13 = pnand %p12406_p12, %p12403_p11 }
  0x48   : > { %12411 = shalt.err (!%p12408_p13)
}
  0x49   : > { %s12412_s18 = scalar_lea.vmem %s12834_s21, 32  ;;  %p12420_p7 = scmp.lt.s32.totalorder %s12834_s21, %s12834_s21 }
  0x4a   : > { %p12413_p0 = scmp.ne.s32.totalorder %s12834_s21, %s12412_s18  ;;  %p12421_p9 = scmp.lt.s32.totalorder %s12412_s18, %s12412_s18 }
  0x4c   : > { %p12415_p3 = pnand %p12413_p0, %p12846_p8  ;;  %p12422_p2 = por %p12421_p9, %p12420_p7 }
  0x4e   : > { %p12416_p5 = pneg %p12415_p3 }
  0x50   : > { %p12423_p10 = pnand %p12422_p2, %p12416_p5 }
  0x52   : > { %12426 = shalt.err (!%p12423_p10)
}
  0x53   : > { %12241 = dma.hbm_to_vmem [thread:$0]  (!%p12830_p6), %s16499_s3, 32, %s12834_s21, [#allocation11]  }
  0x54   : > { %s16500_s5 = sld [smem:[#allocation77_spill]] }
  0x5a   : > { %s12427_s24 = scalar_lea.hbm %s16500_s5, 16 }
  0x5b   : > { %p12428_p11 = scmp.ne.s32.totalorder %s16500_s5, %s12427_s24  ;;  %p12434_p0 = scmp.lt.u32.totalorder %s12427_s24, %s16500_s5 }
  0x5d   : > { %p12430_p12 = pnand %p12428_p11, %p12846_p8 }
  0x5f   : > { %p12431_p13 = pneg %p12430_p12 }
  0x61   : > { %p12436_p3 = pnand %p12434_p0, %p12431_p13 }
  0x63   : > { %12439 = shalt.err (!%p12436_p3)
}
  0x64   : > { %s12440_s21 = scalar_lea.vmem %s12836_s23, 16  ;;  %s12447_s22 = scalar_lea.vmem %s12836_s23, 32 }
  0x65   : > { %p12441_p5 = scmp.ne.s32.totalorder %s12836_s23, %s12440_s21  ;;  %p12448_p2 = scmp.lt.s32.totalorder %s12836_s23, %s12836_s23 }
  0x66   : > { %p12449_p10 = scmp.lt.s32.totalorder %s12447_s22, %s12440_s21 }
  0x67   : > { %p12443_p7 = pnand %p12441_p5, %p12846_p8 }
  0x68   : > { %p12450_p11 = por %p12449_p10, %p12448_p2 }
  0x69   : > { %p12444_p9 = pneg %p12443_p7 }
  0x6b   : > { %p12451_p12 = pnand %p12450_p11, %p12444_p9 }
  0x6d   : > { %12454 = shalt.err (!%p12451_p12)
}
  0x6e   : > { %12247 = dma.hbm_to_vmem [thread:$0]  (!%p12830_p6), %s16500_s5, 16, %s12836_s23, [#allocation14]  }
  0x6f   : > { %s12708_s0 = smov [#allocation12]   ;;  %s16501_s4 = sld [smem:[#allocation76_spill]] }
  0x70   : > { %s286_s1 = sshll.u32 %s12708_s0, 4  ;;  %s287_s1 = int_to_ptr.vmem [resolvable:$true] %s286_s1 }
  0x75   : > { %s12455_s24 = scalar_lea.hbm %s16501_s4, 36864 }
  0x76   : > { %p12456_p13 = scmp.ne.s32.totalorder %s16501_s4, %s12455_s24  ;;  %p12462_p5 = scmp.lt.u32.totalorder %s12455_s24, %s16501_s4 }
  0x78   : > { %p12458_p0 = pnand %p12456_p13, %p12846_p8 }
  0x7a   : > { %p12459_p3 = pneg %p12458_p0 }
  0x7c   : > { %p12464_p7 = pnand %p12462_p5, %p12459_p3 }
  0x7e   : > { %12467 = shalt.err (!%p12464_p7)
}
  0x7f   : > { %s12468_s23 = scalar_lea.vmem %s287_s1, 36864  ;;  %p12476_p11 = scmp.lt.s32.totalorder %s287_s1, %s287_s1 }
  0x80   : > { %p12469_p9 = scmp.ne.s32.totalorder %s287_s1, %s12468_s23  ;;  %p12477_p12 = scmp.lt.s32.totalorder %s12468_s23, %s12468_s23 }
  0x82   : > { %p12471_p2 = pnand %p12469_p9, %p12846_p8  ;;  %p12478_p1 = por %p12477_p12, %p12476_p11 }
  0x84   : > { %p12472_p10 = pneg %p12471_p2 }
  0x86   : > { %p12479_p4 = pnand %p12478_p1, %p12472_p10 }
  0x88   : > { %12482 = shalt.err (!%p12479_p4)
}
  0x89   : > { %s16297_s21 = smov 128   ;;  %s16299_s22 = smov 8  }
  0x8a   : > { %12244 = dma.hbm_to_vmem [thread:$0]  (!%p12830_p6), %s16501_s4, 36864, %s287_s1, [#allocation11], %s16297_s21, %s16297_s21, %s16299_s22  }
  0x8b   : > { %s12711_s0 = smov [#allocation15]   ;;  %s12712_s16 = smov [#allocation16]  }
  0x8c   : > { %s310_s10 = sshll.u32 %s12711_s0, 4  ;;  %s324_s24 = sshll.u32 %s12712_s16, 4  ;;  %s311_s10 = int_to_ptr.vmem [resolvable:$true] %s310_s10  ;;  %s325_s24 = int_to_ptr.vmem [resolvable:$true] %s324_s24 }
  0x8d   : > { %s16502_s6 = sld [smem:[#allocation78_spill]] }
  0x93   : > { %s12483_s17 = scalar_lea.hbm %s16502_s6, 32768 }
  0x94   : > { %p12484_p1 = scmp.ne.s32.totalorder %s16502_s6, %s12483_s17  ;;  %p12490_p0 = scmp.lt.u32.totalorder %s12483_s17, %s16502_s6 }
  0x96   : > { %p12486_p4 = pnand %p12484_p1, %p12846_p8 }
  0x98   : > { %p12487_p13 = pneg %p12486_p4 }
  0x9a   : > { %p12492_p3 = pnand %p12490_p0, %p12487_p13 }
  0x9c   : > { %12495 = shalt.err (!%p12492_p3)
}
  0x9d   : > { %s12496_s1 = scalar_lea.vmem %s311_s10, 32768  ;;  %p12504_p2 = scmp.lt.s32.totalorder %s311_s10, %s311_s10 }
  0x9e   : > { %p12497_p5 = scmp.ne.s32.totalorder %s311_s10, %s12496_s1  ;;  %p12505_p10 = scmp.lt.s32.totalorder %s12496_s1, %s12496_s1 }
  0xa0   : > { %p12499_p7 = pnand %p12497_p5, %p12846_p8  ;;  %p12506_p11 = por %p12505_p10, %p12504_p2 }
  0xa2   : > { %p12500_p9 = pneg %p12499_p7 }
  0xa4   : > { %p12507_p12 = pnand %p12506_p11, %p12500_p9 }
  0xa6   : > { %12510 = shalt.err (!%p12507_p12)
}
  0xa7   : > { %12250 = dma.hbm_to_vmem [thread:$0]  (!%p12830_p6), %s16502_s6, 32768, %s311_s10, [#allocation14], %s16297_s21, %s16297_s21, %s16299_s22  }
  0xa8   : > { %s16503_s7 = sld [smem:[#allocation79_spill]] }
  0xae   : > { %s12511_s0 = scalar_lea.hbm %s16503_s7, 16 }
  0xaf   : > { %p12512_p1 = scmp.ne.s32.totalorder %s16503_s7, %s12511_s0  ;;  %p12518_p0 = scmp.lt.u32.totalorder %s12511_s0, %s16503_s7 }
  0xb1   : > { %p12514_p4 = pnand %p12512_p1, %p12846_p8 }
  0xb3   : > { %p12515_p13 = pneg %p12514_p4 }
  0xb5   : > { %p12520_p3 = pnand %p12518_p0, %p12515_p13 }
  0xb7   : > { %12523 = shalt.err (!%p12520_p3)
}
  0xb8   : > { %s12524_s20 = scalar_lea.vmem %s325_s24, 16  ;;  %s12531_s10 = scalar_lea.vmem %s325_s24, 32 }
  0xb9   : > { %p12525_p5 = scmp.ne.s32.totalorder %s325_s24, %s12524_s20  ;;  %p12532_p2 = scmp.lt.s32.totalorder %s325_s24, %s325_s24 }
  0xba   : > { %p12533_p10 = scmp.lt.s32.totalorder %s12531_s10, %s12524_s20 }
  0xbb   : > { %p12527_p7 = pnand %p12525_p5, %p12846_p8 }
  0xbc   : > { %p12534_p11 = por %p12533_p10, %p12532_p2 }
  0xbd   : > { %p12528_p9 = pneg %p12527_p7 }
  0xbf   : > { %p12535_p12 = pnand %p12534_p11, %p12528_p9 }
  0xc1   : > { %12538 = shalt.err (!%p12535_p12)
}
  0xc2   : > { %12253 = dma.hbm_to_vmem [thread:$0]  (!%p12830_p6), %s16503_s7, 16, %s325_s24, [#allocation17]  }
  0xc3   : > { %s36_s11 = sadd.s32 1, %s12693_s12  ;;  %s39_s19 = sadd.s32 1, %s12697_s13 }
  0xc4   : > { %p37_p8 = scmp.ge.s32.totalorder %s36_s11, 2  ;;  %s46_s2 = sadd.s32 1, %s12681_s9 }
  0xc5   : > { %p53_p1 = scmp.ne.s32.totalorder %s12681_s9, %s12677_s30  ;;  %p54_p4 = scmp.eq.s32.totalorder %s12701_s14, 0 }
  0xc6   : > { %s16970_s11 = smov (%p37_p8, %s36_s11), 0  ;;  %s16972_s19 = smov (!%p37_p8, %s39_s19), %s12697_s13 }
  0xc7   : > { %16504 = sst [smem:[#allocation28_spill]] %s16970_s11  ;;  %p59_p13 = scmp.ne.s32.totalorder %s12677_s30, %s12673_s29 }
  0xc8   : > { %p41_p6 = scmp.ge.s32.totalorder %s16972_s19, 2  ;;  %s222_s24 = ssub.s32 %s12693_s12, %s16970_s11 }
  0xc9   : > { %p12987_p0 = por %p54_p4, %p53_p1  ;;  %p16506_p3 = scmp.eq.s32.totalorder %s12814_s15, 0 }
  0xca   : > { %s16974_s19 = smov (%p41_p6, %s16972_s19), 0  ;;  %s226_s18 = sadd.s32 1, %s12669_s28 }
  0xcb   : > { %p12993_p5 = por %p16506_p3, %p59_p13  ;;  %16508 = sst [smem:[#allocation29_spill]] %s16974_s19 }
  0xcc   : > { %p236_p7 = scmp.ne.s32.totalorder %s12669_s28, %s12665_s27  ;;  %s43_s29 = ssub.s32 %s12697_s13, %s16974_s19 }
  0xcd   : > { %p12267_p9 = scmp.lt.s32.totalorder %s12701_s14, 4  ;;  %p44_p2 = scmp.eq.s32.totalorder %s43_s29, 0 }
  0xce   : > { %s223_s0 = sor.u32 %s222_s24, %s43_s29  ;;  %p16509_p11 = scmp.eq.s32.totalorder %s12814_s15, 3 }
  0xcf   : > { %p224_p10 = scmp.eq.s32.totalorder %s223_s0, 0  ;;  %s335_s17 = sand.u32 1, %s12681_s9  }
  0xd0   : > { %p13007_p12 = por %p16509_p11, %p236_p7  ;;  %s10713_s20 = sshll.u32 %s12697_s13, 12 }
  0xd1   : > { %s13012_s25 = scalar_select %p44_p2, %s12681_s9, %s46_s2  }
  0xd2   : > { %s16510_s16 = scalar_select %p13007_p12, 1, 0 }
  0xd3   : > { %s13015_s26 = scalar_select %p224_p10, %s12669_s28, %s226_s18  }
  0xd4   : > { %s13019_s10 = sshll.u32 %s335_s17, 8  ;;  %s16511_s21 = sld [smem:[#allocation72_spill]] }
  0xd5   : > { %s339_s24 = scalar_lea.vmem [#allocation5], %s13019_s10  ;;  %p13031_p8 = pnand %p12267_p9, %p12987_p0 }
  0xd6   : > { %s346_s29 = sshll.u32 %s339_s24, 4  ;;  %s16513_s23 = sld [smem:[#allocation73_spill]]  ;;  %s13035_s29 = int_to_ptr.vmem [resolvable:$true] %s346_s29 }
  0xd7   : > { %s13042_s4 = scalar_lea.sflag [#allocation6], %s335_s17  ;;  %p12541_p4 = pneg %p13031_p8 }
  0xda   : > { %s13024_s22 = scalar_lea.hbm %s16511_s21, %s10713_s20  ;;  %s12544_s6 = scalar_lea.hbm %s16511_s21, 8192 }
  0xdb   : > { %s12539_s5 = scalar_lea.hbm %s13024_s22, 4096  ;;  %p12545_p0 = scmp.lt.u32.totalorder %s13024_s22, %s16511_s21 }
  0xdc   : > { %s13040_s1 = scalar_lea.hbm %s16513_s23, %s10713_s20  ;;  %p12540_p1 = scmp.ne.s32.totalorder %s13024_s22, %s12539_s5 }
  0xdd   : > { %p12546_p3 = scmp.lt.u32.totalorder %s12544_s6, %s12539_s5  ;;  %p12548_p9 = scmp.lt.u32.totalorder %s12539_s5, %s13024_s22 }
  0xde   : > { %p12542_p13 = pnand %p12541_p4, %p12540_p1 }
  0xdf   : > { %p12547_p7 = por %p12546_p3, %p12545_p0 }
  0xe0   : > { %p12543_p6 = pneg %p12542_p13 }
  0xe1   : > { %p12549_p2 = por %p12548_p9, %p12547_p7 }
  0xe3   : > { %p12550_p10 = pnand %p12549_p2, %p12543_p6 }
  0xe5   : > { %12553 = shalt.err (!%p12550_p10)
}
  0xe6   : > { %s12554_s17 = scalar_lea.vmem %s13035_s29, 4096  ;;  %s12713_s20 = smov [#allocation5]  }
  0xe7   : > { %p12555_p11 = scmp.ne.s32.totalorder %s13035_s29, %s12554_s17  ;;  %s12559_s18 = sshll.u32 %s12713_s20, 4  ;;  %s12560_s18 = int_to_ptr.vmem [resolvable:$false] %s12559_s18 }
  0xe8   : > { %s12561_s7 = scalar_lea.vmem %s12560_s18, 8192  ;;  %p12562_p12 = scmp.lt.s32.totalorder %s13035_s29, %s12560_s18 }
  0xe9   : > { %p12557_p1 = pnand %p12555_p11, %p12541_p4  ;;  %p12563_p0 = scmp.lt.s32.totalorder %s12561_s7, %s12554_s17 }
  0xeb   : > { %p12558_p13 = pneg %p12557_p1  ;;  %p12564_p3 = por %p12563_p0, %p12562_p12 }
  0xed   : > { %p12565_p7 = pnand %p12564_p3, %p12558_p13 }
  0xef   : > { %12568 = shalt.err (!%p12565_p7)
}
  0xf0   : > { %s16514_s5 = smov 8   ;;  %s16515_s6 = smov 128  }
  0xf1   : > { %12257 = dma.hbm_to_vmem [thread:$0]  (!%p13031_p8), %s13024_s22, 4096, %s13035_s29, %s13042_s4, %s16515_s6, %s16515_s6, %s16514_s5  }
  0xf2   : > { %s360_s19 = scalar_lea.vmem [#allocation7], %s13019_s10  ;;  %s356_s3 = sand.u32 1, %s12701_s14  }
  0xf3   : > { %s367_s0 = sshll.u32 %s360_s19, 4  ;;  %s13077_s24 = scalar_lea.sflag [#allocation8], %s356_s3  ;;  %s13075_s0 = int_to_ptr.vmem [resolvable:$true] %s367_s0 }
  0xf4   : > { %s12569_s17 = scalar_lea.hbm %s13040_s1, 4096  ;;  %s12574_s7 = scalar_lea.hbm %s16513_s23, 8192 }
  0xf5   : > { %p12570_p12 = scmp.ne.s32.totalorder %s13040_s1, %s12569_s17  ;;  %p12575_p2 = scmp.lt.u32.totalorder %s13040_s1, %s16513_s23 }
  0xf6   : > { %p12576_p10 = scmp.lt.u32.totalorder %s12574_s7, %s12569_s17  ;;  %p12578_p1 = scmp.lt.u32.totalorder %s12569_s17, %s13040_s1 }
  0xf7   : > { %p12572_p6 = pnand %p12570_p12, %p12541_p4 }
  0xf8   : > { %p12577_p11 = por %p12576_p10, %p12575_p2 }
  0xf9   : > { %p12573_p9 = pneg %p12572_p6 }
  0xfa   : > { %p12579_p13 = por %p12578_p1, %p12577_p11 }
  0xfc   : > { %p12580_p0 = pnand %p12579_p13, %p12573_p9 }
  0xfe   : > { %12583 = shalt.err (!%p12580_p0)
}
  0xff   : > { %s12584_s4 = scalar_lea.vmem %s13075_s0, 4096  ;;  %s12714_s22 = smov [#allocation7]  }
 0x100   : > { %p12585_p3 = scmp.ne.s32.totalorder %s13075_s0, %s12584_s4  ;;  %s12589_s10 = sshll.u32 %s12714_s22, 4  ;;  %s12590_s10 = int_to_ptr.vmem [resolvable:$false] %s12589_s10 }
 0x101   : > { %s12591_s21 = scalar_lea.vmem %s12590_s10, 8192  ;;  %p12592_p6 = scmp.lt.s32.totalorder %s13075_s0, %s12590_s10 }
 0x102   : > { %p12587_p7 = pnand %p12585_p3, %p12541_p4  ;;  %p12593_p2 = scmp.lt.s32.totalorder %s12591_s21, %s12584_s4 }
 0x104   : > { %p12588_p12 = pneg %p12587_p7  ;;  %p12594_p10 = por %p12593_p2, %p12592_p6 }
 0x106   : > { %p12595_p11 = pnand %p12594_p10, %p12588_p12 }
 0x108   : > { %12598 = shalt.err (!%p12595_p11)
}
 0x109   : > { %12260 = dma.hbm_to_vmem [thread:$0]  (!%p13031_p8), %s13040_s1, 4096, %s13075_s0, %s13077_s24, %s16515_s6, %s16515_s6, %s16514_s5  }
 0x10a   : > { %s16516_s11 = sld [smem:[#allocation27_spill]] }
 0x110   : > { %p16517_p4 = scmp.ne.s32.totalorder %s16516_s11, 0 }
 0x112   : > { %379 = sbr.rel (%p16517_p4) target bundleno = 2041 (0x7f9), region = 52 }
 0x119   : > { %s381_s29 = sand.u32 1, %s12677_s30  }
 0x11a   : > { %s10072_s19 = sshll.u32 %s381_s29, 8  ;;  %s382_s3 = scalar_lea.sflag [#allocation6], %s381_s29 }
 0x11b   : > { %s13109_s17 = scalar_lea.vmem [#allocation5], %s10072_s19 }
 0x11c   : > { %12640 = dma.done.wait (%p12993_p5), %s382_s3, 4096  }
 0x11d   : > { %12642 = vsyncadd (%p12993_p5), %s382_s3, 4294963200  ;;  %s390_s2 = sand.u32 1, %s12814_s15   ;;  %s13116_s1 = scalar_lea.vmem [#allocation7], %s10072_s19 }
 0x11e   : > { %s391_s20 = scalar_lea.sflag [#allocation8], %s390_s2 }
 0x11f   : > { %12644 = dma.done.wait (%p12993_p5), %s391_s20, 4096  }
 0x120   : > { %12646 = vsyncadd (%p12993_p5), %s391_s20, 4294963200  ;;  %p16518_p8 = scmp.eq.s32.totalorder %s12814_s15, 0 }
 0x122   : > { %12648 = dma.done.wait (%p16518_p8), [#allocation8], 8192   ;;  %p16519_p9 = pmov %p16518_p8 }
 0x123   : > { %p16520_p1 = pmov %p16518_p8 }
 0x124   : > { %12650 = vsyncadd (%p16519_p9), [#allocation8], 4294959104 }
 0x125   : > { %12652 = dma.done.wait (%p16520_p1), [#allocation11], 36896   ;;  %p16521_p13 = pmov %p16520_p1 }
 0x126   : > { %p16522_p0 = pmov %p16520_p1 }
 0x127   : > { %12654 = vsyncadd (%p16521_p13), [#allocation11], 4294930400 }
 0x128   : > { %12656 = dma.done.wait (%p16522_p0), [#allocation14], 32784   ;;  %p16523_p3 = pmov %p16522_p0 }
 0x129   : > { %p16524_p5 = pmov %p16522_p0 }
 0x12a   : > { %12658 = vsyncadd (%p16523_p3), [#allocation14], 4294934512 }
 0x12b   : > { %12660 = dma.done.wait (%p16524_p5), [#allocation17], 16   ;;  %p16525_p7 = pmov %p16522_p0 }
 0x12c   : > { %s452_s8 = sand.u32 1, %s12665_s27   ;;  %v455_v0 = vlaneseq  ;;  %s16616_s15 = sld [smem:[#allocation25_spill]] }
 0x12d   : > { %12662 = vsyncadd (%p16525_p7), [#allocation17], 4294967280  ;;  %s13139_s5 = sshll.u32 %s452_s8, 9 }
 0x12e   : > { %v13141_v1 = vshrl.u32 %v455_v0, 7  ;;  %s13355_s27 = scalar_lea.vmem [#allocation18], %s13139_s5 }
 0x130   : > { %v13144_v2 = vadd.s32 8, %v13141_v1  ;;  %v13147_v3 = vadd.s32 16, %v13141_v1  ;;  %v13150_v4 = vadd.s32 24, %v13141_v1  ;;  %v460_v5 = vadd.s32 32, %v13141_v1 }
 0x131   : > { %v13154_v6 = vadd.s32 40, %v13141_v1  ;;  %v462_v7 = vadd.s32 48, %v13141_v1  ;;  %v13158_v8 = vadd.s32 56, %v13141_v1  ;;  %v464_v9 = vadd.s32 64, %v13141_v1 }
 0x132   : > { %v13162_v10 = vadd.s32 72, %v13141_v1  ;;  %v466_v11 = vadd.s32 80, %v13141_v1  ;;  %v13166_v12 = vadd.s32 88, %v13141_v1  ;;  %v468_v13 = vadd.s32 96, %v13141_v1  ;;  %p10081_p12 = scmp.ne.s32.totalorder %s16616_s15, 0 }
 0x133   : > { %v13170_v14 = vadd.s32 104, %v13141_v1  ;;  %v470_v15 = vadd.s32 112, %v13141_v1  ;;  %v13174_v16 = vadd.s32 120, %v13141_v1  ;;  %v472_v17 = vadd.s32 128, %v13141_v1 }
 0x134   : > { %v13178_v18 = vadd.s32 136, %v13141_v1  ;;  %v474_v19 = vadd.s32 144, %v13141_v1  ;;  %v13182_v20 = vadd.s32 152, %v13141_v1  ;;  %v476_v21 = vadd.s32 160, %v13141_v1 }
 0x135   : > { %v13186_v22 = vadd.s32 168, %v13141_v1  ;;  %v478_v23 = vadd.s32 176, %v13141_v1  ;;  %v13190_v24 = vadd.s32 184, %v13141_v1  ;;  %v480_v25 = vadd.s32 192, %v13141_v1 }
 0x136   : > { %v13194_v26 = vadd.s32 200, %v13141_v1  ;;  %v482_v27 = vadd.s32 208, %v13141_v1  ;;  %v13198_v28 = vadd.s32 216, %v13141_v1  ;;  %v484_v29 = vadd.s32 224, %v13141_v1 }
 0x137   : > { %v13202_v30 = vadd.s32 232, %v13141_v1  ;;  %v486_v31 = vadd.s32 240, %v13141_v1  ;;  %v13206_v32 = vadd.s32 248, %v13141_v1  ;;  %v492_v33 = vand.u32 15, %v13141_v1 }
 0x138   : > { %v499_v34 = vand.u32 15, %v13144_v2  ;;  %v506_v35 = vand.u32 15, %v13147_v3  ;;  %v513_v36 = vand.u32 15, %v13150_v4  ;;  %v520_v37 = vand.u32 15, %v460_v5 }
 0x139   : > { %v527_v38 = vand.u32 15, %v13154_v6  ;;  %v534_v39 = vand.u32 15, %v462_v7  ;;  %v541_v40 = vand.u32 15, %v13158_v8  ;;  %v548_v41 = vand.u32 15, %v464_v9 }
 0x13a   : > { %v555_v42 = vand.u32 15, %v13162_v10  ;;  %v562_v43 = vand.u32 15, %v466_v11  ;;  %v569_v44 = vand.u32 15, %v13166_v12  ;;  %v576_v45 = vand.u32 15, %v468_v13 }
 0x13b   : > { %v583_v46 = vand.u32 15, %v13170_v14  ;;  %v590_v47 = vand.u32 15, %v470_v15  ;;  %v597_v48 = vand.u32 15, %v13174_v16  ;;  %v604_v49 = vand.u32 15, %v472_v17 }
 0x13c   : > { %v611_v50 = vand.u32 15, %v13178_v18  ;;  %v618_v51 = vand.u32 15, %v474_v19  ;;  %v625_v52 = vand.u32 15, %v13182_v20  ;;  %v632_v53 = vand.u32 15, %v476_v21 }
 0x13d   : > { %v639_v54 = vand.u32 15, %v13186_v22  ;;  %v646_v55 = vand.u32 15, %v478_v23  ;;  %v653_v56 = vand.u32 15, %v13190_v24  ;;  %v660_v57 = vand.u32 15, %v480_v25 }
 0x13e   : > { %v667_v58 = vand.u32 15, %v13194_v26  ;;  %v674_v59 = vand.u32 15, %v482_v27  ;;  %v681_v60 = vand.u32 15, %v13198_v28  ;;  %v688_v61 = vand.u32 15, %v484_v29 }
 0x13f   : > { %v695_v62 = vand.u32 15, %v13202_v30  ;;  %v702_v63 = vand.u32 15, %v486_v31  ;;  %v709_v0 = vand.u32 15, %v13206_v32  ;;  %vm13226_vm0 = vcmp.ne.s32.totalorder %v492_v33, 0 }
 0x140   : > { %v16526_v2 = vmov 0  ;;  %vm13230_vm1 = vcmp.ne.s32.totalorder %v506_v35, 0  ;;  %v16529_v3 = vmov 0  ;;  %vm13234_vm2 = vcmp.ne.s32.totalorder %v520_v37, 0 }
 0x141   : > { %v16527_v2 = vsel %vm13226_vm0, 4294967295, %v16526_v2  ;;  %v16530_v3 = vsel %vm13230_vm1, 4294967295, %v16529_v3  ;;  %v16532_v4 = vmov 0  ;;  %vm13238_vm3 = vcmp.ne.s32.totalorder %v534_v39, 0 }
 0x142   : > { %16528 = vst [vmem:[#allocation30_spill] sm:$0xff] %v16527_v2  ;;  %16531 = vst [vmem:[#allocation31_spill] sm:$0xff] %v16530_v3  ;;  %v16533_v4 = vsel %vm13234_vm2, 4294967295, %v16532_v4  ;;  %v16535_v5 = vmov 0  ;;  %vm13242_vm4 = vcmp.ne.s32.totalorder %v548_v41, 0  ;;  %v16538_v6 = vmov 0 }
 0x143   : > { %16534 = vst [vmem:[#allocation32_spill] sm:$0xff] %v16533_v4  ;;  %v16536_v5 = vsel %vm13238_vm3, 4294967295, %v16535_v5  ;;  %v16539_v6 = vsel %vm13242_vm4, 4294967295, %v16538_v6  ;;  %vm13246_vm5 = vcmp.ne.s32.totalorder %v562_v43, 0  ;;  %v16541_v7 = vmov 0 }
 0x144   : > { %16537 = vst [vmem:[#allocation33_spill] sm:$0xff] %v16536_v5  ;;  %16540 = vst [vmem:[#allocation34_spill] sm:$0xff] %v16539_v6  ;;  %v16542_v7 = vsel %vm13246_vm5, 4294967295, %v16541_v7  ;;  %vm13250_vm6 = vcmp.ne.s32.totalorder %v576_v45, 0  ;;  %v16544_v8 = vmov 0  ;;  %vm13254_vm7 = vcmp.ne.s32.totalorder %v590_v47, 0 }
 0x145   : > { %16543 = vst [vmem:[#allocation35_spill] sm:$0xff] %v16542_v7  ;;  %v16545_v8 = vsel %vm13250_vm6, 4294967295, %v16544_v8  ;;  %v16547_v9 = vmov 0  ;;  %vm13258_vm8 = vcmp.ne.s32.totalorder %v604_v49, 0  ;;  %v16550_v10 = vmov 0 }
 0x146   : > { %16546 = vst [vmem:[#allocation36_spill] sm:$0xff] %v16545_v8  ;;  %v16548_v9 = vsel %vm13254_vm7, 4294967295, %v16547_v9  ;;  %v16551_v10 = vsel %vm13258_vm8, 4294967295, %v16550_v10  ;;  %vm13262_vm9 = vcmp.ne.s32.totalorder %v618_v51, 0  ;;  %v16553_v11 = vmov 0 }
 0x147   : > { %16549 = vst [vmem:[#allocation37_spill] sm:$0xff] %v16548_v9  ;;  %16552 = vst [vmem:[#allocation38_spill] sm:$0xff] %v16551_v10  ;;  %v16554_v11 = vsel %vm13262_vm9, 4294967295, %v16553_v11  ;;  %vm13266_vm10 = vcmp.ne.s32.totalorder %v632_v53, 0  ;;  %v16556_v12 = vmov 0  ;;  %vm13270_vm11 = vcmp.ne.s32.totalorder %v646_v55, 0 }
 0x148   : > { %16555 = vst [vmem:[#allocation39_spill] sm:$0xff] %v16554_v11  ;;  %v16557_v12 = vsel %vm13266_vm10, 4294967295, %v16556_v12  ;;  %v16559_v13 = vmov 0  ;;  %vm13274_vm12 = vcmp.ne.s32.totalorder %v660_v57, 0  ;;  %v16562_v14 = vmov 0 }
 0x149   : > { %16558 = vst [vmem:[#allocation40_spill] sm:$0xff] %v16557_v12  ;;  %v16560_v13 = vsel %vm13270_vm11, 4294967295, %v16559_v13  ;;  %v16563_v14 = vsel %vm13274_vm12, 4294967295, %v16562_v14  ;;  %vm13278_vm13 = vcmp.ne.s32.totalorder %v674_v59, 0  ;;  %v16565_v15 = vmov 0 }
 0x14a   : > { %16561 = vst [vmem:[#allocation41_spill] sm:$0xff] %v16560_v13  ;;  %16564 = vst [vmem:[#allocation42_spill] sm:$0xff] %v16563_v14  ;;  %v16566_v15 = vsel %vm13278_vm13, 4294967295, %v16565_v15  ;;  %vm13282_vm14 = vcmp.ne.s32.totalorder %v688_v61, 0  ;;  %v16567_v16 = vmov 0  ;;  %vm13286_vm15 = vcmp.ne.s32.totalorder %v702_v63, 0 }
 0x14b   : > { %v16568_v16 = vsel %vm13282_vm14, 4294967295, %v16567_v16  ;;  %v16569_v17 = vmov 0  ;;  %vm13290_vm10 = vcmp.ne.s32.totalorder %v499_v34, 15  ;;  %v16571_v18 = vmov 0 }
 0x14c   : > { %v16570_v17 = vsel %vm13286_vm15, 4294967295, %v16569_v17  ;;  %v16572_v18 = vsel %vm13290_vm10, 4294967295, %v16571_v18  ;;  %vm13294_vm11 = vcmp.ne.s32.totalorder %v513_v36, 15  ;;  %v16574_v19 = vmov 0 }
 0x14d   : > { %16573 = vst [vmem:[#allocation43_spill] sm:$0xff] %v16572_v18  ;;  %v16575_v19 = vsel %vm13294_vm11, 4294967295, %v16574_v19  ;;  %vm13298_vm12 = vcmp.ne.s32.totalorder %v527_v38, 15  ;;  %v16576_v20 = vmov 0  ;;  %vm13302_vm13 = vcmp.ne.s32.totalorder %v541_v40, 15 }
 0x14e   : > { %v16577_v20 = vsel %vm13298_vm12, 4294967295, %v16576_v20  ;;  %v16578_v21 = vmov 0  ;;  %vm13306_vm14 = vcmp.ne.s32.totalorder %v555_v42, 15  ;;  %v16580_v22 = vmov 0 }
 0x14f   : > { %v16579_v21 = vsel %vm13302_vm13, 4294967295, %v16578_v21  ;;  %v16581_v22 = vsel %vm13306_vm14, 4294967295, %v16580_v22  ;;  %vm13310_vm15 = vcmp.ne.s32.totalorder %v569_v44, 15  ;;  %v16583_v23 = vmov 0 }
 0x150   : > { %16582 = vst [vmem:[#allocation44_spill] sm:$0xff] %v16581_v22  ;;  %v16584_v23 = vsel %vm13310_vm15, 4294967295, %v16583_v23  ;;  %vm13314_vm10 = vcmp.ne.s32.totalorder %v583_v46, 15  ;;  %v16586_v24 = vmov 0  ;;  %vm13318_vm11 = vcmp.ne.s32.totalorder %v597_v48, 15 }
 0x151   : > { %16585 = vst [vmem:[#allocation45_spill] sm:$0xff] %v16584_v23  ;;  %v16587_v24 = vsel %vm13314_vm10, 4294967295, %v16586_v24  ;;  %v16589_v25 = vmov 0  ;;  %vm13322_vm12 = vcmp.ne.s32.totalorder %v611_v50, 15  ;;  %v16592_v26 = vmov 0 }
 0x152   : > { %16588 = vst [vmem:[#allocation46_spill] sm:$0xff] %v16587_v24  ;;  %v16590_v25 = vsel %vm13318_vm11, 4294967295, %v16589_v25  ;;  %v16593_v26 = vsel %vm13322_vm12, 4294967295, %v16592_v26  ;;  %vm13326_vm13 = vcmp.ne.s32.totalorder %v625_v52, 15  ;;  %v16595_v27 = vmov 0 }
 0x153   : > { %16591 = vst [vmem:[#allocation47_spill] sm:$0xff] %v16590_v25  ;;  %16594 = vst [vmem:[#allocation48_spill] sm:$0xff] %v16593_v26  ;;  %v16596_v27 = vsel %vm13326_vm13, 4294967295, %v16595_v27  ;;  %vm13330_vm14 = vcmp.ne.s32.totalorder %v639_v54, 15  ;;  %v16598_v28 = vmov 0  ;;  %vm13334_vm15 = vcmp.ne.s32.totalorder %v653_v56, 15 }
 0x154   : > { %16597 = vst [vmem:[#allocation49_spill] sm:$0xff] %v16596_v27  ;;  %v16599_v28 = vsel %vm13330_vm14, 4294967295, %v16598_v28  ;;  %v16601_v29 = vmov 0  ;;  %vm13338_vm10 = vcmp.ne.s32.totalorder %v667_v58, 15  ;;  %v16604_v30 = vmov 0  ;;  %939 = sbr.rel (%p10081_p12) target bundleno = 1487 (0x5cf), region = 88 }
 0x155   : > { %16600 = vst [vmem:[#allocation50_spill] sm:$0xff] %v16599_v28  ;;  %v16602_v29 = vsel %vm13334_vm15, 4294967295, %v16601_v29  ;;  %v16605_v30 = vsel %vm13338_vm10, 4294967295, %v16604_v30  ;;  %vm13342_vm11 = vcmp.ne.s32.totalorder %v681_v60, 15  ;;  %v16607_v31 = vmov 0 }
 0x156   : > { %16603 = vst [vmem:[#allocation51_spill] sm:$0xff] %v16602_v29  ;;  %16606 = vst [vmem:[#allocation52_spill] sm:$0xff] %v16605_v30  ;;  %v16608_v31 = vsel %vm13342_vm11, 4294967295, %v16607_v31  ;;  %vm13346_vm12 = vcmp.ne.s32.totalorder %v695_v62, 15  ;;  %v16610_v32 = vmov 0  ;;  %vm13350_vm13 = vcmp.ne.s32.totalorder %v709_v0, 15 }
 0x157   : > { %16609 = vst [vmem:[#allocation53_spill] sm:$0xff] %v16608_v31  ;;  %v16611_v32 = vsel %vm13346_vm12, 4294967295, %v16610_v32  ;;  %v16613_v33 = vmov 0 }
 0x158   : > { %16612 = vst [vmem:[#allocation54_spill] sm:$0xff] %v16611_v32  ;;  %v16614_v33 = vsel %vm13350_vm13, 4294967295, %v16613_v33 }
 0x159   : > { %16615 = vst [vmem:[#allocation55_spill] sm:$0xff] %v16614_v33 }
 0x15b   : > { %v1017_v34 = vld [vmem:[#allocation9 + $0x8] sm:$0xff]  ;;  %v1019_v35 = vld [vmem:[#allocation9 + $0x18] sm:$0xff]  ;;  %v1016_v36 = vld [vmem:[#allocation9] sm:$0xff]  ;;  %vm16346_vm13 = vcmask 1040384  }
 0x15c   : > { %v10719_v37 = vpack.c.bf16 %v1019_v35, %v1017_v34  ;;  %v1018_v38 = vld [vmem:[#allocation9 + $0x10] sm:$0xff]  ;;  %v1021_v39 = vld [vmem:[#allocation9 + $0x28] sm:$0xff]  ;;  %v1023_v40 = vld [vmem:[#allocation9 + $0x38] sm:$0xff] }
 0x15d   : > { %v10721_v41 = vpack.c.bf16 %v1018_v38, %v1016_v36  ;;  %v10723_v42 = vpack.c.bf16 %v1023_v40, %v1021_v39  ;;  %v1020_v43 = vld [vmem:[#allocation9 + $0x20] sm:$0xff]  ;;  %v1022_v44 = vld [vmem:[#allocation9 + $0x30] sm:$0xff]  ;;  %v1025_v45 = vld [vmem:[#allocation9 + $0x48] sm:$0xff] }
 0x15e   : > { %10720 = vmatprep.subr.bf16.mxu0 %v10719_v37  ;;  %v1027_v46 = vld [vmem:[#allocation9 + $0x58] sm:$0xff]  ;;  %v10725_v47 = vpack.c.bf16 %v1022_v44, %v1020_v43  ;;  %v1024_v49 = vld [vmem:[#allocation9 + $0x40] sm:$0xff]  ;;  %v1026_v50 = vld [vmem:[#allocation9 + $0x50] sm:$0xff] }
 0x15f   : > { %10722 = vmatpush1.bf16.msra.mxu0 %v10721_v41  ;;  %v10727_v48 = vpack.c.bf16 %v1027_v46, %v1025_v45  ;;  %v1029_v51 = vld [vmem:[#allocation9 + $0x68] sm:$0xff]  ;;  %v1031_v52 = vld [vmem:[#allocation9 + $0x78] sm:$0xff]  ;;  %v10729_v53 = vpack.c.bf16 %v1026_v50, %v1024_v49  ;;  %v1028_v55 = vld [vmem:[#allocation9 + $0x60] sm:$0xff] }
 0x160   : > { %10724 = vmatprep.subr.bf16.mxu0 %v10723_v42  ;;  %v10731_v54 = vpack.c.bf16 %v1031_v52, %v1029_v51  ;;  %v1030_v56 = vld [vmem:[#allocation9 + $0x70] sm:$0xff]  ;;  %v1033_v57 = vld [vmem:[#allocation9 + $0x88] sm:$0xff]  ;;  %v1035_v58 = vld [vmem:[#allocation9 + $0x98] sm:$0xff] }
 0x161   : > { %v10733_v59 = vpack.c.bf16 %v1030_v56, %v1028_v55  ;;  %v10735_v60 = vpack.c.bf16 %v1035_v58, %v1033_v57  ;;  %v1032_v61 = vld [vmem:[#allocation9 + $0x80] sm:$0xff]  ;;  %v1034_v62 = vld [vmem:[#allocation9 + $0x90] sm:$0xff]  ;;  %v1037_v63 = vld [vmem:[#allocation9 + $0xa8] sm:$0xff] }
 0x162   : > { %v1039_v0 = vld [vmem:[#allocation9 + $0xb8] sm:$0xff]  ;;  %v10737_v34 = vpack.c.bf16 %v1034_v62, %v1032_v61  ;;  %v1036_v36 = vld [vmem:[#allocation9 + $0xa0] sm:$0xff]  ;;  %v1038_v37 = vld [vmem:[#allocation9 + $0xb0] sm:$0xff] }
 0x163   : > { %10726 = vmatpush1.bf16.msra.mxu0 %v10725_v47  ;;  %v10739_v35 = vpack.c.bf16 %v1039_v0, %v1037_v63  ;;  %v1041_v38 = vld [vmem:[#allocation9 + $0xc8] sm:$0xff]  ;;  %v1043_v39 = vld [vmem:[#allocation9 + $0xd8] sm:$0xff]  ;;  %v10741_v40 = vpack.c.bf16 %v1038_v37, %v1036_v36  ;;  %v1040_v42 = vld [vmem:[#allocation9 + $0xc0] sm:$0xff] }
 0x164   : > { %10728 = vmatprep.subr.bf16.mxu0 %v10727_v48  ;;  %v10743_v41 = vpack.c.bf16 %v1043_v39, %v1041_v38  ;;  %v1042_v43 = vld [vmem:[#allocation9 + $0xd0] sm:$0xff]  ;;  %v984_v44 = vld [vmem:[%s13116_s1] sm:$0xff]  ;;  %v1045_v45 = vld [vmem:[#allocation9 + $0xe8] sm:$0xff] }
 0x165   : > { %v1047_v46 = vld [vmem:[#allocation9 + $0xf8] sm:$0xff]  ;;  %1156 = vmatprep.mubr.f32.mxu0 %v984_v44  ;;  %v10745_v47 = vpack.c.bf16 %v1042_v43, %v1040_v42  ;;  %v1044_v49 = vld [vmem:[#allocation9 + $0xe0] sm:$0xff]  ;;  %v1046_v50 = vld [vmem:[#allocation9 + $0xf0] sm:$0xff] }
 0x166   : > { %v10747_v48 = vpack.c.bf16 %v1047_v46, %v1045_v45  ;;  %v1049_v51 = vld [vmem:[#allocation9 + $0x108] sm:$0xff]  ;;  %v1051_v52 = vld [vmem:[#allocation9 + $0x118] sm:$0xff]  ;;  %v1048_v55 = vld [vmem:[#allocation9 + $0x100] sm:$0xff] }
 0x167   : > { %10730 = vmatpush1.bf16.msra.mxu0 %v10729_v53  ;;  %v10749_v53 = vpack.c.bf16 %v1046_v50, %v1044_v49  ;;  %v1050_v56 = vld [vmem:[#allocation9 + $0x110] sm:$0xff]  ;;  %v1053_v57 = vld [vmem:[#allocation9 + $0x128] sm:$0xff]  ;;  %v1055_v58 = vld [vmem:[#allocation9 + $0x138] sm:$0xff] }
 0x168   : > { %10732 = vmatprep.subr.bf16.mxu0 %v10731_v54  ;;  %v10751_v54 = vpack.c.bf16 %v1051_v52, %v1049_v51  ;;  %v1052_v61 = vld [vmem:[#allocation9 + $0x120] sm:$0xff]  ;;  %v1054_v62 = vld [vmem:[#allocation9 + $0x130] sm:$0xff]  ;;  %v1057_v63 = vld [vmem:[#allocation9 + $0x148] sm:$0xff] }
 0x169   : > { %v1059_v0 = vld [vmem:[#allocation9 + $0x158] sm:$0xff]  ;;  %v1056_v36 = vld [vmem:[#allocation9 + $0x140] sm:$0xff]  ;;  %v1058_v37 = vld [vmem:[#allocation9 + $0x150] sm:$0xff] }
 0x16a   : > { %v1061_v38 = vld [vmem:[#allocation9 + $0x168] sm:$0xff]  ;;  %v1063_v39 = vld [vmem:[#allocation9 + $0x178] sm:$0xff]  ;;  %v1060_v42 = vld [vmem:[#allocation9 + $0x160] sm:$0xff] }
 0x16b   : > { %10734 = vmatpush1.bf16.msra.mxu0 %v10733_v59  ;;  %v10753_v59 = vpack.c.bf16 %v1050_v56, %v1048_v55  ;;  %v1062_v43 = vld [vmem:[#allocation9 + $0x170] sm:$0xff]  ;;  %v1065_v44 = vld [vmem:[#allocation9 + $0x188] sm:$0xff]  ;;  %v1067_v45 = vld [vmem:[#allocation9 + $0x198] sm:$0xff] }
 0x16c   : > { %10736 = vmatprep.subr.bf16.mxu0 %v10735_v60  ;;  %v10755_v60 = vpack.c.bf16 %v1055_v58, %v1053_v57  ;;  %v10765_v46 = vpack.c.bf16 %v1062_v43, %v1060_v42  ;;  %v1066_v49 = vld [vmem:[#allocation9 + $0x190] sm:$0xff]  ;;  %v1069_v50 = vld [vmem:[#allocation9 + $0x1a8] sm:$0xff]  ;;  %v1071_v51 = vld [vmem:[#allocation9 + $0x1b8] sm:$0xff]  ;;  %v16405_v43 = vmov 0.0|0.0  }
 0x16d   : > { %v1070_v55 = vld [vmem:[#allocation9 + $0x1b0] sm:$0xff]  ;;  %v1073_v56 = vld [vmem:[#allocation9 + $0x1c8] sm:$0xff]  ;;  %v1075_v57 = vld [vmem:[#allocation9 + $0x1d8] sm:$0xff]  ;;  %10975 = vmatprep.subr.bf16.mxu1 %v16405_v43 }
 0x16f   : > { %10738 = vmatpush1.bf16.msra.mxu0 %v10737_v34  ;;  %v10757_v34 = vpack.c.bf16 %v1054_v62, %v1052_v61  ;;  %v1074_v61 = vld [vmem:[#allocation9 + $0x1d0] sm:$0xff]  ;;  %v1077_v62 = vld [vmem:[#allocation9 + $0x1e8] sm:$0xff] }
 0x170   : > { %10740 = vmatprep.subr.bf16.mxu0 %v10739_v35  ;;  %v10759_v35 = vpack.c.bf16 %v1059_v0, %v1057_v63  ;;  %v1079_v63 = vld [vmem:[#allocation9 + $0x1f8] sm:$0xff] }
 0x173   : > { %10742 = vmatpush1.bf16.msra.mxu0 %v10741_v40  ;;  %v10761_v40 = vpack.c.bf16 %v1058_v37, %v1056_v36  ;;  %v1078_v36 = vld [vmem:[#allocation9 + $0x1f0] sm:$0xff] }
 0x174   : > { %10744 = vmatprep.subr.bf16.mxu0 %v10743_v41  ;;  %v10763_v41 = vpack.c.bf16 %v1063_v39, %v1061_v38  ;;  %v952_v38 = vld [vmem:[%s13109_s17] sm:$0xff] }
 0x175   : > { %v1996_v39 = vld [vmem:[#allocation12] sm:$0xff] }
 0x177   : > { %10746 = vmatpush1.bf16.msra.mxu0 %v10745_v47  ;;  %v10767_v47 = vpack.c.bf16 %v1067_v45, %v1065_v44  ;;  %v4385_v44 = vld [vmem:[#allocation12 + $0x400] sm:$0xff]  ;;  %v4386_v45 = vld [vmem:[#allocation12 + $0x408] sm:$0xff] }
 0x178   : > { %10748 = vmatprep.subr.bf16.mxu0 %v10747_v48  ;;  %v1064_v48 = vld [vmem:[#allocation9 + $0x180] sm:$0xff] }
 0x179   : > { %v10769_v52 = vpack.c.bf16 %v1066_v49, %v1064_v48  ;;  %v10976_v48 = vpack.c.bf16 %v4386_v45, %v4385_v44  ;;  %v4387_v49 = vld [vmem:[#allocation12 + $0x410] sm:$0xff]  ;;  %v2005_v44 = vld [vmem:[#allocation12 + $0x48] sm:$0xff] }
 0x17b   : > { %10750 = vmatpush1.bf16.msra.mxu0 %v10749_v53  ;;  %v10771_v53 = vpack.c.bf16 %v1071_v51, %v1069_v50  ;;  %v4388_v50 = vld [vmem:[#allocation12 + $0x418] sm:$0xff]  ;;  %10977 = vmatpush1.bf16.msra.mxu1 %v10976_v48  ;;  %v4395_v48 = vld [vmem:[#allocation12 + $0x450] sm:$0xff] }
 0x17c   : > { %10752 = vmatprep.subr.bf16.mxu0 %v10751_v54  ;;  %v1068_v54 = vld [vmem:[#allocation9 + $0x1a0] sm:$0xff]  ;;  %v10979_v51 = vpack.c.bf16 %v4388_v50, %v4387_v49  ;;  %10978 = vmatprep.subr.bf16.mxu1 %v16405_v43  ;;  %v989_v50 = vld [vmem:[%s13116_s1 + $0x28] sm:$0xff] }
 0x17d   : > { %v10773_v58 = vpack.c.bf16 %v1070_v55, %v1068_v54  ;;  %v4389_v54 = vld [vmem:[#allocation12 + $0x420] sm:$0xff]  ;;  %v4390_v55 = vld [vmem:[#allocation12 + $0x428] sm:$0xff]  ;;  %v4396_v49 = vld [vmem:[#allocation12 + $0x458] sm:$0xff] }
 0x17f   : > { %10754 = vmatpush1.bf16.msra.mxu0 %v10753_v59  ;;  %v10775_v59 = vpack.c.bf16 %v1075_v57, %v1073_v56  ;;  %v986_v56 = vld [vmem:[%s13116_s1 + $0x10] sm:$0xff]  ;;  %v2000_v57 = vld [vmem:[#allocation12 + $0x20] sm:$0xff]  ;;  %10980 = vmatpush1.bf16.msra.mxu1 %v10979_v51 }
 0x180   : > { %10756 = vmatprep.subr.bf16.mxu0 %v10755_v60  ;;  %v1072_v60 = vld [vmem:[#allocation9 + $0x1c0] sm:$0xff]  ;;  %10981 = vmatprep.subr.bf16.mxu1 %v16405_v43  ;;  %v2006_v51 = vld [vmem:[#allocation12 + $0x50] sm:$0xff] }
 0x181   : > { %v10777_v0 = vpack.c.bf16 %v1074_v61, %v1072_v60  ;;  %v954_v60 = vld [vmem:[%s13109_s17 + $0x10] sm:$0xff] }
 0x183   : > { %10758 = vmatpush1.bf16.msra.mxu0 %v10757_v34  ;;  %v10779_v34 = vpack.c.bf16 %v1079_v63, %v1077_v62  ;;  %v4391_v62 = vld [vmem:[#allocation12 + $0x430] sm:$0xff]  ;;  %v4392_v63 = vld [vmem:[#allocation12 + $0x438] sm:$0xff] }
 0x184   : > { %10760 = vmatprep.subr.bf16.mxu0 %v10759_v35  ;;  %v1076_v35 = vld [vmem:[#allocation9 + $0x1e0] sm:$0xff] }
 0x185   : > { %v10781_v37 = vpack.c.bf16 %v1078_v36, %v1076_v35  ;;  %v2003_v35 = vld [vmem:[#allocation12 + $0x38] sm:$0xff]  ;;  %v10985_v36 = vpack.c.bf16 %v4392_v63, %v4391_v62  ;;  %v958_v62 = vld [vmem:[%s13109_s17 + $0x30] sm:$0xff] }
 0x187   : > { %10762 = vmatpush1.bf16.msra.mxu0 %v10761_v40  ;;  %v1997_v40 = vld [vmem:[#allocation12 + $0x8] sm:$0xff] }
 0x188   : > { %10764 = vmatprep.subr.bf16.mxu0 %v10763_v41  ;;  %v985_v41 = vld [vmem:[%s13116_s1 + $0x8] sm:$0xff]  ;;  %v10784_v42 = vpack.c.bf16 %v1997_v40, %v1996_v39 }
 0x189   : > { %v4393_v39 = vld [vmem:[#allocation12 + $0x440] sm:$0xff]  ;;  %v4394_v40 = vld [vmem:[#allocation12 + $0x448] sm:$0xff] }
 0x18a   : > { %v10988_v45 = vpack.c.bf16 %v4394_v40, %v4393_v39  ;;  %v959_v39 = vld [vmem:[%s13109_s17 + $0x38] sm:$0xff] }
 0x18b   : > { %10766 = vmatpush1.bf16.msra.mxu0 %v10765_v46  ;;  %v1998_v46 = vld [vmem:[#allocation12 + $0x10] sm:$0xff] }
 0x18c   : > { %10768 = vmatprep.subr.bf16.mxu0 %v10767_v47  ;;  %v1999_v47 = vld [vmem:[#allocation12 + $0x18] sm:$0xff] }
 0x18f   : > { %10770 = vmatpush1.bf16.msra.mxu0 %v10769_v52  ;;  %v953_v52 = vld [vmem:[%s13109_s17 + $0x8] sm:$0xff] }
 0x190   : > { %10772 = vmatprep.subr.bf16.mxu0 %v10771_v53  ;;  %v10787_v53 = vpack.c.bf16 %v1999_v47, %v1998_v46  ;;  %v956_v46 = vld [vmem:[%s13109_s17 + $0x20] sm:$0xff] }
 0x193   : > { %10774 = vmatpush1.bf16.msra.mxu0 %v10773_v58  ;;  %v2001_v58 = vld [vmem:[#allocation12 + $0x28] sm:$0xff] }
 0x194   : > { %10776 = vmatprep.subr.bf16.mxu0 %v10775_v59  ;;  %v10982_v59 = vpack.c.bf16 %v4390_v55, %v4389_v54  ;;  %v10790_v61 = vpack.c.bf16 %v2001_v58, %v2000_v57  ;;  %v957_v54 = vld [vmem:[%s13109_s17 + $0x28] sm:$0xff]  ;;  %v990_v58 = vld [vmem:[%s13116_s1 + $0x30] sm:$0xff] }
 0x195   : > { %v4398_v57 = vld [vmem:[#allocation12 + $0x468] sm:$0xff] }
 0x196   : > { %10983 = vmatpush1.bf16.msra.mxu1 %v10982_v59  ;;  %v2008_v59 = vld [vmem:[#allocation12 + $0x60] sm:$0xff] }
 0x197   : > { %10778 = vmatpush1.bf16.msra.mxu0 %v10777_v0  ;;  %v987_v0 = vld [vmem:[%s13116_s1 + $0x18] sm:$0xff]  ;;  %10984 = vmatprep.subr.bf16.mxu1 %v16405_v43 }
 0x198   : > { %10780 = vmatprep.subr.bf16.mxu0 %v10779_v34  ;;  %v2002_v34 = vld [vmem:[#allocation12 + $0x30] sm:$0xff] }
 0x19a   : > { %10986 = vmatpush1.bf16.msra.mxu1 %v10985_v36  ;;  %v2010_v36 = vld [vmem:[#allocation12 + $0x70] sm:$0xff] }
 0x19b   : > { %10782 = vmatpush1.bf16.msra.mxu0 %v10781_v37  ;;  %v955_v37 = vld [vmem:[%s13109_s17 + $0x18] sm:$0xff]  ;;  %10987 = vmatprep.subr.bf16.mxu1 %v16405_v43 }
 0x19c   : > { %10783 = vmatprep.subr.bf16.mxu0 %v16405_v43 }
 0x19e   : > { %1157 = vmatmul.mubr.f32.vlgmr.msra.gmra.mrb[0].mxu0 %v952_v38  ;;  %v10793_v38 = vpack.c.bf16 %v2003_v35, %v2002_v34  ;;  %10989 = vmatpush1.bf16.msra.mxu1 %v10988_v45  ;;  %v4400_v34 = vld [vmem:[#allocation12 + $0x478] sm:$0xff]  ;;  %v2012_v45 = vld [vmem:[#allocation12 + $0x80] sm:$0xff] }
 0x19f   : > { %1162 = vmatprep.mubr.f32.mxu0 %v985_v41  ;;  %10785 = vmatpush1.bf16.msra.mxu0 %v10784_v42  ;;  %v988_v41 = vld [vmem:[%s13116_s1 + $0x20] sm:$0xff]  ;;  %v991_v35 = vld [vmem:[%s13116_s1 + $0x38] sm:$0xff] }
 0x1a0   : > { %10786 = vmatprep.subr.bf16.mxu0 %v16405_v43  ;;  %v2004_v42 = vld [vmem:[#allocation12 + $0x40] sm:$0xff]  ;;  %10990 = vmatprep.subr.bf16.mxu1 %v16405_v43 }
 0x1a1   : > { %v10796_v47 = vpack.c.bf16 %v2005_v44, %v2004_v42  ;;  %v4402_v42 = vld [vmem:[#allocation12 + $0x488] sm:$0xff]  ;;  %v992_v44 = vld [vmem:[%s13116_s1 + $0x40] sm:$0xff] }
 0x1a2   : > { %1163 = vmatmul.mubr.f32.gmra.mrb[2].mxu0 %v953_v52  ;;  %v2007_v52 = vld [vmem:[#allocation12 + $0x58] sm:$0xff] }
 0x1a3   : > { %1168 = vmatprep.mubr.f32.mxu0 %v986_v56  ;;  %10788 = vmatpush1.bf16.msra.mxu0 %v10787_v53  ;;  %v10991_v53 = vpack.c.bf16 %v4396_v49, %v4395_v48  ;;  %v10799_v55 = vpack.c.bf16 %v2007_v52, %v2006_v51  ;;  %v4397_v56 = vld [vmem:[#allocation12 + $0x460] sm:$0xff]  ;;  %v4404_v51 = vld [vmem:[#allocation12 + $0x498] sm:$0xff] }
 0x1a4   : > { %10789 = vmatprep.subr.bf16.mxu0 %v16405_v43  ;;  %v960_v48 = vld [vmem:[%s13109_s17 + $0x40] sm:$0xff]  ;;  %v993_v52 = vld [vmem:[%s13116_s1 + $0x48] sm:$0xff] }
 0x1a5   : > { %10992 = vmatpush1.bf16.msra.mxu1 %v10991_v53  ;;  %v2014_v53 = vld [vmem:[#allocation12 + $0x90] sm:$0xff] }
 0x1a6   : > { %1169 = vmatmul.mubr.f32.gmra.mrb[4].mxu0 %v954_v60  ;;  %v2009_v60 = vld [vmem:[#allocation12 + $0x68] sm:$0xff]  ;;  %10993 = vmatprep.subr.bf16.mxu1 %v16405_v43 }
 0x1a7   : > { %1174 = vmatprep.mubr.f32.mxu0 %v987_v0  ;;  %10791 = vmatpush1.bf16.msra.mxu0 %v10790_v61  ;;  %v10994_v61 = vpack.c.bf16 %v4398_v57, %v4397_v56  ;;  %v10802_v63 = vpack.c.bf16 %v2009_v60, %v2008_v59  ;;  %v4399_v0 = vld [vmem:[#allocation12 + $0x470] sm:$0xff]  ;;  %v961_v56 = vld [vmem:[%s13109_s17 + $0x48] sm:$0xff] }
 0x1a8   : > { %10792 = vmatprep.subr.bf16.mxu0 %v16405_v43  ;;  %v4406_v59 = vld [vmem:[#allocation12 + $0x4a8] sm:$0xff] }
 0x1a9   : > { %10995 = vmatpush1.bf16.msra.mxu1 %v10994_v61  ;;  %v994_v60 = vld [vmem:[%s13116_s1 + $0x50] sm:$0xff]  ;;  %v2016_v61 = vld [vmem:[#allocation12 + $0xa0] sm:$0xff] }
 0x1aa   : > { %1175 = vmatmul.mubr.f32.gmra.mrb[6].mxu0 %v955_v37  ;;  %v2011_v37 = vld [vmem:[#allocation12 + $0x78] sm:$0xff]  ;;  %10996 = vmatprep.subr.bf16.mxu1 %v16405_v43 }
 0x1ab   : > { %1180 = vmatprep.mubr.f32.mxu0 %v988_v41  ;;  %10794 = vmatpush1.bf16.msra.mxu0 %v10793_v38  ;;  %v10997_v38 = vpack.c.bf16 %v4400_v34, %v4399_v0  ;;  %v10805_v40 = vpack.c.bf16 %v2011_v37, %v2010_v36  ;;  %v4401_v41 = vld [vmem:[#allocation12 + $0x480] sm:$0xff]  ;;  %v962_v0 = vld [vmem:[%s13109_s17 + $0x50] sm:$0xff]  ;;  %v4408_v36 = vld [vmem:[#allocation12 + $0x4b8] sm:$0xff] }
 0x1ac   : > { %10795 = vmatprep.subr.bf16.mxu0 %v16405_v43  ;;  %v995_v37 = vld [vmem:[%s13116_s1 + $0x58] sm:$0xff] }
 0x1ad   : > { %10998 = vmatpush1.bf16.msra.mxu1 %v10997_v38  ;;  %v2018_v38 = vld [vmem:[#allocation12 + $0xb0] sm:$0xff] }
 0x1ae   : > { %1181 = vmatmul.mubr.f32.gmra.mrb[8].mxu0 %v956_v46  ;;  %v2013_v46 = vld [vmem:[#allocation12 + $0x88] sm:$0xff]  ;;  %10999 = vmatprep.subr.bf16.mxu1 %v16405_v43 }
 0x1af   : > { %1186 = vmatprep.mubr.f32.mxu0 %v989_v50  ;;  %10797 = vmatpush1.bf16.msra.mxu0 %v10796_v47  ;;  %v11000_v47 = vpack.c.bf16 %v4402_v42, %v4401_v41  ;;  %v10808_v49 = vpack.c.bf16 %v2013_v46, %v2012_v45  ;;  %v4403_v50 = vld [vmem:[#allocation12 + $0x490] sm:$0xff]  ;;  %v4410_v45 = vld [vmem:[#allocation12 + $0x4c8] sm:$0xff]  ;;  %v996_v46 = vld [vmem:[%s13116_s1 + $0x60] sm:$0xff] }
 0x1b0   : > { %10798 = vmatprep.subr.bf16.mxu0 %v16405_v43  ;;  %v963_v41 = vld [vmem:[%s13109_s17 + $0x58] sm:$0xff] }
 0x1b1   : > { %11001 = vmatpush1.bf16.msra.mxu1 %v11000_v47  ;;  %v2020_v47 = vld [vmem:[#allocation12 + $0xc0] sm:$0xff] }
 0x1b2   : > { %1187 = vmatmul.mubr.f32.gmra.mrb[10].mxu0 %v957_v54  ;;  %v2015_v54 = vld [vmem:[#allocation12 + $0x98] sm:$0xff]  ;;  %11002 = vmatprep.subr.bf16.mxu1 %v16405_v43 }
 0x1b3   : > { %1192 = vmatprep.mubr.f32.mxu0 %v990_v58  ;;  %10800 = vmatpush1.bf16.msra.mxu0 %v10799_v55  ;;  %v11003_v55 = vpack.c.bf16 %v4404_v51, %v4403_v50  ;;  %v10811_v57 = vpack.c.bf16 %v2015_v54, %v2014_v53  ;;  %v4405_v58 = vld [vmem:[#allocation12 + $0x4a0] sm:$0xff]  ;;  %v2022_v53 = vld [vmem:[#allocation12 + $0xd0] sm:$0xff]  ;;  %v2023_v54 = vld [vmem:[#allocation12 + $0xd8] sm:$0xff] }
 0x1b4   : > { %10801 = vmatprep.subr.bf16.mxu0 %v16405_v43  ;;  %v964_v50 = vld [vmem:[%s13109_s17 + $0x60] sm:$0xff] }
 0x1b5   : > { %11004 = vmatpush1.bf16.msra.mxu1 %v11003_v55  ;;  %v965_v55 = vld [vmem:[%s13109_s17 + $0x68] sm:$0xff] }
 0x1b6   : > { %1193 = vmatmul.mubr.f32.gmra.mrb[12].mxu0 %v958_v62  ;;  %v2017_v62 = vld [vmem:[#allocation12 + $0xa8] sm:$0xff]  ;;  %11005 = vmatprep.subr.bf16.mxu1 %v16405_v43 }
 0x1b7   : > { %1198 = vmatprep.mubr.f32.mxu0 %v991_v35  ;;  %10803 = vmatpush1.bf16.msra.mxu0 %v10802_v63  ;;  %v11006_v63 = vpack.c.bf16 %v4406_v59, %v4405_v58  ;;  %v10814_v34 = vpack.c.bf16 %v2017_v62, %v2016_v61  ;;  %v4407_v35 = vld [vmem:[#allocation12 + $0x4b0] sm:$0xff]  ;;  %v1000_v61 = vld [vmem:[%s13116_s1 + $0x80] sm:$0xff] }
 0x1b8   : > { %10804 = vmatprep.subr.bf16.mxu0 %v16405_v43  ;;  %v966_v58 = vld [vmem:[%s13109_s17 + $0x70] sm:$0xff]  ;;  %v999_v59 = vld [vmem:[%s13116_s1 + $0x78] sm:$0xff]  ;;  %v968_v62 = vld [vmem:[%s13109_s17 + $0x80] sm:$0xff] }
 0x1b9   : > { %11007 = vmatpush1.bf16.msra.mxu1 %v11006_v63  ;;  %v1001_v63 = vld [vmem:[%s13116_s1 + $0x88] sm:$0xff] }
 0x1ba   : > { %1199 = vmatmul.mubr.f32.gmra.mrb[14].mxu0 %v959_v39  ;;  %v2019_v39 = vld [vmem:[#allocation12 + $0xb8] sm:$0xff]  ;;  %11008 = vmatprep.subr.bf16.mxu1 %v16405_v43 }
 0x1bb   : > { %1204 = vmatprep.mubr.f32.mxu0 %v992_v44  ;;  %10806 = vmatpush1.bf16.msra.mxu0 %v10805_v40  ;;  %v11009_v40 = vpack.c.bf16 %v4408_v36, %v4407_v35  ;;  %v10817_v42 = vpack.c.bf16 %v2019_v39, %v2018_v38  ;;  %v4409_v44 = vld [vmem:[#allocation12 + $0x4c0] sm:$0xff]  ;;  %v970_v35 = vld [vmem:[%s13109_s17 + $0x90] sm:$0xff]  ;;  %v1003_v36 = vld [vmem:[%s13116_s1 + $0x98] sm:$0xff] }
 0x1bc   : > { %10807 = vmatprep.subr.bf16.mxu0 %v16405_v43  ;;  %v1004_v38 = vld [vmem:[%s13116_s1 + $0xa0] sm:$0xff] }
 0x1bd   : > { %11010 = vmatpush1.bf16.msra.mxu1 %v11009_v40  ;;  %v2024_v39 = vld [vmem:[#allocation12 + $0xe0] sm:$0xff]  ;;  %v2025_v40 = vld [vmem:[#allocation12 + $0xe8] sm:$0xff] }
 0x1be   : > { %1205 = vmatmul.mubr.f32.gmra.mrb[16].mxu0 %v960_v48  ;;  %v2021_v48 = vld [vmem:[#allocation12 + $0xc8] sm:$0xff]  ;;  %11011 = vmatprep.subr.bf16.mxu1 %v16405_v43 }
 0x1bf   : > { %1210 = vmatprep.mubr.f32.mxu0 %v993_v52  ;;  %10809 = vmatpush1.bf16.msra.mxu0 %v10808_v49  ;;  %v11012_v49 = vpack.c.bf16 %v4410_v45, %v4409_v44  ;;  %v10820_v51 = vpack.c.bf16 %v2021_v48, %v2020_v47  ;;  %v997_v52 = vld [vmem:[%s13116_s1 + $0x68] sm:$0xff]  ;;  %v4412_v44 = vld [vmem:[#allocation12 + $0x4d8] sm:$0xff]  ;;  %v2026_v48 = vld [vmem:[#allocation12 + $0xf0] sm:$0xff] }
 0x1c0   : > { %10810 = vmatprep.subr.bf16.mxu0 %v16405_v43  ;;  %v972_v45 = vld [vmem:[%s13109_s17 + $0xa0] sm:$0xff]  ;;  %v1005_v47 = vld [vmem:[%s13116_s1 + $0xa8] sm:$0xff] }
 0x1c1   : > { %11013 = vmatpush1.bf16.msra.mxu1 %v11012_v49  ;;  %v2027_v49 = vld [vmem:[#allocation12 + $0xf8] sm:$0xff] }
 0x1c2   : > { %1211 = vmatmul.mubr.f32.gmra.mrb[18].mxu0 %v961_v56  ;;  %v10823_v56 = vpack.c.bf16 %v2023_v54, %v2022_v53  ;;  %11014 = vmatprep.subr.bf16.mxu1 %v16405_v43  ;;  %v973_v53 = vld [vmem:[%s13109_s17 + $0xa8] sm:$0xff] }
 0x1c3   : > { %1216 = vmatprep.mubr.f32.mxu0 %v994_v60  ;;  %10812 = vmatpush1.bf16.msra.mxu0 %v10811_v57  ;;  %v998_v57 = vld [vmem:[%s13116_s1 + $0x70] sm:$0xff]  ;;  %v967_v60 = vld [vmem:[%s13109_s17 + $0x78] sm:$0xff] }
 0x1c4   : > { %10813 = vmatprep.subr.bf16.mxu0 %v16405_v43 }
 0x1c6   : > { %1217 = vmatmul.mubr.f32.gmra.mrb[20].mxu0 %v962_v0  ;;  %v969_v0 = vld [vmem:[%s13109_s17 + $0x88] sm:$0xff] }
 0x1c7   : > { %1222 = vmatprep.mubr.f32.mxu0 %v995_v37  ;;  %10815 = vmatpush1.bf16.msra.mxu0 %v10814_v34  ;;  %v1002_v34 = vld [vmem:[%s13116_s1 + $0x90] sm:$0xff]  ;;  %v971_v37 = vld [vmem:[%s13109_s17 + $0x98] sm:$0xff] }
 0x1c8   : > { %10816 = vmatprep.subr.bf16.mxu0 %v16405_v43 }
 0x1ca   : > { %1223 = vmatmul.mubr.f32.gmra.mrb[22].mxu0 %v963_v41  ;;  %v10826_v41 = vpack.c.bf16 %v2025_v40, %v2024_v39  ;;  %v979_v39 = vld [vmem:[%s13109_s17 + $0xd8] sm:$0xff]  ;;  %v1012_v40 = vld [vmem:[%s13116_s1 + $0xe0] sm:$0xff] }
 0x1cb   : > { %1228 = vmatprep.mubr.f32.mxu0 %v996_v46  ;;  %10818 = vmatpush1.bf16.msra.mxu0 %v10817_v42  ;;  %v4411_v42 = vld [vmem:[#allocation12 + $0x4d0] sm:$0xff] }
 0x1cc   : > { %10819 = vmatprep.subr.bf16.mxu0 %v16405_v43  ;;  %v11015_v46 = vpack.c.bf16 %v4412_v44, %v4411_v42  ;;  %v1013_v42 = vld [vmem:[%s13116_s1 + $0xe8] sm:$0xff] }
 0x1cd   : > { %v981_v44 = vld [vmem:[%s13109_s17 + $0xe8] sm:$0xff] }
 0x1ce   : > { %1229 = vmatmul.mubr.f32.gmra.mrb[24].mxu0 %v964_v50  ;;  %11016 = vmatpush1.bf16.msra.mxu1 %v11015_v46  ;;  %v10829_v50 = vpack.c.bf16 %v2027_v49, %v2026_v48  ;;  %v1510_v46 = vld [vmem:[#allocation2 + $0x8] sm:$0x80] }
 0x1cf   : > { %1234 = vmatprep.mubr.f32.mxu0 %v997_v52  ;;  %10821 = vmatpush1.bf16.msra.mxu0 %v10820_v51  ;;  %v4413_v51 = vld [vmem:[#allocation12 + $0x4e0] sm:$0xff]  ;;  %v4414_v52 = vld [vmem:[#allocation12 + $0x4e8] sm:$0xff]  ;;  %v1015_v48 = vld [vmem:[%s13116_s1 + $0xf8] sm:$0xff]  ;;  %v1709_v49 = vrot.slane %v1510_v46, 7 }
 0x1d0   : > { %10822 = vmatprep.subr.bf16.mxu0 %v16405_v43  ;;  %11017 = vmatprep.subr.bf16.mxu1 %v16405_v43  ;;  %v11018_v54 = vpack.c.bf16 %v4414_v52, %v4413_v51  ;;  %v1509_v51 = vld [vmem:[#allocation2] sm:$0x80]  ;;  %v983_v52 = vld [vmem:[%s13109_s17 + $0xf8] sm:$0xff] }
 0x1d2   : > { %1235 = vmatmul.mubr.f32.gmra.mrb[26].mxu0 %v965_v55  ;;  %v12716_v55 = vmov 0.0   ;;  %11019 = vmatpush1.bf16.msra.mxu1 %v11018_v54 }
 0x1d3   : > { %1240 = vmatprep.mubr.f32.mxu0 %v998_v57  ;;  %10824 = vmatpush1.bf16.msra.mxu0 %v10823_v56  ;;  %941 = vst [vmem:[#allocation2 + $0x18] sm:$0xff] %v12716_v55  ;;  %940 = vst [vmem:[#allocation2 + $0x10] sm:$0xff] %v12716_v55  ;;  %v1006_v56 = vld [vmem:[%s13116_s1 + $0xb0] sm:$0xff] }
 0x1d4   : > { %10825 = vmatprep.subr.bf16.mxu0 %v16405_v43  ;;  %942 = vst [vmem:[#allocation2 + $0x20] sm:$0xff] %v12716_v55  ;;  %943 = vst [vmem:[#allocation2 + $0x28] sm:$0xff] %v12716_v55  ;;  %11020 = vmatprep.subr.bf16.mxu1 %v16405_v43  ;;  %v4415_v57 = vld [vmem:[#allocation12 + $0x4f0] sm:$0xff] }
 0x1d5   : > { %944 = vst [vmem:[#allocation2 + $0x230] sm:$0xff] %v12716_v55  ;;  %945 = vst [vmem:[#allocation2 + $0x238] sm:$0xff] %v12716_v55 }
 0x1d6   : > { %1241 = vmatmul.mubr.f32.gmra.mrb[28].mxu0 %v966_v58  ;;  %946 = vst [vmem:[#allocation2 + $0x240] sm:$0xff] %v12716_v55  ;;  %947 = vst [vmem:[#allocation2 + $0x248] sm:$0xff] %v12716_v55  ;;  %v4416_v58 = vld [vmem:[#allocation12 + $0x4f8] sm:$0xff] }
 0x1d7   : > { %1246 = vmatprep.mubr.f32.mxu0 %v999_v59  ;;  %10827 = vmatpush1.bf16.msra.mxu0 %v10826_v41  ;;  %948 = vst [vmem:[#allocation3 + $0x8] sm:$0xff] %v12716_v55  ;;  %949 = vst [vmem:[#allocation3 + $0x10] sm:$0xff] %v12716_v55  ;;  %v974_v59 = vld [vmem:[%s13109_s17 + $0xb0] sm:$0xff]  ;;  %v980_v41 = vld [vmem:[%s13109_s17 + $0xe0] sm:$0xff] }
 0x1d8   : > { %10828 = vmatprep.subr.bf16.mxu0 %v16405_v43  ;;  %950 = vst [vmem:[#allocation3 + $0x118] sm:$0xff] %v12716_v55  ;;  %951 = vst [vmem:[#allocation3 + $0x120] sm:$0xff] %v12716_v55 }
 0x1da   : > { %1247 = vmatmul.mubr.f32.gmra.mrb[30].mxu0 %v967_v60  ;;  %v11021_v60 = vpack.c.bf16 %v4416_v58, %v4415_v57  ;;  %v2415_v57 = vld [vmem:[#allocation12 + $0x108] sm:$0xff] }
 0x1db   : > { %1252 = vmatprep.mubr.f32.mxu0 %v1000_v61  ;;  %10830 = vmatpush1.bf16.msra.mxu0 %v10829_v50  ;;  %v1007_v61 = vld [vmem:[%s13116_s1 + $0xb8] sm:$0xff]  ;;  %v13455_v50 = vrot.slane %v12716_v55, 7  ;;  %v2414_v55 = vld [vmem:[#allocation12 + $0x100] sm:$0xff] }
 0x1dc   : > { %10831 = vmatprep.subr.bf16.mxu0 %v16405_v43  ;;  %11022 = vmatpush1.bf16.msra.mxu1 %v11021_v60  ;;  %v10832_v58 = vpack.c.bf16 %v2415_v57, %v2414_v55  ;;  %v2417_v60 = vld [vmem:[#allocation12 + $0x118] sm:$0xff]  ;;  %v2434_v57 = vld [vmem:[#allocation12 + $0x1a0] sm:$0xff] }
 0x1dd   : > { %11023 = vmatprep.subr.bf16.mxu1 %v16405_v43  ;;  %v1711_v54 = vsel %vm16346_vm13, %v1709_v49, %v13455_v50 }
 0x1de   : > { %1253 = vmatmul.mubr.f32.gmra.mrb[32].mxu0 %v968_v62  ;;  %v975_v62 = vld [vmem:[%s13109_s17 + $0xb8] sm:$0xff] }
 0x1df   : > { %1258 = vmatprep.mubr.f32.mxu0 %v1001_v63  ;;  %v1008_v63 = vld [vmem:[%s13116_s1 + $0xc0] sm:$0xff] }
 0x1e2   : > { %1259 = vmatmul.mubr.f32.gmra.mrb[34].mxu0 %v969_v0  ;;  %v976_v0 = vld [vmem:[%s13109_s17 + $0xc0] sm:$0xff] }
 0x1e3   : > { %1264 = vmatprep.mubr.f32.mxu0 %v1002_v34  ;;  %v1009_v34 = vld [vmem:[%s13116_s1 + $0xc8] sm:$0xff] }
 0x1e6   : > { %1265 = vmatmul.mubr.f32.gmra.mrb[36].mxu0 %v970_v35  ;;  %v977_v35 = vld [vmem:[%s13109_s17 + $0xc8] sm:$0xff] }
 0x1e7   : > { %1270 = vmatprep.mubr.f32.mxu0 %v1003_v36  ;;  %v1010_v36 = vld [vmem:[%s13116_s1 + $0xd0] sm:$0xff] }
 0x1ea   : > { %1271 = vmatmul.mubr.f32.gmra.mrb[38].mxu0 %v971_v37  ;;  %v978_v37 = vld [vmem:[%s13109_s17 + $0xd0] sm:$0xff] }
 0x1eb   : > { %1276 = vmatprep.mubr.f32.mxu0 %v1004_v38  ;;  %v1011_v38 = vld [vmem:[%s13116_s1 + $0xd8] sm:$0xff] }
 0x1ee   : > { %1277 = vmatmul.mubr.f32.gmra.mrb[40].mxu0 %v972_v45  ;;  %v1014_v45 = vld [vmem:[%s13116_s1 + $0xf0] sm:$0xff] }
 0x1ef   : > { %1282 = vmatprep.mubr.f32.mxu0 %v1005_v47  ;;  %v982_v47 = vld [vmem:[%s13109_s17 + $0xf0] sm:$0xff] }
 0x1f2   : > { %1283 = vmatmul.mubr.f32.gmra.mrb[42].mxu0 %v973_v53  ;;  %v1706_v53 = vrot.slane %v1509_v51, 7  ;;  %v2430_v51 = vld [vmem:[#allocation12 + $0x180] sm:$0xff] }
 0x1f3   : > { %1288 = vmatprep.mubr.f32.mxu0 %v1006_v56 }
 0x1f4   : > { %v1708_v56 = vsel %vm16346_vm13, %v1706_v53, %v13455_v50 }
 0x1f6   : > { %1289 = vmatmul.mubr.f32.gmra.mrb[44].mxu0 %v974_v59  ;;  %v2416_v59 = vld [vmem:[#allocation12 + $0x110] sm:$0xff] }
 0x1f7   : > { %1294 = vmatprep.mubr.f32.mxu0 %v1007_v61  ;;  %v10835_v61 = vpack.c.bf16 %v2417_v60, %v2416_v59  ;;  %v2436_v60 = vld [vmem:[#allocation12 + $0x1b0] sm:$0xff] }
 0x1fa   : > { %1295 = vmatmul.mubr.f32.gmra.mrb[46].mxu0 %v975_v62  ;;  %v2418_v62 = vld [vmem:[#allocation12 + $0x120] sm:$0xff] }
 0x1fb   : > { %1300 = vmatprep.mubr.f32.mxu0 %v1008_v63  ;;  %v2419_v63 = vld [vmem:[#allocation12 + $0x128] sm:$0xff] }
 0x1fe   : > { %1301 = vmatmul.mubr.f32.gmra.mrb[48].mxu0 %v976_v0  ;;  %v10838_v0 = vpack.c.bf16 %v2419_v63, %v2418_v62  ;;  %v2438_v63 = vld [vmem:[#allocation12 + $0x1c0] sm:$0xff] }
 0x1ff   : > { %1306 = vmatprep.mubr.f32.mxu0 %v1009_v34  ;;  %v2420_v34 = vld [vmem:[#allocation12 + $0x130] sm:$0xff] }
 0x202   : > { %1307 = vmatmul.mubr.f32.gmra.mrb[50].mxu0 %v977_v35  ;;  %v2421_v35 = vld [vmem:[#allocation12 + $0x138] sm:$0xff] }
 0x203   : > { %1312 = vmatprep.mubr.f32.mxu0 %v1010_v36  ;;  %v10841_v36 = vpack.c.bf16 %v2421_v35, %v2420_v34  ;;  %v1084_v34 = vsub.s32 0, %v13141_v1 }
 0x206   : > { %1313 = vmatmul.mubr.f32.gmra.mrb[52].mxu0 %v978_v37  ;;  %v2422_v37 = vld [vmem:[#allocation12 + $0x140] sm:$0xff] }
 0x207   : > { %1318 = vmatprep.mubr.f32.mxu0 %v1011_v38  ;;  %v2423_v38 = vld [vmem:[#allocation12 + $0x148] sm:$0xff] }
 0x20a   : > { %1319 = vmatmul.mubr.f32.gmra.mrb[54].mxu0 %v979_v39  ;;  %v10844_v39 = vpack.c.bf16 %v2423_v38, %v2422_v37  ;;  %v1088_v37 = vsub.s32 1, %v13141_v1  ;;  %v2440_v38 = vld [vmem:[#allocation12 + $0x1d0] sm:$0xff]  ;;  %v5129_v1 = vld [vmem:[#allocation12 + $0x500] sm:$0xff] }
 0x20b   : > { %1324 = vmatprep.mubr.f32.mxu0 %v1012_v40  ;;  %v2424_v40 = vld [vmem:[#allocation12 + $0x150] sm:$0xff] }
 0x20e   : > { %1325 = vmatmul.mubr.f32.gmra.mrb[56].mxu0 %v980_v41  ;;  %v2425_v41 = vld [vmem:[#allocation12 + $0x158] sm:$0xff] }
 0x20f   : > { %1330 = vmatprep.mubr.f32.mxu0 %v1013_v42  ;;  %v10847_v42 = vpack.c.bf16 %v2425_v41, %v2424_v40 }
 0x212   : > { %1331 = vmatmul.mubr.f32.gmra.mrb[58].mxu0 %v981_v44  ;;  %v2426_v44 = vld [vmem:[#allocation12 + $0x160] sm:$0xff] }
 0x213   : > { %1336 = vmatprep.mubr.f32.mxu0 %v1014_v45  ;;  %v2427_v45 = vld [vmem:[#allocation12 + $0x168] sm:$0xff] }
 0x214   : > { %v10850_v46 = vpack.c.bf16 %v2427_v45, %v2426_v44  ;;  %v2442_v45 = vld [vmem:[#allocation12 + $0x1e0] sm:$0xff] }
 0x216   : > { %1337 = vmatmul.mubr.f32.gmra.mrb[60].mxu0 %v982_v47  ;;  %v2428_v47 = vld [vmem:[#allocation12 + $0x170] sm:$0xff] }
 0x217   : > { %1342 = vmatprep.mubr.f32.mxu0 %v1015_v48  ;;  %v2429_v48 = vld [vmem:[#allocation12 + $0x178] sm:$0xff] }
 0x218   : > { %v10853_v49 = vpack.c.bf16 %v2429_v48, %v2428_v47 }
 0x21a   : > { %1343 = vmatmul.mubr.f32.gmra.mrb[62].mxu0 %v983_v52  ;;  %v2431_v52 = vld [vmem:[#allocation12 + $0x188] sm:$0xff] }
 0x21b   : > { %10082 = vmatprep.mubr.msk.f32.mxu0 %vm13226_vm0, %v1711_v54  ;;  %v10856_v53 = vpack.c.bf16 %v2431_v52, %v2430_v51  ;;  %v2432_v54 = vld [vmem:[#allocation12 + $0x190] sm:$0xff] }
 0x21e   : > { %10083 = vmatmul.mubr.msk.f32.vlgmr.msra.gmra.mrb[64].mxu0 %vm13226_vm0, %v1708_v56  ;;  %v2433_v56 = vld [vmem:[#allocation12 + $0x198] sm:$0xff] }
 0x21f   : > { %2097 = vmatprep.mubr.f32.mxu0 %v13455_v50  ;;  %10833 = vmatpush1.bf16.msra.mxu0 %v10832_v58  ;;  %v10859_v55 = vpack.c.bf16 %v2433_v56, %v2432_v54  ;;  %v2435_v58 = vld [vmem:[#allocation12 + $0x1a8] sm:$0xff] }
 0x220   : > { %10834 = vmatprep.subr.bf16.mxu0 %v16405_v43  ;;  %v10862_v59 = vpack.c.bf16 %v2435_v58, %v2434_v57  ;;  %v2444_v57 = vld [vmem:[#allocation12 + $0x1f0] sm:$0xff]  ;;  %v2445_v58 = vld [vmem:[#allocation12 + $0x1f8] sm:$0xff] }
 0x222   : > { %2098 = vmatmul.mubr.f32.gmra.mrb[66].mxu0 %v13455_v50 }
 0x223   : > { %10836 = vmatpush1.bf16.msra.mxu0 %v10835_v61  ;;  %v2437_v61 = vld [vmem:[#allocation12 + $0x1b8] sm:$0xff] }
 0x224   : > { %10837 = vmatprep.subr.bf16.mxu0 %v16405_v43  ;;  %v10865_v62 = vpack.c.bf16 %v2437_v61, %v2436_v60 }
 0x227   : > { %10839 = vmatpush1.bf16.msra.mxu0 %v10838_v0  ;;  %v2439_v0 = vld [vmem:[#allocation12 + $0x1c8] sm:$0xff] }
 0x228   : > { %10840 = vmatprep.subr.bf16.mxu0 %v16405_v43  ;;  %v10868_v35 = vpack.c.bf16 %v2439_v0, %v2438_v63  ;;  %v5132_v63 = vld [vmem:[#allocation12 + $0x518] sm:$0xff]  ;;  %v10877_v0 = vpack.c.bf16 %v2445_v58, %v2444_v57 }
 0x22b   : > { %10842 = vmatpush1.bf16.msra.mxu0 %v10841_v36  ;;  %v1080_v36 = vld [vmem:[#allocation10] sm:$0x3] }
 0x22c   : > { %10843 = vmatprep.subr.bf16.mxu0 %v16405_v43  ;;  %v13483_v40 = vrot.slane %v1080_v36, %v1084_v34 }
 0x22f   : > { %10845 = vmatpush1.bf16.msra.mxu0 %v10844_v39  ;;  %v2441_v39 = vld [vmem:[#allocation12 + $0x1d8] sm:$0xff] }
 0x230   : > { %10846 = vmatprep.subr.bf16.mxu0 %v16405_v43  ;;  %v10871_v41 = vpack.c.bf16 %v2441_v39, %v2440_v38 }
 0x233   : > { %10848 = vmatpush1.bf16.msra.mxu0 %v10847_v42  ;;  %v13485_v42 = vrot.slane %v1080_v36, %v1088_v37 }
 0x234   : > { %10849 = vmatprep.subr.bf16.mxu0 %v16405_v43 }
 0x237   : > { %10851 = vmatpush1.bf16.msra.mxu0 %v10850_v46  ;;  %v2443_v46 = vld [vmem:[#allocation12 + $0x1e8] sm:$0xff] }
 0x238   : > { %10852 = vmatprep.subr.bf16.mxu0 %v16405_v43  ;;  %v10874_v51 = vpack.c.bf16 %v2443_v46, %v2442_v45 }
 0x23b   : > { %10854 = vmatpush1.bf16.msra.mxu0 %v10853_v49  ;;  %v5130_v49 = vld [vmem:[#allocation12 + $0x508] sm:$0xff] }
 0x23c   : > { %10855 = vmatprep.subr.bf16.mxu0 %v16405_v43 }
 0x23f   : > { %10857 = vmatpush1.bf16.msra.mxu0 %v10856_v53 }
 0x240   : > { %10858 = vmatprep.subr.bf16.mxu0 %v16405_v43 }
 0x243   : > { %10860 = vmatpush1.bf16.msra.mxu0 %v10859_v55  ;;  %v11024_v55 = vpack.c.bf16 %v5130_v49, %v5129_v1  ;;  %v5134_v1 = vld [vmem:[#allocation12 + $0x528] sm:$0xff] }
 0x244   : > { %10861 = vmatprep.subr.bf16.mxu0 %v16405_v43 }
 0x247   : > { %10863 = vmatpush1.bf16.msra.mxu0 %v10862_v59 }
 0x248   : > { %10864 = vmatprep.subr.bf16.mxu0 %v16405_v43 }
 0x24b   : > { %10866 = vmatpush1.bf16.msra.mxu0 %v10865_v62  ;;  %v5131_v62 = vld [vmem:[#allocation12 + $0x510] sm:$0xff] }
 0x24c   : > { %10867 = vmatprep.subr.bf16.mxu0 %v16405_v43 }
 0x24f   : > { %10869 = vmatpush1.bf16.msra.mxu0 %v10868_v35 }
 0x250   : > { %10870 = vmatprep.subr.bf16.mxu0 %v16405_v43 }
 0x253   : > { %10872 = vmatpush1.bf16.msra.mxu0 %v10871_v41  ;;  %v11027_v41 = vpack.c.bf16 %v5132_v63, %v5131_v62  ;;  %v5136_v62 = vld [vmem:[#allocation12 + $0x538] sm:$0xff] }
 0x254   : > { %10873 = vmatprep.subr.bf16.mxu0 %v16405_v43 }
 0x257   : > { %10875 = vmatpush1.bf16.msra.mxu0 %v10874_v51 }
 0x258   : > { %10876 = vmatprep.subr.bf16.mxu0 %v16405_v43 }
 0x25b   : > { %10878 = vmatpush1.bf16.msra.mxu0 %v10877_v0 }
 0x25c   : > { %10879 = vmatprep.subr.bf16.mxu0 %v16405_v43 }
 0x271   : > { %v1158_v44 = vpop.f32.mrb[0].mxu0 }
 0x272   : > { %v1159_v47 = vadd.f32 %v1158_v44, %v13483_v40  ;;  %v1160_v48 = vpop.f32.mrb[1].mxu0 }
 0x273   : > { %v1161_v52 = vadd.f32 %v1160_v48, %v13485_v42  ;;  %v5133_v48 = vld [vmem:[#allocation12 + $0x520] sm:$0xff] }
 0x274   : > { %v1349_v53 = vmax.f32 %v1159_v47, 0.0 }
 0x275   : > { %v1350_v54 = vmax.f32 %v1161_v52, 0.0  ;;  %v1164_v56 = vpop.f32.mrb[2].mxu0 }
 0x276   : > { %1413 = vst [vmem:[#allocation2 + $0x30] sm:$0xff] %v1349_v53  ;;  %v1165_v59 = vadd.f32 %v1164_v56, %v13483_v40  ;;  %v1166_v60 = vpop.f32.mrb[3].mxu0  ;;  %v1716_v61 = vrot.slane %v1349_v53, 7 }
 0x277   : > { %1414 = vst [vmem:[#allocation2 + $0x38] sm:$0xff] %v1350_v54  ;;  %v1167_v34 = vadd.f32 %v1166_v60, %v13485_v42  ;;  %4481 = vmatprep.mubr.f32.mxu1 %v1350_v54  ;;  %v1718_v35 = vrot.slane %v1350_v54, 7  ;;  %v5135_v60 = vld [vmem:[#allocation12 + $0x530] sm:$0xff] }
 0x278   : > { %v1351_v36 = vmax.f32 %v1165_v59, 0.0  ;;  %4482 = vmatmul.mubr.f32.vlgmr.msra.gmra.mrb[0].mxu1 %v1349_v53  ;;  %v1717_v46 = vsel %vm16346_vm13, %v13455_v50, %v1716_v61 }
 0x279   : > { %v1352_v37 = vmax.f32 %v1167_v34, 0.0  ;;  %v1170_v38 = vpop.f32.mrb[4].mxu0  ;;  %11025 = vmatpush1.bf16.msra.mxu1 %v11024_v55  ;;  %v1719_v39 = vsel %vm16346_vm13, %v13455_v50, %v1718_v35  ;;  %v11030_v55 = vpack.c.bf16 %v5134_v1, %v5133_v48 }
 0x27a   : > { %1415 = vst [vmem:[#allocation2 + $0x40] sm:$0xff] %v1351_v36  ;;  %v1171_v44 = vadd.f32 %v1170_v38, %v13483_v40  ;;  %v1172_v45 = vpop.f32.mrb[5].mxu0  ;;  %10084 = vmatprep.mubr.msk.f32.mxu0 %vm13230_vm1, %v1719_v39  ;;  %v1720_v47 = vrot.slane %v1351_v36, 7  ;;  %11026 = vmatprep.subr.bf16.mxu1 %v16405_v43  ;;  %v11033_v38 = vpack.c.bf16 %v5136_v62, %v5135_v60 }
 0x27b   : > { %1416 = vst [vmem:[#allocation2 + $0x48] sm:$0xff] %v1352_v37  ;;  %v1173_v49 = vadd.f32 %v1172_v45, %v13485_v42  ;;  %10085 = vmatmul.mubr.msk.f32.gmra.mrb[68].mxu0 %vm13230_vm1, %v1717_v46  ;;  %4486 = vmatprep.mubr.f32.mxu1 %v1352_v37  ;;  %v1722_v51 = vrot.slane %v1352_v37, 7  ;;  %v5137_v45 = vld [vmem:[#allocation12 + $0x540] sm:$0xff]  ;;  %v5138_v46 = vld [vmem:[#allocation12 + $0x548] sm:$0xff] }
 0x27c   : > { %v1353_v52 = vmax.f32 %v1171_v44, 0.0  ;;  %4487 = vmatmul.mubr.f32.gmra.mrb[2].mxu1 %v1351_v36  ;;  %v1721_v53 = vsel %vm16346_vm13, %v1716_v61, %v1720_v47 }
 0x27d   : > { %v1354_v54 = vmax.f32 %v1173_v49, 0.0  ;;  %v1176_v56 = vpop.f32.mrb[6].mxu0  ;;  %v1723_v50 = vsel %vm16346_vm13, %v1718_v35, %v1722_v51  ;;  %11028 = vmatpush1.bf16.msra.mxu1 %v11027_v41 }
 0x27e   : > { %1417 = vst [vmem:[#allocation2 + $0x50] sm:$0xff] %v1353_v52  ;;  %v1177_v57 = vadd.f32 %v1176_v56, %v13483_v40  ;;  %v1178_v58 = vpop.f32.mrb[7].mxu0  ;;  %2107 = vmatprep.mubr.f32.mxu0 %v1723_v50  ;;  %v1724_v59 = vrot.slane %v1353_v52, 7  ;;  %11029 = vmatprep.subr.bf16.mxu1 %v16405_v43 }
 0x27f   : > { %1418 = vst [vmem:[#allocation2 + $0x58] sm:$0xff] %v1354_v54  ;;  %v1179_v63 = vadd.f32 %v1178_v58, %v13485_v42  ;;  %2108 = vmatmul.mubr.f32.gmra.mrb[70].mxu0 %v1721_v53  ;;  %4491 = vmatprep.mubr.f32.mxu1 %v1354_v54  ;;  %v1726_v61 = vrot.slane %v1354_v54, 7  ;;  %v11036_v54 = vpack.c.bf16 %v5138_v46, %v5137_v45  ;;  %v5140_v58 = vld [vmem:[#allocation12 + $0x558] sm:$0xff] }
 0x280   : > { %v1355_v0 = vmax.f32 %v1177_v57, 0.0  ;;  %4492 = vmatmul.mubr.f32.gmra.mrb[4].mxu1 %v1353_v52  ;;  %v1725_v34 = vsel %vm16346_vm13, %v1720_v47, %v1724_v59  ;;  %v5139_v57 = vld [vmem:[#allocation12 + $0x550] sm:$0xff] }
 0x281   : > { %v1356_v35 = vmax.f32 %v1179_v63, 0.0  ;;  %v1182_v36 = vpop.f32.mrb[8].mxu0  ;;  %v1727_v37 = vsel %vm16346_vm13, %v1722_v51, %v1726_v61  ;;  %11031 = vmatpush1.bf16.msra.mxu1 %v11030_v55 }
 0x282   : > { %1419 = vst [vmem:[#allocation2 + $0x60] sm:$0xff] %v1355_v0  ;;  %v1183_v39 = vadd.f32 %v1182_v36, %v13483_v40  ;;  %v1184_v41 = vpop.f32.mrb[9].mxu0  ;;  %10086 = vmatprep.mubr.msk.f32.mxu0 %vm13234_vm2, %v1727_v37  ;;  %v1728_v44 = vrot.slane %v1355_v0, 7  ;;  %11032 = vmatprep.subr.bf16.mxu1 %v16405_v43 }
 0x283   : > { %1420 = vst [vmem:[#allocation2 + $0x68] sm:$0xff] %v1356_v35  ;;  %v1185_v47 = vadd.f32 %v1184_v41, %v13485_v42  ;;  %10087 = vmatmul.mubr.msk.f32.gmra.mrb[72].mxu0 %vm13234_vm2, %v1725_v34  ;;  %4496 = vmatprep.mubr.f32.mxu1 %v1356_v35  ;;  %v1730_v48 = vrot.slane %v1356_v35, 7  ;;  %v11039_v35 = vpack.c.bf16 %v5140_v58, %v5139_v57  ;;  %v5142_v41 = vld [vmem:[#allocation12 + $0x568] sm:$0xff] }
 0x284   : > { %v1357_v1 = vmax.f32 %v1183_v39, 0.0  ;;  %4497 = vmatmul.mubr.f32.gmra.mrb[6].mxu1 %v1355_v0  ;;  %v1729_v49 = vsel %vm16346_vm13, %v1724_v59, %v1728_v44  ;;  %v5141_v39 = vld [vmem:[#allocation12 + $0x560] sm:$0xff] }
 0x285   : > { %v1358_v51 = vmax.f32 %v1185_v47, 0.0  ;;  %v1188_v52 = vpop.f32.mrb[10].mxu0  ;;  %v1731_v53 = vsel %vm16346_vm13, %v1726_v61, %v1730_v48  ;;  %11034 = vmatpush1.bf16.msra.mxu1 %v11033_v38 }
 0x286   : > { %1421 = vst [vmem:[#allocation2 + $0x70] sm:$0xff] %v1357_v1  ;;  %v1189_v56 = vadd.f32 %v1188_v52, %v13483_v40  ;;  %v1190_v50 = vpop.f32.mrb[11].mxu0  ;;  %2117 = vmatprep.mubr.f32.mxu0 %v1731_v53  ;;  %v1732_v55 = vrot.slane %v1357_v1, 7  ;;  %11035 = vmatprep.subr.bf16.mxu1 %v16405_v43 }
 0x287   : > { %1422 = vst [vmem:[#allocation2 + $0x78] sm:$0xff] %v1358_v51  ;;  %v1191_v60 = vadd.f32 %v1190_v50, %v13485_v42  ;;  %2118 = vmatmul.mubr.f32.gmra.mrb[74].mxu0 %v1729_v49  ;;  %4501 = vmatprep.mubr.f32.mxu1 %v1358_v51  ;;  %v1734_v59 = vrot.slane %v1358_v51, 7  ;;  %v11042_v51 = vpack.c.bf16 %v5142_v41, %v5141_v39  ;;  %v5144_v50 = vld [vmem:[#allocation12 + $0x578] sm:$0xff] }
 0x288   : > { %v1359_v62 = vmax.f32 %v1189_v56, 0.0  ;;  %4502 = vmatmul.mubr.f32.gmra.mrb[8].mxu1 %v1357_v1  ;;  %v1733_v63 = vsel %vm16346_vm13, %v1728_v44, %v1732_v55  ;;  %v5143_v56 = vld [vmem:[#allocation12 + $0x570] sm:$0xff] }
 0x289   : > { %v1360_v61 = vmax.f32 %v1191_v60, 0.0  ;;  %v1194_v0 = vpop.f32.mrb[12].mxu0  ;;  %v1735_v34 = vsel %vm16346_vm13, %v1730_v48, %v1734_v59  ;;  %11037 = vmatpush1.bf16.msra.mxu1 %v11036_v54 }
 0x28a   : > { %1423 = vst [vmem:[#allocation2 + $0x80] sm:$0xff] %v1359_v62  ;;  %v1195_v36 = vadd.f32 %v1194_v0, %v13483_v40  ;;  %v1196_v37 = vpop.f32.mrb[13].mxu0  ;;  %10088 = vmatprep.mubr.msk.f32.mxu0 %vm13238_vm3, %v1735_v34  ;;  %v1736_v38 = vrot.slane %v1359_v62, 7  ;;  %11038 = vmatprep.subr.bf16.mxu1 %v16405_v43 }
 0x28b   : > { %1424 = vst [vmem:[#allocation2 + $0x88] sm:$0xff] %v1360_v61  ;;  %v1197_v44 = vadd.f32 %v1196_v37, %v13485_v42  ;;  %10089 = vmatmul.mubr.msk.f32.gmra.mrb[76].mxu0 %vm13238_vm3, %v1733_v63  ;;  %4506 = vmatprep.mubr.f32.mxu1 %v1360_v61  ;;  %v1738_v45 = vrot.slane %v1360_v61, 7  ;;  %v11045_v61 = vpack.c.bf16 %v5144_v50, %v5143_v56  ;;  %v5146_v37 = vld [vmem:[#allocation12 + $0x588] sm:$0xff] }
 0x28c   : > { %v1361_v46 = vmax.f32 %v1195_v36, 0.0  ;;  %4507 = vmatmul.mubr.f32.gmra.mrb[10].mxu1 %v1359_v62  ;;  %v1737_v47 = vsel %vm16346_vm13, %v1732_v55, %v1736_v38  ;;  %v5145_v36 = vld [vmem:[#allocation12 + $0x580] sm:$0xff] }
 0x28d   : > { %v1362_v48 = vmax.f32 %v1197_v44, 0.0  ;;  %v1200_v1 = vpop.f32.mrb[14].mxu0  ;;  %v1739_v49 = vsel %vm16346_vm13, %v1734_v59, %v1738_v45  ;;  %11040 = vmatpush1.bf16.msra.mxu1 %v11039_v35 }
 0x28e   : > { %1425 = vst [vmem:[#allocation2 + $0x90] sm:$0xff] %v1361_v46  ;;  %v1201_v52 = vadd.f32 %v1200_v1, %v13483_v40  ;;  %v1202_v53 = vpop.f32.mrb[15].mxu0  ;;  %2127 = vmatprep.mubr.f32.mxu0 %v1739_v49  ;;  %v1740_v54 = vrot.slane %v1361_v46, 7  ;;  %11041 = vmatprep.subr.bf16.mxu1 %v16405_v43 }
 0x28f   : > { %1426 = vst [vmem:[#allocation2 + $0x98] sm:$0xff] %v1362_v48  ;;  %v1203_v57 = vadd.f32 %v1202_v53, %v13485_v42  ;;  %2128 = vmatmul.mubr.f32.gmra.mrb[78].mxu0 %v1737_v47  ;;  %4511 = vmatprep.mubr.f32.mxu1 %v1362_v48  ;;  %v1742_v55 = vrot.slane %v1362_v48, 7  ;;  %v11048_v48 = vpack.c.bf16 %v5146_v37, %v5145_v36  ;;  %v5148_v53 = vld [vmem:[#allocation12 + $0x598] sm:$0xff] }
 0x290   : > { %v1363_v58 = vmax.f32 %v1201_v52, 0.0  ;;  %4512 = vmatmul.mubr.f32.gmra.mrb[12].mxu1 %v1361_v46  ;;  %v1741_v60 = vsel %vm16346_vm13, %v1736_v38, %v1740_v54  ;;  %v5147_v52 = vld [vmem:[#allocation12 + $0x590] sm:$0xff] }
 0x291   : > { %v1364_v59 = vmax.f32 %v1203_v57, 0.0  ;;  %v1206_v62 = vpop.f32.mrb[16].mxu0  ;;  %v1743_v63 = vsel %vm16346_vm13, %v1738_v45, %v1742_v55  ;;  %11043 = vmatpush1.bf16.msra.mxu1 %v11042_v51 }
 0x292   : > { %1427 = vst [vmem:[#allocation2 + $0xa0] sm:$0xff] %v1363_v58  ;;  %v1207_v0 = vadd.f32 %v1206_v62, %v13483_v40  ;;  %v1208_v34 = vpop.f32.mrb[17].mxu0  ;;  %10090 = vmatprep.mubr.msk.f32.mxu0 %vm13242_vm4, %v1743_v63  ;;  %v1744_v35 = vrot.slane %v1363_v58, 7  ;;  %11044 = vmatprep.subr.bf16.mxu1 %v16405_v43 }
 0x293   : > { %1428 = vst [vmem:[#allocation2 + $0xa8] sm:$0xff] %v1364_v59  ;;  %v1209_v38 = vadd.f32 %v1208_v34, %v13485_v42  ;;  %10091 = vmatmul.mubr.msk.f32.gmra.mrb[80].mxu0 %vm13242_vm4, %v1741_v60  ;;  %4516 = vmatprep.mubr.f32.mxu1 %v1364_v59  ;;  %v1746_v39 = vrot.slane %v1364_v59, 7  ;;  %v11051_v59 = vpack.c.bf16 %v5148_v53, %v5147_v52  ;;  %v5150_v34 = vld [vmem:[#allocation12 + $0x5a8] sm:$0xff] }
 0x294   : > { %v1365_v41 = vmax.f32 %v1207_v0, 0.0  ;;  %4517 = vmatmul.mubr.f32.gmra.mrb[14].mxu1 %v1363_v58  ;;  %v1745_v44 = vsel %vm16346_vm13, %v1740_v54, %v1744_v35  ;;  %v5149_v0 = vld [vmem:[#allocation12 + $0x5a0] sm:$0xff] }
 0x295   : > { %v1366_v45 = vmax.f32 %v1209_v38, 0.0  ;;  %v1212_v46 = vpop.f32.mrb[18].mxu0  ;;  %v1747_v47 = vsel %vm16346_vm13, %v1742_v55, %v1746_v39  ;;  %11046 = vmatpush1.bf16.msra.mxu1 %v11045_v61  ;;  %v14614_v3 = vld [vmem:[#allocation2 + $0x90] sm:$0xff] }
 0x296   : > { %1429 = vst [vmem:[#allocation2 + $0xb0] sm:$0xff] %v1365_v41  ;;  %v1213_v1 = vadd.f32 %v1212_v46, %v13483_v40  ;;  %v1214_v49 = vpop.f32.mrb[19].mxu0  ;;  %2137 = vmatprep.mubr.f32.mxu0 %v1747_v47  ;;  %v1748_v51 = vrot.slane %v1365_v41, 7  ;;  %11047 = vmatprep.subr.bf16.mxu1 %v16405_v43 }
 0x297   : > { %1430 = vst [vmem:[#allocation2 + $0xb8] sm:$0xff] %v1366_v45  ;;  %v1215_v56 = vadd.f32 %v1214_v49, %v13485_v42  ;;  %2138 = vmatmul.mubr.f32.gmra.mrb[82].mxu0 %v1745_v44  ;;  %4521 = vmatprep.mubr.f32.mxu1 %v1366_v45  ;;  %v1750_v54 = vrot.slane %v1366_v45, 7  ;;  %v11054_v45 = vpack.c.bf16 %v5150_v34, %v5149_v0  ;;  %v5152_v49 = vld [vmem:[#allocation12 + $0x5b8] sm:$0xff] }
 0x298   : > { %v1367_v50 = vmax.f32 %v1213_v1, 0.0  ;;  %4522 = vmatmul.mubr.f32.gmra.mrb[16].mxu1 %v1365_v41  ;;  %v1749_v57 = vsel %vm16346_vm13, %v1744_v35, %v1748_v51  ;;  %v5151_v1 = vld [vmem:[#allocation12 + $0x5b0] sm:$0xff] }
 0x299   : > { %v1368_v55 = vmax.f32 %v1215_v56, 0.0  ;;  %v1218_v58 = vpop.f32.mrb[20].mxu0  ;;  %v1751_v60 = vsel %vm16346_vm13, %v1746_v39, %v1750_v54  ;;  %11049 = vmatpush1.bf16.msra.mxu1 %v11048_v48 }
 0x29a   : > { %1431 = vst [vmem:[#allocation2 + $0xc0] sm:$0xff] %v1367_v50  ;;  %v1219_v62 = vadd.f32 %v1218_v58, %v13483_v40  ;;  %v1220_v63 = vpop.f32.mrb[21].mxu0  ;;  %10092 = vmatprep.mubr.msk.f32.mxu0 %vm13246_vm5, %v1751_v60  ;;  %v1752_v61 = vrot.slane %v1367_v50, 7  ;;  %11050 = vmatprep.subr.bf16.mxu1 %v16405_v43 }
 0x29b   : > { %1432 = vst [vmem:[#allocation2 + $0xc8] sm:$0xff] %v1368_v55  ;;  %v1221_v35 = vadd.f32 %v1220_v63, %v13485_v42  ;;  %10093 = vmatmul.mubr.msk.f32.gmra.mrb[84].mxu0 %vm13246_vm5, %v1749_v57  ;;  %4526 = vmatprep.mubr.f32.mxu1 %v1368_v55  ;;  %v1754_v36 = vrot.slane %v1368_v55, 7  ;;  %v11057_v55 = vpack.c.bf16 %v5152_v49, %v5151_v1  ;;  %v5154_v63 = vld [vmem:[#allocation12 + $0x5c8] sm:$0xff]  ;;  %vm16629_vm5 = vnez %v16581_v22 }
 0x29c   : > { %v1369_v37 = vmax.f32 %v1219_v62, 0.0  ;;  %4527 = vmatmul.mubr.f32.gmra.mrb[18].mxu1 %v1367_v50  ;;  %v1753_v38 = vsel %vm16346_vm13, %v1748_v51, %v1752_v61  ;;  %v5153_v62 = vld [vmem:[#allocation12 + $0x5c0] sm:$0xff] }
 0x29d   : > { %v1370_v39 = vmax.f32 %v1221_v35, 0.0  ;;  %v1224_v41 = vpop.f32.mrb[22].mxu0  ;;  %v1755_v44 = vsel %vm16346_vm13, %v1750_v54, %v1754_v36  ;;  %11052 = vmatpush1.bf16.msra.mxu1 %v11051_v59 }
 0x29e   : > { %1433 = vst [vmem:[#allocation2 + $0xd0] sm:$0xff] %v1369_v37  ;;  %v1225_v46 = vadd.f32 %v1224_v41, %v13483_v40  ;;  %v1226_v47 = vpop.f32.mrb[23].mxu0  ;;  %2147 = vmatprep.mubr.f32.mxu0 %v1755_v44  ;;  %v1756_v48 = vrot.slane %v1369_v37, 7  ;;  %11053 = vmatprep.subr.bf16.mxu1 %v16405_v43 }
 0x29f   : > { %1434 = vst [vmem:[#allocation2 + $0xd8] sm:$0xff] %v1370_v39  ;;  %v1227_v52 = vadd.f32 %v1226_v47, %v13485_v42  ;;  %2148 = vmatmul.mubr.f32.gmra.mrb[86].mxu0 %v1753_v38  ;;  %4531 = vmatprep.mubr.f32.mxu1 %v1370_v39  ;;  %v1758_v51 = vrot.slane %v1370_v39, 7  ;;  %v11060_v39 = vpack.c.bf16 %v5154_v63, %v5153_v62  ;;  %v5156_v47 = vld [vmem:[#allocation12 + $0x5d8] sm:$0xff] }
 0x2a0   : > { %v1371_v53 = vmax.f32 %v1225_v46, 0.0  ;;  %4532 = vmatmul.mubr.f32.gmra.mrb[20].mxu1 %v1369_v37  ;;  %v1757_v56 = vsel %vm16346_vm13, %v1752_v61, %v1756_v48  ;;  %v5155_v46 = vld [vmem:[#allocation12 + $0x5d0] sm:$0xff] }
 0x2a1   : > { %v1372_v54 = vmax.f32 %v1227_v52, 0.0  ;;  %v1230_v50 = vpop.f32.mrb[24].mxu0  ;;  %v1759_v57 = vsel %vm16346_vm13, %v1754_v36, %v1758_v51  ;;  %11055 = vmatpush1.bf16.msra.mxu1 %v11054_v45  ;;  %v14655_v29 = vld [vmem:[#allocation2 + $0xc0] sm:$0xff] }
 0x2a2   : > { %1435 = vst [vmem:[#allocation2 + $0xe0] sm:$0xff] %v1371_v53  ;;  %v1231_v58 = vadd.f32 %v1230_v50, %v13483_v40  ;;  %v1232_v60 = vpop.f32.mrb[25].mxu0  ;;  %10094 = vmatprep.mubr.msk.f32.mxu0 %vm13250_vm6, %v1759_v57  ;;  %v1760_v59 = vrot.slane %v1371_v53, 7  ;;  %11056 = vmatprep.subr.bf16.mxu1 %v16405_v43 }
 0x2a3   : > { %1436 = vst [vmem:[#allocation2 + $0xe8] sm:$0xff] %v1372_v54  ;;  %v1233_v61 = vadd.f32 %v1232_v60, %v13485_v42  ;;  %10095 = vmatmul.mubr.msk.f32.gmra.mrb[88].mxu0 %vm13250_vm6, %v1757_v56  ;;  %4536 = vmatprep.mubr.f32.mxu1 %v1372_v54  ;;  %v1762_v0 = vrot.slane %v1372_v54, 7  ;;  %v11063_v54 = vpack.c.bf16 %v5156_v47, %v5155_v46  ;;  %v5158_v60 = vld [vmem:[#allocation12 + $0x5e8] sm:$0xff]  ;;  %vm16628_vm6 = vnez %v16579_v21 }
 0x2a4   : > { %v1373_v34 = vmax.f32 %v1231_v58, 0.0  ;;  %4537 = vmatmul.mubr.f32.gmra.mrb[22].mxu1 %v1371_v53  ;;  %v1761_v35 = vsel %vm16346_vm13, %v1756_v48, %v1760_v59  ;;  %v5157_v58 = vld [vmem:[#allocation12 + $0x5e0] sm:$0xff] }
 0x2a5   : > { %v1374_v36 = vmax.f32 %v1233_v61, 0.0  ;;  %v1236_v37 = vpop.f32.mrb[26].mxu0  ;;  %v1763_v38 = vsel %vm16346_vm13, %v1758_v51, %v1762_v0  ;;  %11058 = vmatpush1.bf16.msra.mxu1 %v11057_v55  ;;  %v14666_v28 = vld [vmem:[#allocation2 + $0xd0] sm:$0xff] }
 0x2a6   : > { %1437 = vst [vmem:[#allocation2 + $0xf0] sm:$0xff] %v1373_v34  ;;  %v1237_v41 = vadd.f32 %v1236_v37, %v13483_v40  ;;  %v1238_v44 = vpop.f32.mrb[27].mxu0  ;;  %2157 = vmatprep.mubr.f32.mxu0 %v1763_v38  ;;  %v1764_v45 = vrot.slane %v1373_v34, 7  ;;  %11059 = vmatprep.subr.bf16.mxu1 %v16405_v43 }
 0x2a7   : > { %1438 = vst [vmem:[#allocation2 + $0xf8] sm:$0xff] %v1374_v36  ;;  %v1239_v1 = vadd.f32 %v1238_v44, %v13485_v42  ;;  %2158 = vmatmul.mubr.f32.gmra.mrb[90].mxu0 %v1761_v35  ;;  %4541 = vmatprep.mubr.f32.mxu1 %v1374_v36  ;;  %v1766_v48 = vrot.slane %v1374_v36, 7  ;;  %v11066_v36 = vpack.c.bf16 %v5158_v60, %v5157_v58  ;;  %v5160_v44 = vld [vmem:[#allocation12 + $0x5f8] sm:$0xff] }
 0x2a8   : > { %v1375_v49 = vmax.f32 %v1237_v41, 0.0  ;;  %4542 = vmatmul.mubr.f32.gmra.mrb[24].mxu1 %v1373_v34  ;;  %v1765_v52 = vsel %vm16346_vm13, %v1760_v59, %v1764_v45  ;;  %v5159_v41 = vld [vmem:[#allocation12 + $0x5f0] sm:$0xff] }
 0x2a9   : > { %v1376_v51 = vmax.f32 %v1239_v1, 0.0  ;;  %v1242_v53 = vpop.f32.mrb[28].mxu0  ;;  %v1767_v56 = vsel %vm16346_vm13, %v1762_v0, %v1766_v48  ;;  %11061 = vmatpush1.bf16.msra.mxu1 %v11060_v39 }
 0x2aa   : > { %1439 = vst [vmem:[#allocation2 + $0x100] sm:$0xff] %v1375_v49  ;;  %v1243_v50 = vadd.f32 %v1242_v53, %v13483_v40  ;;  %v1244_v57 = vpop.f32.mrb[29].mxu0  ;;  %10096 = vmatprep.mubr.msk.f32.mxu0 %vm13254_vm7, %v1767_v56  ;;  %v1768_v55 = vrot.slane %v1375_v49, 7  ;;  %11062 = vmatprep.subr.bf16.mxu1 %v16405_v43 }
 0x2ab   : > { %1440 = vst [vmem:[#allocation2 + $0x108] sm:$0xff] %v1376_v51  ;;  %v1245_v59 = vadd.f32 %v1244_v57, %v13485_v42  ;;  %10097 = vmatmul.mubr.msk.f32.gmra.mrb[92].mxu0 %vm13254_vm7, %v1765_v52  ;;  %4546 = vmatprep.mubr.f32.mxu1 %v1376_v51  ;;  %v1770_v62 = vrot.slane %v1376_v51, 7  ;;  %v11069_v51 = vpack.c.bf16 %v5160_v44, %v5159_v41  ;;  %vm16627_vm7 = vnez %v16577_v20 }
 0x2ac   : > { %v1377_v63 = vmax.f32 %v1243_v50, 0.0  ;;  %4547 = vmatmul.mubr.f32.gmra.mrb[26].mxu1 %v1375_v49  ;;  %v1769_v61 = vsel %vm16346_vm13, %v1764_v45, %v1768_v55 }
 0x2ad   : > { %v1378_v0 = vmax.f32 %v1245_v59, 0.0  ;;  %v1248_v34 = vpop.f32.mrb[30].mxu0  ;;  %v1771_v35 = vsel %vm16346_vm13, %v1766_v48, %v1770_v62  ;;  %11064 = vmatpush1.bf16.msra.mxu1 %v11063_v54 }
 0x2ae   : > { %1441 = vst [vmem:[#allocation2 + $0x110] sm:$0xff] %v1377_v63  ;;  %v1249_v37 = vadd.f32 %v1248_v34, %v13483_v40  ;;  %v1250_v38 = vpop.f32.mrb[31].mxu0  ;;  %2167 = vmatprep.mubr.f32.mxu0 %v1771_v35  ;;  %v1772_v39 = vrot.slane %v1377_v63, 7  ;;  %11065 = vmatprep.subr.bf16.mxu1 %v16405_v43 }
 0x2af   : > { %1442 = vst [vmem:[#allocation2 + $0x118] sm:$0xff] %v1378_v0  ;;  %v1251_v46 = vadd.f32 %v1250_v38, %v13485_v42  ;;  %2168 = vmatmul.mubr.f32.gmra.mrb[94].mxu0 %v1769_v61  ;;  %4551 = vmatprep.mubr.f32.mxu1 %v1378_v0  ;;  %v1774_v45 = vrot.slane %v1378_v0, 7 }
 0x2b0   : > { %v1379_v47 = vmax.f32 %v1249_v37, 0.0  ;;  %4552 = vmatmul.mubr.f32.gmra.mrb[28].mxu1 %v1377_v63  ;;  %v1773_v1 = vsel %vm16346_vm13, %v1768_v55, %v1772_v39 }
 0x2b1   : > { %v1380_v48 = vmax.f32 %v1251_v46, 0.0  ;;  %v1254_v49 = vpop.f32.mrb[32].mxu0  ;;  %v1775_v52 = vsel %vm16346_vm13, %v1770_v62, %v1774_v45  ;;  %11067 = vmatpush1.bf16.msra.mxu1 %v11066_v36 }
 0x2b2   : > { %1443 = vst [vmem:[#allocation2 + $0x120] sm:$0xff] %v1379_v47  ;;  %v1255_v53 = vadd.f32 %v1254_v49, %v13483_v40  ;;  %v1256_v56 = vpop.f32.mrb[33].mxu0  ;;  %10098 = vmatprep.mubr.msk.f32.mxu0 %vm13258_vm8, %v1775_v52  ;;  %v1776_v54 = vrot.slane %v1379_v47, 7  ;;  %11068 = vmatprep.subr.bf16.mxu1 %v16405_v43 }
 0x2b3   : > { %1444 = vst [vmem:[#allocation2 + $0x128] sm:$0xff] %v1380_v48  ;;  %v1257_v50 = vadd.f32 %v1256_v56, %v13485_v42  ;;  %10099 = vmatmul.mubr.msk.f32.gmra.mrb[96].mxu0 %vm13258_vm8, %v1773_v1  ;;  %4556 = vmatprep.mubr.f32.mxu1 %v1380_v48  ;;  %v1778_v57 = vrot.slane %v1380_v48, 7 }
 0x2b4   : > { %v1381_v55 = vmax.f32 %v1255_v53, 0.0  ;;  %4557 = vmatmul.mubr.f32.gmra.mrb[30].mxu1 %v1379_v47  ;;  %v1777_v58 = vsel %vm16346_vm13, %v1772_v39, %v1776_v54 }
 0x2b5   : > { %v1382_v60 = vmax.f32 %v1257_v50, 0.0  ;;  %v1260_v59 = vpop.f32.mrb[34].mxu0  ;;  %v1779_v62 = vsel %vm16346_vm13, %v1774_v45, %v1778_v57  ;;  %11070 = vmatpush1.bf16.msra.mxu1 %v11069_v51 }
 0x2b6   : > { %1445 = vst [vmem:[#allocation2 + $0x130] sm:$0xff] %v1381_v55  ;;  %v1261_v63 = vadd.f32 %v1260_v59, %v13483_v40  ;;  %v1262_v61 = vpop.f32.mrb[35].mxu0  ;;  %2177 = vmatprep.mubr.f32.mxu0 %v1779_v62  ;;  %v1780_v0 = vrot.slane %v1381_v55, 7  ;;  %11071 = vmatprep.subr.bf16.mxu1 %v16405_v43 }
 0x2b7   : > { %1446 = vst [vmem:[#allocation2 + $0x138] sm:$0xff] %v1382_v60  ;;  %v1263_v34 = vadd.f32 %v1262_v61, %v13485_v42  ;;  %2178 = vmatmul.mubr.f32.gmra.mrb[98].mxu0 %v1777_v58  ;;  %4561 = vmatprep.mubr.f32.mxu1 %v1382_v60  ;;  %v1782_v35 = vrot.slane %v1382_v60, 7 }
 0x2b8   : > { %v1383_v36 = vmax.f32 %v1261_v63, 0.0  ;;  %4562 = vmatmul.mubr.f32.gmra.mrb[32].mxu1 %v1381_v55  ;;  %v1781_v37 = vsel %vm16346_vm13, %v1776_v54, %v1780_v0 }
 0x2b9   : > { %v1384_v38 = vmax.f32 %v1263_v34, 0.0  ;;  %v1266_v39 = vpop.f32.mrb[36].mxu0  ;;  %v1783_v41 = vsel %vm16346_vm13, %v1778_v57, %v1782_v35 }
 0x2ba   : > { %1447 = vst [vmem:[#allocation2 + $0x140] sm:$0xff] %v1383_v36  ;;  %v1267_v44 = vadd.f32 %v1266_v39, %v13483_v40  ;;  %v1268_v46 = vpop.f32.mrb[37].mxu0  ;;  %10100 = vmatprep.mubr.msk.f32.mxu0 %vm13262_vm9, %v1783_v41  ;;  %v1784_v45 = vrot.slane %v1383_v36, 7 }
 0x2bb   : > { %1448 = vst [vmem:[#allocation2 + $0x148] sm:$0xff] %v1384_v38  ;;  %v1269_v47 = vadd.f32 %v1268_v46, %v13485_v42  ;;  %10101 = vmatmul.mubr.msk.f32.gmra.mrb[100].mxu0 %vm13262_vm9, %v1781_v37  ;;  %4566 = vmatprep.mubr.f32.mxu1 %v1384_v38  ;;  %v1786_v1 = vrot.slane %v1384_v38, 7  ;;  %vm16617_vm9 = vnez %v16557_v12 }
 0x2bc   : > { %v1385_v48 = vmax.f32 %v1267_v44, 0.0  ;;  %4567 = vmatmul.mubr.f32.gmra.mrb[34].mxu1 %v1383_v36  ;;  %v1785_v49 = vsel %vm16346_vm13, %v1780_v0, %v1784_v45 }
 0x2bd   : > { %v1386_v52 = vmax.f32 %v1269_v47, 0.0  ;;  %v1272_v51 = vpop.f32.mrb[38].mxu0  ;;  %v1787_v53 = vsel %vm16346_vm13, %v1782_v35, %v1786_v1 }
 0x2be   : > { %1449 = vst [vmem:[#allocation2 + $0x150] sm:$0xff] %v1385_v48  ;;  %v1273_v56 = vadd.f32 %v1272_v51, %v13483_v40  ;;  %v1274_v54 = vpop.f32.mrb[39].mxu0  ;;  %2187 = vmatprep.mubr.f32.mxu0 %v1787_v53  ;;  %v1788_v50 = vrot.slane %v1385_v48, 7 }
 0x2bf   : > { %1450 = vst [vmem:[#allocation2 + $0x158] sm:$0xff] %v1386_v52  ;;  %v1275_v57 = vadd.f32 %v1274_v54, %v13485_v42  ;;  %2188 = vmatmul.mubr.f32.gmra.mrb[102].mxu0 %v1785_v49  ;;  %4571 = vmatprep.mubr.f32.mxu1 %v1386_v52  ;;  %v1790_v55 = vrot.slane %v1386_v52, 7 }
 0x2c0   : > { %v1387_v58 = vmax.f32 %v1273_v56, 0.0  ;;  %4572 = vmatmul.mubr.f32.gmra.mrb[36].mxu1 %v1385_v48  ;;  %v1789_v60 = vsel %vm16346_vm13, %v1784_v45, %v1788_v50 }
 0x2c1   : > { %v1388_v59 = vmax.f32 %v1275_v57, 0.0  ;;  %v1278_v62 = vpop.f32.mrb[40].mxu0  ;;  %v1791_v63 = vsel %vm16346_vm13, %v1786_v1, %v1790_v55 }
 0x2c2   : > { %1451 = vst [vmem:[#allocation2 + $0x160] sm:$0xff] %v1387_v58  ;;  %v1279_v61 = vadd.f32 %v1278_v62, %v13483_v40  ;;  %v1280_v0 = vpop.f32.mrb[41].mxu0  ;;  %10102 = vmatprep.mubr.msk.f32.mxu0 %vm16617_vm9, %v1791_v63  ;;  %v1792_v34 = vrot.slane %v1387_v58, 7 }
 0x2c3   : > { %1452 = vst [vmem:[#allocation2 + $0x168] sm:$0xff] %v1388_v59  ;;  %v1281_v35 = vadd.f32 %v1280_v0, %v13485_v42  ;;  %10103 = vmatmul.mubr.msk.f32.gmra.mrb[104].mxu0 %vm16617_vm9, %v1789_v60  ;;  %4576 = vmatprep.mubr.f32.mxu1 %v1388_v59  ;;  %v1794_v36 = vrot.slane %v1388_v59, 7  ;;  %vm16618_vm9 = vnez %v16560_v13 }
 0x2c4   : > { %v1389_v37 = vmax.f32 %v1279_v61, 0.0  ;;  %4577 = vmatmul.mubr.f32.gmra.mrb[38].mxu1 %v1387_v58  ;;  %v1793_v38 = vsel %vm16346_vm13, %v1788_v50, %v1792_v34 }
 0x2c5   : > { %v1390_v39 = vmax.f32 %v1281_v35, 0.0  ;;  %v1284_v41 = vpop.f32.mrb[42].mxu0  ;;  %v1795_v44 = vsel %vm16346_vm13, %v1790_v55, %v1794_v36 }
 0x2c6   : > { %1453 = vst [vmem:[#allocation2 + $0x170] sm:$0xff] %v1389_v37  ;;  %v1285_v46 = vadd.f32 %v1284_v41, %v13483_v40  ;;  %v1286_v45 = vpop.f32.mrb[43].mxu0  ;;  %2197 = vmatprep.mubr.f32.mxu0 %v1795_v44  ;;  %v1796_v47 = vrot.slane %v1389_v37, 7 }
 0x2c7   : > { %1454 = vst [vmem:[#allocation2 + $0x178] sm:$0xff] %v1390_v39  ;;  %v1287_v1 = vadd.f32 %v1286_v45, %v13485_v42  ;;  %2198 = vmatmul.mubr.f32.gmra.mrb[106].mxu0 %v1793_v38  ;;  %4581 = vmatprep.mubr.f32.mxu1 %v1390_v39  ;;  %v1798_v48 = vrot.slane %v1390_v39, 7 }
 0x2c8   : > { %v1391_v49 = vmax.f32 %v1285_v46, 0.0  ;;  %4582 = vmatmul.mubr.f32.gmra.mrb[40].mxu1 %v1389_v37  ;;  %v1797_v52 = vsel %vm16346_vm13, %v1792_v34, %v1796_v47 }
 0x2c9   : > { %v1392_v51 = vmax.f32 %v1287_v1, 0.0  ;;  %v1290_v53 = vpop.f32.mrb[44].mxu0  ;;  %v1799_v56 = vsel %vm16346_vm13, %v1794_v36, %v1798_v48 }
 0x2ca   : > { %1455 = vst [vmem:[#allocation2 + $0x180] sm:$0xff] %v1391_v49  ;;  %v1291_v54 = vadd.f32 %v1290_v53, %v13483_v40  ;;  %v1292_v50 = vpop.f32.mrb[45].mxu0  ;;  %10104 = vmatprep.mubr.msk.f32.mxu0 %vm16618_vm9, %v1799_v56  ;;  %v1800_v57 = vrot.slane %v1391_v49, 7 }
 0x2cb   : > { %1456 = vst [vmem:[#allocation2 + $0x188] sm:$0xff] %v1392_v51  ;;  %v1293_v55 = vadd.f32 %v1292_v50, %v13485_v42  ;;  %10105 = vmatmul.mubr.msk.f32.gmra.mrb[108].mxu0 %vm16618_vm9, %v1797_v52  ;;  %4586 = vmatprep.mubr.f32.mxu1 %v1392_v51  ;;  %v1802_v58 = vrot.slane %v1392_v51, 7  ;;  %vm16619_vm9 = vnez %v16563_v14 }
 0x2cc   : > { %v1393_v60 = vmax.f32 %v1291_v54, 0.0  ;;  %4587 = vmatmul.mubr.f32.gmra.mrb[42].mxu1 %v1391_v49  ;;  %v1801_v59 = vsel %vm16346_vm13, %v1796_v47, %v1800_v57 }
 0x2cd   : > { %v1394_v62 = vmax.f32 %v1293_v55, 0.0  ;;  %v1296_v63 = vpop.f32.mrb[46].mxu0  ;;  %v1803_v61 = vsel %vm16346_vm13, %v1798_v48, %v1802_v58 }
 0x2ce   : > { %1457 = vst [vmem:[#allocation2 + $0x190] sm:$0xff] %v1393_v60  ;;  %v1297_v0 = vadd.f32 %v1296_v63, %v13483_v40  ;;  %v1298_v34 = vpop.f32.mrb[47].mxu0  ;;  %2207 = vmatprep.mubr.f32.mxu0 %v1803_v61  ;;  %v1804_v35 = vrot.slane %v1393_v60, 7 }
 0x2cf   : > { %1458 = vst [vmem:[#allocation2 + $0x198] sm:$0xff] %v1394_v62  ;;  %v1299_v36 = vadd.f32 %v1298_v34, %v13485_v42  ;;  %2208 = vmatmul.mubr.f32.gmra.mrb[110].mxu0 %v1801_v59  ;;  %4591 = vmatprep.mubr.f32.mxu1 %v1394_v62  ;;  %v1806_v37 = vrot.slane %v1394_v62, 7 }
 0x2d0   : > { %v1395_v38 = vmax.f32 %v1297_v0, 0.0  ;;  %4592 = vmatmul.mubr.f32.gmra.mrb[44].mxu1 %v1393_v60  ;;  %v1805_v39 = vsel %vm16346_vm13, %v1800_v57, %v1804_v35 }
 0x2d1   : > { %v1396_v41 = vmax.f32 %v1299_v36, 0.0  ;;  %v1302_v44 = vpop.f32.mrb[48].mxu0  ;;  %v1807_v46 = vsel %vm16346_vm13, %v1802_v58, %v1806_v37 }
 0x2d2   : > { %1459 = vst [vmem:[#allocation2 + $0x1a0] sm:$0xff] %v1395_v38  ;;  %v1303_v45 = vadd.f32 %v1302_v44, %v13483_v40  ;;  %v1304_v47 = vpop.f32.mrb[49].mxu0  ;;  %10106 = vmatprep.mubr.msk.f32.mxu0 %vm16619_vm9, %v1807_v46  ;;  %v1808_v1 = vrot.slane %v1395_v38, 7 }
 0x2d3   : > { %1460 = vst [vmem:[#allocation2 + $0x1a8] sm:$0xff] %v1396_v41  ;;  %v1305_v48 = vadd.f32 %v1304_v47, %v13485_v42  ;;  %10107 = vmatmul.mubr.msk.f32.gmra.mrb[112].mxu0 %vm16619_vm9, %v1805_v39  ;;  %4596 = vmatprep.mubr.f32.mxu1 %v1396_v41  ;;  %v1810_v49 = vrot.slane %v1396_v41, 7  ;;  %vm16620_vm9 = vnez %v16566_v15 }
 0x2d4   : > { %v1397_v52 = vmax.f32 %v1303_v45, 0.0  ;;  %4597 = vmatmul.mubr.f32.gmra.mrb[46].mxu1 %v1395_v38  ;;  %v1809_v51 = vsel %vm16346_vm13, %v1804_v35, %v1808_v1 }
 0x2d5   : > { %v1398_v53 = vmax.f32 %v1305_v48, 0.0  ;;  %v1308_v56 = vpop.f32.mrb[50].mxu0  ;;  %v1811_v54 = vsel %vm16346_vm13, %v1806_v37, %v1810_v49 }
 0x2d6   : > { %1461 = vst [vmem:[#allocation2 + $0x1b0] sm:$0xff] %v1397_v52  ;;  %v1309_v50 = vadd.f32 %v1308_v56, %v13483_v40  ;;  %v1310_v57 = vpop.f32.mrb[51].mxu0  ;;  %2217 = vmatprep.mubr.f32.mxu0 %v1811_v54  ;;  %v1812_v55 = vrot.slane %v1397_v52, 7 }
 0x2d7   : > { %1462 = vst [vmem:[#allocation2 + $0x1b8] sm:$0xff] %v1398_v53  ;;  %v1311_v58 = vadd.f32 %v1310_v57, %v13485_v42  ;;  %2218 = vmatmul.mubr.f32.gmra.mrb[114].mxu0 %v1809_v51  ;;  %4601 = vmatprep.mubr.f32.mxu1 %v1398_v53  ;;  %v1814_v60 = vrot.slane %v1398_v53, 7 }
 0x2d8   : > { %v1399_v59 = vmax.f32 %v1309_v50, 0.0  ;;  %4602 = vmatmul.mubr.f32.gmra.mrb[48].mxu1 %v1397_v52  ;;  %v1813_v62 = vsel %vm16346_vm13, %v1808_v1, %v1812_v55 }
 0x2d9   : > { %v1400_v63 = vmax.f32 %v1311_v58, 0.0  ;;  %v1314_v61 = vpop.f32.mrb[52].mxu0  ;;  %v1815_v0 = vsel %vm16346_vm13, %v1810_v49, %v1814_v60 }
 0x2da   : > { %1463 = vst [vmem:[#allocation2 + $0x1c0] sm:$0xff] %v1399_v59  ;;  %v1315_v34 = vadd.f32 %v1314_v61, %v13483_v40  ;;  %v1316_v35 = vpop.f32.mrb[53].mxu0  ;;  %10108 = vmatprep.mubr.msk.f32.mxu0 %vm16620_vm9, %v1815_v0  ;;  %v1816_v36 = vrot.slane %v1399_v59, 7 }
 0x2db   : > { %1464 = vst [vmem:[#allocation2 + $0x1c8] sm:$0xff] %v1400_v63  ;;  %v1317_v37 = vadd.f32 %v1316_v35, %v13485_v42  ;;  %10109 = vmatmul.mubr.msk.f32.gmra.mrb[116].mxu0 %vm16620_vm9, %v1813_v62  ;;  %4606 = vmatprep.mubr.f32.mxu1 %v1400_v63  ;;  %v1818_v38 = vrot.slane %v1400_v63, 7  ;;  %vm16621_vm9 = vnez %v16568_v16 }
 0x2dc   : > { %v1401_v39 = vmax.f32 %v1315_v34, 0.0  ;;  %4607 = vmatmul.mubr.f32.gmra.mrb[50].mxu1 %v1399_v59  ;;  %v1817_v41 = vsel %vm16346_vm13, %v1812_v55, %v1816_v36 }
 0x2dd   : > { %v1402_v44 = vmax.f32 %v1317_v37, 0.0  ;;  %v1320_v46 = vpop.f32.mrb[54].mxu0  ;;  %v1819_v45 = vsel %vm16346_vm13, %v1814_v60, %v1818_v38 }
 0x2de   : > { %1465 = vst [vmem:[#allocation2 + $0x1d0] sm:$0xff] %v1401_v39  ;;  %v1321_v47 = vadd.f32 %v1320_v46, %v13483_v40  ;;  %v1322_v1 = vpop.f32.mrb[55].mxu0  ;;  %2227 = vmatprep.mubr.f32.mxu0 %v1819_v45  ;;  %v1820_v48 = vrot.slane %v1401_v39, 7 }
 0x2df   : > { %1466 = vst [vmem:[#allocation2 + $0x1d8] sm:$0xff] %v1402_v44  ;;  %v1323_v49 = vadd.f32 %v1322_v1, %v13485_v42  ;;  %2228 = vmatmul.mubr.f32.gmra.mrb[118].mxu0 %v1817_v41  ;;  %4611 = vmatprep.mubr.f32.mxu1 %v1402_v44  ;;  %v1822_v52 = vrot.slane %v1402_v44, 7 }
 0x2e0   : > { %v1403_v51 = vmax.f32 %v1321_v47, 0.0  ;;  %4612 = vmatmul.mubr.f32.gmra.mrb[52].mxu1 %v1401_v39  ;;  %v1821_v53 = vsel %vm16346_vm13, %v1816_v36, %v1820_v48 }
 0x2e1   : > { %v1404_v56 = vmax.f32 %v1323_v49, 0.0  ;;  %v1326_v54 = vpop.f32.mrb[56].mxu0  ;;  %v1823_v50 = vsel %vm16346_vm13, %v1818_v38, %v1822_v52 }
 0x2e2   : > { %1467 = vst [vmem:[#allocation2 + $0x1e0] sm:$0xff] %v1403_v51  ;;  %v1327_v57 = vadd.f32 %v1326_v54, %v13483_v40  ;;  %v1328_v55 = vpop.f32.mrb[57].mxu0  ;;  %10110 = vmatprep.mubr.msk.f32.mxu0 %vm16621_vm9, %v1823_v50  ;;  %v1824_v58 = vrot.slane %v1403_v51, 7 }
 0x2e3   : > { %1468 = vst [vmem:[#allocation2 + $0x1e8] sm:$0xff] %v1404_v56  ;;  %v1329_v60 = vadd.f32 %v1328_v55, %v13485_v42  ;;  %10111 = vmatmul.mubr.msk.f32.gmra.mrb[120].mxu0 %vm16621_vm9, %v1821_v53  ;;  %4616 = vmatprep.mubr.f32.mxu1 %v1404_v56  ;;  %v1826_v59 = vrot.slane %v1404_v56, 7  ;;  %vm16622_vm9 = vnez %v16570_v17  ;;  %v13698_v56 = vld [vmem:[#allocation2 + $0x48] sm:$0xff]  ;;  %v4707_v55 = vld [vmem:[#allocation2 + $0x38] sm:$0xfe] }
 0x2e4   : > { %v13676_v62 = vmax.f32 %v1327_v57, 0.0  ;;  %4617 = vmatmul.mubr.f32.gmra.mrb[54].mxu1 %v1403_v51  ;;  %v1825_v63 = vsel %vm16346_vm13, %v1820_v48, %v1824_v58 }
 0x2e5   : > { %v13679_v61 = vmax.f32 %v1329_v60, 0.0  ;;  %v1332_v0 = vpop.f32.mrb[58].mxu0  ;;  %v1827_v34 = vsel %vm16346_vm13, %v1822_v52, %v1826_v59  ;;  %v4842_v60 = vrot.slane %v13698_v56, 1 }
 0x2e6   : > { %1469 = vst [vmem:[#allocation2 + $0x1f0] sm:$0xff] %v13676_v62  ;;  %v1333_v35 = vadd.f32 %v1332_v0, %v13483_v40  ;;  %v1334_v36 = vpop.f32.mrb[59].mxu0  ;;  %2237 = vmatprep.mubr.f32.mxu0 %v1827_v34  ;;  %v1828_v37 = vrot.slane %v13676_v62, 7  ;;  %v13705_v0 = vld [vmem:[#allocation2 + $0x58] sm:$0xff] }
 0x2e7   : > { %1470 = vst [vmem:[#allocation2 + $0x1f8] sm:$0xff] %v13679_v61  ;;  %v1335_v38 = vadd.f32 %v1334_v36, %v13485_v42  ;;  %2238 = vmatmul.mubr.f32.gmra.mrb[122].mxu0 %v1825_v63  ;;  %4621 = vmatprep.mubr.f32.mxu1 %v13679_v61  ;;  %v1830_v39 = vrot.slane %v13679_v61, 7  ;;  %v4706_v61 = vld [vmem:[#allocation2 + $0x30] sm:$0xfe] }
 0x2e8   : > { %v1407_v41 = vmax.f32 %v1333_v35, 0.0  ;;  %4622 = vmatmul.mubr.f32.gmra.mrb[56].mxu1 %v13676_v62  ;;  %v1829_v44 = vsel %vm16346_vm13, %v1824_v58, %v1828_v37  ;;  %v4841_v35 = vrot.slane %v4707_v55, 1  ;;  %v5873_v36 = vld [vmem:[#allocation12 + $0x600] sm:$0xff]  ;;  %v3224_v55 = vld [vmem:[#allocation12 + $0x208] sm:$0xff] }
 0x2e9   : > { %v1408_v46 = vmax.f32 %v1335_v38, 0.0  ;;  %v1338_v45 = vpop.f32.mrb[60].mxu0  ;;  %v1831_v47 = vsel %vm16346_vm13, %v1826_v59, %v1830_v39  ;;  %v13703_v59 = vld [vmem:[#allocation2 + $0x40] sm:$0xff]  ;;  %vm16379_vm13 = vcmask 1046528  }
 0x2ea   : > { %1471 = vst [vmem:[#allocation2 + $0x200] sm:$0xff] %v1407_v41  ;;  %v1339_v1 = vadd.f32 %v1338_v45, %v13483_v40  ;;  %v1340_v48 = vpop.f32.mrb[61].mxu0  ;;  %10112 = vmatprep.mubr.msk.f32.mxu0 %vm16622_vm9, %v1831_v47  ;;  %v5874_v38 = vld [vmem:[#allocation12 + $0x608] sm:$0xff]  ;;  %v13710_v45 = vld [vmem:[#allocation2 + $0x50] sm:$0xff] }
 0x2eb   : > { %1472 = vst [vmem:[#allocation2 + $0x208] sm:$0xff] %v1408_v46  ;;  %v1341_v49 = vadd.f32 %v1340_v48, %v13485_v42  ;;  %10113 = vmatmul.mubr.msk.f32.gmra.mrb[124].mxu0 %vm16622_vm9, %v1829_v44  ;;  %4626 = vmatprep.mubr.f32.mxu1 %v1408_v46  ;;  %v4843_v44 = vsel %vm16379_vm13, %v4841_v35, %v4842_v60  ;;  %v4846_v46 = vrot.slane %v13705_v0, 1  ;;  %vm16623_vm9 = vcmask 1040384  }
 0x2ec   : > { %v1409_v52 = vmax.f32 %v1339_v1, 0.0  ;;  %4627 = vmatmul.mubr.f32.gmra.mrb[58].mxu1 %v1407_v41  ;;  %v4839_v41 = vrot.slane %v13703_v59, 1  ;;  %v4838_v1 = vrot.slane %v4706_v61, 1  ;;  %v11072_v48 = vpack.c.bf16 %v5874_v38, %v5873_v36  ;;  %vm16624_vm8 = vmmov %vm16623_vm9  ;;  %v13727_v61 = vld [vmem:[#allocation2 + $0x78] sm:$0xff]  ;;  %v3225_v38 = vld [vmem:[#allocation12 + $0x210] sm:$0xff] }
 0x2ed   : > { %v1410_v51 = vmax.f32 %v1341_v49, 0.0  ;;  %v1344_v53 = vpop.f32.mrb[62].mxu0  ;;  %v13713_v49 = vld [vmem:[#allocation2 + $0x68] sm:$0xff] }
 0x2ee   : > { %1473 = vst [vmem:[#allocation2 + $0x210] sm:$0xff] %v1409_v52  ;;  %v1345_v54 = vadd.f32 %v1344_v53, %v13483_v40  ;;  %v1346_v50 = vpop.f32.mrb[63].mxu0  ;;  %v5876_v53 = vld [vmem:[#allocation12 + $0x618] sm:$0xff] }
 0x2ef   : > { %1474 = vst [vmem:[#allocation2 + $0x218] sm:$0xff] %v1410_v51  ;;  %v1347_v57 = vadd.f32 %v1346_v50, %v13485_v42  ;;  %4631 = vmatprep.mubr.f32.mxu1 %v1410_v51  ;;  %v5875_v51 = vld [vmem:[#allocation12 + $0x610] sm:$0xff]  ;;  %v4844_v50 = vrot.slane %v13710_v45, 1 }
 0x2f0   : > { %v1411_v58 = vmax.f32 %v1345_v54, 0.0  ;;  %4632 = vmatmul.mubr.f32.gmra.mrb[60].mxu1 %v1409_v52  ;;  %v4840_v54 = vsel %vm16379_vm13, %v4838_v1, %v4839_v41  ;;  %v13738_v1 = vld [vmem:[#allocation2 + $0x70] sm:$0xff] }
 0x2f1   : > { %v1412_v62 = vmax.f32 %v1347_v57, 0.0  ;;  %v1573_v63 = vld [vmem:[#allocation2 + $0x200] sm:$0x7f]  ;;  %v3223_v57 = vld [vmem:[#allocation12 + $0x200] sm:$0xff] }
 0x2f2   : > { %1475 = vst [vmem:[#allocation2 + $0x220] sm:$0xff] %v1411_v58  ;;  %v1574_v34 = vld [vmem:[#allocation2 + $0x208] sm:$0x7f]  ;;  %v1832_v40 = vrot.slane %v1573_v63, 7  ;;  %v13723_v63 = vld [vmem:[#allocation2 + $0x60] sm:$0xff]  ;;  %v10880_v35 = vpack.c.bf16 %v3224_v55, %v3223_v57  ;;  %v4852_v57 = vrot.slane %v13738_v1, 1 }
 0x2f3   : > { %1476 = vst [vmem:[#allocation2 + $0x228] sm:$0xff] %v1412_v62  ;;  %v1834_v42 = vrot.slane %v1574_v34, 7  ;;  %4636 = vmatprep.mubr.f32.mxu1 %v1412_v62  ;;  %v4850_v62 = vrot.slane %v13713_v49, 1  ;;  %v5877_v34 = vld [vmem:[#allocation12 + $0x620] sm:$0xff]  ;;  %v4848_v36 = vrot.slane %v13723_v63, 1 }
 0x2f4   : > { %4637 = vmatmul.mubr.f32.gmra.mrb[62].mxu1 %v1411_v58  ;;  %v1833_v52 = vsel %vm16624_vm8, %v1828_v37, %v1832_v40  ;;  %v13718_v58 = vld [vmem:[#allocation2 + $0x18] sm:$0xff]  ;;  %vm16625_vm8 = vnez %v16572_v18  ;;  %v11075_v37 = vpack.c.bf16 %v5876_v53, %v5875_v51  ;;  %v5880_v51 = vld [vmem:[#allocation12 + $0x638] sm:$0xff] }
 0x2f5   : > { %v1835_v47 = vsel %vm16623_vm9, %v1830_v39, %v1834_v42  ;;  %5225 = vmatprep.mubr.f32.mxu1 %v4843_v44  ;;  %v4847_v39 = vsel %vm16379_vm13, %v4842_v60, %v4846_v46  ;;  %v5878_v40 = vld [vmem:[#allocation12 + $0x628] sm:$0xff]  ;;  %v4845_v60 = vsel %vm16379_vm13, %v4839_v41, %v4844_v50  ;;  %v3226_v42 = vld [vmem:[#allocation12 + $0x218] sm:$0xff]  ;;  %v4851_v44 = vsel %vm16379_vm13, %v4846_v46, %v4850_v62  ;;  %v3227_v55 = vld [vmem:[#allocation12 + $0x220] sm:$0xff] }
 0x2f6   : > { %2247 = vmatprep.mubr.f32.mxu0 %v1835_v47  ;;  %v4854_v47 = vrot.slane %v13727_v61, 1  ;;  %v11078_v41 = vpack.c.bf16 %v5878_v40, %v5877_v34  ;;  %v10883_v53 = vpack.c.bf16 %v3226_v42, %v3225_v38  ;;  %v4849_v46 = vsel %vm16379_vm13, %v4844_v50, %v4848_v36  ;;  %v13749_v40 = vld [vmem:[#allocation2 + $0x80] sm:$0xff]  ;;  %v5881_v38 = vld [vmem:[#allocation12 + $0x640] sm:$0xff] }
 0x2f7   : > { %2248 = vmatmul.mubr.f32.gmra.mrb[126].mxu0 %v1833_v52  ;;  %v5879_v52 = vld [vmem:[#allocation12 + $0x630] sm:$0xff]  ;;  %vm16626_vm9 = vnez %v16575_v19  ;;  %v5882_v42 = vld [vmem:[#allocation12 + $0x648] sm:$0xff] }
 0x2f8   : > { %2510 = vmatprep.mubr.f32.mxu0 %v13718_v58  ;;  %5226 = vmatmul.mubr.f32.vlgmr.msra.gmra.mrb[0].mxu1 %v4840_v54  ;;  %v2322_v54 = vld [vmem:[#allocation2 + $0x38] sm:$0xff]  ;;  %v11081_v50 = vpack.c.bf16 %v5880_v51, %v5879_v52  ;;  %v13764_v51 = vld [vmem:[#allocation2 + $0x90] sm:$0xff] }
 0x2f9   : > { %11073 = vmatpush1.bf16.msra.mxu1 %v11072_v48  ;;  %10178 = vmatprep.mubr.msk.f32.mxu1 %vm16625_vm8, %v4847_v39  ;;  %v13740_v48 = vld [vmem:[#allocation2 + $0x88] sm:$0xff]  ;;  %v3228_v39 = vld [vmem:[#allocation12 + $0x228] sm:$0xff] }
 0x2fa   : > { %11074 = vmatprep.subr.bf16.mxu1 %v16405_v43  ;;  %v4858_v34 = vrot.slane %v13740_v48, 1 }
 0x2fb   : > { %2511 = vmatmul.mubr.f32.vlgmr.msra.gmra.mrb[64].mxu0 %v13718_v58 }
 0x2fc   : > { %2515 = vmatprep.mubr.f32.mxu0 %v13718_v58  ;;  %10179 = vmatmul.mubr.msk.f32.gmra.mrb[2].mxu1 %vm16625_vm8, %v4845_v60  ;;  %v2321_v60 = vld [vmem:[#allocation2 + $0x30] sm:$0xff] }
 0x2fd   : > { %5235 = vmatprep.mubr.f32.mxu1 %v4851_v44  ;;  %11076 = vmatpush1.bf16.msra.mxu1 %v11075_v37  ;;  %v4855_v37 = vsel %vm16379_vm13, %v4850_v62, %v4854_v47  ;;  %v10886_v44 = vpack.c.bf16 %v3228_v39, %v3227_v55  ;;  %v4853_v62 = vsel %vm16379_vm13, %v4848_v36, %v4852_v57  ;;  %v5883_v55 = vld [vmem:[#allocation12 + $0x650] sm:$0xff]  ;;  %v5884_v39 = vld [vmem:[#allocation12 + $0x658] sm:$0xff] }
 0x2fe   : > { %11077 = vmatprep.subr.bf16.mxu1 %v16405_v43  ;;  %10881 = vmatpush1.bf16.msra.mxu0 %v10880_v35  ;;  %v13753_v35 = vld [vmem:[#allocation2 + $0x98] sm:$0xff]  ;;  %v11084_v36 = vpack.c.bf16 %v5882_v42, %v5881_v38  ;;  %v13776_v42 = vld [vmem:[#allocation2 + $0xa0] sm:$0xff] }
 0x2ff   : > { %2516 = vmatmul.mubr.f32.gmra.mrb[66].mxu0 %v13718_v58  ;;  %10882 = vmatprep.subr.bf16.mxu0 %v16405_v43  ;;  %v4862_v52 = vrot.slane %v13753_v35, 1 }
 0x300   : > { %2520 = vmatprep.mubr.f32.mxu0 %v2322_v54  ;;  %5236 = vmatmul.mubr.f32.gmra.mrb[4].mxu1 %v4849_v46  ;;  %v4856_v54 = vrot.slane %v13749_v40, 1  ;;  %v3229_v46 = vld [vmem:[#allocation12 + $0x230] sm:$0xff] }
 0x301   : > { %10180 = vmatprep.mubr.msk.f32.mxu1 %vm16626_vm9, %v4855_v37  ;;  %11079 = vmatpush1.bf16.msra.mxu1 %v11078_v41  ;;  %v3230_v37 = vld [vmem:[#allocation12 + $0x238] sm:$0xff]  ;;  %v4859_v41 = vsel %vm16379_vm13, %v4854_v47, %v4858_v34  ;;  %v4860_v47 = vrot.slane %v13764_v51, 1 }
 0x302   : > { %11080 = vmatprep.subr.bf16.mxu1 %v16405_v43  ;;  %10884 = vmatpush1.bf16.msra.mxu0 %v10883_v53  ;;  %v13766_v53 = vld [vmem:[#allocation2 + $0xa8] sm:$0xff] }
 0x303   : > { %2521 = vmatmul.mubr.f32.gmra.mrb[68].mxu0 %v2321_v60  ;;  %10885 = vmatprep.subr.bf16.mxu0 %v16405_v43  ;;  %v4857_v60 = vsel %vm16379_vm13, %v4852_v57, %v4856_v54  ;;  %v4866_v38 = vrot.slane %v13766_v53, 1  ;;  %v11087_v57 = vpack.c.bf16 %v5884_v39, %v5883_v55  ;;  %v13792_v39 = vld [vmem:[#allocation2 + $0xb0] sm:$0xff] }
 0x304   : > { %2525 = vmatprep.mubr.f32.mxu0 %v13698_v56  ;;  %10181 = vmatmul.mubr.msk.f32.gmra.mrb[6].mxu1 %vm16626_vm9, %v4853_v62  ;;  %v10889_v56 = vpack.c.bf16 %v3230_v37, %v3229_v46  ;;  %v3231_v62 = vld [vmem:[#allocation12 + $0x240] sm:$0xff]  ;;  %v5886_v46 = vld [vmem:[#allocation12 + $0x668] sm:$0xff]  ;;  %v4864_v37 = vrot.slane %v13776_v42, 1 }
 0x305   : > { %5245 = vmatprep.mubr.f32.mxu1 %v4859_v41  ;;  %11082 = vmatpush1.bf16.msra.mxu1 %v11081_v50  ;;  %v3232_v41 = vld [vmem:[#allocation12 + $0x248] sm:$0xff]  ;;  %v4863_v50 = vsel %vm16379_vm13, %v4858_v34, %v4862_v52  ;;  %v4861_v34 = vsel %vm16379_vm13, %v4856_v54, %v4860_v47 }
 0x306   : > { %11083 = vmatprep.subr.bf16.mxu1 %v16405_v43  ;;  %10887 = vmatpush1.bf16.msra.mxu0 %v10886_v44  ;;  %v5885_v44 = vld [vmem:[#allocation12 + $0x660] sm:$0xff] }
 0x307   : > { %2526 = vmatmul.mubr.f32.gmra.mrb[70].mxu0 %v13703_v59  ;;  %10888 = vmatprep.subr.bf16.mxu0 %v16405_v43  ;;  %v13780_v59 = vld [vmem:[#allocation2 + $0xb8] sm:$0xff]  ;;  %v11090_v54 = vpack.c.bf16 %v5886_v46, %v5885_v44  ;;  %v13804_v46 = vld [vmem:[#allocation2 + $0xc0] sm:$0xff] }
 0x308   : > { %2530 = vmatprep.mubr.f32.mxu0 %v13705_v0  ;;  %5246 = vmatmul.mubr.f32.gmra.mrb[8].mxu1 %v4857_v60  ;;  %v10892_v0 = vpack.c.bf16 %v3232_v41, %v3231_v62  ;;  %v3233_v60 = vld [vmem:[#allocation12 + $0x250] sm:$0xff]  ;;  %v4870_v55 = vrot.slane %v13780_v59, 1  ;;  %v5888_v62 = vld [vmem:[#allocation12 + $0x678] sm:$0xff]  ;;  %v4865_v41 = vsel %vm16379_vm13, %v4860_v47, %v4864_v37 }
 0x309   : > { %10182 = vmatprep.mubr.msk.f32.mxu1 %vm16627_vm7, %v4863_v50  ;;  %11085 = vmatpush1.bf16.msra.mxu1 %v11084_v36  ;;  %v3234_v50 = vld [vmem:[#allocation12 + $0x258] sm:$0xff]  ;;  %v4867_v36 = vsel %vm16379_vm13, %v4862_v52, %v4866_v38  ;;  %v4868_v52 = vrot.slane %v13792_v39, 1 }
 0x30a   : > { %11086 = vmatprep.subr.bf16.mxu1 %v16405_v43  ;;  %10890 = vmatpush1.bf16.msra.mxu0 %v10889_v56  ;;  %v5887_v56 = vld [vmem:[#allocation12 + $0x670] sm:$0xff] }
 0x30b   : > { %2531 = vmatmul.mubr.f32.gmra.mrb[72].mxu0 %v13710_v45  ;;  %10891 = vmatprep.subr.bf16.mxu0 %v16405_v43  ;;  %v13794_v45 = vld [vmem:[#allocation2 + $0xc8] sm:$0xff]  ;;  %v11093_v47 = vpack.c.bf16 %v5888_v62, %v5887_v56  ;;  %v13820_v62 = vld [vmem:[#allocation2 + $0xd0] sm:$0xff] }
 0x30c   : > { %2535 = vmatprep.mubr.f32.mxu0 %v13713_v49  ;;  %10183 = vmatmul.mubr.msk.f32.gmra.mrb[10].mxu1 %vm16627_vm7, %v4861_v34  ;;  %v10895_v49 = vpack.c.bf16 %v3234_v50, %v3233_v60  ;;  %v3235_v34 = vld [vmem:[#allocation12 + $0x260] sm:$0xff]  ;;  %v4874_v44 = vrot.slane %v13794_v45, 1  ;;  %v5890_v60 = vld [vmem:[#allocation12 + $0x688] sm:$0xff]  ;;  %v4872_v50 = vrot.slane %v13804_v46, 1 }
 0x30d   : > { %5255 = vmatprep.mubr.f32.mxu1 %v4867_v36  ;;  %11088 = vmatpush1.bf16.msra.mxu1 %v11087_v57  ;;  %v3236_v36 = vld [vmem:[#allocation12 + $0x268] sm:$0xff]  ;;  %v4871_v57 = vsel %vm16379_vm13, %v4866_v38, %v4870_v55  ;;  %v4869_v38 = vsel %vm16379_vm13, %v4864_v37, %v4868_v52 }
 0x30e   : > { %11089 = vmatprep.subr.bf16.mxu1 %v16405_v43  ;;  %10893 = vmatpush1.bf16.msra.mxu0 %v10892_v0  ;;  %v5889_v0 = vld [vmem:[#allocation12 + $0x680] sm:$0xff] }
 0x30f   : > { %2536 = vmatmul.mubr.f32.gmra.mrb[74].mxu0 %v13723_v63  ;;  %10894 = vmatprep.subr.bf16.mxu0 %v16405_v43  ;;  %v13808_v63 = vld [vmem:[#allocation2 + $0xd8] sm:$0xff]  ;;  %v11096_v37 = vpack.c.bf16 %v5890_v60, %v5889_v0  ;;  %v13832_v60 = vld [vmem:[#allocation2 + $0xe0] sm:$0xff] }
 0x310   : > { %2540 = vmatprep.mubr.f32.mxu0 %v13727_v61  ;;  %5256 = vmatmul.mubr.f32.gmra.mrb[12].mxu1 %v4865_v41  ;;  %v10898_v61 = vpack.c.bf16 %v3236_v36, %v3235_v34  ;;  %v3237_v41 = vld [vmem:[#allocation12 + $0x270] sm:$0xff]  ;;  %v4878_v56 = vrot.slane %v13808_v63, 1  ;;  %v5892_v34 = vld [vmem:[#allocation12 + $0x698] sm:$0xff]  ;;  %v4873_v36 = vsel %vm16379_vm13, %v4868_v52, %v4872_v50 }
 0x311   : > { %10184 = vmatprep.mubr.msk.f32.mxu1 %vm16628_vm6, %v4871_v57  ;;  %11091 = vmatpush1.bf16.msra.mxu1 %v11090_v54  ;;  %v3238_v57 = vld [vmem:[#allocation12 + $0x278] sm:$0xff]  ;;  %v4875_v54 = vsel %vm16379_vm13, %v4870_v55, %v4874_v44  ;;  %v4876_v55 = vrot.slane %v13820_v62, 1 }
 0x312   : > { %11092 = vmatprep.subr.bf16.mxu1 %v16405_v43  ;;  %10896 = vmatpush1.bf16.msra.mxu0 %v10895_v49  ;;  %v5891_v49 = vld [vmem:[#allocation12 + $0x690] sm:$0xff] }
 0x313   : > { %2541 = vmatmul.mubr.f32.gmra.mrb[76].mxu0 %v13738_v1  ;;  %10897 = vmatprep.subr.bf16.mxu0 %v16405_v43  ;;  %v13822_v1 = vld [vmem:[#allocation2 + $0xe8] sm:$0xff]  ;;  %v11099_v52 = vpack.c.bf16 %v5892_v34, %v5891_v49  ;;  %v13848_v34 = vld [vmem:[#allocation2 + $0xf0] sm:$0xff] }
 0x314   : > { %2545 = vmatprep.mubr.f32.mxu0 %v13740_v48  ;;  %10185 = vmatmul.mubr.msk.f32.gmra.mrb[14].mxu1 %vm16628_vm6, %v4869_v38  ;;  %v10901_v48 = vpack.c.bf16 %v3238_v57, %v3237_v41  ;;  %v3239_v38 = vld [vmem:[#allocation12 + $0x280] sm:$0xff]  ;;  %v4882_v0 = vrot.slane %v13822_v1, 1  ;;  %v5894_v41 = vld [vmem:[#allocation12 + $0x6a8] sm:$0xff]  ;;  %v4880_v57 = vrot.slane %v13832_v60, 1 }
 0x315   : > { %5265 = vmatprep.mubr.f32.mxu1 %v4875_v54  ;;  %11094 = vmatpush1.bf16.msra.mxu1 %v11093_v47  ;;  %v3240_v54 = vld [vmem:[#allocation12 + $0x288] sm:$0xff]  ;;  %v4879_v47 = vsel %vm16379_vm13, %v4874_v44, %v4878_v56  ;;  %v4877_v44 = vsel %vm16379_vm13, %v4872_v50, %v4876_v55 }
 0x316   : > { %11095 = vmatprep.subr.bf16.mxu1 %v16405_v43  ;;  %10899 = vmatpush1.bf16.msra.mxu0 %v10898_v61  ;;  %v5893_v61 = vld [vmem:[#allocation12 + $0x6a0] sm:$0xff] }
 0x317   : > { %2546 = vmatmul.mubr.f32.gmra.mrb[78].mxu0 %v13749_v40  ;;  %10900 = vmatprep.subr.bf16.mxu0 %v16405_v43  ;;  %v13836_v40 = vld [vmem:[#allocation2 + $0xf8] sm:$0xff]  ;;  %v11102_v50 = vpack.c.bf16 %v5894_v41, %v5893_v61  ;;  %v13860_v41 = vld [vmem:[#allocation2 + $0x100] sm:$0xff] }
 0x318   : > { %2550 = vmatprep.mubr.f32.mxu0 %v13753_v35  ;;  %5266 = vmatmul.mubr.f32.gmra.mrb[16].mxu1 %v4873_v36  ;;  %v10904_v35 = vpack.c.bf16 %v3240_v54, %v3239_v38  ;;  %v3241_v36 = vld [vmem:[#allocation12 + $0x290] sm:$0xff]  ;;  %v4886_v49 = vrot.slane %v13836_v40, 1  ;;  %v5896_v38 = vld [vmem:[#allocation12 + $0x6b8] sm:$0xff]  ;;  %v4881_v54 = vsel %vm16379_vm13, %v4876_v55, %v4880_v57 }
 0x319   : > { %10186 = vmatprep.mubr.msk.f32.mxu1 %vm16629_vm5, %v4879_v47  ;;  %11097 = vmatpush1.bf16.msra.mxu1 %v11096_v37  ;;  %v3242_v47 = vld [vmem:[#allocation12 + $0x298] sm:$0xff]  ;;  %v4883_v37 = vsel %vm16379_vm13, %v4878_v56, %v4882_v0  ;;  %v4884_v56 = vrot.slane %v13848_v34, 1 }
 0x31a   : > { %11098 = vmatprep.subr.bf16.mxu1 %v16405_v43  ;;  %10902 = vmatpush1.bf16.msra.mxu0 %v10901_v48  ;;  %v5895_v48 = vld [vmem:[#allocation12 + $0x6b0] sm:$0xff] }
 0x31b   : > { %2551 = vmatmul.mubr.f32.gmra.mrb[80].mxu0 %v13764_v51  ;;  %10903 = vmatprep.subr.bf16.mxu0 %v16405_v43  ;;  %v13850_v51 = vld [vmem:[#allocation2 + $0x108] sm:$0xff]  ;;  %v11105_v55 = vpack.c.bf16 %v5896_v38, %v5895_v48  ;;  %v13876_v38 = vld [vmem:[#allocation2 + $0x110] sm:$0xff] }
 0x31c   : > { %2555 = vmatprep.mubr.f32.mxu0 %v13766_v53  ;;  %10187 = vmatmul.mubr.msk.f32.gmra.mrb[18].mxu1 %vm16629_vm5, %v4877_v44  ;;  %v10907_v53 = vpack.c.bf16 %v3242_v47, %v3241_v36  ;;  %v3243_v44 = vld [vmem:[#allocation12 + $0x2a0] sm:$0xff]  ;;  %v4890_v61 = vrot.slane %v13850_v51, 1  ;;  %vm16630_vm5 = vnez %v16584_v23  ;;  %v5898_v36 = vld [vmem:[#allocation12 + $0x6c8] sm:$0xff]  ;;  %v4888_v47 = vrot.slane %v13860_v41, 1 }
 0x31d   : > { %5275 = vmatprep.mubr.f32.mxu1 %v4883_v37  ;;  %11100 = vmatpush1.bf16.msra.mxu1 %v11099_v52  ;;  %v3244_v37 = vld [vmem:[#allocation12 + $0x2a8] sm:$0xff]  ;;  %v4887_v52 = vsel %vm16379_vm13, %v4882_v0, %v4886_v49  ;;  %v4885_v0 = vsel %vm16379_vm13, %v4880_v57, %v4884_v56 }
 0x31e   : > { %11101 = vmatprep.subr.bf16.mxu1 %v16405_v43  ;;  %10905 = vmatpush1.bf16.msra.mxu0 %v10904_v35  ;;  %v5897_v35 = vld [vmem:[#allocation12 + $0x6c0] sm:$0xff] }
 0x31f   : > { %2556 = vmatmul.mubr.f32.gmra.mrb[82].mxu0 %v13776_v42  ;;  %10906 = vmatprep.subr.bf16.mxu0 %v16405_v43  ;;  %v13864_v42 = vld [vmem:[#allocation2 + $0x118] sm:$0xff]  ;;  %v11108_v57 = vpack.c.bf16 %v5898_v36, %v5897_v35  ;;  %v13888_v36 = vld [vmem:[#allocation2 + $0x120] sm:$0xff] }
 0x320   : > { %2560 = vmatprep.mubr.f32.mxu0 %v13780_v59  ;;  %5276 = vmatmul.mubr.f32.gmra.mrb[20].mxu1 %v4881_v54  ;;  %v10910_v59 = vpack.c.bf16 %v3244_v37, %v3243_v44  ;;  %v3245_v54 = vld [vmem:[#allocation12 + $0x2b0] sm:$0xff]  ;;  %v4894_v48 = vrot.slane %v13864_v42, 1  ;;  %v4889_v37 = vsel %vm16379_vm13, %v4884_v56, %v4888_v47 }
 0x321   : > { %10188 = vmatprep.mubr.msk.f32.mxu1 %vm16630_vm5, %v4887_v52  ;;  %11103 = vmatpush1.bf16.msra.mxu1 %v11102_v50  ;;  %v3246_v52 = vld [vmem:[#allocation12 + $0x2b8] sm:$0xff]  ;;  %v4891_v50 = vsel %vm16379_vm13, %v4886_v49, %v4890_v61  ;;  %v5899_v44 = vld [vmem:[#allocation12 + $0x6d0] sm:$0xff]  ;;  %v4892_v49 = vrot.slane %v13876_v38, 1 }
 0x322   : > { %11104 = vmatprep.subr.bf16.mxu1 %v16405_v43  ;;  %10908 = vmatpush1.bf16.msra.mxu0 %v10907_v53  ;;  %v10913_v53 = vpack.c.bf16 %v3246_v52, %v3245_v54  ;;  %v5901_v54 = vld [vmem:[#allocation12 + $0x6e0] sm:$0xff]  ;;  %v4896_v52 = vrot.slane %v13888_v36, 1 }
 0x323   : > { %2561 = vmatmul.mubr.f32.gmra.mrb[84].mxu0 %v13792_v39  ;;  %10909 = vmatprep.subr.bf16.mxu0 %v16405_v43  ;;  %v13878_v39 = vld [vmem:[#allocation2 + $0x128] sm:$0xff] }
 0x324   : > { %2565 = vmatprep.mubr.f32.mxu0 %v13794_v45  ;;  %10189 = vmatmul.mubr.msk.f32.gmra.mrb[22].mxu1 %vm16630_vm5, %v4885_v0  ;;  %v5900_v45 = vld [vmem:[#allocation12 + $0x6d8] sm:$0xff]  ;;  %v3247_v0 = vld [vmem:[#allocation12 + $0x2c0] sm:$0xff]  ;;  %v4898_v35 = vrot.slane %v13878_v39, 1  ;;  %vm16631_vm5 = vnez %v16587_v24 }
 0x325   : > { %5285 = vmatprep.mubr.f32.mxu1 %v4891_v50  ;;  %11106 = vmatpush1.bf16.msra.mxu1 %v11105_v55  ;;  %v3248_v50 = vld [vmem:[#allocation12 + $0x2c8] sm:$0xff]  ;;  %v4895_v55 = vsel %vm16379_vm13, %v4890_v61, %v4894_v48  ;;  %v11111_v56 = vpack.c.bf16 %v5900_v45, %v5899_v44  ;;  %v4893_v61 = vsel %vm16379_vm13, %v4888_v47, %v4892_v49  ;;  %v13904_v44 = vld [vmem:[#allocation2 + $0x130] sm:$0xff] }
 0x326   : > { %11107 = vmatprep.subr.bf16.mxu1 %v16405_v43  ;;  %10911 = vmatpush1.bf16.msra.mxu0 %v10910_v59  ;;  %v10916_v59 = vpack.c.bf16 %v3248_v50, %v3247_v0  ;;  %v5903_v0 = vld [vmem:[#allocation12 + $0x6f0] sm:$0xff]  ;;  %v4897_v50 = vsel %vm16379_vm13, %v4892_v49, %v4896_v52 }
 0x327   : > { %2566 = vmatmul.mubr.f32.gmra.mrb[86].mxu0 %v13804_v46  ;;  %10912 = vmatprep.subr.bf16.mxu0 %v16405_v43  ;;  %v13892_v46 = vld [vmem:[#allocation2 + $0x138] sm:$0xff] }
 0x328   : > { %2570 = vmatprep.mubr.f32.mxu0 %v13808_v63  ;;  %5286 = vmatmul.mubr.f32.gmra.mrb[24].mxu1 %v4889_v37  ;;  %v5902_v63 = vld [vmem:[#allocation12 + $0x6e8] sm:$0xff]  ;;  %v3249_v37 = vld [vmem:[#allocation12 + $0x2d0] sm:$0xff] }
 0x329   : > { %10190 = vmatprep.mubr.msk.f32.mxu1 %vm16631_vm5, %v4895_v55  ;;  %11109 = vmatpush1.bf16.msra.mxu1 %v11108_v57  ;;  %v3250_v55 = vld [vmem:[#allocation12 + $0x2d8] sm:$0xff]  ;;  %v4899_v57 = vsel %vm16379_vm13, %v4894_v48, %v4898_v35  ;;  %v11114_v47 = vpack.c.bf16 %v5902_v63, %v5901_v54  ;;  %v4900_v48 = vrot.slane %v13904_v44, 1  ;;  %v13916_v54 = vld [vmem:[#allocation2 + $0x140] sm:$0xff] }
 0x32a   : > { %11110 = vmatprep.subr.bf16.mxu1 %v16405_v43  ;;  %10914 = vmatpush1.bf16.msra.mxu0 %v10913_v53  ;;  %v4902_v53 = vrot.slane %v13892_v46, 1  ;;  %v10919_v45 = vpack.c.bf16 %v3250_v55, %v3249_v37  ;;  %v3253_v37 = vld [vmem:[#allocation12 + $0x2f0] sm:$0xff]  ;;  %v3254_v55 = vld [vmem:[#allocation12 + $0x2f8] sm:$0xff] }
 0x32b   : > { %2571 = vmatmul.mubr.f32.gmra.mrb[88].mxu0 %v13820_v62  ;;  %10915 = vmatprep.subr.bf16.mxu0 %v16405_v43  ;;  %v13906_v62 = vld [vmem:[#allocation2 + $0x148] sm:$0xff] }
 0x32c   : > { %2575 = vmatprep.mubr.f32.mxu0 %v13822_v1  ;;  %10191 = vmatmul.mubr.msk.f32.gmra.mrb[26].mxu1 %vm16631_vm5, %v4893_v61  ;;  %v5904_v1 = vld [vmem:[#allocation12 + $0x6f8] sm:$0xff]  ;;  %v3251_v61 = vld [vmem:[#allocation12 + $0x2e0] sm:$0xff]  ;;  %vm16632_vm5 = vnez %v16590_v25 }
 0x32d   : > { %5295 = vmatprep.mubr.f32.mxu1 %v4899_v57  ;;  %11112 = vmatpush1.bf16.msra.mxu1 %v11111_v56  ;;  %v3252_v57 = vld [vmem:[#allocation12 + $0x2e8] sm:$0xff]  ;;  %v4903_v56 = vsel %vm16379_vm13, %v4898_v35, %v4902_v53  ;;  %v11117_v49 = vpack.c.bf16 %v5904_v1, %v5903_v0  ;;  %v4904_v35 = vrot.slane %v13916_v54, 1  ;;  %v4742_v0 = vld [vmem:[#allocation2 + $0x150] sm:$0xff] }
 0x32e   : > { %10917 = vmatpush1.bf16.msra.mxu0 %v10916_v59  ;;  %11113 = vmatprep.subr.bf16.mxu1 %v16405_v43  ;;  %v4906_v59 = vrot.slane %v13906_v62, 1  ;;  %v10922_v63 = vpack.c.bf16 %v3252_v57, %v3251_v61  ;;  %v4744_v61 = vld [vmem:[#allocation2 + $0x160] sm:$0xff]  ;;  %v4747_v57 = vld [vmem:[#allocation2 + $0x178] sm:$0xff] }
 0x32f   : > { %2576 = vmatmul.mubr.f32.gmra.mrb[90].mxu0 %v13832_v60  ;;  %10918 = vmatprep.subr.bf16.mxu0 %v16405_v43  ;;  %v13920_v60 = vld [vmem:[#allocation2 + $0x158] sm:$0xff]  ;;  %v4905_v1 = vsel %vm16379_vm13, %v4900_v48, %v4904_v35 }
 0x330   : > { %2580 = vmatprep.mubr.f32.mxu0 %v13836_v40  ;;  %5296 = vmatmul.mubr.f32.gmra.mrb[28].mxu1 %v4897_v50  ;;  %v4901_v40 = vsel %vm16379_vm13, %v4896_v52, %v4900_v48  ;;  %v10925_v52 = vpack.c.bf16 %v3254_v55, %v3253_v37  ;;  %v4912_v48 = vrot.slane %v4744_v61, 1  ;;  %v4751_v37 = vld [vmem:[#allocation2 + $0x198] sm:$0xff] }
 0x331   : > { %10192 = vmatprep.mubr.msk.f32.mxu1 %vm16632_vm5, %v4903_v56  ;;  %11115 = vmatpush1.bf16.msra.mxu1 %v11114_v47  ;;  %v4907_v47 = vsel %vm16379_vm13, %v4902_v53, %v4906_v59  ;;  %v4918_v56 = vrot.slane %v4747_v57, 1 }
 0x332   : > { %10920 = vmatpush1.bf16.msra.mxu0 %v10919_v45  ;;  %11116 = vmatprep.subr.bf16.mxu1 %v16405_v43  ;;  %v4910_v45 = vrot.slane %v13920_v60, 1 }
 0x333   : > { %2581 = vmatmul.mubr.f32.gmra.mrb[92].mxu0 %v13848_v34  ;;  %10921 = vmatprep.subr.bf16.mxu0 %v16405_v43  ;;  %v4745_v34 = vld [vmem:[#allocation2 + $0x168] sm:$0xff] }
 0x334   : > { %2585 = vmatprep.mubr.f32.mxu0 %v13850_v51  ;;  %10193 = vmatmul.mubr.msk.f32.gmra.mrb[30].mxu1 %vm16632_vm5, %v4901_v40  ;;  %v4908_v51 = vrot.slane %v4742_v0, 1  ;;  %v4911_v53 = vsel %vm16379_vm13, %v4906_v59, %v4910_v45  ;;  %v4914_v50 = vrot.slane %v4745_v34, 1  ;;  %vm16633_vm5 = vnez %v16593_v26  ;;  %v4746_v59 = vld [vmem:[#allocation2 + $0x170] sm:$0xff] }
 0x335   : > { %5305 = vmatprep.mubr.f32.mxu1 %v4907_v47  ;;  %11118 = vmatpush1.bf16.msra.mxu1 %v11117_v49  ;;  %v4749_v49 = vld [vmem:[#allocation2 + $0x188] sm:$0xff] }
 0x336   : > { %10923 = vmatpush1.bf16.msra.mxu0 %v10922_v63  ;;  %11119 = vmatprep.subr.bf16.mxu1 %v16405_v43  ;;  %v4916_v63 = vrot.slane %v4746_v59, 1  ;;  %v4919_v40 = vsel %vm16379_vm13, %v4914_v50, %v4918_v56 }
 0x337   : > { %2586 = vmatmul.mubr.f32.gmra.mrb[94].mxu0 %v13860_v41  ;;  %10924 = vmatprep.subr.bf16.mxu0 %v16405_v43  ;;  %v4909_v41 = vsel %vm16379_vm13, %v4904_v35, %v4908_v51  ;;  %v4748_v35 = vld [vmem:[#allocation2 + $0x180] sm:$0xff] }
 0x338   : > { %2590 = vmatprep.mubr.f32.mxu0 %v13864_v42  ;;  %5306 = vmatmul.mubr.f32.gmra.mrb[32].mxu1 %v4905_v1  ;;  %v4915_v42 = vsel %vm16379_vm13, %v4910_v45, %v4914_v50  ;;  %v4917_v55 = vsel %vm16379_vm13, %v4912_v48, %v4916_v63  ;;  %v4920_v47 = vrot.slane %v4748_v35, 1  ;;  %v4750_v45 = vld [vmem:[#allocation2 + $0x190] sm:$0xff]  ;;  %v4755_v50 = vld [vmem:[#allocation2 + $0x1b8] sm:$0xff] }
 0x339   : > { %10194 = vmatprep.mubr.msk.f32.mxu1 %vm16633_vm5, %v4911_v53  ;;  %v4752_v53 = vld [vmem:[#allocation2 + $0x1a0] sm:$0xff] }
 0x33a   : > { %10926 = vmatpush1.bf16.msra.mxu0 %v10925_v52  ;;  %v4753_v52 = vld [vmem:[#allocation2 + $0x1a8] sm:$0xff]  ;;  %v4921_v1 = vsel %vm16379_vm13, %v4916_v63, %v4920_v47 }
 0x33b   : > { %2591 = vmatmul.mubr.f32.gmra.mrb[96].mxu0 %v13876_v38  ;;  %10927 = vmatprep.subr.bf16.mxu0 %v16405_v43  ;;  %v4913_v38 = vsel %vm16379_vm13, %v4908_v51, %v4912_v48  ;;  %v4924_v51 = vrot.slane %v4750_v45, 1  ;;  %v4928_v48 = vrot.slane %v4752_v53, 1 }
 0x33c   : > { %2595 = vmatprep.mubr.f32.mxu0 %v13878_v39  ;;  %10195 = vmatmul.mubr.msk.f32.gmra.mrb[34].mxu1 %vm16633_vm5, %v4909_v41  ;;  %v4922_v39 = vrot.slane %v4749_v49, 1  ;;  %vm16634_vm5 = vnez %v16596_v27 }
 0x33d   : > { %5315 = vmatprep.mubr.f32.mxu1 %v4915_v42  ;;  %v4925_v41 = vsel %vm16379_vm13, %v4920_v47, %v4924_v51  ;;  %v4754_v42 = vld [vmem:[#allocation2 + $0x1b0] sm:$0xff] }
 0x33e   : > { %v4932_v63 = vrot.slane %v4754_v42, 1 }
 0x33f   : > { %2596 = vmatmul.mubr.f32.gmra.mrb[98].mxu0 %v13888_v36  ;;  %v4923_v36 = vsel %vm16379_vm13, %v4918_v56, %v4922_v39  ;;  %v4757_v56 = vld [vmem:[#allocation2 + $0x1c8] sm:$0xff] }
 0x340   : > { %2600 = vmatprep.mubr.f32.mxu0 %v13892_v46  ;;  %5316 = vmatmul.mubr.f32.gmra.mrb[36].mxu1 %v4913_v38  ;;  %v4926_v46 = vrot.slane %v4751_v37, 1  ;;  %v4929_v38 = vsel %vm16379_vm13, %v4924_v51, %v4928_v48 }
 0x341   : > { %10196 = vmatprep.mubr.msk.f32.mxu1 %vm16634_vm5, %v4919_v40  ;;  %v4938_v40 = vrot.slane %v4757_v56, 1 }
 0x343   : > { %2601 = vmatmul.mubr.f32.gmra.mrb[100].mxu0 %v13904_v44  ;;  %v4927_v44 = vsel %vm16379_vm13, %v4922_v39, %v4926_v46  ;;  %v4756_v39 = vld [vmem:[#allocation2 + $0x1c0] sm:$0xff] }
 0x344   : > { %2605 = vmatprep.mubr.f32.mxu0 %v13906_v62  ;;  %10197 = vmatmul.mubr.msk.f32.gmra.mrb[38].mxu1 %vm16634_vm5, %v4917_v55  ;;  %v4930_v62 = vrot.slane %v4753_v52, 1  ;;  %v4933_v55 = vsel %vm16379_vm13, %v4928_v48, %v4932_v63  ;;  %v4936_v47 = vrot.slane %v4756_v39, 1 }
 0x345   : > { %5325 = vmatprep.mubr.f32.mxu1 %v4923_v36  ;;  %v4758_v36 = vld [vmem:[#allocation2 + $0x1d0] sm:$0xff] }
 0x346   : > { %v4940_v51 = vrot.slane %v4758_v36, 1 }
 0x347   : > { %2606 = vmatmul.mubr.f32.gmra.mrb[102].mxu0 %v13916_v54  ;;  %v4931_v54 = vsel %vm16379_vm13, %v4926_v46, %v4930_v62  ;;  %v4761_v46 = vld [vmem:[#allocation2 + $0x1e8] sm:$0xff] }
 0x348   : > { %2610 = vmatprep.mubr.f32.mxu0 %v13920_v60  ;;  %5326 = vmatmul.mubr.f32.gmra.mrb[40].mxu1 %v4921_v1  ;;  %v4934_v60 = vrot.slane %v4755_v50, 1  ;;  %v4937_v1 = vsel %vm16379_vm13, %v4932_v63, %v4936_v47 }
 0x349   : > { %10198 = vmatprep.mubr.msk.f32.mxu1 %vm13330_vm14, %v4927_v44  ;;  %v4946_v44 = vrot.slane %v4761_v46, 1 }
 0x34b   : > { %2611 = vmatmul.mubr.f32.gmra.mrb[104].mxu0 %v4742_v0  ;;  %v4935_v0 = vsel %vm16379_vm13, %v4930_v62, %v4934_v60  ;;  %v4760_v62 = vld [vmem:[#allocation2 + $0x1e0] sm:$0xff] }
 0x34c   : > { %2615 = vmatprep.mubr.f32.mxu0 %v4745_v34  ;;  %10199 = vmatmul.mubr.msk.f32.gmra.mrb[42].mxu1 %vm13330_vm14, %v4925_v41  ;;  %v4759_v34 = vld [vmem:[#allocation2 + $0x1d8] sm:$0xff]  ;;  %v4941_v41 = vsel %vm16379_vm13, %v4936_v47, %v4940_v51  ;;  %v4944_v48 = vrot.slane %v4760_v62, 1 }
 0x34d   : > { %5335 = vmatprep.mubr.f32.mxu1 %v4931_v54  ;;  %v4762_v54 = vld [vmem:[#allocation2 + $0x1f0] sm:$0xff] }
 0x34e   : > { %v4948_v63 = vrot.slane %v4762_v54, 1 }
 0x34f   : > { %2616 = vmatmul.mubr.f32.gmra.mrb[106].mxu0 %v4744_v61  ;;  %v4939_v61 = vsel %vm16379_vm13, %v4934_v60, %v4938_v40  ;;  %v13985_v60 = vld [vmem:[#allocation2 + $0x208] sm:$0xff] }
 0x350   : > { %2620 = vmatprep.mubr.f32.mxu0 %v4747_v57  ;;  %5336 = vmatmul.mubr.f32.gmra.mrb[44].mxu1 %v4929_v38  ;;  %v4942_v57 = vrot.slane %v4759_v34, 1  ;;  %v4945_v38 = vsel %vm16379_vm13, %v4940_v51, %v4944_v48 }
 0x351   : > { %10200 = vmatprep.mubr.msk.f32.mxu1 %vm13334_vm15, %v4935_v0  ;;  %v13990_v0 = vld [vmem:[#allocation2 + $0x200] sm:$0xff] }
 0x353   : > { %2621 = vmatmul.mubr.f32.gmra.mrb[108].mxu0 %v4746_v59  ;;  %v4943_v59 = vsel %vm16379_vm13, %v4938_v40, %v4942_v57  ;;  %v4767_v40 = vld [vmem:[#allocation2 + $0x218] sm:$0xff] }
 0x354   : > { %2625 = vmatprep.mubr.f32.mxu0 %v4749_v49  ;;  %10201 = vmatmul.mubr.msk.f32.gmra.mrb[46].mxu1 %vm13334_vm15, %v4933_v55  ;;  %v4763_v49 = vld [vmem:[#allocation2 + $0x1f8] sm:$0xff]  ;;  %v4949_v55 = vsel %vm16379_vm13, %v4944_v48, %v4948_v63  ;;  %v4958_v47 = vrot.slane %v4767_v40, 1  ;;  %v14012_v40 = vld [vmem:[#allocation2 + $0x50] sm:$0xff] }
 0x355   : > { %5345 = vmatprep.mubr.f32.mxu1 %v4939_v61  ;;  %v4766_v61 = vld [vmem:[#allocation2 + $0x210] sm:$0xff] }
 0x356   : > { %v4956_v51 = vrot.slane %v4766_v61, 1  ;;  %v6291_v61 = vld [vmem:[#allocation12 + $0x700] sm:$0xff] }
 0x357   : > { %2626 = vmatmul.mubr.f32.gmra.mrb[110].mxu0 %v4748_v35  ;;  %v4947_v35 = vsel %vm16379_vm13, %v4942_v57, %v4946_v44  ;;  %v4769_v57 = vld [vmem:[#allocation2 + $0x228] sm:$0xff] }
 0x358   : > { %2630 = vmatprep.mubr.f32.mxu0 %v4751_v37  ;;  %5346 = vmatmul.mubr.f32.gmra.mrb[48].mxu1 %v4937_v1  ;;  %v4950_v37 = vrot.slane %v4763_v49, 1 }
 0x359   : > { %10202 = vmatprep.mubr.msk.f32.mxu1 %vm13338_vm10, %v4943_v59  ;;  %v4962_v59 = vrot.slane %v4769_v57, 1  ;;  %v6292_v57 = vld [vmem:[#allocation12 + $0x708] sm:$0xff] }
 0x35b   : > { %2631 = vmatmul.mubr.f32.gmra.mrb[112].mxu0 %v4750_v45  ;;  %v4951_v45 = vsel %vm16379_vm13, %v4946_v44, %v4950_v37  ;;  %v4768_v44 = vld [vmem:[#allocation2 + $0x220] sm:$0xff] }
 0x35c   : > { %2635 = vmatprep.mubr.f32.mxu0 %v4753_v52  ;;  %10203 = vmatmul.mubr.msk.f32.gmra.mrb[50].mxu1 %vm13338_vm10, %v4941_v41  ;;  %v4954_v52 = vrot.slane %v13985_v60, 1  ;;  %v4960_v48 = vrot.slane %v4768_v44, 1 }
 0x35d   : > { %5355 = vmatprep.mubr.f32.mxu1 %v4947_v35  ;;  %v4770_v35 = vld [vmem:[#allocation2 + $0x230] sm:$0x1] }
 0x35f   : > { %2636 = vmatmul.mubr.f32.gmra.mrb[114].mxu0 %v4752_v53  ;;  %v4952_v53 = vrot.slane %v13990_v0, 1 }
 0x360   : > { %2640 = vmatprep.mubr.f32.mxu0 %v4755_v50  ;;  %5356 = vmatmul.mubr.f32.gmra.mrb[52].mxu1 %v4945_v38  ;;  %v4955_v50 = vsel %vm16379_vm13, %v4950_v37, %v4954_v52  ;;  %v14007_v37 = vld [vmem:[#allocation2 + $0x58] sm:$0xff] }
 0x361   : > { %10204 = vmatprep.mubr.msk.f32.mxu1 %vm13342_vm11, %v4951_v45  ;;  %v4953_v1 = vsel %vm16379_vm13, %v4948_v63, %v4952_v53  ;;  %v4957_v41 = vsel %vm16379_vm13, %v4952_v53, %v4956_v51  ;;  %v2736_v38 = vld [vmem:[#allocation2 + $0x18] sm:$0xfe]  ;;  %v4961_v63 = vsel %vm16379_vm13, %v4956_v51, %v4960_v48  ;;  %v4964_v45 = vrot.slane %v4770_v35, 1  ;;  %v2735_v53 = vld [vmem:[#allocation2 + $0x10] sm:$0xfe] }
 0x362   : > { %v5583_v51 = vrot.slane %v14012_v40, 7 }
 0x363   : > { %2641 = vmatmul.mubr.f32.gmra.mrb[116].mxu0 %v4754_v42  ;;  %v4959_v42 = vsel %vm16379_vm13, %v4954_v52, %v4958_v47  ;;  %v5586_v52 = vrot.slane %v14007_v37, 7 }
 0x364   : > { %2645 = vmatprep.mubr.f32.mxu0 %v4757_v56  ;;  %10205 = vmatmul.mubr.msk.f32.gmra.mrb[54].mxu1 %vm13342_vm11, %v4949_v55  ;;  %v4771_v56 = vld [vmem:[#allocation2 + $0x238] sm:$0x1]  ;;  %v2935_v55 = vrot.slane %v2736_v38, 1  ;;  %vm16636_vm11 = vcmask 1040384   ;;  %v14034_v38 = vld [vmem:[#allocation2 + $0x30] sm:$0xff] }
 0x365   : > { %5365 = vmatprep.mubr.f32.mxu1 %v4955_v50  ;;  %v14016_v50 = vld [vmem:[#allocation2 + $0x68] sm:$0xff] }
 0x366   : > { %v2952_v18 = vrot.slane %v14016_v50, 1 }
 0x367   : > { %2646 = vmatmul.mubr.f32.gmra.mrb[118].mxu0 %v4756_v39  ;;  %v4963_v39 = vsel %vm16379_vm13, %v4958_v47, %v4962_v59  ;;  %v5450_v47 = vld [vmem:[#allocation2 + $0x40] sm:$0x80] }
 0x368   : > { %2650 = vmatprep.mubr.f32.mxu0 %v4759_v34  ;;  %5366 = vmatmul.mubr.f32.gmra.mrb[56].mxu1 %v4953_v1  ;;  %v4966_v34 = vrot.slane %v4771_v56, 1  ;;  %v4965_v1 = vsel %vm16379_vm13, %v4960_v48, %v4964_v45  ;;  %v5590_v56 = vrot.slane %v14016_v50, 7  ;;  %v11120_v48 = vpack.c.bf16 %v6292_v57, %v6291_v61  ;;  %v14047_v57 = vld [vmem:[#allocation2 + $0x88] sm:$0xff]  ;;  %v14101_v50 = vld [vmem:[#allocation2 + $0xb8] sm:$0xff] }
 0x369   : > { %10206 = vmatprep.mubr.msk.f32.mxu1 %vm13346_vm12, %v4959_v42  ;;  %v2932_v42 = vrot.slane %v2735_v53, 1  ;;  %v14039_v53 = vld [vmem:[#allocation2 + $0x48] sm:$0xff] }
 0x36b   : > { %2651 = vmatmul.mubr.f32.gmra.mrb[120].mxu0 %v4758_v36  ;;  %v5451_v36 = vld [vmem:[#allocation2 + $0x48] sm:$0x80] }
 0x36c   : > { %2655 = vmatprep.mubr.f32.mxu0 %v4761_v46  ;;  %10207 = vmatmul.mubr.msk.f32.gmra.mrb[58].mxu1 %vm13346_vm12, %v4957_v41  ;;  %v4967_v46 = vsel %vm16379_vm13, %v4962_v59, %v4966_v34  ;;  %vm16635_vm12 = vnez %v16614_v33  ;;  %v2740_v59 = vld [vmem:[#allocation2 + $0x38] sm:$0xff]  ;;  %v14026_v41 = vld [vmem:[#allocation2 + $0x60] sm:$0xff]  ;;  %v6294_v34 = vld [vmem:[#allocation12 + $0x718] sm:$0xff] }
 0x36d   : > { %5375 = vmatprep.mubr.f32.mxu1 %v4963_v39  ;;  %v14031_v39 = vld [vmem:[#allocation2 + $0x78] sm:$0xff]  ;;  %v2940_v35 = vrot.slane %v2740_v59, 1  ;;  %v5588_v45 = vrot.slane %v14026_v41, 7 }
 0x36e   : > { %v6296_v59 = vld [vmem:[#allocation12 + $0x728] sm:$0xff] }
 0x36f   : > { %2656 = vmatmul.mubr.f32.gmra.mrb[122].mxu0 %v4760_v62  ;;  %v5585_v62 = vrot.slane %v5451_v36, 7  ;;  %v3967_v36 = vld [vmem:[#allocation12 + $0x300] sm:$0xff] }
 0x370   : > { %2660 = vmatprep.mubr.f32.mxu0 %v4763_v49  ;;  %5376 = vmatmul.mubr.f32.gmra.mrb[60].mxu1 %v4961_v63  ;;  %v2936_v49 = vrot.slane %v13718_v58, 1  ;;  %v5582_v58 = vrot.slane %v5450_v47, 7  ;;  %v14045_v47 = vld [vmem:[#allocation2 + $0x70] sm:$0xff] }
 0x371   : > { %10208 = vmatprep.mubr.msk.f32.mxu1 %vm16635_vm12, %v4967_v46  ;;  %v5587_v44 = vsel %vm16636_vm11, %v5585_v62, %v5586_v52  ;;  %v3968_v46 = vld [vmem:[#allocation12 + $0x308] sm:$0xff] }
 0x372   : > { %v5584_v63 = vsel %vm16636_vm11, %v5582_v58, %v5583_v51  ;;  %v14053_v58 = vld [vmem:[#allocation2 + $0x40] sm:$0xff] }
 0x373   : > { %2661 = vmatmul.mubr.f32.gmra.mrb[124].mxu0 %v4762_v54  ;;  %v2937_v54 = vsel %vm16379_vm13, %v2935_v55, %v2936_v49  ;;  %v2934_v55 = vsel %vm16379_vm13, %v2932_v42, %v2936_v49  ;;  %v6295_v42 = vld [vmem:[#allocation12 + $0x720] sm:$0xff] }
 0x374   : > { %2665 = vmatprep.mubr.f32.mxu0 %v13985_v60  ;;  %10209 = vmatmul.mubr.msk.f32.gmra.mrb[62].mxu1 %vm16635_vm12, %v4965_v1  ;;  %v6293_v60 = vld [vmem:[#allocation12 + $0x710] sm:$0xff]  ;;  %vm16637_vm12 = vmmov %vm16636_vm11  ;;  %v2938_v1 = vrot.slane %v14034_v38, 1 }
 0x375   : > { %10210 = vmatprep.mubr.msk.f32.mxu1 %vm13226_vm0, %v5587_v44  ;;  %v5591_v62 = vsel %vm16637_vm12, %v5586_v52, %v5590_v56  ;;  %v11123_v61 = vpack.c.bf16 %v6294_v34, %v6293_v60  ;;  %v10928_v44 = vpack.c.bf16 %v3968_v46, %v3967_v36  ;;  %v2944_v52 = vrot.slane %v14039_v53, 1  ;;  %vm16638_vm12 = vmmov %vm16636_vm11  ;;  %v3969_v34 = vld [vmem:[#allocation12 + $0x310] sm:$0xff] }
 0x376   : > { %v5592_v60 = vrot.slane %v14045_v47, 7  ;;  %v5598_v36 = vrot.slane %v14047_v57, 7  ;;  %v14061_v46 = vld [vmem:[#allocation2 + $0x80] sm:$0xff]  ;;  %v2939_v53 = vsel %vm16379_vm13, %v2936_v49, %v2938_v1 }
 0x377   : > { %2666 = vmatmul.mubr.f32.gmra.mrb[126].mxu0 %v13990_v0  ;;  %v5594_v0 = vrot.slane %v14031_v39, 7  ;;  %v2945_v2 = vsel %vm16379_vm13, %v2940_v35, %v2944_v52 }
 0x378   : > { %3319 = vmatprep.mubr.f32.mxu0 %v2937_v54  ;;  %10211 = vmatmul.mubr.msk.f32.vlgmr.msra.gmra.mrb[0].mxu1 %vm13226_vm0, %v5584_v63  ;;  %v2941_v54 = vsel %vm16379_vm13, %v2936_v49, %v2940_v35  ;;  %v3970_v63 = vld [vmem:[#allocation12 + $0x318] sm:$0xff]  ;;  %v3971_v49 = vld [vmem:[#allocation12 + $0x320] sm:$0xff] }
 0x379   : > { %11121 = vmatpush1.bf16.msra.mxu1 %v11120_v48  ;;  %5974 = vmatprep.mubr.f32.mxu1 %v5591_v62  ;;  %v5589_v48 = vsel %vm16638_vm12, %v5583_v51, %v5588_v45  ;;  %v5595_v38 = vsel %vm16636_vm11, %v5590_v56, %v5594_v0  ;;  %v11126_v51 = vpack.c.bf16 %v6296_v59, %v6295_v42  ;;  %v2942_v62 = vrot.slane %v14053_v58, 1  ;;  %vm16639_vm12 = vmmov %vm16636_vm11  ;;  %v3972_v59 = vld [vmem:[#allocation12 + $0x328] sm:$0xff] }
 0x37a   : > { %11122 = vmatprep.subr.bf16.mxu1 %v16405_v43  ;;  %v10931_v56 = vpack.c.bf16 %v3970_v63, %v3969_v34  ;;  %v5596_v42 = vrot.slane %v14061_v46, 7  ;;  %v14081_v34 = vld [vmem:[#allocation2 + $0x90] sm:$0xff]  ;;  %v2946_v63 = vrot.slane %v14012_v40, 1 }
 0x37b   : > { %3320 = vmatmul.mubr.f32.vlgmr.msra.gmra.mrb[64].mxu0 %v2934_v55  ;;  %v14065_v55 = vld [vmem:[#allocation2 + $0x98] sm:$0xff] }
 0x37c   : > { %10114 = vmatprep.mubr.msk.f32.mxu0 %vm16625_vm8, %v2941_v54  ;;  %5975 = vmatmul.mubr.f32.gmra.mrb[2].mxu1 %v5589_v48  ;;  %v6297_v54 = vld [vmem:[#allocation12 + $0x730] sm:$0xff]  ;;  %v6298_v48 = vld [vmem:[#allocation12 + $0x738] sm:$0xff]  ;;  %v5602_v58 = vrot.slane %v14065_v55, 7 }
 0x37d   : > { %10212 = vmatprep.mubr.msk.f32.mxu1 %vm13230_vm1, %v5595_v38  ;;  %11124 = vmatpush1.bf16.msra.mxu1 %v11123_v61  ;;  %v2948_v61 = vrot.slane %v14007_v37, 1  ;;  %v5593_v38 = vsel %vm16639_vm12, %v5588_v45, %v5592_v60  ;;  %v14083_v37 = vld [vmem:[#allocation2 + $0xa8] sm:$0xff]  ;;  %v11129_v35 = vpack.c.bf16 %v6298_v48, %v6297_v54  ;;  %v2943_v45 = vsel %vm16379_vm13, %v2938_v1, %v2942_v62  ;;  %vm16640_vm12 = vmmov %vm16636_vm11 }
 0x37e   : > { %11125 = vmatprep.subr.bf16.mxu1 %v16405_v43  ;;  %10929 = vmatpush1.bf16.msra.mxu0 %v10928_v44  ;;  %v5599_v44 = vsel %vm16636_vm11, %v5594_v0, %v5598_v36  ;;  %v3973_v1 = vld [vmem:[#allocation12 + $0x330] sm:$0xff]  ;;  %v3974_v54 = vld [vmem:[#allocation12 + $0x338] sm:$0xff]  ;;  %v5603_v40 = vsel %vm16636_vm11, %v5598_v36, %v5602_v58  ;;  %v5606_v48 = vrot.slane %v14083_v37, 7 }
 0x37f   : > { %10115 = vmatmul.mubr.msk.f32.gmra.mrb[66].mxu0 %vm16625_vm8, %v2939_v53  ;;  %10930 = vmatprep.subr.bf16.mxu0 %v16405_v43  ;;  %v6300_v53 = vld [vmem:[#allocation12 + $0x748] sm:$0xff]  ;;  %v2949_v0 = vsel %vm16379_vm13, %v2944_v52, %v2948_v61  ;;  %v10937_v36 = vpack.c.bf16 %v3974_v54, %v3973_v1  ;;  %v14117_v1 = vld [vmem:[#allocation2 + $0xb0] sm:$0xff]  ;;  %v2954_v54 = vrot.slane %v14045_v47, 1  ;;  %vm16669_vm8 = vcmask 1040384  }
 0x380   : > { %3329 = vmatprep.mubr.f32.mxu0 %v2945_v2  ;;  %10213 = vmatmul.mubr.msk.f32.gmra.mrb[4].mxu1 %vm13230_vm1, %v5593_v38  ;;  %v6299_v2 = vld [vmem:[#allocation12 + $0x740] sm:$0xff]  ;;  %v10934_v38 = vpack.c.bf16 %v3972_v59, %v3971_v49  ;;  %v2950_v49 = vrot.slane %v14026_v41, 1  ;;  %v6301_v59 = vld [vmem:[#allocation12 + $0x750] sm:$0xff] }
 0x381   : > { %5984 = vmatprep.mubr.f32.mxu1 %v5599_v44  ;;  %11127 = vmatpush1.bf16.msra.mxu1 %v11126_v51  ;;  %v5597_v51 = vsel %vm16640_vm12, %v5592_v60, %v5596_v42  ;;  %v5600_v44 = vrot.slane %v14081_v34, 7  ;;  %v11132_v52 = vpack.c.bf16 %v6300_v53, %v6299_v2  ;;  %v2947_v60 = vsel %vm16379_vm13, %v2942_v62, %v2946_v63  ;;  %vm16641_vm12 = vmmov %vm16636_vm11  ;;  %v3975_v41 = vld [vmem:[#allocation12 + $0x340] sm:$0xff]  ;;  %v3976_v62 = vld [vmem:[#allocation12 + $0x348] sm:$0xff] }
 0x382   : > { %11128 = vmatprep.subr.bf16.mxu1 %v16405_v43  ;;  %10932 = vmatpush1.bf16.msra.mxu0 %v10931_v56  ;;  %v14097_v56 = vld [vmem:[#allocation2 + $0xa0] sm:$0xff]  ;;  %v5607_v53 = vsel %vm16636_vm11, %v5602_v58, %v5606_v48 }
 0x383   : > { %3330 = vmatmul.mubr.f32.gmra.mrb[68].mxu0 %v2943_v45  ;;  %10933 = vmatprep.subr.bf16.mxu0 %v16405_v43  ;;  %v6302_v45 = vld [vmem:[#allocation12 + $0x758] sm:$0xff]  ;;  %v5604_v2 = vrot.slane %v14097_v56, 7 }
 0x384   : > { %10116 = vmatprep.mubr.msk.f32.mxu0 %vm16626_vm9, %v2949_v0  ;;  %5985 = vmatmul.mubr.f32.gmra.mrb[6].mxu1 %v5597_v51  ;;  %v2953_v0 = vsel %vm16379_vm13, %v2948_v61, %v2952_v18  ;;  %v2956_v51 = vrot.slane %v14031_v39, 1  ;;  %v14119_v39 = vld [vmem:[#allocation2 + $0xc8] sm:$0xff]  ;;  %v11135_v61 = vpack.c.bf16 %v6302_v45, %v6301_v59 }
 0x385   : > { %10214 = vmatprep.mubr.msk.f32.mxu1 %vm13234_vm2, %v5603_v40  ;;  %11130 = vmatpush1.bf16.msra.mxu1 %v11129_v35  ;;  %v5601_v35 = vsel %vm16641_vm12, %v5596_v42, %v5600_v44  ;;  %v2951_v42 = vsel %vm16379_vm13, %v2946_v63, %v2950_v49  ;;  %v6303_v40 = vld [vmem:[#allocation12 + $0x760] sm:$0xff]  ;;  %vm16642_vm12 = vmmov %vm16636_vm11  ;;  %v3977_v63 = vld [vmem:[#allocation12 + $0x350] sm:$0xff]  ;;  %v5614_v45 = vrot.slane %v14119_v39, 7 }
 0x386   : > { %11131 = vmatprep.subr.bf16.mxu1 %v16405_v43  ;;  %10935 = vmatpush1.bf16.msra.mxu0 %v10934_v38  ;;  %v5610_v38 = vrot.slane %v14101_v50, 7  ;;  %v2957_v58 = vsel %vm16379_vm13, %v2952_v18, %v2956_v51  ;;  %v3978_v59 = vld [vmem:[#allocation12 + $0x358] sm:$0xff]  ;;  %v14137_v18 = vld [vmem:[#allocation2 + $0xd8] sm:$0xff] }
 0x387   : > { %10117 = vmatmul.mubr.msk.f32.gmra.mrb[70].mxu0 %vm16626_vm9, %v2947_v60  ;;  %10936 = vmatprep.subr.bf16.mxu0 %v16405_v43  ;;  %v6304_v60 = vld [vmem:[#allocation12 + $0x768] sm:$0xff]  ;;  %vm16660_vm9 = vcmask 1040384  }
 0x388   : > { %3339 = vmatprep.mubr.f32.mxu0 %v2953_v0  ;;  %10215 = vmatmul.mubr.msk.f32.gmra.mrb[8].mxu1 %vm13234_vm2, %v5601_v35  ;;  %v10940_v0 = vpack.c.bf16 %v3976_v62, %v3975_v41  ;;  %v2960_v35 = vrot.slane %v14047_v57, 1  ;;  %v5611_v47 = vsel %vm16636_vm11, %v5606_v48, %v5610_v38  ;;  %v11138_v57 = vpack.c.bf16 %v6304_v60, %v6303_v40  ;;  %v6305_v62 = vld [vmem:[#allocation12 + $0x770] sm:$0xff] }
 0x389   : > { %5994 = vmatprep.mubr.f32.mxu1 %v5607_v53  ;;  %11133 = vmatpush1.bf16.msra.mxu1 %v11132_v52  ;;  %v5605_v53 = vsel %vm16642_vm12, %v5600_v44, %v5604_v2  ;;  %v5608_v52 = vrot.slane %v14117_v1, 7  ;;  %v2955_v44 = vsel %vm16379_vm13, %v2950_v49, %v2954_v54  ;;  %v2958_v41 = vrot.slane %v14061_v46, 1  ;;  %vm16643_vm12 = vmmov %vm16636_vm11  ;;  %v3979_v46 = vld [vmem:[#allocation12 + $0x360] sm:$0xff]  ;;  %v3980_v49 = vld [vmem:[#allocation12 + $0x368] sm:$0xff] }
 0x38a   : > { %11134 = vmatprep.subr.bf16.mxu1 %v16405_v43  ;;  %10938 = vmatpush1.bf16.msra.mxu0 %v10937_v36  ;;  %v14133_v36 = vld [vmem:[#allocation2 + $0xc0] sm:$0xff]  ;;  %v10943_v48 = vpack.c.bf16 %v3978_v59, %v3977_v63  ;;  %v5615_v60 = vsel %vm16636_vm11, %v5610_v38, %v5614_v45  ;;  %v14153_v63 = vld [vmem:[#allocation2 + $0xd0] sm:$0xff]  ;;  %v2962_v59 = vrot.slane %v14081_v34, 1 }
 0x38b   : > { %3340 = vmatmul.mubr.f32.gmra.mrb[72].mxu0 %v2951_v42  ;;  %10939 = vmatprep.subr.bf16.mxu0 %v16405_v43  ;;  %v6306_v42 = vld [vmem:[#allocation12 + $0x778] sm:$0xff]  ;;  %v5612_v40 = vrot.slane %v14133_v36, 7 }
 0x38c   : > { %10118 = vmatprep.mubr.msk.f32.mxu0 %vm16627_vm7, %v2957_v58  ;;  %5995 = vmatmul.mubr.f32.gmra.mrb[10].mxu1 %v5605_v53  ;;  %v2961_v58 = vsel %vm16379_vm13, %v2956_v51, %v2960_v35  ;;  %v2964_v53 = vrot.slane %v14065_v55, 1  ;;  %v14155_v55 = vld [vmem:[#allocation2 + $0xe8] sm:$0xff]  ;;  %v11141_v51 = vpack.c.bf16 %v6306_v42, %v6305_v62 }
 0x38d   : > { %10216 = vmatprep.mubr.msk.f32.mxu1 %vm13238_vm3, %v5611_v47  ;;  %11136 = vmatpush1.bf16.msra.mxu1 %v11135_v61  ;;  %v5609_v61 = vsel %vm16643_vm12, %v5604_v2, %v5608_v52  ;;  %v2959_v2 = vsel %vm16379_vm13, %v2954_v54, %v2958_v41  ;;  %v6307_v47 = vld [vmem:[#allocation12 + $0x780] sm:$0xff]  ;;  %vm16644_vm12 = vmmov %vm16636_vm11  ;;  %v3981_v54 = vld [vmem:[#allocation12 + $0x370] sm:$0xff]  ;;  %v5622_v42 = vrot.slane %v14155_v55, 7 }
 0x38e   : > { %11137 = vmatprep.subr.bf16.mxu1 %v16405_v43  ;;  %10941 = vmatpush1.bf16.msra.mxu0 %v10940_v0  ;;  %v5618_v0 = vrot.slane %v14137_v18, 7  ;;  %v2965_v38 = vsel %vm16379_vm13, %v2960_v35, %v2964_v53  ;;  %v3982_v62 = vld [vmem:[#allocation12 + $0x378] sm:$0xff] }
 0x38f   : > { %10119 = vmatmul.mubr.msk.f32.gmra.mrb[74].mxu0 %vm16627_vm7, %v2955_v44  ;;  %10942 = vmatprep.subr.bf16.mxu0 %v16405_v43  ;;  %v6308_v44 = vld [vmem:[#allocation12 + $0x788] sm:$0xff]  ;;  %vm16652_vm7 = vcmask 1040384  }
 0x390   : > { %3349 = vmatprep.mubr.f32.mxu0 %v2961_v58  ;;  %10217 = vmatmul.mubr.msk.f32.gmra.mrb[12].mxu1 %vm13238_vm3, %v5609_v61  ;;  %v10946_v58 = vpack.c.bf16 %v3980_v49, %v3979_v46  ;;  %v2968_v61 = vrot.slane %v14083_v37, 1  ;;  %v5619_v34 = vsel %vm16636_vm11, %v5614_v45, %v5618_v0  ;;  %v14173_v37 = vld [vmem:[#allocation2 + $0xf8] sm:$0xff]  ;;  %v11144_v35 = vpack.c.bf16 %v6308_v44, %v6307_v47  ;;  %v6309_v49 = vld [vmem:[#allocation12 + $0x790] sm:$0xff] }
 0x391   : > { %6004 = vmatprep.mubr.f32.mxu1 %v5615_v60  ;;  %11139 = vmatpush1.bf16.msra.mxu1 %v11138_v57  ;;  %v5613_v60 = vsel %vm16644_vm12, %v5608_v52, %v5612_v40  ;;  %v5616_v57 = vrot.slane %v14153_v63, 7  ;;  %v2963_v52 = vsel %vm16379_vm13, %v2958_v41, %v2962_v59  ;;  %v2966_v46 = vrot.slane %v14097_v56, 1  ;;  %vm16645_vm12 = vmmov %vm16636_vm11  ;;  %v3983_v56 = vld [vmem:[#allocation12 + $0x380] sm:$0xff]  ;;  %v3984_v41 = vld [vmem:[#allocation12 + $0x388] sm:$0xff] }
 0x392   : > { %11140 = vmatprep.subr.bf16.mxu1 %v16405_v43  ;;  %10944 = vmatpush1.bf16.msra.mxu0 %v10943_v48  ;;  %v14169_v48 = vld [vmem:[#allocation2 + $0xe0] sm:$0xff]  ;;  %v10949_v45 = vpack.c.bf16 %v3982_v62, %v3981_v54  ;;  %v5623_v44 = vsel %vm16636_vm11, %v5618_v0, %v5622_v42  ;;  %v14189_v54 = vld [vmem:[#allocation2 + $0xf0] sm:$0xff]  ;;  %v2970_v62 = vrot.slane %v14117_v1, 1 }
 0x393   : > { %3350 = vmatmul.mubr.f32.gmra.mrb[76].mxu0 %v2959_v2  ;;  %10945 = vmatprep.subr.bf16.mxu0 %v16405_v43  ;;  %v6310_v2 = vld [vmem:[#allocation12 + $0x798] sm:$0xff]  ;;  %v5620_v47 = vrot.slane %v14169_v48, 7 }
 0x394   : > { %10120 = vmatprep.mubr.msk.f32.mxu0 %vm16628_vm6, %v2965_v38  ;;  %6005 = vmatmul.mubr.f32.gmra.mrb[14].mxu1 %v5613_v60  ;;  %v2969_v38 = vsel %vm16379_vm13, %v2964_v53, %v2968_v61  ;;  %v2972_v60 = vrot.slane %v14101_v50, 1  ;;  %v14191_v50 = vld [vmem:[#allocation2 + $0x108] sm:$0xff]  ;;  %v11147_v53 = vpack.c.bf16 %v6310_v2, %v6309_v49 }
 0x395   : > { %10218 = vmatprep.mubr.msk.f32.mxu1 %vm13242_vm4, %v5619_v34  ;;  %11142 = vmatpush1.bf16.msra.mxu1 %v11141_v51  ;;  %v5617_v51 = vsel %vm16645_vm12, %v5612_v40, %v5616_v57  ;;  %v2967_v40 = vsel %vm16379_vm13, %v2962_v59, %v2966_v46  ;;  %v6311_v34 = vld [vmem:[#allocation12 + $0x7a0] sm:$0xff]  ;;  %vm16646_vm12 = vmmov %vm16636_vm11  ;;  %v3985_v59 = vld [vmem:[#allocation12 + $0x390] sm:$0xff]  ;;  %vm16647_vm11 = vnez %v16581_v22  ;;  %v5630_v2 = vrot.slane %v14191_v50, 7 }
 0x396   : > { %11143 = vmatprep.subr.bf16.mxu1 %v16405_v43  ;;  %10947 = vmatpush1.bf16.msra.mxu0 %v10946_v58  ;;  %v5626_v58 = vrot.slane %v14173_v37, 7  ;;  %v2973_v0 = vsel %vm16379_vm13, %v2968_v61, %v2972_v60  ;;  %v3986_v49 = vld [vmem:[#allocation12 + $0x398] sm:$0xff]  ;;  %vm16649_vm13 = vnez %v16542_v7 }
 0x397   : > { %10121 = vmatmul.mubr.msk.f32.gmra.mrb[78].mxu0 %vm16628_vm6, %v2963_v52  ;;  %10948 = vmatprep.subr.bf16.mxu0 %v16405_v43  ;;  %v6312_v52 = vld [vmem:[#allocation12 + $0x7a8] sm:$0xff]  ;;  %vm16648_vm6 = vmmov %vm16646_vm12  ;;  %v14718_v22 = vld [vmem:[#allocation2 + $0x110] sm:$0xff] }
 0x398   : > { %3359 = vmatprep.mubr.f32.mxu0 %v2969_v38  ;;  %10219 = vmatmul.mubr.msk.f32.gmra.mrb[16].mxu1 %vm13242_vm4, %v5617_v51  ;;  %v10952_v38 = vpack.c.bf16 %v3984_v41, %v3983_v56  ;;  %v2976_v51 = vrot.slane %v14119_v39, 1  ;;  %v5627_v1 = vsel %vm16648_vm6, %v5622_v42, %v5626_v58  ;;  %v14209_v39 = vld [vmem:[#allocation2 + $0x118] sm:$0xff]  ;;  %v11150_v61 = vpack.c.bf16 %v6312_v52, %v6311_v34  ;;  %v6313_v41 = vld [vmem:[#allocation12 + $0x7b0] sm:$0xff] }
 0x399   : > { %6014 = vmatprep.mubr.f32.mxu1 %v5623_v44  ;;  %11145 = vmatpush1.bf16.msra.mxu1 %v11144_v35  ;;  %v5621_v44 = vsel %vm16646_vm12, %v5616_v57, %v5620_v47  ;;  %v5624_v35 = vrot.slane %v14189_v54, 7  ;;  %vm16650_vm12 = vcmask 1046528   ;;  %v2974_v56 = vrot.slane %v14133_v36, 1  ;;  %v3987_v36 = vld [vmem:[#allocation12 + $0x3a0] sm:$0xff] }
 0x39a   : > { %11146 = vmatprep.subr.bf16.mxu1 %v16405_v43  ;;  %10950 = vmatpush1.bf16.msra.mxu0 %v10949_v45  ;;  %v14205_v45 = vld [vmem:[#allocation2 + $0x100] sm:$0xff]  ;;  %v2971_v57 = vsel %vm16650_vm12, %v2966_v46, %v2970_v62  ;;  %v10955_v42 = vpack.c.bf16 %v3986_v49, %v3985_v59  ;;  %vm16651_vm6 = vmmov %vm16650_vm12  ;;  %v14225_v59 = vld [vmem:[#allocation2 + $0x110] sm:$0xff]  ;;  %v2978_v49 = vrot.slane %v14153_v63, 1 }
 0x39b   : > { %3360 = vmatmul.mubr.f32.gmra.mrb[80].mxu0 %v2967_v40  ;;  %10951 = vmatprep.subr.bf16.mxu0 %v16405_v43  ;;  %v6314_v40 = vld [vmem:[#allocation12 + $0x7b8] sm:$0xff]  ;;  %v5628_v34 = vrot.slane %v14205_v45, 7  ;;  %v3988_v46 = vld [vmem:[#allocation12 + $0x3a8] sm:$0xff]  ;;  %vm16653_vm12 = vmmov %vm16652_vm7 }
 0x39c   : > { %10122 = vmatprep.mubr.msk.f32.mxu0 %vm16647_vm11, %v2973_v0  ;;  %6015 = vmatmul.mubr.f32.gmra.mrb[18].mxu1 %v5621_v44  ;;  %v2977_v0 = vsel %vm16651_vm6, %v2972_v60, %v2976_v51  ;;  %v2980_v44 = vrot.slane %v14137_v18, 1  ;;  %v5631_v52 = vsel %vm16653_vm12, %v5626_v58, %v5630_v2  ;;  %v14227_v18 = vld [vmem:[#allocation2 + $0x128] sm:$0xff]  ;;  %v11153_v60 = vpack.c.bf16 %v6314_v40, %v6313_v41 }
 0x39d   : > { %10220 = vmatprep.mubr.msk.f32.mxu1 %vm16649_vm13, %v5627_v1  ;;  %11148 = vmatpush1.bf16.msra.mxu1 %v11147_v53  ;;  %v5625_v53 = vsel %vm16652_vm7, %v5620_v47, %v5624_v35  ;;  %vm16654_vm7 = vmmov %vm16651_vm6  ;;  %v6315_v1 = vld [vmem:[#allocation12 + $0x7c0] sm:$0xff]  ;;  %v3990_v41 = vld [vmem:[#allocation12 + $0x3b8] sm:$0xff]  ;;  %v5638_v40 = vrot.slane %v14227_v18, 7 }
 0x39e   : > { %11149 = vmatprep.subr.bf16.mxu1 %v16405_v43  ;;  %10953 = vmatpush1.bf16.msra.mxu0 %v10952_v38  ;;  %v5634_v38 = vrot.slane %v14209_v39, 7  ;;  %v2975_v47 = vsel %vm16654_vm7, %v2970_v62, %v2974_v56  ;;  %v2981_v58 = vsel %vm16651_vm6, %v2976_v51, %v2980_v44  ;;  %v3989_v62 = vld [vmem:[#allocation12 + $0x3b0] sm:$0xff]  ;;  %vm16655_vm7 = vnez %v16584_v23 }
 0x39f   : > { %10123 = vmatmul.mubr.msk.f32.gmra.mrb[82].mxu0 %vm16647_vm11, %v2971_v57  ;;  %10954 = vmatprep.subr.bf16.mxu0 %v16405_v43  ;;  %v6316_v57 = vld [vmem:[#allocation12 + $0x7c8] sm:$0xff]  ;;  %vm16656_vm11 = vmmov %vm16653_vm12  ;;  %vm16657_vm6 = vnez %v16545_v8 }
 0x3a0   : > { %3369 = vmatprep.mubr.f32.mxu0 %v2977_v0  ;;  %10221 = vmatmul.mubr.msk.f32.gmra.mrb[20].mxu1 %vm16649_vm13, %v5625_v53  ;;  %v10958_v0 = vpack.c.bf16 %v3988_v46, %v3987_v36  ;;  %v2984_v53 = vrot.slane %v14155_v55, 1  ;;  %v5635_v63 = vsel %vm16656_vm11, %v5630_v2, %v5634_v38  ;;  %v14245_v55 = vld [vmem:[#allocation2 + $0x138] sm:$0xff]  ;;  %v11156_v51 = vpack.c.bf16 %v6316_v57, %v6315_v1  ;;  %v6317_v2 = vld [vmem:[#allocation12 + $0x7d0] sm:$0xff] }
 0x3a1   : > { %6024 = vmatprep.mubr.f32.mxu1 %v5631_v52  ;;  %11151 = vmatpush1.bf16.msra.mxu1 %v11150_v61  ;;  %v5629_v52 = vsel %vm16653_vm12, %v5624_v35, %v5628_v34  ;;  %v5632_v61 = vrot.slane %v14225_v59, 7  ;;  %vm16658_vm12 = vcmask 1046528   ;;  %v2982_v36 = vrot.slane %v14169_v48, 1  ;;  %v3991_v48 = vld [vmem:[#allocation12 + $0x3c0] sm:$0xff]  ;;  %v14707_v23 = vld [vmem:[#allocation2 + $0x100] sm:$0xff] }
 0x3a2   : > { %11152 = vmatprep.subr.bf16.mxu1 %v16405_v43  ;;  %10956 = vmatpush1.bf16.msra.mxu0 %v10955_v42  ;;  %v14241_v42 = vld [vmem:[#allocation2 + $0x120] sm:$0xff]  ;;  %v2979_v35 = vsel %vm16658_vm12, %v2974_v56, %v2978_v49  ;;  %v10961_v46 = vpack.c.bf16 %v3990_v41, %v3989_v62  ;;  %vm16659_vm11 = vmmov %vm16658_vm12  ;;  %v14261_v62 = vld [vmem:[#allocation2 + $0x130] sm:$0xff]  ;;  %v2986_v41 = vrot.slane %v14189_v54, 1 }
 0x3a3   : > { %3370 = vmatmul.mubr.f32.gmra.mrb[84].mxu0 %v2975_v47  ;;  %10957 = vmatprep.subr.bf16.mxu0 %v16405_v43  ;;  %v6318_v47 = vld [vmem:[#allocation12 + $0x7d8] sm:$0xff]  ;;  %v5636_v1 = vrot.slane %v14241_v42, 7  ;;  %v3992_v56 = vld [vmem:[#allocation12 + $0x3c8] sm:$0xff]  ;;  %vm16661_vm12 = vmmov %vm16660_vm9 }
 0x3a4   : > { %10124 = vmatprep.mubr.msk.f32.mxu0 %vm16655_vm7, %v2981_v58  ;;  %6025 = vmatmul.mubr.f32.gmra.mrb[22].mxu1 %v5629_v52  ;;  %v2985_v58 = vsel %vm16659_vm11, %v2980_v44, %v2984_v53  ;;  %v2988_v52 = vrot.slane %v14173_v37, 1  ;;  %v5639_v57 = vsel %vm16661_vm12, %v5634_v38, %v5638_v40  ;;  %v14263_v37 = vld [vmem:[#allocation2 + $0x148] sm:$0xff]  ;;  %v11159_v44 = vpack.c.bf16 %v6318_v47, %v6317_v2  ;;  %v14277_v47 = vld [vmem:[#allocation2 + $0x140] sm:$0xff] }
 0x3a5   : > { %10222 = vmatprep.mubr.msk.f32.mxu1 %vm16657_vm6, %v5635_v63  ;;  %11154 = vmatpush1.bf16.msra.mxu1 %v11153_v60  ;;  %v5633_v60 = vsel %vm16660_vm9, %v5628_v34, %v5632_v61  ;;  %vm16662_vm9 = vmmov %vm16659_vm11  ;;  %v10964_v63 = vpack.c.bf16 %v3992_v56, %v3991_v48  ;;  %v3994_v2 = vld [vmem:[#allocation12 + $0x3d8] sm:$0xff]  ;;  %v2990_v48 = vrot.slane %v14205_v45, 1  ;;  %v3995_v45 = vld [vmem:[#allocation12 + $0x3e0] sm:$0xff] }
 0x3a6   : > { %11155 = vmatprep.subr.bf16.mxu1 %v16405_v43  ;;  %10959 = vmatpush1.bf16.msra.mxu0 %v10958_v0  ;;  %v5642_v0 = vrot.slane %v14245_v55, 7  ;;  %v2983_v34 = vsel %vm16662_vm9, %v2978_v49, %v2982_v36  ;;  %vm16663_vm11 = vmmov %vm16662_vm9  ;;  %v3993_v49 = vld [vmem:[#allocation12 + $0x3d0] sm:$0xff]  ;;  %vm16664_vm9 = vnez %v16587_v24 }
 0x3a7   : > { %10125 = vmatmul.mubr.msk.f32.gmra.mrb[86].mxu0 %vm16655_vm7, %v2979_v35  ;;  %10960 = vmatprep.subr.bf16.mxu0 %v16405_v43  ;;  %v6319_v35 = vld [vmem:[#allocation12 + $0x7e0] sm:$0xff]  ;;  %v2989_v38 = vsel %vm16663_vm11, %v2984_v53, %v2988_v52  ;;  %vm16665_vm7 = vmmov %vm16661_vm12  ;;  %vm16666_vm11 = vnez %v16548_v9  ;;  %v10967_v56 = vpack.c.bf16 %v3994_v2, %v3993_v49  ;;  %v2994_v2 = vrot.slane %v14225_v59, 1 }
 0x3a8   : > { %3379 = vmatprep.mubr.f32.mxu0 %v2985_v58  ;;  %10223 = vmatmul.mubr.msk.f32.gmra.mrb[24].mxu1 %vm16657_vm6, %v5633_v60  ;;  %v6320_v58 = vld [vmem:[#allocation12 + $0x7e8] sm:$0xff]  ;;  %v2992_v60 = vrot.slane %v14191_v50, 1  ;;  %v5643_v54 = vsel %vm16665_vm7, %v5638_v40, %v5642_v0  ;;  %v6321_v40 = vld [vmem:[#allocation12 + $0x7f0] sm:$0xff]  ;;  %v14297_v49 = vld [vmem:[#allocation2 + $0x150] sm:$0xff] }
 0x3a9   : > { %6034 = vmatprep.mubr.f32.mxu1 %v5639_v57  ;;  %11157 = vmatpush1.bf16.msra.mxu1 %v11156_v51  ;;  %v5637_v57 = vsel %vm16661_vm12, %v5632_v61, %v5636_v1  ;;  %v5640_v51 = vrot.slane %v14261_v62, 7  ;;  %v14281_v50 = vld [vmem:[#allocation2 + $0x158] sm:$0xff]  ;;  %v11162_v53 = vpack.c.bf16 %v6320_v58, %v6319_v35  ;;  %vm16667_vm12 = vcmask 1046528  }
 0x3aa   : > { %11158 = vmatprep.subr.bf16.mxu1 %v16405_v43  ;;  %10962 = vmatpush1.bf16.msra.mxu0 %v10961_v46  ;;  %v5646_v46 = vrot.slane %v14263_v37, 7  ;;  %v2987_v61 = vsel %vm16667_vm12, %v2982_v36, %v2986_v41  ;;  %vm16668_vm7 = vmmov %vm16667_vm12  ;;  %v5644_v35 = vrot.slane %v14277_v47, 7  ;;  %v3996_v36 = vld [vmem:[#allocation12 + $0x3e8] sm:$0xff]  ;;  %v5650_v58 = vrot.slane %v14281_v50, 7 }
 0x3ab   : > { %3380 = vmatmul.mubr.f32.gmra.mrb[88].mxu0 %v2983_v34  ;;  %10963 = vmatprep.subr.bf16.mxu0 %v16405_v43  ;;  %v6322_v34 = vld [vmem:[#allocation12 + $0x7f8] sm:$0xff]  ;;  %vm16670_vm12 = vmmov %vm16669_vm8 }
 0x3ac   : > { %10126 = vmatprep.mubr.msk.f32.mxu0 %vm16664_vm9, %v2989_v38  ;;  %6035 = vmatmul.mubr.f32.gmra.mrb[26].mxu1 %v5637_v57  ;;  %v2993_v38 = vsel %vm16668_vm7, %v2988_v52, %v2992_v60  ;;  %v2996_v57 = vrot.slane %v14209_v39, 1  ;;  %v14299_v39 = vld [vmem:[#allocation2 + $0x168] sm:$0xff]  ;;  %v11165_v52 = vpack.c.bf16 %v6322_v34, %v6321_v40 }
 0x3ad   : > { %10224 = vmatprep.mubr.msk.f32.mxu1 %vm16666_vm11, %v5643_v54  ;;  %11160 = vmatpush1.bf16.msra.mxu1 %v11159_v44  ;;  %v5641_v44 = vsel %vm16669_vm8, %v5636_v1, %v5640_v51  ;;  %vm16671_vm8 = vmmov %vm16668_vm7  ;;  %v10970_v54 = vpack.c.bf16 %v3996_v36, %v3995_v45  ;;  %v3998_v40 = vld [vmem:[#allocation12 + $0x3f8] sm:$0xff]  ;;  %v3004_v45 = vrot.slane %v14245_v55, 1 }
 0x3ae   : > { %10965 = vmatpush1.bf16.msra.mxu0 %v10964_v63  ;;  %11161 = vmatprep.subr.bf16.mxu1 %v16405_v43  ;;  %v5647_v63 = vsel %vm16670_vm12, %v5642_v0, %v5646_v46  ;;  %v2991_v1 = vsel %vm16671_vm8, %v2986_v41, %v2990_v48  ;;  %v2997_v0 = vsel %vm16668_vm7, %v2992_v60, %v2996_v57  ;;  %v5654_v41 = vrot.slane %v14299_v39, 7 }
 0x3af   : > { %10127 = vmatmul.mubr.msk.f32.gmra.mrb[90].mxu0 %vm16664_vm9, %v2987_v61  ;;  %10966 = vmatprep.subr.bf16.mxu0 %v16405_v43  ;;  %v3000_v61 = vrot.slane %v14227_v18, 1  ;;  %vm16672_vm8 = vnez %v16590_v25  ;;  %vm16673_vm9 = vmmov %vm16670_vm12  ;;  %vm16674_vm7 = vnez %v16551_v10  ;;  %v14317_v18 = vld [vmem:[#allocation2 + $0x178] sm:$0xff]  ;;  %v14692_v25 = vld [vmem:[#allocation2 + $0xf0] sm:$0xff] }
 0x3b0   : > { %3389 = vmatprep.mubr.f32.mxu0 %v2993_v38  ;;  %10225 = vmatmul.mubr.msk.f32.gmra.mrb[28].mxu1 %vm16666_vm11, %v5641_v44  ;;  %v5645_v38 = vsel %vm16670_vm12, %v5640_v51, %v5644_v35  ;;  %v5648_v44 = vrot.slane %v14297_v49, 7  ;;  %v5651_v59 = vsel %vm16673_vm9, %v5646_v46, %v5650_v58  ;;  %vm16675_vm12 = vcmask 1046528   ;;  %16743 = vst [vmem:[#allocation56_spill] sm:$0xff] %v14692_v25 }
 0x3b1   : > { %6044 = vmatprep.mubr.f32.mxu1 %v5647_v63  ;;  %11163 = vmatpush1.bf16.msra.mxu1 %v11162_v53  ;;  %v3997_v53 = vld [vmem:[#allocation12 + $0x3f0] sm:$0xff]  ;;  %v2995_v60 = vsel %vm16675_vm12, %v2990_v48, %v2994_v2  ;;  %v2998_v51 = vrot.slane %v14241_v42, 1  ;;  %vm16676_vm9 = vmmov %vm16675_vm12  ;;  %vm16677_vm11 = vcmask 1040384   ;;  %v5658_v48 = vrot.slane %v14317_v18, 7 }
 0x3b2   : > { %10968 = vmatpush1.bf16.msra.mxu0 %v10967_v56  ;;  %11164 = vmatprep.subr.bf16.mxu1 %v16405_v43  ;;  %v14313_v56 = vld [vmem:[#allocation2 + $0x160] sm:$0xff]  ;;  %v10973_v34 = vpack.c.bf16 %v3998_v40, %v3997_v53  ;;  %v3001_v46 = vsel %vm16676_vm9, %v2996_v57, %v3000_v61  ;;  %v5649_v36 = vsel %vm16677_vm11, %v5644_v35, %v5648_v44  ;;  %vm16678_vm12 = vmmov %vm16677_vm11  ;;  %v14335_v57 = vld [vmem:[#allocation2 + $0x188] sm:$0xff]  ;;  %v3002_v35 = vrot.slane %v14261_v62, 1 }
 0x3b3   : > { %3390 = vmatmul.mubr.f32.gmra.mrb[92].mxu0 %v2991_v1  ;;  %10969 = vmatprep.subr.bf16.mxu0 %v16405_v43  ;;  %v5652_v63 = vrot.slane %v14313_v56, 7  ;;  %v5655_v42 = vsel %vm16678_vm12, %v5650_v58, %v5654_v41  ;;  %v2999_v55 = vsel %vm16676_vm9, %v2994_v2, %v2998_v51  ;;  %vm16679_vm11 = vmmov %vm16676_vm9  ;;  %v5662_v2 = vrot.slane %v14335_v57, 7  ;;  %v14347_v53 = vld [vmem:[#allocation2 + $0x180] sm:$0xff]  ;;  %v14351_v62 = vld [vmem:[#allocation2 + $0x198] sm:$0xff] }
 0x3b4   : > { %10128 = vmatprep.mubr.msk.f32.mxu0 %vm16672_vm8, %v2997_v0  ;;  %6045 = vmatmul.mubr.f32.gmra.mrb[30].mxu1 %v5645_v38  ;;  %v3005_v1 = vsel %vm16679_vm11, %v3000_v61, %v3004_v45  ;;  %vm16683_vm9 = vnez %v16554_v11  ;;  %v3006_v61 = vrot.slane %v14277_v47, 1  ;;  %v3012_v40 = vrot.slane %v14281_v50, 1  ;;  %v14365_v47 = vld [vmem:[#allocation2 + $0x190] sm:$0xff] }
 0x3b5   : > { %10226 = vmatprep.mubr.msk.f32.mxu1 %vm16674_vm7, %v5651_v59  ;;  %11166 = vmatpush1.bf16.msra.mxu1 %v11165_v52  ;;  %v14333_v52 = vld [vmem:[#allocation2 + $0x170] sm:$0xff]  ;;  %v3010_v50 = vrot.slane %v14297_v49, 1  ;;  %v14383_v49 = vld [vmem:[#allocation2 + $0x1b8] sm:$0xff] }
 0x3b6   : > { %10971 = vmatpush1.bf16.msra.mxu0 %v10970_v54  ;;  %11167 = vmatprep.subr.bf16.mxu1 %v16405_v43  ;;  %v3008_v54 = vrot.slane %v14263_v37, 1  ;;  %v5656_v58 = vrot.slane %v14333_v52, 7  ;;  %v3003_v37 = vsel %vm16679_vm11, %v2998_v51, %v3002_v35  ;;  %v5666_v51 = vrot.slane %v14351_v62, 7  ;;  %v14817_v11 = vld [vmem:[#allocation2 + $0x190] sm:$0xff] }
 0x3b7   : > { %10129 = vmatmul.mubr.msk.f32.gmra.mrb[94].mxu0 %vm16672_vm8, %v2995_v60  ;;  %10972 = vmatprep.subr.bf16.mxu0 %v16405_v43  ;;  %vm16680_vm8 = vmmov %vm16678_vm12  ;;  %vm16681_vm12 = vnez %v16593_v26  ;;  %v3549_v43 = vld [vmem:[#allocation2 + $0x48] sm:$0xff]  ;;  %v14681_v26 = vld [vmem:[#allocation2 + $0xe0] sm:$0xff]  ;;  %16772 = vst [vmem:[#allocation65_spill] sm:$0xff] %v14817_v11 }
 0x3b8   : > { %3399 = vmatprep.mubr.f32.mxu0 %v3001_v46  ;;  %10227 = vmatmul.mubr.msk.f32.gmra.mrb[32].mxu1 %vm16674_vm7, %v5649_v36  ;;  %v5653_v0 = vsel %vm16680_vm8, %v5648_v44, %v5652_v63  ;;  %vm16682_vm7 = vmmov %vm16680_vm8  ;;  %v3016_v36 = vrot.slane %v14299_v39, 1 }
 0x3b9   : > { %6054 = vmatprep.mubr.f32.mxu1 %v5655_v42  ;;  %v5659_v38 = vsel %vm16682_vm7, %v5654_v41, %v5658_v48  ;;  %vm16684_vm8 = vmmov %vm16679_vm11  ;;  %v5657_v59 = vsel %vm16682_vm7, %v5652_v63, %v5656_v58  ;;  %v5660_v41 = vrot.slane %v14347_v53, 7  ;;  %v5664_v42 = vrot.slane %v14365_v47, 7 }
 0x3ba   : > { %10974 = vmatpush1.bf16.msra.mxu0 %v10973_v34  ;;  %v3009_v44 = vsel %vm16684_vm8, %v3004_v45, %v3008_v54  ;;  %vm16685_vm6 = vmmov %vm16682_vm7  ;;  %v14367_v34 = vld [vmem:[#allocation2 + $0x1a8] sm:$0xff]  ;;  %v3013_v45 = vsel %vm16684_vm8, %v3008_v54, %v3012_v40  ;;  %v3011_v39 = vsel %vm16684_vm8, %v3006_v61, %v3010_v50 }
 0x3bb   : > { %3400 = vmatmul.mubr.f32.gmra.mrb[96].mxu0 %v2999_v55  ;;  %v5663_v60 = vsel %vm16685_vm6, %v5658_v48, %v5662_v2  ;;  %vm16686_vm11 = vmmov %vm16684_vm8  ;;  %v5667_v48 = vsel %vm16685_vm6, %v5662_v2, %v5666_v51  ;;  %v5670_v55 = vrot.slane %v14367_v34, 7 }
 0x3bc   : > { %10130 = vmatprep.mubr.msk.f32.mxu0 %vm16681_vm12, %v3005_v1  ;;  %6055 = vmatmul.mubr.f32.gmra.mrb[34].mxu1 %v5653_v0  ;;  %v3007_v46 = vsel %vm16686_vm11, %v3002_v35, %v3006_v61  ;;  %vm16687_vm7 = vmmov %vm16685_vm6  ;;  %v14379_v35 = vld [vmem:[#allocation2 + $0x1a0] sm:$0xff]  ;;  %vm16688_vm11 = vnez %v16557_v12  ;;  %v3014_v1 = vrot.slane %v14313_v56, 1  ;;  %v3020_v0 = vrot.slane %v14317_v18, 1  ;;  %v14397_v56 = vld [vmem:[#allocation2 + $0x1b0] sm:$0xff] }
 0x3bd   : > { %10228 = vmatprep.mubr.msk.f32.mxu1 %vm16683_vm9, %v5659_v38  ;;  %v5661_v63 = vsel %vm16687_vm7, %v5656_v58, %v5660_v41  ;;  %vm16689_vm7 = vmmov %vm16684_vm8  ;;  %v5665_v58 = vsel %vm16685_vm6, %v5660_v41, %v5664_v42  ;;  %v5668_v38 = vrot.slane %v14379_v35, 7  ;;  %v14399_v61 = vld [vmem:[#allocation2 + $0x1c8] sm:$0xff]  ;;  %v3018_v18 = vrot.slane %v14333_v52, 1  ;;  %v14415_v52 = vld [vmem:[#allocation2 + $0x1d8] sm:$0xff] }
 0x3be   : > { %v3017_v54 = vsel %vm16689_vm7, %v3012_v40, %v3016_v36  ;;  %vm16691_vm8 = vmmov %vm16689_vm7  ;;  %v3021_v40 = vsel %vm16689_vm7, %v3016_v36, %v3020_v0  ;;  %v14841_v12 = vld [vmem:[#allocation2 + $0x1b0] sm:$0xff] }
 0x3bf   : > { %10131 = vmatmul.mubr.msk.f32.gmra.mrb[98].mxu0 %vm16681_vm12, %v3003_v37  ;;  %vm16690_vm12 = vmmov %vm16685_vm6  ;;  %v5674_v37 = vrot.slane %v14383_v49, 7  ;;  %v5669_v41 = vsel %vm16685_vm6, %v5664_v42, %v5668_v38  ;;  %16778 = vst [vmem:[#allocation68_spill] sm:$0xff] %v14841_v12 }
 0x3c0   : > { %3409 = vmatprep.mubr.f32.mxu0 %v3009_v44  ;;  %10229 = vmatmul.mubr.msk.f32.gmra.mrb[36].mxu1 %vm16683_vm9, %v5657_v59  ;;  %v5671_v2 = vsel %vm16690_vm12, %v5666_v51, %v5670_v55  ;;  %v3015_v44 = vsel %vm16691_vm8, %v3010_v50, %v3014_v1  ;;  %v3024_v59 = vrot.slane %v14335_v57, 1  ;;  %vm16692_vm12 = vmmov %vm16685_vm6  ;;  %v14411_v50 = vld [vmem:[#allocation2 + $0x1c0] sm:$0xff]  ;;  %vm16693_vm8 = vnez %v16560_v13  ;;  %v14865_v13 = vld [vmem:[#allocation2 + $0x1d0] sm:$0xff] }
 0x3c1   : > { %6064 = vmatprep.mubr.f32.mxu1 %v5663_v60  ;;  %v5672_v60 = vrot.slane %v14397_v56, 7  ;;  %v5675_v51 = vsel %vm16692_vm12, %v5670_v55, %v5674_v37  ;;  %v3019_v57 = vsel %vm16689_vm7, %v3014_v1, %v3018_v18  ;;  %vm16694_vm6 = vmmov %vm16689_vm7  ;;  %v14431_v1 = vld [vmem:[#allocation2 + $0x1e8] sm:$0xff] }
 0x3c2   : > { %v3025_v36 = vsel %vm16694_vm6, %v3020_v0, %v3024_v59  ;;  %vm16696_vm7 = vmmov %vm16694_vm6 }
 0x3c3   : > { %3410 = vmatmul.mubr.f32.gmra.mrb[100].mxu0 %v3007_v46  ;;  %v5678_v46 = vrot.slane %v14399_v61, 7  ;;  %v5673_v42 = vsel %vm16692_vm12, %v5668_v38, %v5672_v60 }
 0x3c4   : > { %10132 = vmatprep.mubr.msk.f32.mxu0 %vm16634_vm5, %v3013_v45  ;;  %6065 = vmatmul.mubr.f32.gmra.mrb[38].mxu1 %v5661_v63  ;;  %v3022_v45 = vrot.slane %v14347_v53, 1  ;;  %v3028_v63 = vrot.slane %v14351_v62, 1  ;;  %v14429_v53 = vld [vmem:[#allocation2 + $0x1d0] sm:$0xff]  ;;  %v3026_v62 = vrot.slane %v14365_v47, 1  ;;  %v14447_v47 = vld [vmem:[#allocation2 + $0x1f8] sm:$0xff] }
 0x3c5   : > { %10230 = vmatprep.mubr.msk.f32.mxu1 %vm16688_vm11, %v5667_v48  ;;  %v5676_v48 = vrot.slane %v14411_v50, 7 }
 0x3c6   : > { %v3029_v0 = vsel %vm16694_vm6, %v3024_v59, %v3028_v63 }
 0x3c7   : > { %10133 = vmatmul.mubr.msk.f32.gmra.mrb[102].mxu0 %vm16634_vm5, %v3011_v39  ;;  %vm16695_vm5 = vmmov %vm16692_vm12  ;;  %v5682_v39 = vrot.slane %v14415_v52, 7 }
 0x3c8   : > { %3419 = vmatprep.mubr.f32.mxu0 %v3017_v54  ;;  %10231 = vmatmul.mubr.msk.f32.gmra.mrb[40].mxu1 %vm16688_vm11, %v5665_v58  ;;  %v5679_v55 = vsel %vm16695_vm5, %v5674_v37, %v5678_v46  ;;  %v3023_v54 = vsel %vm16696_vm7, %v3018_v18, %v3022_v45  ;;  %v3032_v58 = vrot.slane %v14367_v34, 1  ;;  %vm16697_vm12 = vmmov %vm16695_vm5  ;;  %v14443_v18 = vld [vmem:[#allocation2 + $0x1e0] sm:$0xff]  ;;  %vm16698_vm7 = vnez %v16563_v14 }
 0x3c9   : > { %6074 = vmatprep.mubr.f32.mxu1 %v5671_v2  ;;  %v5677_v38 = vsel %vm16697_vm12, %v5672_v60, %v5676_v48  ;;  %v5680_v2 = vrot.slane %v14429_v53, 7  ;;  %v5683_v37 = vsel %vm16695_vm5, %v5678_v46, %v5682_v39  ;;  %v3027_v34 = vsel %vm16694_vm6, %v3022_v45, %v3026_v62  ;;  %vm16699_vm12 = vmmov %vm16694_vm6  ;;  %v14463_v45 = vld [vmem:[#allocation2 + $0x208] sm:$0xff] }
 0x3ca   : > { %v3033_v59 = vsel %vm16699_vm12, %v3028_v63, %v3032_v58  ;;  %vm16701_vm12 = vmmov %vm16694_vm6 }
 0x3cb   : > { %3420 = vmatmul.mubr.f32.gmra.mrb[104].mxu0 %v3015_v44  ;;  %v5686_v44 = vrot.slane %v14431_v1, 7  ;;  %v5681_v60 = vsel %vm16695_vm5, %v5676_v48, %v5680_v2 }
 0x3cc   : > { %10134 = vmatprep.mubr.msk.f32.mxu0 %vm13330_vm14, %v3021_v40  ;;  %6075 = vmatmul.mubr.f32.gmra.mrb[42].mxu1 %v5669_v41  ;;  %v3030_v40 = vrot.slane %v14379_v35, 1  ;;  %v3036_v41 = vrot.slane %v14383_v49, 1  ;;  %v14461_v35 = vld [vmem:[#allocation2 + $0x1f0] sm:$0xff]  ;;  %v3034_v49 = vrot.slane %v14397_v56, 1  ;;  %v14479_v56 = vld [vmem:[#allocation2 + $0x218] sm:$0xff] }
 0x3cd   : > { %10232 = vmatprep.mubr.msk.f32.mxu1 %vm16693_vm8, %v5675_v51  ;;  %v5684_v51 = vrot.slane %v14443_v18, 7 }
 0x3ce   : > { %v3037_v63 = vsel %vm16701_vm12, %v3032_v58, %v3036_v41 }
 0x3cf   : > { %10135 = vmatmul.mubr.msk.f32.gmra.mrb[106].mxu0 %vm13330_vm14, %v3019_v57  ;;  %vm16700_vm14 = vmmov %vm16695_vm5  ;;  %v5690_v57 = vrot.slane %v14447_v47, 7  ;;  %v5685_v48 = vsel %vm16695_vm5, %v5680_v2, %v5684_v51 }
 0x3d0   : > { %3429 = vmatprep.mubr.f32.mxu0 %v3025_v36  ;;  %10233 = vmatmul.mubr.msk.f32.gmra.mrb[44].mxu1 %vm16693_vm8, %v5673_v42  ;;  %v5687_v46 = vsel %vm16700_vm14, %v5682_v39, %v5686_v44  ;;  %v3031_v36 = vsel %vm16694_vm6, %v3026_v62, %v3030_v40  ;;  %v3040_v42 = vrot.slane %v14399_v61, 1  ;;  %vm16702_vm14 = vmmov %vm16695_vm5  ;;  %v14475_v62 = vld [vmem:[#allocation2 + $0x200] sm:$0xff]  ;;  %vm16703_vm6 = vnez %v16566_v15 }
 0x3d1   : > { %6084 = vmatprep.mubr.f32.mxu1 %v5679_v55  ;;  %v5688_v55 = vrot.slane %v14461_v35, 7  ;;  %v5691_v39 = vsel %vm16702_vm14, %v5686_v44, %v5690_v57  ;;  %v3035_v61 = vsel %vm16701_vm12, %v3030_v40, %v3034_v49  ;;  %vm16704_vm5 = vmmov %vm16701_vm12  ;;  %v14499_v40 = vld [vmem:[#allocation2 + $0x228] sm:$0xff] }
 0x3d2   : > { %v3041_v58 = vsel %vm16704_vm5, %v3036_v41, %v3040_v42  ;;  %vm16706_vm12 = vmmov %vm16704_vm5 }
 0x3d3   : > { %3430 = vmatmul.mubr.f32.gmra.mrb[108].mxu0 %v3023_v54  ;;  %v5694_v54 = vrot.slane %v14463_v45, 7  ;;  %v5689_v2 = vsel %vm16702_vm14, %v5684_v51, %v5688_v55 }
 0x3d4   : > { %10136 = vmatprep.mubr.msk.f32.mxu0 %vm13334_vm15, %v3029_v0  ;;  %6085 = vmatmul.mubr.f32.gmra.mrb[46].mxu1 %v5677_v38  ;;  %v3038_v0 = vrot.slane %v14411_v50, 1  ;;  %v3044_v38 = vrot.slane %v14415_v52, 1  ;;  %v14495_v50 = vrot.slane %v14479_v56, 7 }
 0x3d5   : > { %10234 = vmatprep.mubr.msk.f32.mxu1 %vm16698_vm7, %v5683_v37  ;;  %v14489_v37 = vrot.slane %v14475_v62, 7 }
 0x3d6   : > { %v3039_v52 = vsel %vm16706_vm12, %v3034_v49, %v3038_v0  ;;  %v3045_v41 = vsel %vm16704_vm5, %v3040_v42, %v3044_v38  ;;  %vm16709_vm12 = vnez %v16568_v16  ;;  %v3046_v49 = vrot.slane %v14443_v18, 1 }
 0x3d7   : > { %10137 = vmatmul.mubr.msk.f32.gmra.mrb[110].mxu0 %vm13334_vm15, %v3027_v34  ;;  %vm16705_vm15 = vmmov %vm16702_vm14  ;;  %v14497_v34 = vld [vmem:[#allocation2 + $0x210] sm:$0xff]  ;;  %v5693_v51 = vsel %vm16702_vm14, %v5688_v55, %v14489_v37  ;;  %v3052_v42 = vrot.slane %v14447_v47, 1 }
 0x3d8   : > { %3439 = vmatprep.mubr.f32.mxu0 %v3033_v59  ;;  %10235 = vmatmul.mubr.msk.f32.gmra.mrb[48].mxu1 %vm16698_vm7, %v5681_v60  ;;  %v5695_v44 = vsel %vm16705_vm15, %v5690_v57, %v5694_v54  ;;  %v3042_v59 = vrot.slane %v14429_v53, 1  ;;  %v3048_v60 = vrot.slane %v14431_v1, 1  ;;  %vm16707_vm15 = vnez %v16608_v31  ;;  %v14640_v31 = vld [vmem:[#allocation2 + $0xb0] sm:$0xff] }
 0x3d9   : > { %6094 = vmatprep.mubr.f32.mxu1 %v5687_v46  ;;  %v14508_v46 = vrot.slane %v14497_v34, 7  ;;  %v5702_v53 = vrot.slane %v14499_v40, 7 }
 0x3da   : > { %v3043_v1 = vsel %vm16704_vm5, %v3038_v0, %v3042_v59  ;;  %v3050_v0 = vrot.slane %v14461_v35, 1 }
 0x3db   : > { %3440 = vmatmul.mubr.f32.gmra.mrb[112].mxu0 %v3031_v36  ;;  %v14515_v36 = vld [vmem:[#allocation2 + $0x220] sm:$0xff] }
 0x3dc   : > { %10138 = vmatprep.mubr.msk.f32.mxu0 %vm13338_vm10, %v3037_v63  ;;  %6095 = vmatmul.mubr.f32.gmra.mrb[50].mxu1 %v5685_v48  ;;  %v5700_v55 = vrot.slane %v14515_v36, 7 }
 0x3dd   : > { %10236 = vmatprep.mubr.msk.f32.mxu1 %vm16703_vm6, %v5691_v39  ;;  %v5515_v39 = vld [vmem:[#allocation2 + $0x248] sm:$0x7f] }
 0x3df   : > { %10139 = vmatmul.mubr.msk.f32.gmra.mrb[114].mxu0 %vm13338_vm10, %v3035_v61  ;;  %vm16708_vm10 = vmmov %vm16702_vm14 }
 0x3e0   : > { %3449 = vmatprep.mubr.f32.mxu0 %v3041_v58  ;;  %10237 = vmatmul.mubr.msk.f32.gmra.mrb[52].mxu1 %vm16703_vm6, %v5689_v2  ;;  %v5699_v57 = vsel %vm16708_vm10, %v5694_v54, %v14495_v50  ;;  %vm16710_vm14 = vmmov %vm16704_vm5  ;;  %v14528_v48 = vsel %vm16708_vm10, %v14489_v37, %v14508_v46  ;;  %v14536_v54 = vld [vmem:[#allocation2 + $0x18] sm:$0xff]  ;;  %v5710_v58 = vrot.slane %v5515_v39, 7 }
 0x3e1   : > { %6104 = vmatprep.mubr.f32.mxu1 %v5695_v44  ;;  %v3049_v63 = vsel %vm16710_vm14, %v3044_v38, %v3048_v60  ;;  %vm16711_vm5 = vmmov %vm16708_vm10  ;;  %v5706_v47 = vrot.slane %v14536_v54, 7  ;;  %v3047_v61 = vsel %vm16710_vm14, %v3042_v59, %v3046_v49  ;;  %v5514_v38 = vld [vmem:[#allocation2 + $0x240] sm:$0x7f]  ;;  %v3056_v44 = vrot.slane %v14463_v45, 1 }
 0x3e2   : > { %v5703_v18 = vsel %vm16711_vm5, %v14495_v50, %v5702_v53  ;;  %vm16712_vm10 = vmmov %vm16710_vm14  ;;  %vm16716_vm14 = vnez %v16570_v17  ;;  %v5708_v59 = vrot.slane %v5514_v38, 7 }
 0x3e3   : > { %3450 = vmatmul.mubr.f32.gmra.mrb[116].mxu0 %v3039_v52  ;;  %v3053_v2 = vsel %vm16712_vm10, %v3048_v60, %v3052_v42  ;;  %vm16717_vm6 = vmmov %vm16712_vm10  ;;  %v3054_v60 = vrot.slane %v14475_v62, 1 }
 0x3e4   : > { %10140 = vmatprep.mubr.msk.f32.mxu0 %vm16707_vm15, %v3045_v41  ;;  %6105 = vmatmul.mubr.f32.gmra.mrb[54].mxu1 %v5693_v51  ;;  %v2800_v41 = vld [vmem:[#allocation2 + $0x218] sm:$0x1] }
 0x3e5   : > { %10238 = vmatprep.mubr.msk.f32.mxu1 %vm16709_vm12, %v5699_v57  ;;  %v3051_v57 = vsel %vm16717_vm6, %v3046_v49, %v3050_v0  ;;  %v3060_v39 = vrot.slane %v2800_v41, 1 }
 0x3e7   : > { %10141 = vmatmul.mubr.msk.f32.gmra.mrb[118].mxu0 %vm16707_vm15, %v3043_v1  ;;  %vm16713_vm15 = vmmov %vm16711_vm5  ;;  %vm16714_vm5 = vnez %v16611_v32  ;;  %v14629_v32 = vld [vmem:[#allocation2 + $0xa0] sm:$0xff] }
 0x3e8   : > { %3459 = vmatprep.mubr.f32.mxu0 %v3049_v63  ;;  %10239 = vmatmul.mubr.msk.f32.gmra.mrb[56].mxu1 %vm16709_vm12, %v14528_v48  ;;  %v5701_v52 = vsel %vm16713_vm15, %v14508_v46, %v5700_v55  ;;  %vm16715_vm12 = vmmov %vm16713_vm15 }
 0x3e9   : > { %6114 = vmatprep.mubr.f32.mxu1 %v5703_v18  ;;  %v5707_v51 = vsel %vm16715_vm12, %v5702_v53, %v5706_v47  ;;  %vm16718_vm10 = vmmov %vm16715_vm12  ;;  %v2799_v18 = vld [vmem:[#allocation2 + $0x210] sm:$0x1]  ;;  %v3545_v53 = vld [vmem:[#allocation2 + $0x28] sm:$0x80] }
 0x3ea   : > { %v5711_v1 = vsel %vm16718_vm10, %v5706_v47, %v5710_v58  ;;  %vm16719_vm15 = vmmov %vm16717_vm6  ;;  %v3058_v38 = vrot.slane %v2799_v18, 1  ;;  %v3679_v41 = vrot.slane %v3545_v53, 7  ;;  %v3548_v53 = vld [vmem:[#allocation2 + $0x40] sm:$0xff] }
 0x3eb   : > { %3460 = vmatmul.mubr.f32.gmra.mrb[120].mxu0 %v3047_v61  ;;  %v3057_v63 = vsel %vm16719_vm15, %v3052_v42, %v3056_v44  ;;  %vm16720_vm7 = vmmov %vm16718_vm10 }
 0x3ec   : > { %10142 = vmatprep.mubr.msk.f32.mxu0 %vm16714_vm5, %v3053_v2  ;;  %6115 = vmatmul.mubr.f32.gmra.mrb[58].mxu1 %v5701_v52  ;;  %v5705_v61 = vsel %vm16720_vm7, %v5700_v55, %v5706_v47  ;;  %v3547_v2 = vld [vmem:[#allocation2 + $0x38] sm:$0xff]  ;;  %vm16721_vm6 = vmmov %vm16720_vm7  ;;  %v3544_v55 = vld [vmem:[#allocation2 + $0x20] sm:$0x80]  ;;  %vm16724_vm7 = vnez %v16614_v33 }
 0x3ed   : > { %10240 = vmatprep.mubr.msk.f32.mxu1 %vm16716_vm14, %v5707_v51  ;;  %v5709_v49 = vsel %vm16721_vm6, %v5706_v47, %v5708_v59  ;;  %vm16722_vm12 = vmmov %vm16719_vm15  ;;  %v7035_v52 = vld [vmem:[#allocation12 + $0x800] sm:$0xff]  ;;  %v7036_v51 = vld [vmem:[#allocation12 + $0x808] sm:$0xff]  ;;  %v3676_v59 = vrot.slane %v3544_v55, 7 }
 0x3ee   : > { %v3055_v58 = vsel %vm16722_vm12, %v3050_v0, %v3054_v60  ;;  %vm16723_vm10 = vmmov %vm16722_vm12  ;;  %v11168_v47 = vpack.c.bf16 %v7036_v51, %v7035_v52  ;;  %v3682_v52 = vrot.slane %v3548_v53, 7  ;;  %v16728_v51 = vmov 0.0|0.0   ;;  %v7039_v55 = vld [vmem:[#allocation12 + $0x820] sm:$0xff]  ;;  %v7042_v53 = vld [vmem:[#allocation12 + $0x838] sm:$0xff] }
 0x3ef   : > { %10143 = vmatmul.mubr.msk.f32.gmra.mrb[122].mxu0 %vm16714_vm5, %v3051_v57  ;;  %v3061_v42 = vsel %vm16723_vm10, %v3056_v44, %v3060_v39  ;;  %v3680_v57 = vrot.slane %v3547_v2, 7  ;;  %vm16725_vm15 = vmmov %vm16723_vm10  ;;  %v3684_v39 = vrot.slane %v3549_v43, 7  ;;  %v6194_v2 = vld [vmem:[#allocation2 + $0x50] sm:$0xff] }
 0x3f0   : > { %3469 = vmatprep.mubr.f32.mxu0 %v3057_v63  ;;  %10241 = vmatmul.mubr.msk.f32.gmra.mrb[60].mxu1 %vm16716_vm14, %v5705_v61  ;;  %v3546_v63 = vld [vmem:[#allocation2 + $0x30] sm:$0xff]  ;;  %v3059_v0 = vsel %vm16725_vm15, %v3054_v60, %v3058_v38  ;;  %v7037_v61 = vld [vmem:[#allocation12 + $0x810] sm:$0xff]  ;;  %vm16727_vm12 = vmmov %vm16721_vm6 }
 0x3f1   : > { %6124 = vmatprep.mubr.f32.mxu1 %v5711_v1  ;;  %v6195_v1 = vld [vmem:[#allocation2 + $0x58] sm:$0xff]  ;;  %v3677_v18 = vrot.slane %v3546_v63, 7  ;;  %v3681_v44 = vsel %vm16721_vm6, %v3679_v41, %v3680_v57  ;;  %vm16729_vm10 = vmmov %vm16721_vm6 }
 0x3f2   : > { %v7040_v41 = vld [vmem:[#allocation12 + $0x828] sm:$0xff]  ;;  %v3685_v43 = vsel %vm16729_vm10, %v3680_v57, %v3684_v39  ;;  %v3688_v63 = vrot.slane %v6195_v1, 7  ;;  %vm16730_vm15 = vmmov %vm16721_vm6 }
 0x3f3   : > { %3470 = vmatmul.mubr.f32.gmra.mrb[124].mxu0 %v3055_v58  ;;  %v7038_v58 = vld [vmem:[#allocation12 + $0x818] sm:$0xff]  ;;  %v3678_v38 = vsel %vm16727_vm12, %v3676_v59, %v3677_v18  ;;  %v11174_v59 = vpack.c.bf16 %v7040_v41, %v7039_v55  ;;  %vm16731_vm12 = vmmov %vm16721_vm6  ;;  %v7044_v55 = vld [vmem:[#allocation12 + $0x848] sm:$0xff] }
 0x3f4   : > { %10144 = vmatprep.mubr.msk.f32.mxu0 %vm16724_vm7, %v3061_v42  ;;  %6125 = vmatmul.mubr.f32.gmra.mrb[62].mxu1 %v5709_v49  ;;  %v14570_v49 = vld [vmem:[#allocation2 + $0x68] sm:$0xff]  ;;  %v11171_v60 = vpack.c.bf16 %v7038_v58, %v7037_v61  ;;  %v3683_v61 = vsel %vm16730_vm15, %v3677_v18, %v3682_v52  ;;  %v3686_v58 = vrot.slane %v6194_v2, 7  ;;  %v3689_v57 = vsel %vm16721_vm6, %v3684_v39, %v3688_v63  ;;  %v14588_v42 = vld [vmem:[#allocation2 + $0x70] sm:$0xff]  ;;  %vm16732_vm10 = vmmov %vm16721_vm6 }
 0x3f5   : > { %6387 = vmatprep.mubr.f32.mxu1 %v6195_v1  ;;  %v3692_v1 = vrot.slane %v14570_v49, 7  ;;  %v7043_v39 = vld [vmem:[#allocation12 + $0x840] sm:$0xff]  ;;  %vm16733_vm15 = vmmov %vm16721_vm6 }
 0x3f7   : > { %10145 = vmatmul.mubr.msk.f32.gmra.mrb[126].mxu0 %vm16724_vm7, %v3059_v0  ;;  %v14578_v0 = vld [vmem:[#allocation2 + $0x60] sm:$0xff]  ;;  %v3693_v41 = vsel %vm16732_vm10, %v3688_v63, %v3692_v1  ;;  %vm16735_vm10 = vmmov %vm16721_vm6 }
 0x3f8   : > { %10146 = vmatprep.mubr.msk.f32.mxu0 %vm13226_vm0, %v3681_v44  ;;  %6388 = vmatmul.mubr.f32.vlgmr.msra.gmra.mrb[0].mxu1 %v6194_v2  ;;  %v7041_v44 = vld [vmem:[#allocation12 + $0x830] sm:$0xff]  ;;  %v3687_v2 = vsel %vm16731_vm12, %v3682_v52, %v3686_v58  ;;  %v11180_v52 = vpack.c.bf16 %v7044_v55, %v7043_v39  ;;  %vm16734_vm12 = vmmov %vm16721_vm6 }
 0x3f9   : > { %11169 = vmatpush1.bf16.msra.mxu1 %v11168_v47  ;;  %6392 = vmatprep.mubr.f32.mxu1 %v14570_v49  ;;  %v14581_v47 = vld [vmem:[#allocation2 + $0x78] sm:$0xff]  ;;  %v11177_v18 = vpack.c.bf16 %v7042_v53, %v7041_v44  ;;  %v3694_v53 = vrot.slane %v14588_v42, 7  ;;  %v7045_v63 = vld [vmem:[#allocation12 + $0x850] sm:$0xff] }
 0x3fa   : > { %11170 = vmatprep.subr.bf16.mxu1 %v16728_v51 }
 0x3fb   : > { %10147 = vmatmul.mubr.msk.f32.vlgmr.msra.gmra.mrb[64].mxu0 %vm13226_vm0, %v3678_v38  ;;  %v3690_v38 = vrot.slane %v14578_v0, 7 }
 0x3fc   : > { %4068 = vmatprep.mubr.f32.mxu0 %v3685_v43  ;;  %6393 = vmatmul.mubr.f32.gmra.mrb[2].mxu1 %v14578_v0  ;;  %v3696_v43 = vrot.slane %v14581_v47, 7 }
 0x3fd   : > { %6397 = vmatprep.mubr.f32.mxu1 %v14581_v47  ;;  %11172 = vmatpush1.bf16.msra.mxu1 %v11171_v60  ;;  %v14593_v60 = vld [vmem:[#allocation2 + $0x88] sm:$0xff]  ;;  %v3691_v44 = vsel %vm16733_vm15, %v3686_v58, %v3690_v38  ;;  %v3695_v39 = vsel %vm16734_vm12, %v3690_v38, %v3694_v53  ;;  %vm16736_vm15 = vmmov %vm16721_vm6 }
 0x3fe   : > { %11173 = vmatprep.subr.bf16.mxu1 %v16728_v51  ;;  %vm16737_vm12 = vmmov %vm16721_vm6 }
 0x3ff   : > { %4069 = vmatmul.mubr.f32.gmra.mrb[66].mxu0 %v3683_v61  ;;  %v14603_v61 = vld [vmem:[#allocation2 + $0x80] sm:$0xff] }
 0x400   : > { %10148 = vmatprep.mubr.msk.f32.mxu0 %vm13230_vm1, %v3689_v57  ;;  %6398 = vmatmul.mubr.f32.gmra.mrb[4].mxu1 %v14588_v42  ;;  %v7046_v57 = vld [vmem:[#allocation12 + $0x858] sm:$0xff]  ;;  %v3698_v55 = vrot.slane %v14603_v61, 7 }
 0x401   : > { %6402 = vmatprep.mubr.f32.mxu1 %v14593_v60  ;;  %11175 = vmatpush1.bf16.msra.mxu1 %v11174_v59  ;;  %v14606_v59 = vld [vmem:[#allocation2 + $0x98] sm:$0xff]  ;;  %v11183_v58 = vpack.c.bf16 %v7046_v57, %v7045_v63  ;;  %v3702_v57 = vrot.slane %v14614_v3, 7 }
 0x402   : > { %11176 = vmatprep.subr.bf16.mxu1 %v16728_v51  ;;  %v3704_v33 = vrot.slane %v14606_v59, 7  ;;  %v3699_v63 = vsel %vm16736_vm15, %v3694_v53, %v3698_v55  ;;  %vm16739_vm15 = vmmov %vm16721_vm6 }
 0x403   : > { %10149 = vmatmul.mubr.msk.f32.gmra.mrb[68].mxu0 %vm13230_vm1, %v3687_v2  ;;  %v3697_v2 = vsel %vm16721_vm6, %v3692_v1, %v3696_v43  ;;  %v7047_v1 = vld [vmem:[#allocation12 + $0x860] sm:$0xff] }
 0x404   : > { %4078 = vmatprep.mubr.f32.mxu0 %v3693_v41  ;;  %6403 = vmatmul.mubr.f32.gmra.mrb[6].mxu1 %v14603_v61  ;;  %v3700_v41 = vrot.slane %v14593_v60, 7 }
 0x405   : > { %6407 = vmatprep.mubr.f32.mxu1 %v14606_v59  ;;  %11178 = vmatpush1.bf16.msra.mxu1 %v11177_v18  ;;  %v14619_v18 = vld [vmem:[#allocation2 + $0xa8] sm:$0xff] }
 0x406   : > { %11179 = vmatprep.subr.bf16.mxu1 %v16728_v51  ;;  %v3705_v4 = vsel %vm16721_vm6, %v3700_v41, %v3704_v33 }
 0x407   : > { %4079 = vmatmul.mubr.f32.gmra.mrb[70].mxu0 %v3691_v44  ;;  %v7048_v44 = vld [vmem:[#allocation12 + $0x868] sm:$0xff] }
 0x408   : > { %10150 = vmatprep.mubr.msk.f32.mxu0 %vm13234_vm2, %v3697_v2  ;;  %6408 = vmatmul.mubr.f32.gmra.mrb[8].mxu1 %v14614_v3  ;;  %v3701_v2 = vsel %vm16735_vm10, %v3696_v43, %v3700_v41  ;;  %v11186_v38 = vpack.c.bf16 %v7048_v44, %v7047_v1  ;;  %v7049_v43 = vld [vmem:[#allocation12 + $0x870] sm:$0xff]  ;;  %v3703_v1 = vsel %vm16737_vm12, %v3698_v55, %v3702_v57  ;;  %v3706_v44 = vrot.slane %v14629_v32, 7  ;;  %v7051_v41 = vld [vmem:[#allocation12 + $0x880] sm:$0xff]  ;;  %vm16738_vm10 = vmmov %vm16721_vm6 }
 0x409   : > { %6412 = vmatprep.mubr.f32.mxu1 %v14619_v18  ;;  %11181 = vmatpush1.bf16.msra.mxu1 %v11180_v52  ;;  %v14632_v52 = vld [vmem:[#allocation2 + $0xb8] sm:$0xff]  ;;  %vm16740_vm12 = vmmov %vm16721_vm6 }
 0x40a   : > { %11182 = vmatprep.subr.bf16.mxu1 %v16728_v51  ;;  %v3712_v30 = vrot.slane %v14632_v52, 7 }
 0x40b   : > { %10151 = vmatmul.mubr.msk.f32.gmra.mrb[72].mxu0 %vm13234_vm2, %v3695_v39  ;;  %v7050_v39 = vld [vmem:[#allocation12 + $0x878] sm:$0xff] }
 0x40c   : > { %4088 = vmatprep.mubr.f32.mxu0 %v3701_v2  ;;  %6413 = vmatmul.mubr.f32.gmra.mrb[10].mxu1 %v14629_v32  ;;  %v3708_v2 = vrot.slane %v14619_v18, 7  ;;  %v11189_v53 = vpack.c.bf16 %v7050_v39, %v7049_v43  ;;  %v3707_v43 = vsel %vm16739_vm15, %v3702_v57, %v3706_v44  ;;  %v3710_v39 = vrot.slane %v14640_v31, 7  ;;  %vm16742_vm15 = vmmov %vm16721_vm6 }
 0x40d   : > { %6417 = vmatprep.mubr.f32.mxu1 %v14632_v52  ;;  %11184 = vmatpush1.bf16.msra.mxu1 %v11183_v58  ;;  %v14645_v58 = vld [vmem:[#allocation2 + $0xc8] sm:$0xff] }
 0x40e   : > { %11185 = vmatprep.subr.bf16.mxu1 %v16728_v51  ;;  %v3713_v5 = vsel %vm16721_vm6, %v3708_v2, %v3712_v30 }
 0x40f   : > { %4089 = vmatmul.mubr.f32.gmra.mrb[74].mxu0 %v3699_v63  ;;  %v7052_v63 = vld [vmem:[#allocation12 + $0x888] sm:$0xff] }
 0x410   : > { %10152 = vmatprep.mubr.msk.f32.mxu0 %vm13238_vm3, %v3705_v4  ;;  %6418 = vmatmul.mubr.f32.gmra.mrb[12].mxu1 %v14640_v31  ;;  %v3709_v4 = vsel %vm16738_vm10, %v3704_v33, %v3708_v2  ;;  %v11192_v55 = vpack.c.bf16 %v7052_v63, %v7051_v41  ;;  %v7053_v33 = vld [vmem:[#allocation12 + $0x890] sm:$0xff]  ;;  %v3711_v41 = vsel %vm16740_vm12, %v3706_v44, %v3710_v39  ;;  %v3714_v63 = vrot.slane %v14655_v29, 7  ;;  %v7055_v2 = vld [vmem:[#allocation12 + $0x8a0] sm:$0xff]  ;;  %vm16741_vm10 = vmmov %vm16721_vm6 }
 0x411   : > { %6422 = vmatprep.mubr.f32.mxu1 %v14645_v58  ;;  %11187 = vmatpush1.bf16.msra.mxu1 %v11186_v38  ;;  %v14658_v38 = vld [vmem:[#allocation2 + $0xd8] sm:$0xff]  ;;  %vm16745_vm12 = vmmov %vm16721_vm6 }
 0x412   : > { %11188 = vmatprep.subr.bf16.mxu1 %v16728_v51  ;;  %v3720_v27 = vrot.slane %v14658_v38, 7 }
 0x413   : > { %10153 = vmatmul.mubr.msk.f32.gmra.mrb[76].mxu0 %vm13238_vm3, %v3703_v1  ;;  %v7054_v1 = vld [vmem:[#allocation12 + $0x898] sm:$0xff] }
 0x414   : > { %4098 = vmatprep.mubr.f32.mxu0 %v3709_v4  ;;  %6423 = vmatmul.mubr.f32.gmra.mrb[14].mxu1 %v14655_v29  ;;  %v3716_v4 = vrot.slane %v14645_v58, 7  ;;  %v11195_v57 = vpack.c.bf16 %v7054_v1, %v7053_v33  ;;  %v3715_v33 = vsel %vm16742_vm15, %v3710_v39, %v3714_v63  ;;  %v3718_v1 = vrot.slane %v14666_v28, 7  ;;  %vm16748_vm15 = vmmov %vm16721_vm6 }
 0x415   : > { %6427 = vmatprep.mubr.f32.mxu1 %v14658_v38  ;;  %11190 = vmatpush1.bf16.msra.mxu1 %v11189_v53  ;;  %v14671_v53 = vld [vmem:[#allocation2 + $0xe8] sm:$0xff] }
 0x416   : > { %11191 = vmatprep.subr.bf16.mxu1 %v16728_v51  ;;  %v3721_v6 = vsel %vm16721_vm6, %v3716_v4, %v3720_v27 }
 0x417   : > { %4099 = vmatmul.mubr.f32.gmra.mrb[78].mxu0 %v3707_v43  ;;  %v7056_v43 = vld [vmem:[#allocation12 + $0x8a8] sm:$0xff] }
 0x418   : > { %10154 = vmatprep.mubr.msk.f32.mxu0 %vm13242_vm4, %v3713_v5  ;;  %6428 = vmatmul.mubr.f32.gmra.mrb[16].mxu1 %v14666_v28  ;;  %v3717_v5 = vsel %vm16741_vm10, %v3712_v30, %v3716_v4  ;;  %v11198_v44 = vpack.c.bf16 %v7056_v43, %v7055_v2  ;;  %v7057_v30 = vld [vmem:[#allocation12 + $0x8b0] sm:$0xff]  ;;  %v3719_v2 = vsel %vm16745_vm12, %v3714_v63, %v3718_v1  ;;  %v3722_v43 = vrot.slane %v14681_v26, 7  ;;  %v7059_v4 = vld [vmem:[#allocation12 + $0x8c0] sm:$0xff]  ;;  %vm16746_vm10 = vmmov %vm16721_vm6 }
 0x419   : > { %6432 = vmatprep.mubr.f32.mxu1 %v14671_v53  ;;  %11193 = vmatpush1.bf16.msra.mxu1 %v11192_v55  ;;  %v14684_v55 = vld [vmem:[#allocation2 + $0xf8] sm:$0xff]  ;;  %vm16751_vm12 = vmmov %vm16746_vm10 }
 0x41a   : > { %11194 = vmatprep.subr.bf16.mxu1 %v16728_v51  ;;  %v3728_v24 = vrot.slane %v14684_v55, 7 }
 0x41b   : > { %10155 = vmatmul.mubr.msk.f32.gmra.mrb[80].mxu0 %vm13242_vm4, %v3711_v41  ;;  %v7058_v41 = vld [vmem:[#allocation12 + $0x8b8] sm:$0xff] }
 0x41c   : > { %4108 = vmatprep.mubr.f32.mxu0 %v3717_v5  ;;  %6433 = vmatmul.mubr.f32.gmra.mrb[18].mxu1 %v14681_v26  ;;  %v3724_v5 = vrot.slane %v14671_v53, 7  ;;  %v11201_v39 = vpack.c.bf16 %v7058_v41, %v7057_v30  ;;  %v3723_v30 = vsel %vm16748_vm15, %v3718_v1, %v3722_v43  ;;  %v3726_v41 = vrot.slane %v14692_v25, 7  ;;  %vm16752_vm15 = vmmov %vm16746_vm10 }
 0x41d   : > { %6437 = vmatprep.mubr.f32.mxu1 %v14684_v55  ;;  %11196 = vmatpush1.bf16.msra.mxu1 %v11195_v57  ;;  %v14697_v57 = vld [vmem:[#allocation2 + $0x108] sm:$0xff] }
 0x41e   : > { %11197 = vmatprep.subr.bf16.mxu1 %v16728_v51  ;;  %16744 = vst [vmem:[#allocation57_spill] sm:$0xff] %v14697_v57 }
 0x41f   : > { %4109 = vmatmul.mubr.f32.gmra.mrb[82].mxu0 %v3715_v33  ;;  %v7060_v33 = vld [vmem:[#allocation12 + $0x8c8] sm:$0xff] }
 0x420   : > { %10156 = vmatprep.mubr.msk.f32.mxu0 %vm16649_vm13, %v3721_v6  ;;  %6438 = vmatmul.mubr.f32.gmra.mrb[20].mxu1 %v14692_v25  ;;  %v3725_v6 = vsel %vm16746_vm10, %v3720_v27, %v3724_v5  ;;  %v11204_v63 = vpack.c.bf16 %v7060_v33, %v7059_v4  ;;  %v7061_v27 = vld [vmem:[#allocation12 + $0x8d0] sm:$0xff]  ;;  %v3727_v4 = vsel %vm16751_vm12, %v3722_v43, %v3726_v41  ;;  %v3730_v33 = vrot.slane %v14707_v23, 7  ;;  %vm16755_vm12 = vmmov %vm16746_vm10 }
 0x421   : > { %6442 = vmatprep.mubr.f32.mxu1 %v14697_v57  ;;  %11199 = vmatpush1.bf16.msra.mxu1 %v11198_v44  ;;  %v14710_v44 = vld [vmem:[#allocation2 + $0x118] sm:$0xff]  ;;  %v14733_v25 = vld [vmem:[#allocation2 + $0x120] sm:$0xff] }
 0x422   : > { %11200 = vmatprep.subr.bf16.mxu1 %v16728_v51  ;;  %16747 = vst [vmem:[#allocation58_spill] sm:$0xff] %v14710_v44 }
 0x423   : > { %10157 = vmatmul.mubr.msk.f32.gmra.mrb[84].mxu0 %vm16649_vm13, %v3719_v2  ;;  %v7062_v2 = vld [vmem:[#allocation12 + $0x8d8] sm:$0xff]  ;;  %vm16749_vm13 = vmmov %vm16721_vm6  ;;  %vm16750_vm6 = vnez %v16545_v8 }
 0x424   : > { %4118 = vmatprep.mubr.f32.mxu0 %v3725_v6  ;;  %6443 = vmatmul.mubr.f32.gmra.mrb[22].mxu1 %v14707_v23  ;;  %v3729_v7 = vsel %vm16749_vm13, %v3724_v5, %v3728_v24  ;;  %v3732_v6 = vrot.slane %v14697_v57, 7  ;;  %v11207_v1 = vpack.c.bf16 %v7062_v2, %v7061_v27  ;;  %v7063_v5 = vld [vmem:[#allocation12 + $0x8e0] sm:$0xff]  ;;  %v3736_v57 = vrot.slane %v14710_v44, 7  ;;  %vm16753_vm13 = vmmov %vm16746_vm10 }
 0x425   : > { %6447 = vmatprep.mubr.f32.mxu1 %v14710_v44  ;;  %11202 = vmatpush1.bf16.msra.mxu1 %v11201_v39  ;;  %v14723_v39 = vld [vmem:[#allocation2 + $0x128] sm:$0xff]  ;;  %v3731_v27 = vsel %vm16752_vm15, %v3726_v41, %v3730_v33  ;;  %v3734_v2 = vrot.slane %v14718_v22, 7  ;;  %v14744_v44 = vld [vmem:[#allocation2 + $0x130] sm:$0xff]  ;;  %vm16756_vm15 = vmmov %vm16746_vm10 }
 0x426   : > { %11203 = vmatprep.subr.bf16.mxu1 %v16728_v51  ;;  %v3737_v8 = vsel %vm16753_vm13, %v3732_v6, %v3736_v57  ;;  %vm16757_vm13 = vmmov %vm16746_vm10 }
 0x427   : > { %4119 = vmatmul.mubr.f32.gmra.mrb[86].mxu0 %v3723_v30  ;;  %v7064_v30 = vld [vmem:[#allocation12 + $0x8e8] sm:$0xff] }
 0x428   : > { %10158 = vmatprep.mubr.msk.f32.mxu0 %vm16750_vm6, %v3729_v7  ;;  %6448 = vmatmul.mubr.f32.gmra.mrb[24].mxu1 %v14718_v22  ;;  %v3733_v7 = vsel %vm16746_vm10, %v3728_v24, %v3732_v6  ;;  %v11210_v43 = vpack.c.bf16 %v7064_v30, %v7063_v5  ;;  %v7065_v24 = vld [vmem:[#allocation12 + $0x8f0] sm:$0xff]  ;;  %v3735_v5 = vsel %vm16755_vm12, %v3730_v33, %v3734_v2  ;;  %v3738_v30 = vrot.slane %v14733_v25, 7  ;;  %vm16761_vm12 = vmmov %vm16746_vm10 }
 0x429   : > { %6452 = vmatprep.mubr.f32.mxu1 %v14723_v39  ;;  %11205 = vmatpush1.bf16.msra.mxu1 %v11204_v63  ;;  %v14736_v63 = vld [vmem:[#allocation2 + $0x138] sm:$0xff] }
 0x42a   : > { %11206 = vmatprep.subr.bf16.mxu1 %v16728_v51  ;;  %v3739_v33 = vsel %vm16756_vm15, %v3734_v2, %v3738_v30  ;;  %vm16763_vm15 = vmmov %vm16746_vm10 }
 0x42b   : > { %10159 = vmatmul.mubr.msk.f32.gmra.mrb[88].mxu0 %vm16750_vm6, %v3727_v4  ;;  %v7066_v4 = vld [vmem:[#allocation12 + $0x8f8] sm:$0xff]  ;;  %vm16754_vm6 = vnez %v16548_v9 }
 0x42c   : > { %4128 = vmatprep.mubr.f32.mxu0 %v3733_v7  ;;  %6453 = vmatmul.mubr.f32.gmra.mrb[26].mxu1 %v14733_v25  ;;  %v3740_v7 = vrot.slane %v14723_v39, 7  ;;  %v11213_v41 = vpack.c.bf16 %v7066_v4, %v7065_v24  ;;  %v14769_v4 = vld [vmem:[#allocation2 + $0x150] sm:$0xff] }
 0x42d   : > { %6457 = vmatprep.mubr.f32.mxu1 %v14736_v63  ;;  %11208 = vmatpush1.bf16.msra.mxu1 %v11207_v1  ;;  %v14749_v1 = vld [vmem:[#allocation2 + $0x148] sm:$0xff]  ;;  %16758 = vst [vmem:[#allocation59_spill] sm:$0xff] %v14769_v4  ;;  %v3750_v9 = vrot.slane %v14769_v4, 7 }
 0x42e   : > { %11209 = vmatprep.subr.bf16.mxu1 %v16728_v51  ;;  %v3741_v6 = vsel %vm16746_vm10, %v3736_v57, %v3740_v7  ;;  %v3748_v57 = vrot.slane %v14749_v1, 7 }
 0x42f   : > { %4129 = vmatmul.mubr.f32.gmra.mrb[90].mxu0 %v3731_v27  ;;  %v14759_v27 = vld [vmem:[#allocation2 + $0x140] sm:$0xff] }
 0x430   : > { %10160 = vmatprep.mubr.msk.f32.mxu0 %vm16754_vm6, %v3737_v8  ;;  %6458 = vmatmul.mubr.f32.gmra.mrb[28].mxu1 %v14744_v44  ;;  %v3744_v8 = vrot.slane %v14736_v63, 7 }
 0x431   : > { %6462 = vmatprep.mubr.f32.mxu1 %v14749_v1  ;;  %11211 = vmatpush1.bf16.msra.mxu1 %v11210_v43  ;;  %v14762_v43 = vld [vmem:[#allocation2 + $0x158] sm:$0xff] }
 0x432   : > { %11212 = vmatprep.subr.bf16.mxu1 %v16728_v51  ;;  %v3742_v51 = vrot.slane %v14744_v44, 7  ;;  %v3745_v24 = vsel %vm16757_vm13, %v3740_v7, %v3744_v8  ;;  %v3749_v7 = vsel %vm16746_vm10, %v3744_v8, %v3748_v57  ;;  %vm16764_vm13 = vmmov %vm16746_vm10 }
 0x433   : > { %10161 = vmatmul.mubr.msk.f32.gmra.mrb[92].mxu0 %vm16754_vm6, %v3735_v5  ;;  %vm16759_vm6 = vnez %v16551_v10  ;;  %v14774_v5 = vld [vmem:[#allocation2 + $0x168] sm:$0xff]  ;;  %v14793_v10 = vld [vmem:[#allocation2 + $0x170] sm:$0xff] }
 0x434   : > { %4138 = vmatprep.mubr.f32.mxu0 %v3741_v6  ;;  %6463 = vmatmul.mubr.f32.gmra.mrb[30].mxu1 %v14759_v27  ;;  %16760 = vst [vmem:[#allocation60_spill] sm:$0xff] %v14774_v5  ;;  %v3743_v2 = vsel %vm16761_vm12, %v3738_v30, %v3742_v51  ;;  %v3752_v6 = vrot.slane %v14762_v43, 7  ;;  %v3756_v8 = vrot.slane %v14774_v5, 7  ;;  %16765 = vst [vmem:[#allocation62_spill] sm:$0xff] %v14793_v10 }
 0x435   : > { %6467 = vmatprep.mubr.f32.mxu1 %v14762_v43  ;;  %11214 = vmatpush1.bf16.msra.mxu1 %v11213_v41  ;;  %v3746_v41 = vrot.slane %v14759_v27, 7 }
 0x437   : > { %4139 = vmatmul.mubr.f32.gmra.mrb[94].mxu0 %v3739_v33  ;;  %v14783_v33 = vld [vmem:[#allocation2 + $0x160] sm:$0xff]  ;;  %v3747_v30 = vsel %vm16763_vm15, %v3742_v51, %v3746_v41 }
 0x438   : > { %10162 = vmatprep.mubr.msk.f32.mxu0 %vm16759_vm6, %v3745_v24  ;;  %6468 = vmatmul.mubr.f32.gmra.mrb[32].mxu1 %v14769_v4  ;;  %16762 = vst [vmem:[#allocation61_spill] sm:$0xff] %v14783_v33  ;;  %v14786_v24 = vld [vmem:[#allocation2 + $0x178] sm:$0xff]  ;;  %v3754_v4 = vrot.slane %v14783_v33, 7 }
 0x439   : > { %6472 = vmatprep.mubr.f32.mxu1 %v14774_v5  ;;  %v14807_v5 = vld [vmem:[#allocation2 + $0x180] sm:$0xff] }
 0x43a   : > { %16769 = vst [vmem:[#allocation64_spill] sm:$0xff] %v14807_v5 }
 0x43b   : > { %10163 = vmatmul.mubr.msk.f32.gmra.mrb[96].mxu0 %vm16759_vm6, %v3743_v2  ;;  %v3753_v2 = vsel %vm16764_vm13, %v3748_v57, %v3752_v6  ;;  %vm16767_vm6 = vmmov %vm16746_vm10 }
 0x43c   : > { %4148 = vmatprep.mubr.f32.mxu0 %v3749_v7  ;;  %6473 = vmatmul.mubr.f32.gmra.mrb[34].mxu1 %v14783_v33  ;;  %v14798_v7 = vld [vmem:[#allocation2 + $0x188] sm:$0xff]  ;;  %v3751_v51 = vsel %vm16767_vm6, %v3746_v41, %v3750_v9  ;;  %vm16768_vm12 = vmmov %vm16767_vm6  ;;  %v3758_v33 = vrot.slane %v14793_v10, 7 }
 0x43d   : > { %6477 = vmatprep.mubr.f32.mxu1 %v14786_v24  ;;  %16766 = vst [vmem:[#allocation63_spill] sm:$0xff] %v14798_v7  ;;  %v3757_v57 = vsel %vm16768_vm12, %v3752_v6, %v3756_v8  ;;  %vm16770_vm10 = vmmov %vm16767_vm6  ;;  %v3764_v6 = vrot.slane %v14798_v7, 7 }
 0x43e   : > { %v3755_v41 = vsel %vm16770_vm10, %v3750_v9, %v3754_v4  ;;  %vm16771_vm15 = vmmov %vm16767_vm6 }
 0x43f   : > { %4149 = vmatmul.mubr.f32.gmra.mrb[98].mxu0 %v3747_v30  ;;  %v3760_v30 = vrot.slane %v14786_v24, 7  ;;  %vm16775_vm13 = vmmov %vm16767_vm6 }
 0x440   : > { %10164 = vmatprep.mubr.msk.f32.mxu0 %vm16683_vm9, %v3753_v2  ;;  %6478 = vmatmul.mubr.f32.gmra.mrb[36].mxu1 %v14793_v10  ;;  %v14810_v2 = vld [vmem:[#allocation2 + $0x198] sm:$0xff]  ;;  %v3762_v10 = vrot.slane %v14807_v5, 7  ;;  %vm16777_vm12 = vmmov %vm16767_vm6 }
 0x441   : > { %6482 = vmatprep.mubr.f32.mxu1 %v14798_v7  ;;  %v14831_v7 = vld [vmem:[#allocation2 + $0x1a0] sm:$0xff]  ;;  %vm16781_vm10 = vmmov %vm16767_vm6 }
 0x442   : > { %16776 = vst [vmem:[#allocation67_spill] sm:$0xff] %v14831_v7 }
 0x443   : > { %10165 = vmatmul.mubr.msk.f32.gmra.mrb[100].mxu0 %vm16683_vm9, %v3751_v51  ;;  %v3761_v51 = vsel %vm16771_vm15, %v3756_v8, %v3760_v30  ;;  %vm16774_vm9 = vmmov %vm16767_vm6  ;;  %v3765_v8 = vsel %vm16775_vm13, %v3760_v30, %v3764_v6 }
 0x444   : > { %4158 = vmatprep.mubr.f32.mxu0 %v3757_v57  ;;  %6483 = vmatmul.mubr.f32.gmra.mrb[38].mxu1 %v14807_v5  ;;  %v14822_v57 = vld [vmem:[#allocation2 + $0x1a8] sm:$0xff]  ;;  %v3759_v9 = vsel %vm16774_vm9, %v3754_v4, %v3758_v33  ;;  %v3763_v4 = vsel %vm16767_vm6, %v3758_v33, %v3762_v10  ;;  %v3766_v5 = vrot.slane %v14817_v11, 7  ;;  %vm16783_vm15 = vmmov %vm16767_vm6 }
 0x445   : > { %6487 = vmatprep.mubr.f32.mxu1 %v14810_v2  ;;  %16773 = vst [vmem:[#allocation66_spill] sm:$0xff] %v14822_v57  ;;  %v3772_v30 = vrot.slane %v14822_v57, 7  ;;  %vm16784_vm9 = vmmov %vm16767_vm6 }
 0x446   : > { %vm16787_vm13 = vmmov %vm16767_vm6 }
 0x447   : > { %4159 = vmatmul.mubr.f32.gmra.mrb[102].mxu0 %v3755_v41  ;;  %v3768_v41 = vrot.slane %v14810_v2, 7 }
 0x448   : > { %10166 = vmatprep.mubr.msk.f32.mxu0 %vm16688_vm11, %v3761_v51  ;;  %6488 = vmatmul.mubr.f32.gmra.mrb[40].mxu1 %v14817_v11  ;;  %v14834_v51 = vld [vmem:[#allocation2 + $0x1b8] sm:$0xff]  ;;  %v3770_v11 = vrot.slane %v14831_v7, 7 }
 0x449   : > { %6492 = vmatprep.mubr.f32.mxu1 %v14822_v57  ;;  %v14855_v57 = vld [vmem:[#allocation2 + $0x1c0] sm:$0xff] }
 0x44a   : > { %16782 = vst [vmem:[#allocation70_spill] sm:$0xff] %v14855_v57 }
 0x44b   : > { %10167 = vmatmul.mubr.msk.f32.gmra.mrb[104].mxu0 %vm16688_vm11, %v3759_v9  ;;  %v3769_v9 = vsel %vm16777_vm12, %v3764_v6, %v3768_v41  ;;  %vm16780_vm11 = vmmov %vm16767_vm6  ;;  %v3773_v6 = vsel %vm16781_vm10, %v3768_v41, %v3772_v30  ;;  %vm16790_vm10 = vnez %v16566_v15 }
 0x44c   : > { %4168 = vmatprep.mubr.f32.mxu0 %v3765_v8  ;;  %6493 = vmatmul.mubr.f32.gmra.mrb[42].mxu1 %v14831_v7  ;;  %v14846_v8 = vld [vmem:[#allocation2 + $0x1c8] sm:$0xff]  ;;  %v3767_v33 = vsel %vm16780_vm11, %v3762_v10, %v3766_v5  ;;  %v3771_v10 = vsel %vm16783_vm15, %v3766_v5, %v3770_v11  ;;  %v3774_v7 = vrot.slane %v14841_v12, 7  ;;  %vm16788_vm12 = vmmov %vm16767_vm6 }
 0x44d   : > { %6497 = vmatprep.mubr.f32.mxu1 %v14834_v51  ;;  %16779 = vst [vmem:[#allocation69_spill] sm:$0xff] %v14846_v8  ;;  %v3780_v41 = vrot.slane %v14846_v8, 7  ;;  %vm16789_vm11 = vmmov %vm16767_vm6 }
 0x44e   : > { %v3775_v5 = vsel %vm16787_vm13, %v3770_v11, %v3774_v7  ;;  %vm16791_vm15 = vmmov %vm16767_vm6 }
 0x44f   : > { %4169 = vmatmul.mubr.f32.gmra.mrb[106].mxu0 %v3763_v4  ;;  %v3776_v4 = vrot.slane %v14834_v51, 7  ;;  %vm16794_vm13 = vmmov %vm16767_vm6 }
 0x450   : > { %10168 = vmatprep.mubr.msk.f32.mxu0 %vm16693_vm8, %v3769_v9  ;;  %6498 = vmatmul.mubr.f32.gmra.mrb[44].mxu1 %v14841_v12  ;;  %v14858_v9 = vld [vmem:[#allocation2 + $0x1d8] sm:$0xff]  ;;  %v3778_v12 = vrot.slane %v14855_v57, 7 }
 0x451   : > { %6502 = vmatprep.mubr.f32.mxu1 %v14846_v8  ;;  %v14879_v8 = vld [vmem:[#allocation2 + $0x1e0] sm:$0xff] }
 0x452   : > { %v3779_v11 = vsel %vm16788_vm12, %v3774_v7, %v3778_v12 }
 0x453   : > { %10169 = vmatmul.mubr.msk.f32.gmra.mrb[108].mxu0 %vm16693_vm8, %v3767_v33  ;;  %v3777_v33 = vsel %vm16784_vm9, %v3772_v30, %v3776_v4  ;;  %vm16785_vm8 = vnez %v16563_v14  ;;  %v3781_v30 = vsel %vm16767_vm6, %v3776_v4, %v3780_v41  ;;  %v3786_v14 = vrot.slane %v14879_v8, 7  ;;  %vm16792_vm9 = vmmov %vm16767_vm6 }
 0x454   : > { %4178 = vmatprep.mubr.f32.mxu0 %v3773_v6  ;;  %6503 = vmatmul.mubr.f32.gmra.mrb[46].mxu1 %v14855_v57  ;;  %v14870_v6 = vld [vmem:[#allocation2 + $0x1e8] sm:$0xff]  ;;  %v3782_v57 = vrot.slane %v14865_v13, 7 }
 0x455   : > { %6507 = vmatprep.mubr.f32.mxu1 %v14858_v9  ;;  %16786 = vst [vmem:[#allocation71_spill] sm:$0xff] %v14870_v6  ;;  %v3788_v4 = vrot.slane %v14870_v6, 7 }
 0x457   : > { %4179 = vmatmul.mubr.f32.gmra.mrb[110].mxu0 %v3771_v10  ;;  %v3784_v10 = vrot.slane %v14858_v9, 7 }
 0x458   : > { %10170 = vmatprep.mubr.msk.f32.mxu0 %vm16785_vm8, %v3777_v33  ;;  %6508 = vmatmul.mubr.f32.gmra.mrb[48].mxu1 %v14865_v13  ;;  %v14882_v33 = vld [vmem:[#allocation2 + $0x1f8] sm:$0xff] }
 0x459   : > { %6512 = vmatprep.mubr.f32.mxu1 %v14870_v6  ;;  %v3789_v7 = vsel %vm16792_vm9, %v3784_v10, %v3788_v4  ;;  %v14901_v6 = vld [vmem:[#allocation2 + $0x208] sm:$0xff] }
 0x45b   : > { %10171 = vmatmul.mubr.msk.f32.gmra.mrb[112].mxu0 %vm16785_vm8, %v3775_v5  ;;  %v3785_v5 = vsel %vm16789_vm11, %v3780_v41, %v3784_v10  ;;  %v3792_v41 = vrot.slane %v14882_v33, 7  ;;  %vm16793_vm8 = vmmov %vm16767_vm6  ;;  %v3796_v10 = vrot.slane %v14901_v6, 7  ;;  %vm16795_vm6 = vnez %v16568_v16 }
 0x45c   : > { %4188 = vmatprep.mubr.f32.mxu0 %v3781_v30  ;;  %6513 = vmatmul.mubr.f32.gmra.mrb[50].mxu1 %v14879_v8  ;;  %v3783_v30 = vsel %vm16791_vm15, %v3778_v12, %v3782_v57  ;;  %v3787_v12 = vsel %vm16793_vm8, %v3782_v57, %v3786_v14  ;;  %vm16796_vm12 = vmmov %vm16793_vm8  ;;  %v3609_v57 = vld [vmem:[#allocation2 + $0x228] sm:$0x7f] }
 0x45d   : > { %6517 = vmatprep.mubr.f32.mxu1 %v14882_v33  ;;  %vm16797_vm11 = vmmov %vm16793_vm8 }
 0x45e   : > { %vm16799_vm15 = vmmov %vm16793_vm8 }
 0x45f   : > { %4189 = vmatmul.mubr.f32.gmra.mrb[114].mxu0 %v3779_v11  ;;  %v14899_v11 = vld [vmem:[#allocation2 + $0x1f0] sm:$0xff]  ;;  %vm16800_vm9 = vmmov %vm16793_vm8 }
 0x460   : > { %10172 = vmatprep.mubr.msk.f32.mxu0 %vm16790_vm10, %v3785_v5  ;;  %6518 = vmatmul.mubr.f32.gmra.mrb[52].mxu1 %v14461_v35  ;;  %v3790_v35 = vrot.slane %v14899_v11, 7 }
 0x461   : > { %6522 = vmatprep.mubr.f32.mxu1 %v14463_v45  ;;  %v3793_v45 = vsel %vm16794_vm13, %v3788_v4, %v3792_v41  ;;  %v6613_v4 = vld [vmem:[#allocation2 + $0x58] sm:$0xfe]  ;;  %vm16802_vm13 = vmmov %vm16800_vm9 }
 0x463   : > { %10173 = vmatmul.mubr.msk.f32.gmra.mrb[116].mxu0 %vm16790_vm10, %v3783_v30  ;;  %vm16798_vm10 = vmmov %vm16793_vm8  ;;  %v6748_v30 = vrot.slane %v14570_v49, 1  ;;  %vm16801_vm8 = vcmask 1046528   ;;  %v6752_v49 = vrot.slane %v14581_v47, 1 }
 0x464   : > { %4198 = vmatprep.mubr.f32.mxu0 %v3789_v7  ;;  %6523 = vmatmul.mubr.f32.gmra.mrb[54].mxu1 %v14475_v62  ;;  %v3791_v62 = vsel %vm16796_vm12, %v3786_v14, %v3790_v35  ;;  %v3795_v5 = vsel %vm16798_vm10, %v3790_v35, %v14489_v37  ;;  %v3608_v14 = vld [vmem:[#allocation2 + $0x220] sm:$0x7f]  ;;  %v6747_v7 = vrot.slane %v6613_v4, 1  ;;  %v6766_v4 = vrot.slane %v14640_v31, 1 }
 0x465   : > { %6527 = vmatprep.mubr.f32.mxu1 %v14479_v56  ;;  %v3797_v56 = vsel %vm16797_vm11, %v3792_v41, %v3796_v10  ;;  %v6612_v41 = vld [vmem:[#allocation2 + $0x50] sm:$0xfe] }
 0x466   : > { %v6749_v35 = vsel %vm16801_vm8, %v6747_v7, %v6748_v30  ;;  %v6776_v7 = vrot.slane %v14658_v38, 1 }
 0x467   : > { %4199 = vmatmul.mubr.f32.gmra.mrb[118].mxu0 %v3787_v12  ;;  %v6745_v12 = vrot.slane %v14578_v0, 1  ;;  %v6756_v0 = vrot.slane %v14593_v60, 1 }
 0x468   : > { %10174 = vmatprep.mubr.msk.f32.mxu0 %vm16795_vm6, %v3793_v45  ;;  %6528 = vmatmul.mubr.f32.gmra.mrb[56].mxu1 %v14497_v34  ;;  %v3801_v34 = vsel %vm16799_vm15, %v3796_v10, %v14495_v50  ;;  %v6744_v45 = vrot.slane %v6612_v41, 1  ;;  %v6774_v41 = vrot.slane %v14666_v28, 1 }
 0x469   : > { %6532 = vmatprep.mubr.f32.mxu1 %v14499_v40  ;;  %v3804_v40 = vrot.slane %v3609_v57, 7  ;;  %v6760_v57 = vrot.slane %v14606_v59, 1 }
 0x46b   : > { %10175 = vmatmul.mubr.msk.f32.gmra.mrb[120].mxu0 %vm16795_vm6, %v3791_v62  ;;  %v3805_v37 = vsel %vm16800_vm9, %v14495_v50, %v3804_v40  ;;  %vm16803_vm6 = vmmov %vm16801_vm8  ;;  %v6750_v62 = vrot.slane %v14588_v42, 1  ;;  %vm16811_vm8 = vnez %v16575_v19  ;;  %v6762_v40 = vrot.slane %v14629_v32, 1 }
 0x46c   : > { %4208 = vmatprep.mubr.f32.mxu0 %v3797_v56  ;;  %6533 = vmatmul.mubr.f32.gmra.mrb[58].mxu1 %v14515_v36  ;;  %v3802_v36 = vrot.slane %v3608_v14, 7  ;;  %vm16807_vm11 = vmmov %vm16803_vm6  ;;  %v6754_v56 = vrot.slane %v14603_v61, 1  ;;  %v6768_v14 = vrot.slane %v14632_v52, 1 }
 0x46d   : > { %6537 = vmatprep.mubr.f32.mxu1 %v14536_v54  ;;  %v6751_v47 = vsel %vm16807_vm11, %v6745_v12, %v6750_v62  ;;  %vm16808_vm10 = vmmov %vm16803_vm6  ;;  %vm16815_vm11 = vnez %v16577_v20 }
 0x46e   : > { %v3803_v10 = vsel %vm16802_vm13, %v14508_v46, %v3802_v36  ;;  %v6757_v46 = vsel %vm16808_vm10, %v6752_v49, %v6756_v0  ;;  %vm16809_vm15 = vmmov %vm16803_vm6  ;;  %v6770_v36 = vrot.slane %v14655_v29, 1 }
 0x46f   : > { %4209 = vmatmul.mubr.f32.gmra.mrb[122].mxu0 %v3795_v5  ;;  %v6755_v42 = vsel %vm16809_vm15, %v6750_v62, %v6754_v56  ;;  %v6758_v5 = vrot.slane %v14614_v3, 1  ;;  %vm16810_vm9 = vmmov %vm16803_vm6  ;;  %v16826_v62 = vld [vmem:[#allocation44_spill] sm:$0xff] }
 0x470   : > { %10176 = vmatprep.mubr.msk.f32.mxu0 %vm16716_vm14, %v3801_v34  ;;  %6538 = vmatmul.mubr.f32.gmra.mrb[60].mxu1 %v14536_v54  ;;  %v6761_v60 = vsel %vm16810_vm9, %v6756_v0, %v6760_v57  ;;  %v6764_v34 = vrot.slane %v14619_v18, 1  ;;  %vm16812_vm13 = vmmov %vm16803_vm6  ;;  %v6775_v29 = vsel %vm16803_vm6, %v6770_v36, %v6774_v41  ;;  %v16830_v0 = vld [vmem:[#allocation58_spill] sm:$0xff] }
 0x471   : > { %6542 = vmatprep.mubr.f32.mxu1 %v14536_v54  ;;  %v6759_v61 = vsel %vm16812_vm13, %v6754_v56, %v6758_v5  ;;  %vm16816_vm10 = vmmov %vm16803_vm6  ;;  %vm16820_vm13 = vnez %v16579_v21  ;;  %v6790_v56 = vrot.slane %v14718_v22, 1 }
 0x472   : > { %v6765_v59 = vsel %vm16803_vm6, %v6760_v57, %v6764_v34  ;;  %v6767_v32 = vsel %vm16816_vm10, %v6762_v40, %v6766_v4  ;;  %vm16817_vm15 = vmmov %vm16803_vm6  ;;  %vm16827_vm10 = vnez %v16826_v62  ;;  %v6796_v57 = vrot.slane %v14723_v39, 1 }
 0x473   : > { %10177 = vmatmul.mubr.msk.f32.gmra.mrb[124].mxu0 %vm16716_vm14, %v14528_v48  ;;  %v6746_v48 = vsel %vm16803_vm6, %v6744_v45, %v6745_v12  ;;  %vm16804_vm14 = vmmov %vm16803_vm6  ;;  %v6778_v12 = vrot.slane %v14681_v26, 1 }
 0x474   : > { %4218 = vmatprep.mubr.f32.mxu0 %v3805_v37  ;;  %6543 = vmatmul.mubr.f32.gmra.mrb[62].mxu1 %v14536_v54  ;;  %v6753_v50 = vsel %vm16804_vm14, %v6748_v30, %v6752_v49  ;;  %v16805_v54 = vld [vmem:[#allocation43_spill] sm:$0xff]  ;;  %vm16813_vm14 = vmmov %vm16803_vm6  ;;  %v6772_v30 = vrot.slane %v14645_v58, 1  ;;  %v6780_v37 = vrot.slane %v14671_v53, 1  ;;  %v16823_v49 = vld [vmem:[#allocation56_spill] sm:$0xff] }
 0x475   : > { %7131 = vmatprep.mubr.f32.mxu1 %v6749_v35  ;;  %vm16806_vm12 = vnez %v16805_v54  ;;  %v6763_v3 = vsel %vm16813_vm14, %v6758_v5, %v6762_v40  ;;  %vm16818_vm9 = vmmov %vm16803_vm6  ;;  %v6784_v35 = vrot.slane %v14684_v55, 1  ;;  %v6782_v45 = vrot.slane %v16823_v49, 1  ;;  %v16858_v49 = vld [vmem:[#allocation64_spill] sm:$0xff] }
 0x476   : > { %v6773_v52 = vsel %vm16817_vm15, %v6768_v14, %v6772_v30  ;;  %v6771_v31 = vsel %vm16818_vm9, %v6766_v4, %v6770_v36  ;;  %vm16821_vm14 = vmmov %vm16803_vm6  ;;  %v6792_v54 = vrot.slane %v16830_v0, 1  ;;  %v6794_v5 = vrot.slane %v14733_v25, 1  ;;  %v16843_v4 = vld [vmem:[#allocation59_spill] sm:$0xff]  ;;  %v16863_v0 = vld [vmem:[#allocation49_spill] sm:$0xff] }
 0x477   : > { %4219 = vmatmul.mubr.f32.gmra.mrb[126].mxu0 %v3803_v10  ;;  %v6781_v38 = vsel %vm16821_vm14, %v6776_v7, %v6780_v37  ;;  %v16825_v10 = vld [vmem:[#allocation57_spill] sm:$0xff]  ;;  %vm16828_vm15 = vmmov %vm16803_vm6  ;;  %v6804_v40 = vrot.slane %v14749_v1, 1  ;;  %v16846_v36 = vld [vmem:[#allocation47_spill] sm:$0xff] }
 0x478   : > { %7132 = vmatmul.mubr.f32.vlgmr.msra.gmra.mrb[0].mxu1 %v6746_v48  ;;  %v6788_v48 = vrot.slane %v16825_v10, 1  ;;  %v6783_v26 = vsel %vm16828_vm15, %v6778_v12, %v6782_v45  ;;  %vm16829_vm9 = vmmov %vm16803_vm6 }
 0x479   : > { %10242 = vmatprep.mubr.msk.f32.mxu1 %vm16806_vm12, %v6753_v50  ;;  %v6786_v50 = vrot.slane %v14707_v23, 1 }
 0x47a   : > { %v6789_v55 = vsel %vm16829_vm9, %v6784_v35, %v6788_v48 }
 0x47c   : > { %10243 = vmatmul.mubr.msk.f32.gmra.mrb[2].mxu1 %vm16806_vm12, %v6751_v47  ;;  %vm16814_vm12 = vmmov %vm16803_vm6 }
 0x47d   : > { %7141 = vmatprep.mubr.f32.mxu1 %v6757_v46  ;;  %v6769_v18 = vsel %vm16814_vm12, %v6764_v34, %v6768_v14  ;;  %vm16822_vm12 = vmmov %vm16803_vm6  ;;  %v6800_v34 = vrot.slane %v14736_v63, 1  ;;  %v6802_v14 = vrot.slane %v14759_v27, 1 }
 0x47e   : > { %v6779_v28 = vsel %vm16822_vm12, %v6774_v41, %v6778_v12  ;;  %v16854_v12 = vld [vmem:[#allocation63_spill] sm:$0xff] }
 0x480   : > { %7142 = vmatmul.mubr.f32.gmra.mrb[4].mxu1 %v6755_v42  ;;  %v16833_v42 = vld [vmem:[#allocation45_spill] sm:$0xff] }
 0x481   : > { %10244 = vmatprep.mubr.msk.f32.mxu1 %vm16811_vm8, %v6761_v60 }
 0x484   : > { %10245 = vmatmul.mubr.msk.f32.gmra.mrb[6].mxu1 %vm16811_vm8, %v6759_v61  ;;  %vm16819_vm8 = vmmov %vm16803_vm6  ;;  %v6798_v61 = vrot.slane %v14744_v44, 1 }
 0x485   : > { %7151 = vmatprep.mubr.f32.mxu1 %v6765_v59  ;;  %v6777_v58 = vsel %vm16819_vm8, %v6772_v30, %v6776_v7  ;;  %vm16831_vm8 = vmmov %vm16803_vm6  ;;  %v16839_v59 = vld [vmem:[#allocation46_spill] sm:$0xff]  ;;  %v16845_v30 = vld [vmem:[#allocation60_spill] sm:$0xff] }
 0x486   : > { %v6787_v47 = vsel %vm16831_vm8, %v6782_v45, %v6786_v50  ;;  %vm16835_vm14 = vmmov %vm16831_vm8  ;;  %vm16840_vm15 = vnez %v16839_v59  ;;  %v6805_v63 = vsel %vm16831_vm8, %v6800_v34, %v6804_v40  ;;  %v6818_v45 = vrot.slane %v16858_v49, 1  ;;  %v6668_v49 = vld [vmem:[#allocation2 + $0x210] sm:$0xff] }
 0x487   : > { %v6791_v23 = vsel %vm16835_vm14, %v6786_v50, %v6790_v56  ;;  %vm16836_vm12 = vmmov %vm16831_vm8  ;;  %vm16847_vm14 = vnez %v16846_v36  ;;  %v16862_v50 = vld [vmem:[#allocation66_spill] sm:$0xff]  ;;  %v6840_v59 = vrot.slane %v14858_v9, 1  ;;  %v6842_v36 = vrot.slane %v14879_v8, 1 }
 0x488   : > { %7152 = vmatmul.mubr.f32.gmra.mrb[8].mxu1 %v6763_v3  ;;  %v6797_v60 = vsel %vm16836_vm12, %v6792_v54, %v6796_v57  ;;  %vm16841_vm9 = vmmov %vm16831_vm8  ;;  %v6808_v3 = vrot.slane %v14762_v43, 1  ;;  %v6852_v8 = vrot.slane %v14901_v6, 1  ;;  %v6671_v6 = vld [vmem:[#allocation2 + $0x228] sm:$0xff] }
 0x489   : > { %10246 = vmatprep.mubr.msk.f32.mxu1 %vm16815_vm11, %v6769_v18  ;;  %v6799_v25 = vsel %vm16841_vm9, %v6794_v5, %v6798_v61  ;;  %v6806_v18 = vrot.slane %v16843_v4, 1  ;;  %v16878_v4 = vld [vmem:[#allocation71_spill] sm:$0xff] }
 0x48c   : > { %10247 = vmatmul.mubr.msk.f32.gmra.mrb[10].mxu1 %vm16815_vm11, %v6767_v32  ;;  %vm16824_vm11 = vmmov %vm16803_vm6  ;;  %v6812_v32 = vrot.slane %v16845_v30, 1 }
 0x48d   : > { %7161 = vmatprep.mubr.f32.mxu1 %v6773_v52  ;;  %v6785_v53 = vsel %vm16824_vm11, %v6780_v37, %v6784_v35  ;;  %vm16837_vm11 = vmmov %vm16831_vm8  ;;  %v16849_v52 = vld [vmem:[#allocation61_spill] sm:$0xff]  ;;  %v16855_v35 = vld [vmem:[#allocation48_spill] sm:$0xff] }
 0x48e   : > { %v6795_v22 = vsel %vm16837_vm11, %v6790_v56, %v6794_v5  ;;  %v6810_v7 = vrot.slane %v16849_v52, 1  ;;  %vm16856_vm9 = vnez %v16855_v35 }
 0x490   : > { %7162 = vmatmul.mubr.f32.gmra.mrb[12].mxu1 %v6771_v31  ;;  %v6816_v31 = vrot.slane %v14786_v24, 1 }
 0x491   : > { %10248 = vmatprep.mubr.msk.f32.mxu1 %vm16820_vm13, %v6777_v58  ;;  %v16852_v58 = vld [vmem:[#allocation62_spill] sm:$0xff] }
 0x492   : > { %v6814_v37 = vrot.slane %v16852_v58, 1  ;;  %v6666_v58 = vld [vmem:[#allocation2 + $0x200] sm:$0xff] }
 0x493   : > { %v6850_v35 = vrot.slane %v6666_v58, 1 }
 0x494   : > { %10249 = vmatmul.mubr.msk.f32.gmra.mrb[14].mxu1 %vm16820_vm13, %v6775_v29  ;;  %vm16832_vm13 = vmmov %vm16803_vm6  ;;  %vm16834_vm6 = vnez %v16833_v42  ;;  %v16869_v42 = vld [vmem:[#allocation68_spill] sm:$0xff] }
 0x495   : > { %7171 = vmatprep.mubr.f32.mxu1 %v6781_v38  ;;  %v6793_v46 = vsel %vm16832_vm13, %v6788_v48, %v6792_v54  ;;  %vm16842_vm13 = vmmov %vm16831_vm8  ;;  %v6820_v38 = vrot.slane %v16854_v12, 1  ;;  %v16860_v48 = vld [vmem:[#allocation65_spill] sm:$0xff] }
 0x496   : > { %v6803_v44 = vsel %vm16842_vm13, %v6798_v61, %v6802_v14  ;;  %v6822_v62 = vrot.slane %v16860_v48, 1 }
 0x498   : > { %7172 = vmatmul.mubr.f32.gmra.mrb[16].mxu1 %v6779_v28 }
 0x499   : > { %10250 = vmatprep.mubr.msk.f32.mxu1 %vm16827_vm10, %v6785_v53  ;;  %v6824_v53 = vrot.slane %v14810_v2, 1 }
 0x49c   : > { %10251 = vmatmul.mubr.msk.f32.gmra.mrb[18].mxu1 %vm16827_vm10, %v6783_v26  ;;  %vm16838_vm10 = vmmov %vm16831_vm8 }
 0x49d   : > { %7181 = vmatprep.mubr.f32.mxu1 %v6789_v55  ;;  %v6801_v39 = vsel %vm16838_vm10, %v6796_v57, %v6800_v34  ;;  %v6828_v55 = vrot.slane %v16862_v50, 1  ;;  %v16890_v50 = vld [vmem:[#allocation53_spill] sm:$0xff] }
 0x4a0   : > { %7182 = vmatmul.mubr.f32.gmra.mrb[20].mxu1 %v6787_v47  ;;  %v16866_v47 = vld [vmem:[#allocation67_spill] sm:$0xff] }
 0x4a1   : > { %10252 = vmatprep.mubr.msk.f32.mxu1 %vm16834_vm6, %v6793_v46  ;;  %v6826_v56 = vrot.slane %v16866_v47, 1  ;;  %v6832_v46 = vrot.slane %v14834_v51, 1 }
 0x4a4   : > { %10253 = vmatmul.mubr.msk.f32.gmra.mrb[22].mxu1 %vm16834_vm6, %v6791_v23  ;;  %vm16844_vm6 = vmmov %vm16831_vm8  ;;  %v6830_v23 = vrot.slane %v16869_v42, 1 }
 0x4a5   : > { %7191 = vmatprep.mubr.f32.mxu1 %v6797_v60  ;;  %v6809_v1 = vsel %vm16844_vm6, %v6804_v40, %v6808_v3  ;;  %vm16848_vm12 = vmmov %vm16844_vm6  ;;  %v6819_v10 = vsel %vm16844_vm6, %v6814_v37, %v6818_v45  ;;  %v16871_v60 = vld [vmem:[#allocation69_spill] sm:$0xff] }
 0x4a6   : > { %v6807_v27 = vsel %vm16848_vm12, %v6802_v14, %v6806_v18  ;;  %vm16850_vm11 = vmmov %vm16844_vm6  ;;  %vm16864_vm12 = vnez %v16863_v0  ;;  %v6836_v34 = vrot.slane %v16871_v60, 1 }
 0x4a7   : > { %v6813_v43 = vsel %vm16850_vm11, %v6808_v3, %v6812_v32  ;;  %vm16851_vm10 = vmmov %vm16844_vm6  ;;  %v6838_v3 = vrot.slane %v14865_v13, 1 }
 0x4a8   : > { %7192 = vmatmul.mubr.f32.gmra.mrb[24].mxu1 %v6795_v22  ;;  %v6811_v41 = vsel %vm16851_vm10, %v6806_v18, %v6810_v7  ;;  %vm16857_vm8 = vmmov %vm16844_vm6  ;;  %v16872_v22 = vld [vmem:[#allocation50_spill] sm:$0xff]  ;;  %v6837_v51 = vsel %vm16844_vm6, %v6832_v46, %v6836_v34  ;;  %v6844_v18 = vrot.slane %v16878_v4, 1 }
 0x4a9   : > { %10254 = vmatprep.mubr.msk.f32.mxu1 %vm16840_vm15, %v6801_v39  ;;  %v6815_v28 = vsel %vm16857_vm8, %v6810_v7, %v6814_v37  ;;  %vm16859_vm13 = vmmov %vm16844_vm6  ;;  %vm16873_vm8 = vnez %v16872_v22  ;;  %v16875_v39 = vld [vmem:[#allocation70_spill] sm:$0xff]  ;;  %v16885_v37 = vld [vmem:[#allocation52_spill] sm:$0xff] }
 0x4aa   : > { %v6821_v24 = vsel %vm16859_vm13, %v6816_v31, %v6820_v38  ;;  %vm16865_vm11 = vmmov %vm16844_vm6  ;;  %v6834_v40 = vrot.slane %v16875_v39, 1  ;;  %v6676_v39 = vld [vmem:[#allocation2 + $0x250] sm:$0x1] }
 0x4ab   : > { %v6823_v54 = vsel %vm16865_vm11, %v6818_v45, %v6822_v62  ;;  %vm16867_vm10 = vmmov %vm16844_vm6 }
 0x4ac   : > { %10255 = vmatmul.mubr.msk.f32.gmra.mrb[26].mxu1 %vm16840_vm15, %v6799_v25  ;;  %vm16853_vm15 = vmmov %vm16844_vm6  ;;  %v6829_v2 = vsel %vm16867_vm10, %v6824_v53, %v6828_v55 }
 0x4ad   : > { %7201 = vmatprep.mubr.f32.mxu1 %v6805_v63  ;;  %v6817_v29 = vsel %vm16853_vm15, %v6812_v32, %v6816_v31  ;;  %vm16868_vm15 = vmmov %vm16844_vm6  ;;  %v6846_v31 = vrot.slane %v14899_v11, 1 }
 0x4ae   : > { %v6827_v57 = vsel %vm16868_vm15, %v6822_v62, %v6826_v56  ;;  %vm16874_vm13 = vmmov %vm16844_vm6  ;;  %v6860_v62 = vrot.slane %v6671_v6, 1 }
 0x4af   : > { %v6831_v61 = vsel %vm16874_vm13, %v6826_v56, %v6830_v23  ;;  %vm16881_vm10 = vmmov %vm16844_vm6  ;;  %vm16886_vm13 = vnez %v16885_v37 }
 0x4b0   : > { %7202 = vmatmul.mubr.f32.gmra.mrb[28].mxu1 %v6803_v44  ;;  %v6839_v9 = vsel %vm16881_vm10, %v6834_v40, %v6838_v3  ;;  %vm16882_vm15 = vmmov %vm16844_vm6  ;;  %vm16891_vm10 = vnez %v16890_v50 }
 0x4b1   : > { %10256 = vmatprep.mubr.msk.f32.mxu1 %vm16847_vm14, %v6809_v1  ;;  %v16879_v1 = vld [vmem:[#allocation51_spill] sm:$0xff]  ;;  %v6845_v13 = vsel %vm16882_vm15, %v6840_v59, %v6844_v18  ;;  %vm16892_vm15 = vmmov %vm16844_vm6 }
 0x4b2   : > { %vm16880_vm11 = vnez %v16879_v1 }
 0x4b4   : > { %10257 = vmatmul.mubr.msk.f32.gmra.mrb[30].mxu1 %vm16847_vm14, %v6807_v27  ;;  %vm16861_vm14 = vmmov %vm16844_vm6  ;;  %v6848_v27 = vrot.slane %v14882_v33, 1 }
 0x4b5   : > { %7211 = vmatprep.mubr.f32.mxu1 %v6813_v43  ;;  %v6825_v26 = vsel %vm16861_vm14, %v6820_v38, %v6824_v53  ;;  %vm16876_vm14 = vmmov %vm16844_vm6  ;;  %v6847_v38 = vsel %vm16844_vm6, %v6842_v36, %v6846_v31 }
 0x4b6   : > { %v6835_v63 = vsel %vm16876_vm14, %v6830_v23, %v6834_v40  ;;  %vm16887_vm14 = vmmov %vm16844_vm6 }
 0x4b7   : > { %v6853_v11 = vsel %vm16887_vm14, %v6848_v27, %v6852_v8  ;;  %vm16897_vm14 = vmmov %vm16844_vm6 }
 0x4b8   : > { %7212 = vmatmul.mubr.f32.gmra.mrb[32].mxu1 %v6811_v41 }
 0x4b9   : > { %10258 = vmatprep.mubr.msk.f32.mxu1 %vm16856_vm9, %v6817_v29  ;;  %v6669_v29 = vld [vmem:[#allocation2 + $0x218] sm:$0xff] }
 0x4bc   : > { %10259 = vmatmul.mubr.msk.f32.gmra.mrb[34].mxu1 %vm16856_vm9, %v6815_v28  ;;  %vm16870_vm9 = vmmov %vm16844_vm6  ;;  %v6856_v28 = vrot.slane %v6669_v29, 1 }
 0x4bd   : > { %7221 = vmatprep.mubr.f32.mxu1 %v6821_v24  ;;  %v6833_v5 = vsel %vm16870_vm9, %v6828_v55, %v6832_v46  ;;  %vm16883_vm9 = vmmov %vm16844_vm6 }
 0x4be   : > { %v6843_v43 = vsel %vm16883_vm9, %v6838_v3, %v6842_v36  ;;  %vm16893_vm9 = vmmov %vm16844_vm6 }
 0x4bf   : > { %v6861_v56 = vsel %vm16893_vm9, %v6856_v28, %v6860_v62 }
 0x4c0   : > { %7222 = vmatmul.mubr.f32.gmra.mrb[36].mxu1 %v6819_v10  ;;  %v6854_v10 = vrot.slane %v6668_v49, 1 }
 0x4c1   : > { %10260 = vmatprep.mubr.msk.f32.mxu1 %vm16864_vm12, %v6825_v26  ;;  %v6670_v26 = vld [vmem:[#allocation2 + $0x220] sm:$0xff] }
 0x4c2   : > { %v6858_v47 = vrot.slane %v6670_v26, 1 }
 0x4c4   : > { %10261 = vmatmul.mubr.msk.f32.gmra.mrb[38].mxu1 %vm16864_vm12, %v6823_v54  ;;  %vm16877_vm12 = vmmov %vm16844_vm6  ;;  %v6855_v54 = vsel %vm16892_vm15, %v6850_v35, %v6854_v10 }
 0x4c5   : > { %7231 = vmatprep.mubr.f32.mxu1 %v6829_v2  ;;  %v6841_v44 = vsel %vm16877_vm12, %v6836_v34, %v6840_v59  ;;  %vm16888_vm12 = vmmov %vm16844_vm6  ;;  %v15113_v2 = vld [vmem:[#allocation2 + $0x18] sm:$0xff]  ;;  %v6870_v59 = vrot.slane %v6676_v39, 1 }
 0x4c6   : > { %v6851_v53 = vsel %vm16888_vm12, %v6846_v31, %v6850_v35  ;;  %v6864_v46 = vrot.slane %v15113_v2, 1  ;;  %vm16899_vm12 = vmmov %vm16844_vm6 }
 0x4c8   : > { %7232 = vmatmul.mubr.f32.gmra.mrb[40].mxu1 %v6827_v57  ;;  %v6871_v4 = vsel %vm16899_vm12, %v6864_v46, %v6870_v59 }
 0x4c9   : > { %10262 = vmatprep.mubr.msk.f32.mxu1 %vm16873_vm8, %v6833_v5  ;;  %v6677_v5 = vld [vmem:[#allocation2 + $0x258] sm:$0x1] }
 0x4cc   : > { %10263 = vmatmul.mubr.msk.f32.gmra.mrb[42].mxu1 %vm16873_vm8, %v6831_v61  ;;  %vm16884_vm8 = vmmov %vm16844_vm6  ;;  %v6872_v61 = vrot.slane %v6677_v5, 1 }
 0x4cd   : > { %7241 = vmatprep.mubr.f32.mxu1 %v6837_v51  ;;  %v6849_v41 = vsel %vm16884_vm8, %v6844_v18, %v6848_v27  ;;  %vm16894_vm8 = vmmov %vm16844_vm6  ;;  %v6863_v51 = vsel %vm16844_vm6, %v6858_v47, %v6864_v46 }
 0x4ce   : > { %v15071_v25 = vpop.f32.mrb[64].mxu0  ;;  %v6859_v23 = vsel %vm16894_vm8, %v6854_v10, %v6858_v47 }
 0x4cf   : > { %v4067_v14 = vpop.f32.mrb[65].mxu0 }
 0x4d0   : > { %7242 = vmatmul.mubr.f32.gmra.mrb[44].mxu1 %v6835_v63  ;;  %v6873_v63 = vsel %vm16897_vm14, %v6864_v46, %v6872_v61 }
 0x4d1   : > { %10264 = vmatprep.mubr.msk.f32.mxu1 %vm16880_vm11, %v6841_v44 }
 0x4d2   : > { %v15079_v30 = vpop.f32.mrb[66].mxu0 }
 0x4d3   : > { %v4072_v32 = vpop.f32.mrb[67].mxu0 }
 0x4d4   : > { %10265 = vmatmul.mubr.msk.f32.gmra.mrb[46].mxu1 %vm16880_vm11, %v6839_v9  ;;  %vm16889_vm11 = vmmov %vm16844_vm6 }
 0x4d5   : > { %7251 = vmatprep.mubr.f32.mxu1 %v6845_v13  ;;  %v6857_v48 = vsel %vm16889_vm11, %v6852_v8, %v6856_v28 }
 0x4d6   : > { %v15087_v52 = vpop.f32.mrb[68].mxu0 }
 0x4d7   : > { %v4077_v7 = vpop.f32.mrb[69].mxu0 }
 0x4d8   : > { %7252 = vmatmul.mubr.f32.gmra.mrb[48].mxu1 %v6843_v43 }
 0x4d9   : > { %10266 = vmatprep.mubr.msk.f32.mxu1 %vm16886_vm13, %v6849_v41 }
 0x4da   : > { %v15095_v12 = vpop.f32.mrb[70].mxu0 }
 0x4db   : > { %v4082_v33 = vpop.f32.mrb[71].mxu0 }
 0x4dc   : > { %10267 = vmatmul.mubr.msk.f32.gmra.mrb[50].mxu1 %vm16886_vm13, %v6847_v38  ;;  %vm16895_vm13 = vmmov %vm16844_vm6 }
 0x4dd   : > { %7261 = vmatprep.mubr.f32.mxu1 %v6853_v11  ;;  %v6865_v60 = vsel %vm16895_vm13, %v6860_v62, %v6864_v46 }
 0x4de   : > { %v15101_v45 = vpop.f32.mrb[72].mxu0 }
 0x4df   : > { %v4087_v24 = vpop.f32.mrb[73].mxu0 }
 0x4e0   : > { %7262 = vmatmul.mubr.f32.gmra.mrb[52].mxu1 %v6851_v53 }
 0x4e1   : > { %10268 = vmatprep.mubr.msk.f32.mxu1 %vm16891_vm10, %v6857_v48 }
 0x4e2   : > { %v15107_v55 = vpop.f32.mrb[74].mxu0 }
 0x4e3   : > { %v4092_v0 = vpop.f32.mrb[75].mxu0 }
 0x4e4   : > { %10269 = vmatmul.mubr.msk.f32.gmra.mrb[54].mxu1 %vm16891_vm10, %v6855_v54 }
 0x4e5   : > { %7271 = vmatprep.mubr.f32.mxu1 %v6861_v56 }
 0x4e6   : > { %v15116_v57 = vpop.f32.mrb[76].mxu0 }
 0x4e7   : > { %v4097_v42 = vpop.f32.mrb[77].mxu0 }
 0x4e8   : > { %7272 = vmatmul.mubr.f32.gmra.mrb[56].mxu1 %v6859_v23 }
 0x4e9   : > { %10270 = vmatprep.mubr.msk.f32.mxu1 %vm16714_vm5, %v6865_v60 }
 0x4ea   : > { %v15122_v22 = vpop.f32.mrb[78].mxu0 }
 0x4eb   : > { %v4102_v40 = vpop.f32.mrb[79].mxu0 }
 0x4ec   : > { %10271 = vmatmul.mubr.msk.f32.gmra.mrb[58].mxu1 %vm16714_vm5, %v6863_v51 }
 0x4ed   : > { %7281 = vmatprep.mubr.f32.mxu1 %v6864_v46 }
 0x4ee   : > { %v15127_v14 = vpop.f32.mrb[80].mxu0 }
 0x4ef   : > { %v4107_v3 = vpop.f32.mrb[81].mxu0 }
 0x4f0   : > { %7282 = vmatmul.mubr.f32.gmra.mrb[60].mxu1 %v6864_v46 }
 0x4f1   : > { %10272 = vmatprep.mubr.msk.f32.mxu1 %vm16724_vm7, %v6873_v63  ;;  %v11409_v63 = vadd.f32 %v15113_v2, %v15071_v25  ;;  %v11421_v25 = vadd.f32 %v15113_v2, %v15087_v52  ;;  %v11433_v52 = vadd.f32 %v15113_v2, %v15101_v45  ;;  %v11445_v45 = vadd.f32 %v15113_v2, %v15116_v57 }
 0x4f2   : > { %v15133_v18 = vpop.f32.mrb[82].mxu0  ;;  %v11457_v57 = vadd.f32 %v15113_v2, %v15127_v14 }
 0x4f3   : > { %v4112_v1 = vpop.f32.mrb[83].mxu0 }
 0x4f4   : > { %10273 = vmatmul.mubr.msk.f32.gmra.mrb[62].mxu1 %vm16724_vm7, %v6871_v4  ;;  %v15183_v1 = vld [vmem:[#allocation13] ss:$0 sm:$0xff] }
 0x4f6   : > { %v15137_v32 = vpop.f32.mrb[84].mxu0 }
 0x4f7   : > { %v4117_v9 = vpop.f32.mrb[85].mxu0  ;;  %v11469_v14 = vadd.f32 %v15113_v2, %v15137_v32 }
 0x4fa   : > { %v15139_v36 = vpop.f32.mrb[86].mxu0 }
 0x4fb   : > { %v4122_v13 = vpop.f32.mrb[87].mxu0 }
 0x4fe   : > { %v15141_v27 = vpop.f32.mrb[88].mxu0 }
 0x4ff   : > { %v4127_v7 = vpop.f32.mrb[89].mxu0  ;;  %v11481_v32 = vadd.f32 %v15113_v2, %v15141_v27 }
 0x500   : > { %v11415_v7 = vadd.f32 %v15113_v2, %v15079_v30 }
 0x502   : > { %v15143_v43 = vpop.f32.mrb[90].mxu0 }
 0x503   : > { %v4132_v31 = vpop.f32.mrb[91].mxu0 }
 0x506   : > { %v15145_v41 = vpop.f32.mrb[92].mxu0 }
 0x507   : > { %v4137_v8 = vpop.f32.mrb[93].mxu0  ;;  %v11493_v27 = vadd.f32 %v15113_v2, %v15145_v41 }
 0x50a   : > { %v15147_v58 = vpop.f32.mrb[94].mxu0 }
 0x50b   : > { %v4142_v37 = vpop.f32.mrb[95].mxu0 }
 0x50e   : > { %v15149_v29 = vpop.f32.mrb[96].mxu0 }
 0x50f   : > { %v4147_v33 = vpop.f32.mrb[97].mxu0  ;;  %v11505_v41 = vadd.f32 %v15113_v2, %v15149_v29 }
 0x512   : > { %v15151_v38 = vpop.f32.mrb[98].mxu0 }
 0x513   : > { %v4152_v35 = vpop.f32.mrb[99].mxu0 }
 0x516   : > { %v15153_v11 = vpop.f32.mrb[100].mxu0 }
 0x517   : > { %v4157_v28 = vpop.f32.mrb[101].mxu0  ;;  %v11517_v29 = vadd.f32 %v15113_v2, %v15153_v11 }
 0x51a   : > { %v15155_v49 = vpop.f32.mrb[102].mxu0 }
 0x51b   : > { %v4162_v6 = vpop.f32.mrb[103].mxu0 }
 0x51e   : > { %v15157_v24 = vpop.f32.mrb[104].mxu0 }
 0x51f   : > { %v4167_v53 = vpop.f32.mrb[105].mxu0  ;;  %v11529_v11 = vadd.f32 %v15113_v2, %v15157_v24 }
 0x522   : > { %v15159_v10 = vpop.f32.mrb[106].mxu0 }
 0x523   : > { %v4172_v48 = vpop.f32.mrb[107].mxu0 }
 0x526   : > { %v15161_v62 = vpop.f32.mrb[108].mxu0 }
 0x527   : > { %v4177_v26 = vpop.f32.mrb[109].mxu0  ;;  %v11541_v24 = vadd.f32 %v15113_v2, %v15161_v62 }
 0x52a   : > { %v15163_v50 = vpop.f32.mrb[110].mxu0 }
 0x52b   : > { %v4182_v0 = vpop.f32.mrb[111].mxu0 }
 0x52c   : > { %v11427_v0 = vadd.f32 %v15113_v2, %v15095_v12  ;;  %v11439_v12 = vadd.f32 %v15113_v2, %v15107_v55  ;;  %v11451_v55 = vadd.f32 %v15113_v2, %v15122_v22  ;;  %v11463_v22 = vadd.f32 %v15113_v2, %v15133_v18 }
 0x52d   : > { %v11475_v18 = vadd.f32 %v15113_v2, %v15139_v36  ;;  %v11487_v36 = vadd.f32 %v15113_v2, %v15143_v43  ;;  %v11499_v43 = vadd.f32 %v15113_v2, %v15147_v58  ;;  %v11511_v58 = vadd.f32 %v15113_v2, %v15151_v38 }
 0x52e   : > { %v15165_v54 = vpop.f32.mrb[112].mxu0  ;;  %v11523_v38 = vadd.f32 %v15113_v2, %v15155_v49  ;;  %v11535_v49 = vadd.f32 %v15113_v2, %v15159_v10  ;;  %v11547_v10 = vadd.f32 %v15113_v2, %v15163_v50 }
 0x52f   : > { %v4187_v47 = vpop.f32.mrb[113].mxu0  ;;  %v11553_v62 = vadd.f32 %v15113_v2, %v15165_v54 }
 0x532   : > { %v15167_v56 = vpop.f32.mrb[114].mxu0 }
 0x533   : > { %v4192_v46 = vpop.f32.mrb[115].mxu0  ;;  %v11559_v50 = vadd.f32 %v15113_v2, %v15167_v56 }
 0x536   : > { %v15169_v42 = vpop.f32.mrb[116].mxu0 }
 0x537   : > { %v4197_v23 = vpop.f32.mrb[117].mxu0  ;;  %v11565_v54 = vadd.f32 %v15113_v2, %v15169_v42 }
 0x53a   : > { %v15171_v5 = vpop.f32.mrb[118].mxu0 }
 0x53b   : > { %v4202_v60 = vpop.f32.mrb[119].mxu0  ;;  %v11571_v56 = vadd.f32 %v15113_v2, %v15171_v5 }
 0x53e   : > { %v15173_v34 = vpop.f32.mrb[120].mxu0 }
 0x53f   : > { %v4207_v61 = vpop.f32.mrb[121].mxu0  ;;  %v11577_v42 = vadd.f32 %v15113_v2, %v15173_v34 }
 0x542   : > { %v15175_v39 = vpop.f32.mrb[122].mxu0 }
 0x543   : > { %v4212_v40 = vpop.f32.mrb[123].mxu0  ;;  %v11583_v5 = vadd.f32 %v15113_v2, %v15175_v39 }
 0x546   : > { %v15177_v51 = vpop.f32.mrb[124].mxu0 }
 0x547   : > { %v4217_v59 = vpop.f32.mrb[125].mxu0  ;;  %v11589_v34 = vadd.f32 %v15113_v2, %v15177_v51 }
 0x54a   : > { %v15181_v3 = vpop.f32.mrb[126].mxu0 }
 0x54b   : > { %v4222_v44 = vpop.f32.mrb[127].mxu0  ;;  %v7133_v4 = vpop.f32.mrb[0].mxu1  ;;  %v11595_v39 = vadd.f32 %v15113_v2, %v15181_v3 }
 0x54c   : > { %v11412_v9 = vadd.f32 %v11409_v63, %v7133_v4  ;;  %v7135_v13 = vpop.f32.mrb[1].mxu1 }
 0x54e   : > { %v7395_v31 = vadd.f32 %v11412_v9, %v15183_v1 }
 0x54f   : > { %v7138_v8 = vpop.f32.mrb[2].mxu1 }
 0x550   : > { %v7427_v37 = vmax.f32 %v7395_v31, 0.0  ;;  %v11418_v33 = vadd.f32 %v11415_v7, %v7138_v8  ;;  %v7140_v35 = vpop.f32.mrb[3].mxu1 }
 0x552   : > { %7459 = vst [vmem:[#allocation3 + $0x18] sm:$0xff] %v7427_v37  ;;  %v7396_v28 = vadd.f32 %v11418_v33, %v15183_v1 }
 0x553   : > { %v7143_v6 = vpop.f32.mrb[4].mxu1 }
 0x554   : > { %v7428_v53 = vmax.f32 %v7396_v28, 0.0  ;;  %v11424_v48 = vadd.f32 %v11421_v25, %v7143_v6  ;;  %v7145_v26 = vpop.f32.mrb[5].mxu1 }
 0x556   : > { %7460 = vst [vmem:[#allocation3 + $0x20] sm:$0xff] %v7428_v53  ;;  %v7397_v30 = vadd.f32 %v11424_v48, %v15183_v1 }
 0x557   : > { %v7148_v47 = vpop.f32.mrb[6].mxu1 }
 0x558   : > { %v7429_v46 = vmax.f32 %v7397_v30, 0.0  ;;  %v11430_v23 = vadd.f32 %v11427_v0, %v7148_v47  ;;  %v7150_v60 = vpop.f32.mrb[7].mxu1 }
 0x55a   : > { %7461 = vst [vmem:[#allocation3 + $0x28] sm:$0xff] %v7429_v46  ;;  %v7398_v61 = vadd.f32 %v11430_v23, %v15183_v1 }
 0x55b   : > { %v7153_v40 = vpop.f32.mrb[8].mxu1 }
 0x55c   : > { %v7430_v59 = vmax.f32 %v7398_v61, 0.0  ;;  %v11436_v63 = vadd.f32 %v11433_v52, %v7153_v40  ;;  %v7155_v44 = vpop.f32.mrb[9].mxu1 }
 0x55e   : > { %7462 = vst [vmem:[#allocation3 + $0x30] sm:$0xff] %v7430_v59  ;;  %v7399_v4 = vadd.f32 %v11436_v63, %v15183_v1 }
 0x55f   : > { %v7158_v9 = vpop.f32.mrb[10].mxu1 }
 0x560   : > { %v7431_v13 = vmax.f32 %v7399_v4, 0.0  ;;  %v11442_v7 = vadd.f32 %v11439_v12, %v7158_v9  ;;  %v7160_v31 = vpop.f32.mrb[11].mxu1 }
 0x562   : > { %7463 = vst [vmem:[#allocation3 + $0x38] sm:$0xff] %v7431_v13  ;;  %v7400_v8 = vadd.f32 %v11442_v7, %v15183_v1 }
 0x563   : > { %v7163_v37 = vpop.f32.mrb[12].mxu1 }
 0x564   : > { %v7432_v33 = vmax.f32 %v7400_v8, 0.0  ;;  %v11448_v35 = vadd.f32 %v11445_v45, %v7163_v37  ;;  %v7165_v25 = vpop.f32.mrb[13].mxu1 }
 0x566   : > { %7464 = vst [vmem:[#allocation3 + $0x40] sm:$0xff] %v7432_v33  ;;  %v7401_v28 = vadd.f32 %v11448_v35, %v15183_v1 }
 0x567   : > { %v7168_v6 = vpop.f32.mrb[14].mxu1 }
 0x568   : > { %v7433_v53 = vmax.f32 %v7401_v28, 0.0  ;;  %v11454_v48 = vadd.f32 %v11451_v55, %v7168_v6  ;;  %v7170_v26 = vpop.f32.mrb[15].mxu1 }
 0x56a   : > { %7465 = vst [vmem:[#allocation3 + $0x48] sm:$0xff] %v7433_v53  ;;  %v7402_v0 = vadd.f32 %v11454_v48, %v15183_v1 }
 0x56b   : > { %v7173_v30 = vpop.f32.mrb[16].mxu1 }
 0x56c   : > { %v7434_v47 = vmax.f32 %v7402_v0, 0.0  ;;  %v11460_v46 = vadd.f32 %v11457_v57, %v7173_v30  ;;  %v7175_v23 = vpop.f32.mrb[17].mxu1 }
 0x56e   : > { %7466 = vst [vmem:[#allocation3 + $0x50] sm:$0xff] %v7434_v47  ;;  %v7403_v60 = vadd.f32 %v11460_v46, %v15183_v1 }
 0x56f   : > { %v7178_v52 = vpop.f32.mrb[18].mxu1 }
 0x570   : > { %v7435_v61 = vmax.f32 %v7403_v60, 0.0  ;;  %v11466_v40 = vadd.f32 %v11463_v22, %v7178_v52  ;;  %v7180_v59 = vpop.f32.mrb[19].mxu1 }
 0x572   : > { %7467 = vst [vmem:[#allocation3 + $0x58] sm:$0xff] %v7435_v61  ;;  %v7404_v63 = vadd.f32 %v11466_v40, %v15183_v1 }
 0x573   : > { %v7183_v44 = vpop.f32.mrb[20].mxu1 }
 0x574   : > { %v7436_v12 = vmax.f32 %v7404_v63, 0.0  ;;  %v11472_v4 = vadd.f32 %v11469_v14, %v7183_v44  ;;  %v7185_v9 = vpop.f32.mrb[21].mxu1 }
 0x576   : > { %7468 = vst [vmem:[#allocation3 + $0x60] sm:$0xff] %v7436_v12  ;;  %v7405_v13 = vadd.f32 %v11472_v4, %v15183_v1 }
 0x577   : > { %v7188_v7 = vpop.f32.mrb[22].mxu1 }
 0x578   : > { %v7437_v31 = vmax.f32 %v7405_v13, 0.0  ;;  %v11478_v45 = vadd.f32 %v11475_v18, %v7188_v7  ;;  %v7190_v8 = vpop.f32.mrb[23].mxu1 }
 0x57a   : > { %7469 = vst [vmem:[#allocation3 + $0x68] sm:$0xff] %v7437_v31  ;;  %v7406_v37 = vadd.f32 %v11478_v45, %v15183_v1 }
 0x57b   : > { %v7193_v33 = vpop.f32.mrb[24].mxu1 }
 0x57c   : > { %v7438_v35 = vmax.f32 %v7406_v37, 0.0  ;;  %v11484_v25 = vadd.f32 %v11481_v32, %v7193_v33  ;;  %v7195_v55 = vpop.f32.mrb[25].mxu1 }
 0x57e   : > { %7470 = vst [vmem:[#allocation3 + $0x70] sm:$0xff] %v7438_v35  ;;  %v7407_v28 = vadd.f32 %v11484_v25, %v15183_v1 }
 0x57f   : > { %v7198_v6 = vpop.f32.mrb[26].mxu1 }
 0x580   : > { %v7439_v53 = vmax.f32 %v7407_v28, 0.0  ;;  %v11490_v48 = vadd.f32 %v11487_v36, %v7198_v6  ;;  %v7200_v26 = vpop.f32.mrb[27].mxu1 }
 0x582   : > { %7471 = vst [vmem:[#allocation3 + $0x78] sm:$0xff] %v7439_v53  ;;  %v7408_v57 = vadd.f32 %v11490_v48, %v15183_v1 }
 0x583   : > { %v7203_v0 = vpop.f32.mrb[28].mxu1 }
 0x584   : > { %v7440_v30 = vmax.f32 %v7408_v57, 0.0  ;;  %v11496_v47 = vadd.f32 %v11493_v27, %v7203_v0  ;;  %v7205_v46 = vpop.f32.mrb[29].mxu1 }
 0x586   : > { %7472 = vst [vmem:[#allocation3 + $0x80] sm:$0xff] %v7440_v30  ;;  %v7409_v23 = vadd.f32 %v11496_v47, %v15183_v1 }
 0x587   : > { %v7208_v22 = vpop.f32.mrb[30].mxu1 }
 0x588   : > { %v7441_v60 = vmax.f32 %v7409_v23, 0.0  ;;  %v11502_v52 = vadd.f32 %v11499_v43, %v7208_v22  ;;  %v7210_v61 = vpop.f32.mrb[31].mxu1 }
 0x58a   : > { %7473 = vst [vmem:[#allocation3 + $0x88] sm:$0xff] %v7441_v60  ;;  %v7410_v40 = vadd.f32 %v11502_v52, %v15183_v1 }
 0x58b   : > { %v7213_v59 = vpop.f32.mrb[32].mxu1 }
 0x58c   : > { %v7442_v14 = vmax.f32 %v7410_v40, 0.0  ;;  %v11508_v63 = vadd.f32 %v11505_v41, %v7213_v59  ;;  %v7215_v44 = vpop.f32.mrb[33].mxu1 }
 0x58e   : > { %7474 = vst [vmem:[#allocation3 + $0x90] sm:$0xff] %v7442_v14  ;;  %v7411_v12 = vadd.f32 %v11508_v63, %v15183_v1 }
 0x58f   : > { %v7218_v4 = vpop.f32.mrb[34].mxu1 }
 0x590   : > { %v7443_v9 = vmax.f32 %v7411_v12, 0.0  ;;  %v11514_v18 = vadd.f32 %v11511_v58, %v7218_v4  ;;  %v7220_v13 = vpop.f32.mrb[35].mxu1 }
 0x592   : > { %7475 = vst [vmem:[#allocation3 + $0x98] sm:$0xff] %v7443_v9  ;;  %v7412_v7 = vadd.f32 %v11514_v18, %v15183_v1 }
 0x593   : > { %v7223_v31 = vpop.f32.mrb[36].mxu1 }
 0x594   : > { %v7444_v45 = vmax.f32 %v7412_v7, 0.0  ;;  %v11520_v8 = vadd.f32 %v11517_v29, %v7223_v31  ;;  %v7225_v32 = vpop.f32.mrb[37].mxu1 }
 0x596   : > { %7476 = vst [vmem:[#allocation3 + $0xa0] sm:$0xff] %v7444_v45  ;;  %v7413_v37 = vadd.f32 %v11520_v8, %v15183_v1 }
 0x597   : > { %v7228_v33 = vpop.f32.mrb[38].mxu1 }
 0x598   : > { %v7445_v35 = vmax.f32 %v7413_v37, 0.0  ;;  %v11526_v25 = vadd.f32 %v11523_v38, %v7228_v33  ;;  %v7230_v55 = vpop.f32.mrb[39].mxu1 }
 0x59a   : > { %7477 = vst [vmem:[#allocation3 + $0xa8] sm:$0xff] %v7445_v35  ;;  %v7414_v36 = vadd.f32 %v11526_v25, %v15183_v1 }
 0x59b   : > { %v7233_v28 = vpop.f32.mrb[40].mxu1 }
 0x59c   : > { %v7446_v6 = vmax.f32 %v7414_v36, 0.0  ;;  %v11532_v53 = vadd.f32 %v11529_v11, %v7233_v28  ;;  %v7235_v48 = vpop.f32.mrb[41].mxu1 }
 0x59e   : > { %7478 = vst [vmem:[#allocation3 + $0xb0] sm:$0xff] %v7446_v6  ;;  %v7415_v26 = vadd.f32 %v11532_v53, %v15183_v1 }
 0x59f   : > { %v7238_v27 = vpop.f32.mrb[42].mxu1 }
 0x5a0   : > { %v7447_v57 = vmax.f32 %v7415_v26, 0.0  ;;  %v11538_v0 = vadd.f32 %v11535_v49, %v7238_v27  ;;  %v7240_v30 = vpop.f32.mrb[43].mxu1 }
 0x5a2   : > { %7479 = vst [vmem:[#allocation3 + $0xb8] sm:$0xff] %v7447_v57  ;;  %v7416_v47 = vadd.f32 %v11538_v0, %v15183_v1 }
 0x5a3   : > { %v7243_v46 = vpop.f32.mrb[44].mxu1 }
 0x5a4   : > { %v7448_v43 = vmax.f32 %v7416_v47, 0.0  ;;  %v11544_v23 = vadd.f32 %v11541_v24, %v7243_v46  ;;  %v7245_v22 = vpop.f32.mrb[45].mxu1 }
 0x5a6   : > { %7480 = vst [vmem:[#allocation3 + $0xc0] sm:$0xff] %v7448_v43  ;;  %v7417_v60 = vadd.f32 %v11544_v23, %v15183_v1 }
 0x5a7   : > { %v7248_v52 = vpop.f32.mrb[46].mxu1 }
 0x5a8   : > { %v7449_v61 = vmax.f32 %v7417_v60, 0.0  ;;  %v11550_v41 = vadd.f32 %v11547_v10, %v7248_v52  ;;  %v7250_v40 = vpop.f32.mrb[47].mxu1 }
 0x5aa   : > { %7481 = vst [vmem:[#allocation3 + $0xc8] sm:$0xff] %v7449_v61  ;;  %v7418_v59 = vadd.f32 %v11550_v41, %v15183_v1 }
 0x5ab   : > { %v7253_v14 = vpop.f32.mrb[48].mxu1 }
 0x5ac   : > { %v7450_v63 = vmax.f32 %v7418_v59, 0.0  ;;  %v11556_v44 = vadd.f32 %v11553_v62, %v7253_v14  ;;  %v7255_v58 = vpop.f32.mrb[49].mxu1 }
 0x5ae   : > { %7482 = vst [vmem:[#allocation3 + $0xd0] sm:$0xff] %v7450_v63  ;;  %v7419_v12 = vadd.f32 %v11556_v44, %v15183_v1 }
 0x5af   : > { %v7258_v4 = vpop.f32.mrb[50].mxu1 }
 0x5b0   : > { %v7451_v9 = vmax.f32 %v7419_v12, 0.0  ;;  %v11562_v18 = vadd.f32 %v11559_v50, %v7258_v4  ;;  %v7260_v13 = vpop.f32.mrb[51].mxu1 }
 0x5b2   : > { %7483 = vst [vmem:[#allocation3 + $0xd8] sm:$0xff] %v7451_v9  ;;  %v7420_v29 = vadd.f32 %v11562_v18, %v15183_v1 }
 0x5b3   : > { %v7263_v7 = vpop.f32.mrb[52].mxu1 }
 0x5b4   : > { %v7452_v31 = vmax.f32 %v7420_v29, 0.0  ;;  %v11568_v45 = vadd.f32 %v11565_v54, %v7263_v7  ;;  %v7265_v8 = vpop.f32.mrb[53].mxu1 }
 0x5b6   : > { %7484 = vst [vmem:[#allocation3 + $0xe0] sm:$0xff] %v7452_v31  ;;  %7350 = vst [vmem:[#allocation4 + $0xd0] sm:$0xff] %v11568_v45  ;;  %v7421_v32 = vadd.f32 %v11568_v45, %v15183_v1 }
 0x5b7   : > { %v7268_v38 = vpop.f32.mrb[54].mxu1 }
 0x5b8   : > { %v7453_v37 = vmax.f32 %v7421_v32, 0.0  ;;  %v11574_v33 = vadd.f32 %v11571_v56, %v7268_v38  ;;  %v7270_v35 = vpop.f32.mrb[55].mxu1 }
 0x5ba   : > { %7485 = vst [vmem:[#allocation3 + $0xe8] sm:$0xff] %v7453_v37  ;;  %7351 = vst [vmem:[#allocation4 + $0xd8] sm:$0xff] %v11574_v33  ;;  %v7422_v25 = vadd.f32 %v11574_v33, %v15183_v1 }
 0x5bb   : > { %v7273_v55 = vpop.f32.mrb[56].mxu1 }
 0x5bc   : > { %v7454_v11 = vmax.f32 %v7422_v25, 0.0  ;;  %v11580_v36 = vadd.f32 %v11577_v42, %v7273_v55  ;;  %v7275_v28 = vpop.f32.mrb[57].mxu1 }
 0x5be   : > { %7486 = vst [vmem:[#allocation3 + $0xf0] sm:$0xff] %v7454_v11  ;;  %7352 = vst [vmem:[#allocation4 + $0xe0] sm:$0xff] %v11580_v36  ;;  %v7423_v6 = vadd.f32 %v11580_v36, %v15183_v1 }
 0x5bf   : > { %v7278_v53 = vpop.f32.mrb[58].mxu1 }
 0x5c0   : > { %v7455_v48 = vmax.f32 %v7423_v6, 0.0  ;;  %v11586_v49 = vadd.f32 %v11583_v5, %v7278_v53  ;;  %v7280_v26 = vpop.f32.mrb[59].mxu1 }
 0x5c2   : > { %7487 = vst [vmem:[#allocation3 + $0xf8] sm:$0xff] %v7455_v48  ;;  %7353 = vst [vmem:[#allocation4 + $0xe8] sm:$0xff] %v11586_v49  ;;  %v7424_v27 = vadd.f32 %v11586_v49, %v15183_v1 }
 0x5c3   : > { %v7283_v57 = vpop.f32.mrb[60].mxu1 }
 0x5c4   : > { %v7456_v0 = vmax.f32 %v7424_v27, 0.0  ;;  %v11592_v30 = vadd.f32 %v11589_v34, %v7283_v57  ;;  %v7285_v24 = vpop.f32.mrb[61].mxu1 }
 0x5c6   : > { %7488 = vst [vmem:[#allocation3 + $0x100] sm:$0xff] %v7456_v0  ;;  %7354 = vst [vmem:[#allocation4 + $0xf0] sm:$0xff] %v11592_v30  ;;  %v7425_v47 = vadd.f32 %v11592_v30, %v15183_v1 }
 0x5c7   : > { %v7288_v46 = vpop.f32.mrb[62].mxu1 }
 0x5c8   : > { %v7457_v43 = vmax.f32 %v7425_v47, 0.0  ;;  %v11598_v23 = vadd.f32 %v11595_v39, %v7288_v46  ;;  %v7290_v22 = vpop.f32.mrb[63].mxu1 }
 0x5ca   : > { %7489 = vst [vmem:[#allocation3 + $0x108] sm:$0xff] %v7457_v43  ;;  %7355 = vst [vmem:[#allocation4 + $0xf8] sm:$0xff] %v11598_v23  ;;  %v7426_v51 = vadd.f32 %v11598_v23, %v15183_v1 }
 0x5cc   : > { %v7458_v10 = vmax.f32 %v7426_v51, 0.0 }
 0x5ce   : > { %7490 = vst [vmem:[#allocation3 + $0x110] sm:$0xff] %v7458_v10 }
 0x5cf PF: > { %s16900_s6 = sld [smem:[#allocation25_spill]]  ;;  %v12717_v60 = vmov 0.0|0.0   ;;  %vm16922_vm10 = vnez %v16566_v15  ;;  %vm16923_vm15 = vnez %v16568_v16  ;;  %vm16924_vm9 = vnez %v16570_v17  ;;  %v16925_v17 = vld [vmem:[#allocation43_spill] sm:$0xff]  ;;  %p16954_p6 = scmp.ne.s32.totalorder %s16510_s16, 0 }
 0x5d0   : > { %11215 = vmatprep.subr.bf16.mxu1 %v12717_v60  ;;  %11311 = vmatprep.subr.bf16.mxu0 %v12717_v60  ;;  %vm16926_vm8 = vnez %v16925_v17  ;;  %vm16927_vm13 = vnez %v16575_v19  ;;  %vm16928_vm6 = vnez %v16577_v20  ;;  %vm16929_vm14 = vnez %v16579_v21  ;;  %s16955_s4 = sld [smem:[#allocation25_spill]] (%p16954_p6)  ;;  %s16956_s22 = sld [smem:[#allocation26_spill]] (%p16954_p6) }
 0x5d1   : > { %s16957_s3 = sld [smem:[#allocation80_spill]] (%p16954_p6) }
 0x5d5   : > { %s10715_s0 = sshll.u32 %s16900_s6, 10  ;;  %s10275_s18 = sshll.u32 %s16900_s6, 4 }
 0x5d6   : > { %s15282_s24 = scalar_lea.vmem [#allocation15], %s10715_s0  ;;  %s15323_s7 = scalar_lea.vmem [#allocation3], %s10275_s18 }
 0x5d7   : > { %v7757_v2 = vld [vmem:[%s15282_s24] sm:$0xff]  ;;  %v7758_v3 = vld [vmem:[%s15282_s24 + $0x8] sm:$0xff]  ;;  %v7759_v41 = vld [vmem:[%s15282_s24 + $0x10] sm:$0xff]  ;;  %s10708_s10 = sshll.u32 (%p16954_p6), %s16955_s4, 2  ;;  %s10709_s21 = sshll.u32 (%p16954_p6), %s16956_s22, 7 }
 0x5d8   : > { %v10542_v1 = vld [vmem:[%s15282_s24 + $0x200] sm:$0xff]  ;;  %v11216_v52 = vpack.c.bf16 %v7758_v3, %v7757_v2  ;;  %v10543_v61 = vld [vmem:[%s15282_s24 + $0x208] sm:$0xff]  ;;  %v7760_v40 = vld [vmem:[%s15282_s24 + $0x18] sm:$0xff]  ;;  %s9721_s16 = sadd.s32 (%p16954_p6), %s10709_s21, %s10708_s10 }
 0x5d9   : > { %v11312_v62 = vpack.c.bf16 %v10543_v61, %v10542_v1  ;;  %v10544_v59 = vld [vmem:[%s15282_s24 + $0x210] sm:$0xff]  ;;  %v10545_v14 = vld [vmem:[%s15282_s24 + $0x218] sm:$0xff]  ;;  %v11219_v63 = vpack.c.bf16 %v7760_v40, %v7759_v41  ;;  %v7761_v58 = vld [vmem:[%s15282_s24 + $0x20] sm:$0xff]  ;;  %s10710_s11 = sshll.u32 (%p16954_p6), %s9721_s16, 3 }
 0x5da   : > { %11217 = vmatpush1.bf16.msra.mxu1 %v11216_v52  ;;  %v11315_v44 = vpack.c.bf16 %v10545_v14, %v10544_v59  ;;  %v7762_v50 = vld [vmem:[%s15282_s24 + $0x28] sm:$0xff]  ;;  %v10546_v12 = vld [vmem:[%s15282_s24 + $0x220] sm:$0xff]  ;;  %v7763_v13 = vld [vmem:[%s15282_s24 + $0x30] sm:$0xff]  ;;  %s16131_s17 = scalar_lea.vmem (%p16954_p6), %s16957_s3, %s10710_s11 }
 0x5db   : > { %11313 = vmatpush1.bf16.msra.mxu0 %v11312_v62  ;;  %11218 = vmatprep.subr.bf16.mxu1 %v12717_v60  ;;  %v10547_v4 = vld [vmem:[%s15282_s24 + $0x228] sm:$0xff]  ;;  %v11222_v9 = vpack.c.bf16 %v7762_v50, %v7761_v58  ;;  %v7764_v54 = vld [vmem:[%s15282_s24 + $0x38] sm:$0xff]  ;;  %v10548_v29 = vld [vmem:[%s15282_s24 + $0x230] sm:$0xff] }
 0x5dc   : > { %11314 = vmatprep.subr.bf16.mxu0 %v12717_v60  ;;  %v11318_v18 = vpack.c.bf16 %v10547_v4, %v10546_v12  ;;  %v10549_v7 = vld [vmem:[%s15282_s24 + $0x238] sm:$0xff]  ;;  %v11225_v31 = vpack.c.bf16 %v7764_v54, %v7763_v13  ;;  %v7765_v8 = vld [vmem:[%s15282_s24 + $0x40] sm:$0xff]  ;;  %v7766_v56 = vld [vmem:[%s15282_s24 + $0x48] sm:$0xff] }
 0x5dd   : > { %v11321_v45 = vpack.c.bf16 %v10549_v7, %v10548_v29  ;;  %v10550_v32 = vld [vmem:[%s15282_s24 + $0x240] sm:$0xff]  ;;  %v10551_v38 = vld [vmem:[%s15282_s24 + $0x248] sm:$0xff]  ;;  %v11228_v37 = vpack.c.bf16 %v7766_v56, %v7765_v8  ;;  %v7767_v35 = vld [vmem:[%s15282_s24 + $0x50] sm:$0xff] }
 0x5de   : > { %11220 = vmatpush1.bf16.msra.mxu1 %v11219_v63  ;;  %v11324_v33 = vpack.c.bf16 %v10551_v38, %v10550_v32  ;;  %v7768_v42 = vld [vmem:[%s15282_s24 + $0x58] sm:$0xff]  ;;  %v10552_v25 = vld [vmem:[%s15282_s24 + $0x250] sm:$0xff]  ;;  %v7769_v28 = vld [vmem:[%s15282_s24 + $0x60] sm:$0xff] }
 0x5df   : > { %11316 = vmatpush1.bf16.msra.mxu0 %v11315_v44  ;;  %11221 = vmatprep.subr.bf16.mxu1 %v12717_v60  ;;  %v10553_v55 = vld [vmem:[%s15282_s24 + $0x258] sm:$0xff]  ;;  %v11231_v11 = vpack.c.bf16 %v7768_v42, %v7767_v35  ;;  %v7770_v5 = vld [vmem:[%s15282_s24 + $0x68] sm:$0xff]  ;;  %v10554_v6 = vld [vmem:[%s15282_s24 + $0x260] sm:$0xff] }
 0x5e0   : > { %11317 = vmatprep.subr.bf16.mxu0 %v12717_v60  ;;  %v11327_v36 = vpack.c.bf16 %v10553_v55, %v10552_v25  ;;  %v10555_v53 = vld [vmem:[%s15282_s24 + $0x268] sm:$0xff]  ;;  %v15326_v48 = vld [vmem:[%s15323_s7 + $0x17] sm:$0xff]  ;;  %v11234_v34 = vpack.c.bf16 %v7770_v5, %v7769_v28  ;;  %v7773_v46 = vld [vmem:[%s15282_s24 + $0x80] sm:$0xff] }
 0x5e1   : > { %v15329_v49 = vld [vmem:[%s15323_s7 + $0x18] sm:$0xff]  ;;  %10343 = vmatprep.mubr.msk.f32.mxu1 %vm13226_vm0, %v15326_v48  ;;  %v11330_v27 = vpack.c.bf16 %v10555_v53, %v10554_v6  ;;  %v7771_v57 = vld [vmem:[%s15282_s24 + $0x70] sm:$0xff]  ;;  %v7774_v43 = vld [vmem:[%s15282_s24 + $0x88] sm:$0xff] }
 0x5e2   : > { %11223 = vmatpush1.bf16.msra.mxu1 %v11222_v9  ;;  %8832 = vmatprep.mubr.f32.mxu0 %v15329_v49  ;;  %v7772_v0 = vld [vmem:[%s15282_s24 + $0x78] sm:$0xff]  ;;  %v10556_v30 = vld [vmem:[%s15282_s24 + $0x270] sm:$0xff]  ;;  %v10558_v23 = vld [vmem:[%s15282_s24 + $0x280] sm:$0xff]  ;;  %v11240_v51 = vpack.c.bf16 %v7774_v43, %v7773_v46 }
 0x5e3   : > { %11319 = vmatpush1.bf16.msra.mxu0 %v11318_v18  ;;  %11224 = vmatprep.subr.bf16.mxu1 %v12717_v60  ;;  %v10557_v24 = vld [vmem:[%s15282_s24 + $0x278] sm:$0xff]  ;;  %v11237_v39 = vpack.c.bf16 %v7772_v0, %v7771_v57  ;;  %v10559_v22 = vld [vmem:[%s15282_s24 + $0x288] sm:$0xff]  ;;  %v7775_v2 = vld [vmem:[%s15282_s24 + $0x90] sm:$0xff] }
 0x5e4   : > { %11320 = vmatprep.subr.bf16.mxu0 %v12717_v60  ;;  %v11333_v47 = vpack.c.bf16 %v10557_v24, %v10556_v30  ;;  %v11336_v10 = vpack.c.bf16 %v10559_v22, %v10558_v23  ;;  %v7776_v3 = vld [vmem:[%s15282_s24 + $0x98] sm:$0xff]  ;;  %v10560_v1 = vld [vmem:[%s15282_s24 + $0x290] sm:$0xff]  ;;  %v7777_v40 = vld [vmem:[%s15282_s24 + $0xa0] sm:$0xff] }
 0x5e5   : > { %v10561_v52 = vld [vmem:[%s15282_s24 + $0x298] sm:$0xff]  ;;  %v11243_v61 = vpack.c.bf16 %v7776_v3, %v7775_v2  ;;  %v7778_v62 = vld [vmem:[%s15282_s24 + $0xa8] sm:$0xff]  ;;  %v10562_v59 = vld [vmem:[%s15282_s24 + $0x2a0] sm:$0xff] }
 0x5e6   : > { %11226 = vmatpush1.bf16.msra.mxu1 %v11225_v31  ;;  %v11339_v41 = vpack.c.bf16 %v10561_v52, %v10560_v1  ;;  %v10563_v14 = vld [vmem:[%s15282_s24 + $0x2a8] sm:$0xff]  ;;  %v11246_v63 = vpack.c.bf16 %v7778_v62, %v7777_v40  ;;  %v7779_v58 = vld [vmem:[%s15282_s24 + $0xb0] sm:$0xff]  ;;  %v7780_v50 = vld [vmem:[%s15282_s24 + $0xb8] sm:$0xff] }
 0x5e7   : > { %11322 = vmatpush1.bf16.msra.mxu0 %v11321_v45  ;;  %11227 = vmatprep.subr.bf16.mxu1 %v12717_v60  ;;  %v11342_v44 = vpack.c.bf16 %v10563_v14, %v10562_v59  ;;  %v10564_v12 = vld [vmem:[%s15282_s24 + $0x2b0] sm:$0xff]  ;;  %v10565_v4 = vld [vmem:[%s15282_s24 + $0x2b8] sm:$0xff]  ;;  %v11249_v9 = vpack.c.bf16 %v7780_v50, %v7779_v58  ;;  %v7781_v13 = vld [vmem:[%s15282_s24 + $0xc0] sm:$0xff] }
 0x5e8   : > { %11323 = vmatprep.subr.bf16.mxu0 %v12717_v60  ;;  %v11345_v18 = vpack.c.bf16 %v10565_v4, %v10564_v12  ;;  %v7782_v54 = vld [vmem:[%s15282_s24 + $0xc8] sm:$0xff]  ;;  %v10566_v29 = vld [vmem:[%s15282_s24 + $0x2c0] sm:$0xff]  ;;  %v7783_v8 = vld [vmem:[%s15282_s24 + $0xd0] sm:$0xff] }
 0x5e9   : > { %v10567_v7 = vld [vmem:[%s15282_s24 + $0x2c8] sm:$0xff]  ;;  %v11252_v31 = vpack.c.bf16 %v7782_v54, %v7781_v13  ;;  %v7784_v56 = vld [vmem:[%s15282_s24 + $0xd8] sm:$0xff]  ;;  %v10568_v32 = vld [vmem:[%s15282_s24 + $0x2d0] sm:$0xff] }
 0x5ea   : > { %11229 = vmatpush1.bf16.msra.mxu1 %v11228_v37  ;;  %v11348_v45 = vpack.c.bf16 %v10567_v7, %v10566_v29  ;;  %v10569_v38 = vld [vmem:[%s15282_s24 + $0x2d8] sm:$0xff]  ;;  %v11255_v37 = vpack.c.bf16 %v7784_v56, %v7783_v8  ;;  %v7785_v35 = vld [vmem:[%s15282_s24 + $0xe0] sm:$0xff]  ;;  %v7786_v42 = vld [vmem:[%s15282_s24 + $0xe8] sm:$0xff] }
 0x5eb   : > { %11325 = vmatpush1.bf16.msra.mxu0 %v11324_v33  ;;  %11230 = vmatprep.subr.bf16.mxu1 %v12717_v60  ;;  %v11351_v33 = vpack.c.bf16 %v10569_v38, %v10568_v32  ;;  %v10570_v25 = vld [vmem:[%s15282_s24 + $0x2e0] sm:$0xff]  ;;  %v10571_v55 = vld [vmem:[%s15282_s24 + $0x2e8] sm:$0xff]  ;;  %v7787_v28 = vld [vmem:[%s15282_s24 + $0xf0] sm:$0xff] }
 0x5ec   : > { %11326 = vmatprep.subr.bf16.mxu0 %v12717_v60  ;;  %v7788_v5 = vld [vmem:[%s15282_s24 + $0xf8] sm:$0xff]  ;;  %v10572_v6 = vld [vmem:[%s15282_s24 + $0x2f0] sm:$0xff]  ;;  %v10443_v57 = vld [vmem:[%s15282_s24 + $0x100] sm:$0xff] }
 0x5ed   : > { %v10573_v53 = vld [vmem:[%s15282_s24 + $0x2f8] sm:$0xff]  ;;  %v10444_v0 = vld [vmem:[%s15282_s24 + $0x108] sm:$0xff]  ;;  %v10642_v30 = vld [vmem:[%s15282_s24 + $0x300] sm:$0xff] }
 0x5ee   : > { %11232 = vmatpush1.bf16.msra.mxu1 %v11231_v11  ;;  %v11258_v11 = vpack.c.bf16 %v7786_v42, %v7785_v35  ;;  %v10643_v24 = vld [vmem:[%s15282_s24 + $0x308] sm:$0xff]  ;;  %v10310_v43 = vld [vmem:[%s15323_s7 + $0x1f] sm:$0xff]  ;;  %v10445_v22 = vld [vmem:[%s15282_s24 + $0x110] sm:$0xff] }
 0x5ef   : > { %11328 = vmatpush1.bf16.msra.mxu0 %v11327_v36  ;;  %11233 = vmatprep.subr.bf16.mxu1 %v12717_v60  ;;  %v11354_v36 = vpack.c.bf16 %v10571_v55, %v10570_v25  ;;  %v15398_v46 = vld [vmem:[%s15323_s7 + $0x8] sm:$0xff]  ;;  %v15402_v23 = vld [vmem:[%s15323_s7 + $0x20] sm:$0xff]  ;;  %v10644_v2 = vld [vmem:[%s15282_s24 + $0x310] sm:$0xff] }
 0x5f0   : > { %11329 = vmatprep.subr.bf16.mxu0 %v12717_v60  ;;  %v10645_v3 = vld [vmem:[%s15282_s24 + $0x318] sm:$0xff]  ;;  %v10277_v1 = vld [vmem:[%s15323_s7 + $0xf] sm:$0xff]  ;;  %v10447_v26 = vld [vmem:[%s15282_s24 + $0x120] sm:$0xff] }
 0x5f1   : > { %v15415_v52 = vld [vmem:[%s15323_s7 + $0x10] sm:$0xff]  ;;  %v15419_v40 = vld [vmem:[%s15323_s7 + $0x28] sm:$0xff]  ;;  %v11363_v59 = vpack.c.bf16 %v10645_v3, %v10644_v2  ;;  %v10646_v14 = vld [vmem:[%s15282_s24 + $0x320] sm:$0xff] }
 0x5f2   : > { %11235 = vmatpush1.bf16.msra.mxu1 %v11234_v34  ;;  %v11261_v34 = vpack.c.bf16 %v7788_v5, %v7787_v28  ;;  %v10448_v62 = vld [vmem:[%s15282_s24 + $0x128] sm:$0xff]  ;;  %v15433_v12 = vld [vmem:[%s15323_s7 + $0x30] sm:$0xff]  ;;  %v10649_v54 = vld [vmem:[%s15282_s24 + $0x338] sm:$0xff] }
 0x5f3   : > { %11331 = vmatpush1.bf16.msra.mxu0 %v11330_v27  ;;  %11236 = vmatprep.subr.bf16.mxu1 %v12717_v60  ;;  %v11357_v27 = vpack.c.bf16 %v10573_v53, %v10572_v6  ;;  %v10312_v58 = vld [vmem:[%s15323_s7 + $0x2f] sm:$0xff]  ;;  %v11270_v50 = vpack.c.bf16 %v10448_v62, %v10447_v26  ;;  %v10313_v29 = vld [vmem:[%s15323_s7 + $0x37] sm:$0xff]  ;;  %v10650_v56 = vld [vmem:[%s15282_s24 + $0x340] sm:$0xff] }
 0x5f4   : > { %11332 = vmatprep.subr.bf16.mxu0 %v12717_v60  ;;  %v10449_v4 = vld [vmem:[%s15282_s24 + $0x130] sm:$0xff]  ;;  %v10651_v32 = vld [vmem:[%s15282_s24 + $0x348] sm:$0xff]  ;;  %v15462_v35 = vld [vmem:[%s15323_s7 + $0x40] sm:$0xff] }
 0x5f5   : > { %v10648_v13 = vld [vmem:[%s15282_s24 + $0x330] sm:$0xff]  ;;  %v10454_v25 = vld [vmem:[%s15282_s24 + $0x158] sm:$0xff]  ;;  %v11372_v55 = vpack.c.bf16 %v10651_v32, %v10650_v56  ;;  %v10315_v28 = vld [vmem:[%s15323_s7 + $0x47] sm:$0xff] }
 0x5f6   : > { %11238 = vmatpush1.bf16.msra.mxu1 %v11237_v39  ;;  %v10276_v39 = vld [vmem:[%s15323_s7 + $0x7] sm:$0xff]  ;;  %v11369_v8 = vpack.c.bf16 %v10649_v54, %v10648_v13  ;;  %v10453_v42 = vld [vmem:[%s15282_s24 + $0x150] sm:$0xff]  ;;  %v10657_v2 = vld [vmem:[%s15282_s24 + $0x378] sm:$0xff] }
 0x5f7   : > { %11334 = vmatpush1.bf16.msra.mxu0 %v11333_v47  ;;  %11239 = vmatprep.subr.bf16.mxu1 %v12717_v60  ;;  %v11264_v47 = vpack.c.bf16 %v10444_v0, %v10443_v57  ;;  %v11279_v5 = vpack.c.bf16 %v10454_v25, %v10453_v42  ;;  %v15476_v6 = vld [vmem:[%s15323_s7 + $0x48] sm:$0xff]  ;;  %v10455_v53 = vld [vmem:[%s15282_s24 + $0x160] sm:$0xff]  ;;  %v10317_v3 = vld [vmem:[%s15323_s7 + $0x57] sm:$0xff] }
 0x5f8   : > { %11335 = vmatprep.subr.bf16.mxu0 %v12717_v60  ;;  %v10654_v57 = vld [vmem:[%s15282_s24 + $0x360] sm:$0xff]  ;;  %v10655_v0 = vld [vmem:[%s15282_s24 + $0x368] sm:$0xff]  ;;  %v10660_v13 = vld [vmem:[%s15282_s24 + $0x390] sm:$0xff] }
 0x5f9   : > { %v10460_v26 = vld [vmem:[%s15282_s24 + $0x188] sm:$0xff]  ;;  %v10661_v54 = vld [vmem:[%s15282_s24 + $0x398] sm:$0xff]  ;;  %v10662_v32 = vld [vmem:[%s15282_s24 + $0x3a0] sm:$0xff] }
 0x5fa   : > { %11241 = vmatpush1.bf16.msra.mxu1 %v11240_v51  ;;  %v10446_v51 = vld [vmem:[%s15282_s24 + $0x118] sm:$0xff]  ;;  %v11387_v56 = vpack.c.bf16 %v10661_v54, %v10660_v13  ;;  %v10663_v38 = vld [vmem:[%s15282_s24 + $0x3a8] sm:$0xff]  ;;  %v15546_v25 = vld [vmem:[%s15323_s7 + $0x70] sm:$0xff] }
 0x5fb   : > { %11337 = vmatpush1.bf16.msra.mxu0 %v11336_v10  ;;  %11242 = vmatprep.subr.bf16.mxu1 %v12717_v60  ;;  %v11360_v10 = vpack.c.bf16 %v10643_v24, %v10642_v30  ;;  %v10316_v24 = vld [vmem:[%s15323_s7 + $0x4f] sm:$0xff]  ;;  %v10338_v15 = vld [vmem:[%s15323_s7 + $0xff] sm:$0xff] }
 0x5fc   : > { %11338 = vmatprep.subr.bf16.mxu0 %v12717_v60  ;;  %v10324_v13 = vld [vmem:[%s15323_s7 + $0x8f] sm:$0xff]  ;;  %v10617_v20 = vld [vmem:[%s15323_s7 + $0x61] sm:$0xff] }
 0x5fd   : > { %v10340_v16 = vld [vmem:[%s15323_s7 + $0x10f] sm:$0xff] }
 0x5fe   : > { %11244 = vmatpush1.bf16.msra.mxu1 %v11243_v61  ;;  %v10311_v61 = vld [vmem:[%s15323_s7 + $0x27] sm:$0xff]  ;;  %v10615_v19 = vld [vmem:[%s15323_s7 + $0x51] sm:$0xff] }
 0x5ff   : > { %11340 = vmatpush1.bf16.msra.mxu0 %v11339_v41  ;;  %11245 = vmatprep.subr.bf16.mxu1 %v12717_v60  ;;  %v11267_v41 = vpack.c.bf16 %v10446_v51, %v10445_v22  ;;  %v10458_v22 = vld [vmem:[%s15282_s24 + $0x178] sm:$0xff]  ;;  %v11378_v51 = vpack.c.bf16 %v10655_v0, %v10654_v57  ;;  %v10467_v57 = vld [vmem:[%s15282_s24 + $0x1c0] sm:$0xff]  ;;  %v10468_v0 = vld [vmem:[%s15282_s24 + $0x1c8] sm:$0xff] }
 0x600   : > { %11341 = vmatprep.subr.bf16.mxu0 %v12717_v60  ;;  %v10619_v21 = vld [vmem:[%s15323_s7 + $0x71] sm:$0xff]  ;;  %v10638_v17 = vld [vmem:[%s15323_s7 + $0x109] sm:$0xff] }
 0x602   : > { %11247 = vmatpush1.bf16.msra.mxu1 %v11246_v63  ;;  %v10647_v63 = vld [vmem:[%s15282_s24 + $0x328] sm:$0xff] }
 0x603   : > { %11343 = vmatpush1.bf16.msra.mxu0 %v11342_v44  ;;  %11248 = vmatprep.subr.bf16.mxu1 %v12717_v60  ;;  %v10318_v44 = vld [vmem:[%s15323_s7 + $0x5f] sm:$0xff] }
 0x604   : > { %11344 = vmatprep.subr.bf16.mxu0 %v12717_v60 }
 0x606   : > { %11250 = vmatpush1.bf16.msra.mxu1 %v11249_v9  ;;  %v10450_v9 = vld [vmem:[%s15282_s24 + $0x138] sm:$0xff] }
 0x607   : > { %11346 = vmatpush1.bf16.msra.mxu0 %v11345_v18  ;;  %11251 = vmatprep.subr.bf16.mxu1 %v12717_v60  ;;  %v11366_v18 = vpack.c.bf16 %v10647_v63, %v10646_v14  ;;  %v11273_v7 = vpack.c.bf16 %v10450_v9, %v10449_v4  ;;  %v10659_v14 = vld [vmem:[%s15282_s24 + $0x388] sm:$0xff]  ;;  %v10461_v4 = vld [vmem:[%s15282_s24 + $0x190] sm:$0xff]  ;;  %v10462_v9 = vld [vmem:[%s15282_s24 + $0x198] sm:$0xff] }
 0x608   : > { %11347 = vmatprep.subr.bf16.mxu0 %v12717_v60  ;;  %v10471_v63 = vld [vmem:[%s15282_s24 + $0x1e0] sm:$0xff] }
 0x60a   : > { %11253 = vmatpush1.bf16.msra.mxu1 %v11252_v31  ;;  %v15448_v31 = vld [vmem:[%s15323_s7 + $0x38] sm:$0xff] }
 0x60b   : > { %11349 = vmatpush1.bf16.msra.mxu0 %v11348_v45  ;;  %11254 = vmatprep.subr.bf16.mxu1 %v12717_v60  ;;  %v10452_v45 = vld [vmem:[%s15282_s24 + $0x148] sm:$0xff] }
 0x60c   : > { %11350 = vmatprep.subr.bf16.mxu0 %v12717_v60 }
 0x60e   : > { %11256 = vmatpush1.bf16.msra.mxu1 %v11255_v37  ;;  %v10314_v37 = vld [vmem:[%s15323_s7 + $0x3f] sm:$0xff] }
 0x60f   : > { %11352 = vmatpush1.bf16.msra.mxu0 %v11351_v33  ;;  %11257 = vmatprep.subr.bf16.mxu1 %v12717_v60 }
 0x610   : > { %11353 = vmatprep.subr.bf16.mxu0 %v12717_v60 }
 0x612   : > { %11259 = vmatpush1.bf16.msra.mxu1 %v11258_v11  ;;  %v10652_v11 = vld [vmem:[%s15282_s24 + $0x350] sm:$0xff] }
 0x613   : > { %11355 = vmatpush1.bf16.msra.mxu0 %v11354_v36  ;;  %11260 = vmatprep.subr.bf16.mxu1 %v12717_v60  ;;  %v10653_v36 = vld [vmem:[%s15282_s24 + $0x358] sm:$0xff] }
 0x614   : > { %11356 = vmatprep.subr.bf16.mxu0 %v12717_v60 }
 0x616   : > { %11262 = vmatpush1.bf16.msra.mxu1 %v11261_v34  ;;  %v10456_v34 = vld [vmem:[%s15282_s24 + $0x168] sm:$0xff] }
 0x617   : > { %11358 = vmatpush1.bf16.msra.mxu0 %v11357_v27  ;;  %11263 = vmatprep.subr.bf16.mxu1 %v12717_v60  ;;  %v11375_v27 = vpack.c.bf16 %v10653_v36, %v10652_v11  ;;  %v10466_v11 = vld [vmem:[%s15282_s24 + $0x1b8] sm:$0xff]  ;;  %v11390_v36 = vpack.c.bf16 %v10663_v38, %v10662_v32 }
 0x618   : > { %11359 = vmatprep.subr.bf16.mxu0 %v12717_v60  ;;  %v10673_v32 = vld [vmem:[%s15282_s24 + $0x3f8] sm:$0xff] }
 0x619   : > { %10344 = vmatmul.mubr.msk.f32.vlgmr.msra.gmra.mrb[0].mxu1 %vm13226_vm0, %v10276_v39  ;;  %v11282_v39 = vpack.c.bf16 %v10456_v34, %v10455_v53  ;;  %v10321_v53 = vld [vmem:[%s15323_s7 + $0x77] sm:$0xff] }
 0x61a   : > { %8833 = vmatmul.mubr.f32.vlgmr.msra.gmra.mrb[0].mxu0 %v15398_v46  ;;  %11265 = vmatpush1.bf16.msra.mxu1 %v11264_v47  ;;  %v15490_v47 = vld [vmem:[%s15323_s7 + $0x50] sm:$0xff] }
 0x61b   : > { %7858 = vmatprep.mubr.f32.mxu1 %v10310_v43  ;;  %8837 = vmatprep.mubr.f32.mxu0 %v15402_v23  ;;  %v10325_v38 = vld [vmem:[%s15323_s7 + $0x97] sm:$0xff] }
 0x61c   : > { %11266 = vmatprep.subr.bf16.mxu1 %v12717_v60  ;;  %11361 = vmatpush1.bf16.msra.mxu0 %v11360_v10  ;;  %v10656_v10 = vld [vmem:[%s15282_s24 + $0x370] sm:$0xff] }
 0x61d   : > { %7859 = vmatmul.mubr.f32.gmra.mrb[2].mxu1 %v10277_v1  ;;  %11362 = vmatprep.subr.bf16.mxu0 %v12717_v60  ;;  %v11381_v62 = vpack.c.bf16 %v10657_v2, %v10656_v10  ;;  %v15574_v10 = vld [vmem:[%s15323_s7 + $0x80] sm:$0xff]  ;;  %v10469_v2 = vld [vmem:[%s15282_s24 + $0x1d0] sm:$0xff] }
 0x61e   : > { %8838 = vmatmul.mubr.f32.gmra.mrb[2].mxu0 %v15415_v52  ;;  %10345 = vmatprep.mubr.msk.f32.mxu1 %vm13230_vm1, %v10311_v61 }
 0x61f   : > { %8842 = vmatprep.mubr.f32.mxu0 %v15419_v40  ;;  %11268 = vmatpush1.bf16.msra.mxu1 %v11267_v41  ;;  %v10459_v41 = vld [vmem:[%s15282_s24 + $0x180] sm:$0xff] }
 0x620   : > { %11269 = vmatprep.subr.bf16.mxu1 %v12717_v60  ;;  %11364 = vmatpush1.bf16.msra.mxu0 %v11363_v59  ;;  %v10658_v59 = vld [vmem:[%s15282_s24 + $0x380] sm:$0xff] }
 0x621   : > { %10346 = vmatmul.mubr.msk.f32.gmra.mrb[4].mxu1 %vm13230_vm1, %v15326_v48  ;;  %11365 = vmatprep.subr.bf16.mxu0 %v12717_v60  ;;  %v10451_v48 = vld [vmem:[%s15282_s24 + $0x140] sm:$0xff] }
 0x622   : > { %8843 = vmatmul.mubr.f32.gmra.mrb[4].mxu0 %v15329_v49  ;;  %7868 = vmatprep.mubr.f32.mxu1 %v10312_v58  ;;  %v11276_v33 = vpack.c.bf16 %v10452_v45, %v10451_v48  ;;  %v15532_v48 = vld [vmem:[%s15323_s7 + $0x68] sm:$0xff]  ;;  %v10463_v45 = vld [vmem:[%s15282_s24 + $0x1a0] sm:$0xff] }
 0x623   : > { %8847 = vmatprep.mubr.f32.mxu0 %v15433_v12  ;;  %11271 = vmatpush1.bf16.msra.mxu1 %v11270_v50  ;;  %v15518_v50 = vld [vmem:[%s15323_s7 + $0x60] sm:$0xff] }
 0x624   : > { %11272 = vmatprep.subr.bf16.mxu1 %v12717_v60  ;;  %11367 = vmatpush1.bf16.msra.mxu0 %v11366_v18  ;;  %v11384_v18 = vpack.c.bf16 %v10659_v14, %v10658_v59  ;;  %v15588_v14 = vld [vmem:[%s15323_s7 + $0x88] sm:$0xff] }
 0x625   : > { %7869 = vmatmul.mubr.f32.gmra.mrb[6].mxu1 %v10310_v43  ;;  %11368 = vmatprep.subr.bf16.mxu0 %v12717_v60  ;;  %v10457_v43 = vld [vmem:[%s15282_s24 + $0x170] sm:$0xff] }
 0x626   : > { %8848 = vmatmul.mubr.f32.gmra.mrb[6].mxu0 %v15402_v23  ;;  %10347 = vmatprep.mubr.msk.f32.mxu1 %vm13234_vm2, %v10313_v29  ;;  %v11285_v1 = vpack.c.bf16 %v10458_v22, %v10457_v43  ;;  %v16908_v43 = vld [vmem:[#allocation36_spill] sm:$0xff] }
 0x627   : > { %8852 = vmatprep.mubr.f32.mxu0 %v15448_v31  ;;  %11274 = vmatpush1.bf16.msra.mxu1 %v11273_v7  ;;  %v11291_v7 = vpack.c.bf16 %v10462_v9, %v10461_v4  ;;  %vm16909_vm1 = vnez %v16908_v43  ;;  %v10322_v22 = vld [vmem:[%s15323_s7 + $0x7f] sm:$0xff]  ;;  %v10671_v9 = vld [vmem:[%s15282_s24 + $0x3e8] sm:$0xff] }
 0x628   : > { %11275 = vmatprep.subr.bf16.mxu1 %v12717_v60  ;;  %11370 = vmatpush1.bf16.msra.mxu0 %v11369_v8  ;;  %v10464_v8 = vld [vmem:[%s15282_s24 + $0x1a8] sm:$0xff]  ;;  %v10670_v4 = vld [vmem:[%s15282_s24 + $0x3e0] sm:$0xff] }
 0x629   : > { %10348 = vmatmul.mubr.msk.f32.gmra.mrb[8].mxu1 %vm13234_vm2, %v10311_v61  ;;  %11371 = vmatprep.subr.bf16.mxu0 %v12717_v60  ;;  %v15504_v61 = vld [vmem:[%s15323_s7 + $0x58] sm:$0xff]  ;;  %v11294_v42 = vpack.c.bf16 %v10464_v8, %v10463_v45  ;;  %v11402_v8 = vpack.c.bf16 %v10671_v9, %v10670_v4  ;;  %v10331_v43 = vld [vmem:[%s15323_s7 + $0xc7] sm:$0xff]  ;;  %v15706_v4 = vld [vmem:[%s15323_s7 + $0xf0] sm:$0xff] }
 0x62a   : > { %8853 = vmatmul.mubr.f32.gmra.mrb[8].mxu0 %v15419_v40  ;;  %7878 = vmatprep.mubr.f32.mxu1 %v10314_v37  ;;  %v10474_v45 = vld [vmem:[%s15282_s24 + $0x1f8] sm:$0xff] }
 0x62b   : > { %8857 = vmatprep.mubr.f32.mxu0 %v15462_v35  ;;  %11277 = vmatpush1.bf16.msra.mxu1 %v11276_v33  ;;  %v10320_v33 = vld [vmem:[%s15323_s7 + $0x6f] sm:$0xff]  ;;  %v10337_v9 = vld [vmem:[%s15323_s7 + $0xf7] sm:$0xff] }
 0x62c   : > { %11278 = vmatprep.subr.bf16.mxu1 %v12717_v60  ;;  %11373 = vmatpush1.bf16.msra.mxu0 %v11372_v55  ;;  %v10465_v55 = vld [vmem:[%s15282_s24 + $0x1b0] sm:$0xff] }
 0x62d   : > { %7879 = vmatmul.mubr.f32.gmra.mrb[10].mxu1 %v10312_v58  ;;  %11374 = vmatprep.subr.bf16.mxu0 %v12717_v60  ;;  %v11288_v58 = vpack.c.bf16 %v10460_v26, %v10459_v41  ;;  %v11297_v34 = vpack.c.bf16 %v10466_v11, %v10465_v55  ;;  %v10668_v41 = vld [vmem:[%s15282_s24 + $0x3d0] sm:$0xff]  ;;  %v10669_v26 = vld [vmem:[%s15282_s24 + $0x3d8] sm:$0xff] }
 0x62e   : > { %8858 = vmatmul.mubr.f32.gmra.mrb[10].mxu0 %v15433_v12  ;;  %10349 = vmatprep.mubr.msk.f32.mxu1 %vm13238_vm3, %v10315_v28  ;;  %v16912_v55 = vld [vmem:[#allocation38_spill] sm:$0xff]  ;;  %v10326_v11 = vld [vmem:[%s15323_s7 + $0x9f] sm:$0xff] }
 0x62f   : > { %8862 = vmatprep.mubr.f32.mxu0 %v15476_v6  ;;  %11280 = vmatpush1.bf16.msra.mxu1 %v11279_v5  ;;  %v10665_v5 = vld [vmem:[%s15282_s24 + $0x3b8] sm:$0xff] }
 0x630   : > { %11281 = vmatprep.subr.bf16.mxu1 %v12717_v60  ;;  %11376 = vmatpush1.bf16.msra.mxu0 %v11375_v27  ;;  %v15560_v27 = vld [vmem:[%s15323_s7 + $0x78] sm:$0xff] }
 0x631   : > { %10350 = vmatmul.mubr.msk.f32.gmra.mrb[12].mxu1 %vm13238_vm3, %v10313_v29  ;;  %11377 = vmatprep.subr.bf16.mxu0 %v12717_v60  ;;  %v10319_v29 = vld [vmem:[%s15323_s7 + $0x67] sm:$0xff]  ;;  %vm16913_vm3 = vnez %v16912_v55  ;;  %v10624_v55 = vld [vmem:[%s15323_s7 + $0x99] sm:$0xff] }
 0x632   : > { %8863 = vmatmul.mubr.f32.gmra.mrb[12].mxu0 %v15448_v31  ;;  %7888 = vmatprep.mubr.f32.mxu1 %v10316_v24 }
 0x633   : > { %8867 = vmatprep.mubr.f32.mxu0 %v15490_v47  ;;  %11283 = vmatpush1.bf16.msra.mxu1 %v11282_v39  ;;  %v10667_v39 = vld [vmem:[%s15282_s24 + $0x3c8] sm:$0xff] }
 0x634   : > { %11284 = vmatprep.subr.bf16.mxu1 %v12717_v60  ;;  %11379 = vmatpush1.bf16.msra.mxu0 %v11378_v51  ;;  %v11300_v51 = vpack.c.bf16 %v10468_v0, %v10467_v57  ;;  %v10329_v57 = vld [vmem:[%s15323_s7 + $0xb7] sm:$0xff] }
 0x635   : > { %7889 = vmatmul.mubr.f32.gmra.mrb[14].mxu1 %v10314_v37  ;;  %11380 = vmatprep.subr.bf16.mxu0 %v12717_v60  ;;  %v16906_v37 = vld [vmem:[#allocation35_spill] sm:$0xff] }
 0x636   : > { %8868 = vmatmul.mubr.f32.gmra.mrb[14].mxu0 %v15462_v35  ;;  %10351 = vmatprep.mubr.msk.f32.mxu1 %vm13242_vm4, %v10317_v3  ;;  %vm16907_vm0 = vnez %v16906_v37  ;;  %v15650_v0 = vld [vmem:[%s15323_s7 + $0xb8] sm:$0xff] }
 0x637   : > { %8872 = vmatprep.mubr.f32.mxu0 %v15504_v61  ;;  %11286 = vmatpush1.bf16.msra.mxu1 %v11285_v1 }
 0x638   : > { %11287 = vmatprep.subr.bf16.mxu1 %v12717_v60  ;;  %11382 = vmatpush1.bf16.msra.mxu0 %v11381_v62  ;;  %v10323_v62 = vld [vmem:[%s15323_s7 + $0x87] sm:$0xff] }
 0x639   : > { %10352 = vmatmul.mubr.msk.f32.gmra.mrb[16].mxu1 %vm13242_vm4, %v10315_v28  ;;  %11383 = vmatprep.subr.bf16.mxu0 %v12717_v60  ;;  %v10664_v28 = vld [vmem:[%s15282_s24 + $0x3b0] sm:$0xff] }
 0x63a   : > { %8873 = vmatmul.mubr.f32.gmra.mrb[16].mxu0 %v15476_v6  ;;  %7898 = vmatprep.mubr.f32.mxu1 %v10318_v44  ;;  %v11393_v30 = vpack.c.bf16 %v10665_v5, %v10664_v28  ;;  %v15634_v28 = vld [vmem:[%s15323_s7 + $0xa8] sm:$0xff]  ;;  %v16914_v5 = vld [vmem:[#allocation39_spill] sm:$0xff] }
 0x63b   : > { %8877 = vmatprep.mubr.f32.mxu0 %v15518_v50  ;;  %11289 = vmatpush1.bf16.msra.mxu1 %v11288_v58  ;;  %v11399_v58 = vpack.c.bf16 %v10669_v26, %v10668_v41  ;;  %vm16915_vm4 = vnez %v16914_v5  ;;  %v15682_v41 = vld [vmem:[%s15323_s7 + $0xd8] sm:$0xff] }
 0x63c   : > { %11290 = vmatprep.subr.bf16.mxu1 %v12717_v60  ;;  %11385 = vmatpush1.bf16.msra.mxu0 %v11384_v18  ;;  %v16910_v18 = vld [vmem:[#allocation37_spill] sm:$0xff]  ;;  %v16920_v26 = vld [vmem:[#allocation42_spill] sm:$0xff] }
 0x63d   : > { %7899 = vmatmul.mubr.f32.gmra.mrb[18].mxu1 %v10316_v24  ;;  %11386 = vmatprep.subr.bf16.mxu0 %v12717_v60  ;;  %v10666_v24 = vld [vmem:[%s15282_s24 + $0x3c0] sm:$0xff]  ;;  %vm16911_vm2 = vnez %v16910_v18  ;;  %vm16921_vm11 = vnez %v16920_v26  ;;  %v15714_v18 = vld [vmem:[%s15323_s7 + $0xf8] sm:$0xff] }
 0x63e   : > { %8878 = vmatmul.mubr.f32.gmra.mrb[18].mxu0 %v15490_v47  ;;  %10353 = vmatprep.mubr.msk.f32.mxu1 %vm16907_vm0, %v10319_v29  ;;  %v11396_v1 = vpack.c.bf16 %v10667_v39, %v10666_v24  ;;  %v10330_v24 = vld [vmem:[%s15323_s7 + $0xbf] sm:$0xff] }
 0x63f   : > { %8882 = vmatprep.mubr.f32.mxu0 %v15532_v48  ;;  %11292 = vmatpush1.bf16.msra.mxu1 %v11291_v7  ;;  %v10473_v7 = vld [vmem:[%s15282_s24 + $0x1f0] sm:$0xff]  ;;  %v15658_v39 = vld [vmem:[%s15323_s7 + $0xc0] sm:$0xff] }
 0x640   : > { %11293 = vmatprep.subr.bf16.mxu1 %v12717_v60  ;;  %11388 = vmatpush1.bf16.msra.mxu0 %v11387_v56  ;;  %v10672_v56 = vld [vmem:[%s15282_s24 + $0x3f0] sm:$0xff]  ;;  %v11309_v37 = vpack.c.bf16 %v10474_v45, %v10473_v7  ;;  %v15730_v7 = vld [vmem:[%s15323_s7 + $0x108] sm:$0xff] }
 0x641   : > { %10354 = vmatmul.mubr.msk.f32.gmra.mrb[20].mxu1 %vm16907_vm0, %v10317_v3  ;;  %11389 = vmatprep.subr.bf16.mxu0 %v12717_v60  ;;  %v10470_v3 = vld [vmem:[%s15282_s24 + $0x1d8] sm:$0xff]  ;;  %v15738_v45 = vld [vmem:[%s15323_s7 + $0x110] sm:$0xff]  ;;  %v16946_v26 = vld [vmem:[#allocation52_spill] sm:$0xff] }
 0x642   : > { %8883 = vmatmul.mubr.f32.gmra.mrb[20].mxu0 %v15504_v61  ;;  %7908 = vmatprep.mubr.f32.mxu1 %v10320_v33  ;;  %v11303_v59 = vpack.c.bf16 %v10470_v3, %v10469_v2  ;;  %v10332_v2 = vld [vmem:[%s15323_s7 + $0xcf] sm:$0xff] }
 0x643   : > { %8887 = vmatprep.mubr.f32.mxu0 %v15546_v25  ;;  %11295 = vmatpush1.bf16.msra.mxu1 %v11294_v42  ;;  %v11405_v42 = vpack.c.bf16 %v10673_v32, %v10672_v56  ;;  %v15674_v3 = vld [vmem:[%s15323_s7 + $0xd0] sm:$0xff]  ;;  %v10609_v32 = vld [vmem:[%s15323_s7 + $0x21] sm:$0xff] }
 0x644   : > { %11296 = vmatprep.subr.bf16.mxu1 %v12717_v60  ;;  %11391 = vmatpush1.bf16.msra.mxu0 %v11390_v36  ;;  %v15626_v36 = vld [vmem:[%s15323_s7 + $0xa0] sm:$0xff]  ;;  %v10575_v56 = vld [vmem:[%s15323_s7 + $0x9] sm:$0xff] }
 0x645   : > { %7909 = vmatmul.mubr.f32.gmra.mrb[22].mxu1 %v10318_v44  ;;  %11392 = vmatprep.subr.bf16.mxu0 %v12717_v60  ;;  %v10472_v44 = vld [vmem:[%s15282_s24 + $0x1e8] sm:$0xff] }
 0x646   : > { %8888 = vmatmul.mubr.f32.gmra.mrb[22].mxu0 %v15518_v50  ;;  %10355 = vmatprep.mubr.msk.f32.mxu1 %vm16909_vm1, %v10321_v53  ;;  %v11306_v54 = vpack.c.bf16 %v10472_v44, %v10471_v63  ;;  %v10335_v63 = vld [vmem:[%s15323_s7 + $0xe7] sm:$0xff] }
 0x647   : > { %8892 = vmatprep.mubr.f32.mxu0 %v15560_v27  ;;  %11298 = vmatpush1.bf16.msra.mxu1 %v11297_v34  ;;  %v15642_v34 = vld [vmem:[%s15323_s7 + $0xb0] sm:$0xff]  ;;  %v15698_v44 = vld [vmem:[%s15323_s7 + $0xe8] sm:$0xff] }
 0x648   : > { %11299 = vmatprep.subr.bf16.mxu1 %v12717_v60  ;;  %11394 = vmatpush1.bf16.msra.mxu0 %v11393_v30  ;;  %v16916_v30 = vld [vmem:[#allocation40_spill] sm:$0xff] }
 0x649   : > { %10356 = vmatmul.mubr.msk.f32.gmra.mrb[24].mxu1 %vm16909_vm1, %v10319_v29  ;;  %11395 = vmatprep.subr.bf16.mxu0 %v12717_v60  ;;  %v15602_v29 = vld [vmem:[%s15323_s7 + $0x90] sm:$0xff]  ;;  %vm16917_vm5 = vnez %v16916_v30 }
 0x64a   : > { %8893 = vmatmul.mubr.f32.gmra.mrb[24].mxu0 %v15532_v48  ;;  %7918 = vmatprep.mubr.f32.mxu1 %v10322_v22 }
 0x64b   : > { %8897 = vmatprep.mubr.f32.mxu0 %v15574_v10  ;;  %11301 = vmatpush1.bf16.msra.mxu1 %v11300_v51  ;;  %v16918_v51 = vld [vmem:[#allocation41_spill] sm:$0xff] }
 0x64c   : > { %11302 = vmatprep.subr.bf16.mxu1 %v12717_v60  ;;  %11397 = vmatpush1.bf16.msra.mxu0 %v11396_v1  ;;  %vm16919_vm7 = vnez %v16918_v51  ;;  %v10333_v1 = vld [vmem:[%s15323_s7 + $0xd7] sm:$0xff] }
 0x64d   : > { %7919 = vmatmul.mubr.f32.gmra.mrb[26].mxu1 %v10320_v33  ;;  %11398 = vmatprep.subr.bf16.mxu0 %v12717_v60  ;;  %v15616_v33 = vld [vmem:[%s15323_s7 + $0x98] sm:$0xff] }
 0x64e   : > { %8898 = vmatmul.mubr.f32.gmra.mrb[26].mxu0 %v15546_v25  ;;  %10357 = vmatprep.mubr.msk.f32.mxu1 %vm16911_vm2, %v10323_v62 }
 0x64f   : > { %8902 = vmatprep.mubr.f32.mxu0 %v15588_v14  ;;  %11304 = vmatpush1.bf16.msra.mxu1 %v11303_v59  ;;  %v15690_v59 = vld [vmem:[%s15323_s7 + $0xe0] sm:$0xff] }
 0x650   : > { %11305 = vmatprep.subr.bf16.mxu1 %v12717_v60  ;;  %11400 = vmatpush1.bf16.msra.mxu0 %v11399_v58  ;;  %v10336_v58 = vld [vmem:[%s15323_s7 + $0xef] sm:$0xff] }
 0x651   : > { %10358 = vmatmul.mubr.msk.f32.gmra.mrb[28].mxu1 %vm16911_vm2, %v10321_v53  ;;  %11401 = vmatprep.subr.bf16.mxu0 %v12717_v60  ;;  %v10328_v53 = vld [vmem:[%s15323_s7 + $0xaf] sm:$0xff] }
 0x652   : > { %8903 = vmatmul.mubr.f32.gmra.mrb[28].mxu0 %v15560_v27  ;;  %7928 = vmatprep.mubr.f32.mxu1 %v10324_v13 }
 0x653   : > { %8907 = vmatprep.mubr.f32.mxu0 %v15602_v29  ;;  %11307 = vmatpush1.bf16.msra.mxu1 %v11306_v54  ;;  %v10339_v54 = vld [vmem:[%s15323_s7 + $0x107] sm:$0xff] }
 0x654   : > { %11308 = vmatprep.subr.bf16.mxu1 %v12717_v60  ;;  %11403 = vmatpush1.bf16.msra.mxu0 %v11402_v8  ;;  %v10608_v8 = vld [vmem:[%s15323_s7 + $0x19] sm:$0xff] }
 0x655   : > { %7929 = vmatmul.mubr.f32.gmra.mrb[30].mxu1 %v10322_v22  ;;  %11404 = vmatprep.subr.bf16.mxu0 %v12717_v60  ;;  %v10327_v60 = vld [vmem:[%s15323_s7 + $0xa7] sm:$0xff] }
 0x656   : > { %8908 = vmatmul.mubr.f32.gmra.mrb[30].mxu0 %v15574_v10  ;;  %10359 = vmatprep.mubr.msk.f32.mxu1 %vm16913_vm3, %v10325_v38  ;;  %v15666_v22 = vld [vmem:[%s15323_s7 + $0xc8] sm:$0xff] }
 0x657   : > { %8912 = vmatprep.mubr.f32.mxu0 %v15616_v33  ;;  %11310 = vmatpush1.bf16.msra.mxu1 %v11309_v37  ;;  %v10610_v37 = vld [vmem:[%s15323_s7 + $0x29] sm:$0xff] }
 0x658   : > { %11406 = vmatpush1.bf16.msra.mxu0 %v11405_v42  ;;  %v10611_v42 = vld [vmem:[%s15323_s7 + $0x31] sm:$0xff] }
 0x659   : > { %10360 = vmatmul.mubr.msk.f32.gmra.mrb[32].mxu1 %vm16913_vm3, %v10323_v62  ;;  %v10334_v62 = vld [vmem:[%s15323_s7 + $0xdf] sm:$0xff] }
 0x65a   : > { %8913 = vmatmul.mubr.f32.gmra.mrb[32].mxu0 %v15588_v14  ;;  %7938 = vmatprep.mubr.f32.mxu1 %v10326_v11 }
 0x65b   : > { %8917 = vmatprep.mubr.f32.mxu0 %v15626_v36 }
 0x65d   : > { %7939 = vmatmul.mubr.f32.gmra.mrb[34].mxu1 %v10324_v13  ;;  %v15722_v13 = vld [vmem:[%s15323_s7 + $0x100] sm:$0xff] }
 0x65e   : > { %8918 = vmatmul.mubr.f32.gmra.mrb[34].mxu0 %v15602_v29  ;;  %10361 = vmatprep.mubr.msk.f32.mxu1 %vm16915_vm4, %v10327_v60 }
 0x65f   : > { %8922 = vmatprep.mubr.f32.mxu0 %v15634_v28 }
 0x661   : > { %10362 = vmatmul.mubr.msk.f32.gmra.mrb[36].mxu1 %vm16915_vm4, %v10325_v38  ;;  %v10576_v38 = vld [vmem:[%s15323_s7 + $0x11] sm:$0xff] }
 0x662   : > { %8923 = vmatmul.mubr.f32.gmra.mrb[36].mxu0 %v15616_v33  ;;  %7948 = vmatprep.mubr.f32.mxu1 %v10328_v53 }
 0x663   : > { %8927 = vmatprep.mubr.f32.mxu0 %v15642_v34 }
 0x665   : > { %7949 = vmatmul.mubr.f32.gmra.mrb[38].mxu1 %v10326_v11  ;;  %v10626_v11 = vld [vmem:[%s15323_s7 + $0xa9] sm:$0xff] }
 0x666   : > { %8928 = vmatmul.mubr.f32.gmra.mrb[38].mxu0 %v15626_v36  ;;  %10363 = vmatprep.mubr.msk.f32.mxu1 %vm16917_vm5, %v10329_v57 }
 0x667   : > { %8932 = vmatprep.mubr.f32.mxu0 %v15650_v0 }
 0x669   : > { %10364 = vmatmul.mubr.msk.f32.gmra.mrb[40].mxu1 %vm16917_vm5, %v10327_v60  ;;  %v10628_v60 = vld [vmem:[%s15323_s7 + $0xb9] sm:$0xff] }
 0x66a   : > { %8933 = vmatmul.mubr.f32.gmra.mrb[40].mxu0 %v15634_v28  ;;  %7958 = vmatprep.mubr.f32.mxu1 %v10330_v24 }
 0x66b   : > { %8937 = vmatprep.mubr.f32.mxu0 %v15658_v39 }
 0x66d   : > { %7959 = vmatmul.mubr.f32.gmra.mrb[42].mxu1 %v10328_v53 }
 0x66e   : > { %8938 = vmatmul.mubr.f32.gmra.mrb[42].mxu0 %v15642_v34  ;;  %10365 = vmatprep.mubr.msk.f32.mxu1 %vm16919_vm7, %v10331_v43 }
 0x66f   : > { %8942 = vmatprep.mubr.f32.mxu0 %v15666_v22 }
 0x671   : > { %10366 = vmatmul.mubr.msk.f32.gmra.mrb[44].mxu1 %vm16919_vm7, %v10329_v57  ;;  %v10631_v57 = vld [vmem:[%s15323_s7 + $0xd1] sm:$0xff] }
 0x672   : > { %8943 = vmatmul.mubr.f32.gmra.mrb[44].mxu0 %v15650_v0  ;;  %7968 = vmatprep.mubr.f32.mxu1 %v10332_v2 }
 0x673   : > { %8947 = vmatprep.mubr.f32.mxu0 %v15674_v3 }
 0x675   : > { %7969 = vmatmul.mubr.f32.gmra.mrb[46].mxu1 %v10330_v24  ;;  %v16944_v24 = vld [vmem:[#allocation51_spill] sm:$0xff] }
 0x676   : > { %8948 = vmatmul.mubr.f32.gmra.mrb[46].mxu0 %v15658_v39  ;;  %10367 = vmatprep.mubr.msk.f32.mxu1 %vm16921_vm11, %v10333_v1  ;;  %vm16945_vm7 = vnez %v16944_v24 }
 0x677   : > { %8952 = vmatprep.mubr.f32.mxu0 %v15682_v41 }
 0x679   : > { %10368 = vmatmul.mubr.msk.f32.gmra.mrb[48].mxu1 %vm16921_vm11, %v10331_v43  ;;  %v10632_v43 = vld [vmem:[%s15323_s7 + $0xd9] sm:$0xff]  ;;  %vm16947_vm11 = vnez %v16946_v26 }
 0x67a   : > { %8953 = vmatmul.mubr.f32.gmra.mrb[48].mxu0 %v15666_v22  ;;  %7978 = vmatprep.mubr.f32.mxu1 %v10334_v62 }
 0x67b   : > { %8957 = vmatprep.mubr.f32.mxu0 %v15690_v59 }
 0x67d   : > { %7979 = vmatmul.mubr.f32.gmra.mrb[50].mxu1 %v10332_v2  ;;  %v10633_v2 = vld [vmem:[%s15323_s7 + $0xe1] sm:$0xff] }
 0x67e   : > { %8958 = vmatmul.mubr.f32.gmra.mrb[50].mxu0 %v15674_v3  ;;  %10369 = vmatprep.mubr.msk.f32.mxu1 %vm16922_vm10, %v10335_v63 }
 0x67f   : > { %8962 = vmatprep.mubr.f32.mxu0 %v15698_v44 }
 0x681   : > { %10370 = vmatmul.mubr.msk.f32.gmra.mrb[52].mxu1 %vm16922_vm10, %v10333_v1 }
 0x682   : > { %8963 = vmatmul.mubr.f32.gmra.mrb[52].mxu0 %v15682_v41  ;;  %7988 = vmatprep.mubr.f32.mxu1 %v10336_v58 }
 0x683   : > { %8967 = vmatprep.mubr.f32.mxu0 %v15706_v4 }
 0x685   : > { %7989 = vmatmul.mubr.f32.gmra.mrb[54].mxu1 %v10334_v62  ;;  %v10634_v62 = vld [vmem:[%s15323_s7 + $0xe9] sm:$0xff] }
 0x686   : > { %8968 = vmatmul.mubr.f32.gmra.mrb[54].mxu0 %v15690_v59  ;;  %10371 = vmatprep.mubr.msk.f32.mxu1 %vm16923_vm15, %v10337_v9 }
 0x687   : > { %8972 = vmatprep.mubr.f32.mxu0 %v15714_v18 }
 0x689   : > { %10372 = vmatmul.mubr.msk.f32.gmra.mrb[56].mxu1 %vm16923_vm15, %v10335_v63 }
 0x68a   : > { %8973 = vmatmul.mubr.f32.gmra.mrb[56].mxu0 %v15698_v44  ;;  %7998 = vmatprep.mubr.f32.mxu1 %v10338_v15 }
 0x68b   : > { %8977 = vmatprep.mubr.f32.mxu0 %v15722_v13 }
 0x68d   : > { %7999 = vmatmul.mubr.f32.gmra.mrb[58].mxu1 %v10336_v58  ;;  %v10635_v58 = vld [vmem:[%s15323_s7 + $0xf1] sm:$0xff] }
 0x68e   : > { %8978 = vmatmul.mubr.f32.gmra.mrb[58].mxu0 %v15706_v4  ;;  %10373 = vmatprep.mubr.msk.f32.mxu1 %vm16924_vm9, %v10339_v54  ;;  %v10636_v54 = vld [vmem:[%s15323_s7 + $0xf9] sm:$0xff] }
 0x68f   : > { %8982 = vmatprep.mubr.f32.mxu0 %v15730_v7 }
 0x691   : > { %10374 = vmatmul.mubr.msk.f32.gmra.mrb[60].mxu1 %vm16924_vm9, %v10337_v9 }
 0x692   : > { %8983 = vmatmul.mubr.f32.gmra.mrb[60].mxu0 %v15714_v18  ;;  %8008 = vmatprep.mubr.f32.mxu1 %v10340_v16 }
 0x693   : > { %8987 = vmatprep.mubr.f32.mxu0 %v15738_v45 }
 0x695   : > { %8009 = vmatmul.mubr.f32.gmra.mrb[62].mxu1 %v10338_v15  ;;  %v16948_v15 = vld [vmem:[#allocation53_spill] sm:$0xff] }
 0x696   : > { %8988 = vmatmul.mubr.f32.gmra.mrb[62].mxu0 %v15722_v13  ;;  %8277 = vmatprep.mubr.f32.mxu1 %v15329_v49  ;;  %vm16949_vm10 = vnez %v16948_v15 }
 0x697   : > { %9384 = vmatprep.mubr.f32.mxu0 %v10608_v8 }
 0x699   : > { %8278 = vmatmul.mubr.f32.vlgmr.msra.gmra.mrb[64].mxu1 %v15398_v46  ;;  %v10612_v46 = vld [vmem:[%s15323_s7 + $0x39] sm:$0xff] }
 0x69a   : > { %9385 = vmatmul.mubr.f32.vlgmr.msra.gmra.mrb[0].mxu0 %v10575_v56  ;;  %8282 = vmatprep.mubr.f32.mxu1 %v15402_v23 }
 0x69b   : > { %10674 = vmatprep.mubr.msk.f32.mxu0 %vm16926_vm8, %v10609_v32 }
 0x69d   : > { %8283 = vmatmul.mubr.f32.gmra.mrb[66].mxu1 %v15415_v52  ;;  %v10613_v52 = vld [vmem:[%s15323_s7 + $0x41] sm:$0xff] }
 0x69e   : > { %10675 = vmatmul.mubr.msk.f32.gmra.mrb[2].mxu0 %vm16926_vm8, %v10576_v38  ;;  %8287 = vmatprep.mubr.f32.mxu1 %v15419_v40 }
 0x69f   : > { %9394 = vmatprep.mubr.f32.mxu0 %v10610_v37 }
 0x6a1   : > { %8288 = vmatmul.mubr.f32.gmra.mrb[68].mxu1 %v15329_v49  ;;  %v10614_v49 = vld [vmem:[%s15323_s7 + $0x49] sm:$0xff] }
 0x6a2   : > { %9395 = vmatmul.mubr.f32.gmra.mrb[4].mxu0 %v10608_v8  ;;  %8292 = vmatprep.mubr.f32.mxu1 %v15433_v12  ;;  %v10637_v8 = vld [vmem:[%s15323_s7 + $0x101] sm:$0xff] }
 0x6a3   : > { %10676 = vmatprep.mubr.msk.f32.mxu0 %vm16927_vm13, %v10611_v42 }
 0x6a5   : > { %8293 = vmatmul.mubr.f32.gmra.mrb[70].mxu1 %v15402_v23  ;;  %v10616_v23 = vld [vmem:[%s15323_s7 + $0x59] sm:$0xff] }
 0x6a6   : > { %10677 = vmatmul.mubr.msk.f32.gmra.mrb[6].mxu0 %vm16927_vm13, %v10609_v32  ;;  %8297 = vmatprep.mubr.f32.mxu1 %v15448_v31  ;;  %v16950_v32 = vld [vmem:[#allocation54_spill] sm:$0xff] }
 0x6a7   : > { %9404 = vmatprep.mubr.f32.mxu0 %v10612_v46  ;;  %vm16951_vm15 = vnez %v16950_v32 }
 0x6a9   : > { %8298 = vmatmul.mubr.f32.gmra.mrb[72].mxu1 %v15419_v40  ;;  %v16930_v40 = vld [vmem:[#allocation44_spill] sm:$0xff] }
 0x6aa   : > { %9405 = vmatmul.mubr.f32.gmra.mrb[8].mxu0 %v10610_v37  ;;  %8302 = vmatprep.mubr.f32.mxu1 %v15462_v35  ;;  %vm16931_vm12 = vnez %v16930_v40 }
 0x6ab   : > { %10678 = vmatprep.mubr.msk.f32.mxu0 %vm16928_vm6, %v10613_v52 }
 0x6ad   : > { %8303 = vmatmul.mubr.f32.gmra.mrb[74].mxu1 %v15433_v12  ;;  %v10618_v12 = vld [vmem:[%s15323_s7 + $0x69] sm:$0xff] }
 0x6ae   : > { %10679 = vmatmul.mubr.msk.f32.gmra.mrb[10].mxu0 %vm16928_vm6, %v10611_v42  ;;  %8307 = vmatprep.mubr.f32.mxu1 %v15476_v6 }
 0x6af   : > { %9414 = vmatprep.mubr.f32.mxu0 %v10614_v49 }
 0x6b1   : > { %8308 = vmatmul.mubr.f32.gmra.mrb[76].mxu1 %v15448_v31  ;;  %v16932_v31 = vld [vmem:[#allocation45_spill] sm:$0xff] }
 0x6b2   : > { %9415 = vmatmul.mubr.f32.gmra.mrb[12].mxu0 %v10612_v46  ;;  %8312 = vmatprep.mubr.f32.mxu1 %v15490_v47  ;;  %vm16933_vm0 = vnez %v16932_v31  ;;  %v16952_v46 = vld [vmem:[#allocation55_spill] sm:$0xff] }
 0x6b3   : > { %10680 = vmatprep.mubr.msk.f32.mxu0 %vm16929_vm14, %v10615_v19  ;;  %vm16953_vm9 = vnez %v16952_v46 }
 0x6b5   : > { %8313 = vmatmul.mubr.f32.gmra.mrb[78].mxu1 %v15462_v35  ;;  %v10620_v35 = vld [vmem:[%s15323_s7 + $0x79] sm:$0xff] }
 0x6b6   : > { %10681 = vmatmul.mubr.msk.f32.gmra.mrb[14].mxu0 %vm16929_vm14, %v10613_v52  ;;  %8317 = vmatprep.mubr.f32.mxu1 %v15504_v61 }
 0x6b7   : > { %9424 = vmatprep.mubr.f32.mxu0 %v10616_v23 }
 0x6b9   : > { %8318 = vmatmul.mubr.f32.gmra.mrb[80].mxu1 %v15476_v6  ;;  %v10621_v6 = vld [vmem:[%s15323_s7 + $0x81] sm:$0xff] }
 0x6ba   : > { %9425 = vmatmul.mubr.f32.gmra.mrb[16].mxu0 %v10614_v49  ;;  %8322 = vmatprep.mubr.f32.mxu1 %v15518_v50 }
 0x6bb   : > { %10682 = vmatprep.mubr.msk.f32.mxu0 %vm16931_vm12, %v10617_v20 }
 0x6bd   : > { %8323 = vmatmul.mubr.f32.gmra.mrb[82].mxu1 %v15490_v47  ;;  %v16934_v47 = vld [vmem:[#allocation46_spill] sm:$0xff] }
 0x6be   : > { %10683 = vmatmul.mubr.msk.f32.gmra.mrb[18].mxu0 %vm16931_vm12, %v10615_v19  ;;  %8327 = vmatprep.mubr.f32.mxu1 %v15532_v48  ;;  %vm16935_vm1 = vnez %v16934_v47 }
 0x6bf   : > { %9434 = vmatprep.mubr.f32.mxu0 %v10618_v12 }
 0x6c1   : > { %8328 = vmatmul.mubr.f32.gmra.mrb[84].mxu1 %v15504_v61  ;;  %v10622_v61 = vld [vmem:[%s15323_s7 + $0x89] sm:$0xff] }
 0x6c2   : > { %9435 = vmatmul.mubr.f32.gmra.mrb[20].mxu0 %v10616_v23  ;;  %8332 = vmatprep.mubr.f32.mxu1 %v15546_v25 }
 0x6c3   : > { %10684 = vmatprep.mubr.msk.f32.mxu0 %vm16933_vm0, %v10619_v21 }
 0x6c5   : > { %8333 = vmatmul.mubr.f32.gmra.mrb[86].mxu1 %v15518_v50  ;;  %v10623_v50 = vld [vmem:[%s15323_s7 + $0x91] sm:$0xff] }
 0x6c6   : > { %10685 = vmatmul.mubr.msk.f32.gmra.mrb[22].mxu0 %vm16933_vm0, %v10617_v20  ;;  %8337 = vmatprep.mubr.f32.mxu1 %v15560_v27 }
 0x6c7   : > { %9444 = vmatprep.mubr.f32.mxu0 %v10620_v35 }
 0x6c9   : > { %8338 = vmatmul.mubr.f32.gmra.mrb[88].mxu1 %v15532_v48  ;;  %v16936_v48 = vld [vmem:[#allocation47_spill] sm:$0xff] }
 0x6ca   : > { %9445 = vmatmul.mubr.f32.gmra.mrb[24].mxu0 %v10618_v12  ;;  %8342 = vmatprep.mubr.f32.mxu1 %v15574_v10  ;;  %vm16937_vm2 = vnez %v16936_v48 }
 0x6cb   : > { %10686 = vmatprep.mubr.msk.f32.mxu0 %vm16935_vm1, %v10621_v6 }
 0x6cd   : > { %8343 = vmatmul.mubr.f32.gmra.mrb[90].mxu1 %v15546_v25  ;;  %v10625_v25 = vld [vmem:[%s15323_s7 + $0xa1] sm:$0xff] }
 0x6ce   : > { %10687 = vmatmul.mubr.msk.f32.gmra.mrb[26].mxu0 %vm16935_vm1, %v10619_v21  ;;  %8347 = vmatprep.mubr.f32.mxu1 %v15588_v14 }
 0x6cf   : > { %9454 = vmatprep.mubr.f32.mxu0 %v10622_v61 }
 0x6d1   : > { %8348 = vmatmul.mubr.f32.gmra.mrb[92].mxu1 %v15560_v27  ;;  %v16938_v27 = vld [vmem:[#allocation48_spill] sm:$0xff] }
 0x6d2   : > { %9455 = vmatmul.mubr.f32.gmra.mrb[28].mxu0 %v10620_v35  ;;  %8352 = vmatprep.mubr.f32.mxu1 %v15602_v29  ;;  %vm16939_vm3 = vnez %v16938_v27 }
 0x6d3   : > { %10688 = vmatprep.mubr.msk.f32.mxu0 %vm16937_vm2, %v10623_v50 }
 0x6d5   : > { %8353 = vmatmul.mubr.f32.gmra.mrb[94].mxu1 %v15574_v10  ;;  %v10627_v10 = vld [vmem:[%s15323_s7 + $0xb1] sm:$0xff] }
 0x6d6   : > { %10689 = vmatmul.mubr.msk.f32.gmra.mrb[30].mxu0 %vm16937_vm2, %v10621_v6  ;;  %8357 = vmatprep.mubr.f32.mxu1 %v15616_v33 }
 0x6d7   : > { %9464 = vmatprep.mubr.f32.mxu0 %v10624_v55 }
 0x6d9   : > { %8358 = vmatmul.mubr.f32.gmra.mrb[96].mxu1 %v15588_v14  ;;  %v16940_v14 = vld [vmem:[#allocation49_spill] sm:$0xff] }
 0x6da   : > { %9465 = vmatmul.mubr.f32.gmra.mrb[32].mxu0 %v10622_v61  ;;  %8362 = vmatprep.mubr.f32.mxu1 %v15626_v36  ;;  %vm16941_vm4 = vnez %v16940_v14 }
 0x6db   : > { %10690 = vmatprep.mubr.msk.f32.mxu0 %vm16939_vm3, %v10625_v25 }
 0x6dd   : > { %8363 = vmatmul.mubr.f32.gmra.mrb[98].mxu1 %v15602_v29  ;;  %v10629_v29 = vld [vmem:[%s15323_s7 + $0xc1] sm:$0xff] }
 0x6de   : > { %10691 = vmatmul.mubr.msk.f32.gmra.mrb[34].mxu0 %vm16939_vm3, %v10623_v50  ;;  %8367 = vmatprep.mubr.f32.mxu1 %v15634_v28 }
 0x6df   : > { %9474 = vmatprep.mubr.f32.mxu0 %v10626_v11 }
 0x6e1   : > { %8368 = vmatmul.mubr.f32.gmra.mrb[100].mxu1 %v15616_v33  ;;  %v16942_v33 = vld [vmem:[#allocation50_spill] sm:$0xff] }
 0x6e2   : > { %9475 = vmatmul.mubr.f32.gmra.mrb[36].mxu0 %v10624_v55  ;;  %8372 = vmatprep.mubr.f32.mxu1 %v15642_v34  ;;  %vm16943_vm5 = vnez %v16942_v33 }
 0x6e3   : > { %10692 = vmatprep.mubr.msk.f32.mxu0 %vm16941_vm4, %v10627_v10 }
 0x6e5   : > { %8373 = vmatmul.mubr.f32.gmra.mrb[102].mxu1 %v15626_v36  ;;  %v10630_v36 = vld [vmem:[%s15323_s7 + $0xc9] sm:$0xff] }
 0x6e6   : > { %10693 = vmatmul.mubr.msk.f32.gmra.mrb[38].mxu0 %vm16941_vm4, %v10625_v25  ;;  %8377 = vmatprep.mubr.f32.mxu1 %v15650_v0 }
 0x6e7   : > { %9484 = vmatprep.mubr.f32.mxu0 %v10628_v60 }
 0x6e9   : > { %8378 = vmatmul.mubr.f32.gmra.mrb[104].mxu1 %v15634_v28 }
 0x6ea   : > { %9485 = vmatmul.mubr.f32.gmra.mrb[40].mxu0 %v10626_v11  ;;  %8382 = vmatprep.mubr.f32.mxu1 %v15658_v39 }
 0x6eb   : > { %10694 = vmatprep.mubr.msk.f32.mxu0 %vm16943_vm5, %v10629_v29 }
 0x6ec   : > { %v15854_v5 = vpop.f32.mrb[0].mxu1 }
 0x6ed   : > { %v7857_v53 = vpop.f32.mrb[1].mxu1  ;;  %8383 = vmatmul.mubr.f32.gmra.mrb[106].mxu1 %v15642_v34 }
 0x6ee   : > { %10695 = vmatmul.mubr.msk.f32.gmra.mrb[42].mxu0 %vm16943_vm5, %v10627_v10  ;;  %8387 = vmatprep.mubr.f32.mxu1 %v15666_v22 }
 0x6ef   : > { %9494 = vmatprep.mubr.f32.mxu0 %v10630_v36 }
 0x6f0   : > { %v15861_v28 = vpop.f32.mrb[2].mxu1 }
 0x6f1   : > { %v7862_v30 = vpop.f32.mrb[3].mxu1  ;;  %8388 = vmatmul.mubr.f32.gmra.mrb[108].mxu1 %v15650_v0 }
 0x6f2   : > { %9495 = vmatmul.mubr.f32.gmra.mrb[44].mxu0 %v10628_v60  ;;  %8392 = vmatprep.mubr.f32.mxu1 %v15674_v3 }
 0x6f3   : > { %10696 = vmatprep.mubr.msk.f32.mxu0 %vm16945_vm7, %v10631_v57 }
 0x6f4   : > { %v15868_v34 = vpop.f32.mrb[4].mxu1 }
 0x6f5   : > { %v7867_v51 = vpop.f32.mrb[5].mxu1  ;;  %8393 = vmatmul.mubr.f32.gmra.mrb[110].mxu1 %v15658_v39 }
 0x6f6   : > { %10697 = vmatmul.mubr.msk.f32.gmra.mrb[46].mxu0 %vm16945_vm7, %v10629_v29  ;;  %8397 = vmatprep.mubr.f32.mxu1 %v15682_v41 }
 0x6f7   : > { %9504 = vmatprep.mubr.f32.mxu0 %v10632_v43 }
 0x6f8   : > { %v15875_v0 = vpop.f32.mrb[6].mxu1 }
 0x6f9   : > { %v7872_v1 = vpop.f32.mrb[7].mxu1  ;;  %8398 = vmatmul.mubr.f32.gmra.mrb[112].mxu1 %v15666_v22 }
 0x6fa   : > { %9505 = vmatmul.mubr.f32.gmra.mrb[48].mxu0 %v10630_v36  ;;  %8402 = vmatprep.mubr.f32.mxu1 %v15690_v59 }
 0x6fb   : > { %10698 = vmatprep.mubr.msk.f32.mxu0 %vm16947_vm11, %v10633_v2 }
 0x6fc   : > { %v15882_v39 = vpop.f32.mrb[8].mxu1 }
 0x6fd   : > { %v7877_v63 = vpop.f32.mrb[9].mxu1  ;;  %8403 = vmatmul.mubr.f32.gmra.mrb[114].mxu1 %v15674_v3 }
 0x6fe   : > { %10699 = vmatmul.mubr.msk.f32.gmra.mrb[50].mxu0 %vm16947_vm11, %v10631_v57  ;;  %8407 = vmatprep.mubr.f32.mxu1 %v15698_v44 }
 0x6ff   : > { %9514 = vmatprep.mubr.f32.mxu0 %v10634_v62 }
 0x700   : > { %v15889_v22 = vpop.f32.mrb[10].mxu1 }
 0x701   : > { %v7882_v9 = vpop.f32.mrb[11].mxu1  ;;  %8408 = vmatmul.mubr.f32.gmra.mrb[116].mxu1 %v15682_v41 }
 0x702   : > { %9515 = vmatmul.mubr.f32.gmra.mrb[52].mxu0 %v10632_v43  ;;  %8412 = vmatprep.mubr.f32.mxu1 %v15706_v4 }
 0x703   : > { %10700 = vmatprep.mubr.msk.f32.mxu0 %vm16949_vm10, %v10635_v58 }
 0x704   : > { %v15896_v3 = vpop.f32.mrb[12].mxu1 }
 0x705   : > { %v7887_v16 = vpop.f32.mrb[13].mxu1  ;;  %8413 = vmatmul.mubr.f32.gmra.mrb[118].mxu1 %v15690_v59 }
 0x706   : > { %10701 = vmatmul.mubr.msk.f32.gmra.mrb[54].mxu0 %vm16949_vm10, %v10633_v2  ;;  %8417 = vmatprep.mubr.f32.mxu1 %v15714_v18  ;;  %v15959_v16 = vld [vmem:[#allocation16] ss:$0 sm:$0xff] }
 0x707   : > { %9524 = vmatprep.mubr.f32.mxu0 %v10636_v54 }
 0x708   : > { %v15903_v41 = vpop.f32.mrb[14].mxu1 }
 0x709   : > { %v7892_v56 = vpop.f32.mrb[15].mxu1  ;;  %8418 = vmatmul.mubr.f32.gmra.mrb[120].mxu1 %v15698_v44  ;;  %v10639_v44 = vld [vmem:[%s15323_s7 + $0x111] sm:$0xff] }
 0x70a   : > { %9525 = vmatmul.mubr.f32.gmra.mrb[56].mxu0 %v10634_v62  ;;  %8422 = vmatprep.mubr.f32.mxu1 %v15722_v13 }
 0x70b   : > { %10702 = vmatprep.mubr.msk.f32.mxu0 %vm16951_vm15, %v10637_v8 }
 0x70c   : > { %v15910_v59 = vpop.f32.mrb[16].mxu1 }
 0x70d   : > { %v7897_v38 = vpop.f32.mrb[17].mxu1  ;;  %8423 = vmatmul.mubr.f32.gmra.mrb[122].mxu1 %v15706_v4 }
 0x70e   : > { %10703 = vmatmul.mubr.msk.f32.gmra.mrb[58].mxu0 %vm16951_vm15, %v10635_v58  ;;  %8427 = vmatprep.mubr.f32.mxu1 %v15730_v7 }
 0x70f   : > { %9534 = vmatprep.mubr.f32.mxu0 %v10638_v17 }
 0x710   : > { %v15917_v37 = vpop.f32.mrb[18].mxu1 }
 0x711   : > { %v7902_v42 = vpop.f32.mrb[19].mxu1  ;;  %8428 = vmatmul.mubr.f32.gmra.mrb[124].mxu1 %v15714_v18 }
 0x712   : > { %9535 = vmatmul.mubr.f32.gmra.mrb[60].mxu0 %v10636_v54  ;;  %8432 = vmatprep.mubr.f32.mxu1 %v15738_v45 }
 0x713   : > { %10704 = vmatprep.mubr.msk.f32.mxu0 %vm16953_vm9, %v10639_v44 }
 0x714   : > { %v15924_v52 = vpop.f32.mrb[20].mxu1 }
 0x715   : > { %v7907_v4 = vpop.f32.mrb[21].mxu1  ;;  %8433 = vmatmul.mubr.f32.gmra.mrb[126].mxu1 %v15722_v13 }
 0x716   : > { %10705 = vmatmul.mubr.msk.f32.gmra.mrb[62].mxu0 %vm16953_vm9, %v10637_v8 }
 0x718   : > { %v15929_v7 = vpop.f32.mrb[22].mxu1 }
 0x719   : > { %v7912_v49 = vpop.f32.mrb[23].mxu1 }
 0x71c   : > { %v15931_v19 = vpop.f32.mrb[24].mxu1 }
 0x71d   : > { %v7917_v18 = vpop.f32.mrb[25].mxu1 }
 0x720   : > { %v15933_v23 = vpop.f32.mrb[26].mxu1 }
 0x721   : > { %v7922_v45 = vpop.f32.mrb[27].mxu1 }
 0x724   : > { %v15935_v20 = vpop.f32.mrb[28].mxu1 }
 0x725   : > { %v7927_v40 = vpop.f32.mrb[29].mxu1 }
 0x728   : > { %v15937_v12 = vpop.f32.mrb[30].mxu1 }
 0x729   : > { %v7932_v21 = vpop.f32.mrb[31].mxu1 }
 0x72c   : > { %v15939_v31 = vpop.f32.mrb[32].mxu1 }
 0x72d   : > { %v7937_v13 = vpop.f32.mrb[33].mxu1 }
 0x730   : > { %v15941_v35 = vpop.f32.mrb[34].mxu1 }
 0x731   : > { %v7942_v6 = vpop.f32.mrb[35].mxu1 }
 0x734   : > { %v15943_v47 = vpop.f32.mrb[36].mxu1 }
 0x735   : > { %v7947_v61 = vpop.f32.mrb[37].mxu1 }
 0x738   : > { %v15945_v50 = vpop.f32.mrb[38].mxu1 }
 0x739   : > { %v7952_v48 = vpop.f32.mrb[39].mxu1 }
 0x73c   : > { %v15947_v55 = vpop.f32.mrb[40].mxu1 }
 0x73d   : > { %v7957_v25 = vpop.f32.mrb[41].mxu1 }
 0x740   : > { %v15949_v27 = vpop.f32.mrb[42].mxu1 }
 0x741   : > { %v7962_v11 = vpop.f32.mrb[43].mxu1 }
 0x744   : > { %v15951_v10 = vpop.f32.mrb[44].mxu1 }
 0x745   : > { %v7967_v14 = vpop.f32.mrb[45].mxu1 }
 0x748   : > { %v15953_v60 = vpop.f32.mrb[46].mxu1 }
 0x749   : > { %v7972_v29 = vpop.f32.mrb[47].mxu1 }
 0x74c   : > { %v15955_v33 = vpop.f32.mrb[48].mxu1 }
 0x74d   : > { %v7977_v36 = vpop.f32.mrb[49].mxu1 }
 0x750   : > { %v15957_v53 = vpop.f32.mrb[50].mxu1 }
 0x751   : > { %v7982_v57 = vpop.f32.mrb[51].mxu1 }
 0x754   : > { %v7985_v30 = vpop.f32.mrb[52].mxu1 }
 0x755   : > { %v7987_v24 = vpop.f32.mrb[53].mxu1  ;;  %8072 = vst [vmem:[#allocation4 + $0xd0] sm:$0xff] %v7985_v30 }
 0x758   : > { %v7990_v43 = vpop.f32.mrb[54].mxu1 }
 0x759   : > { %v7992_v51 = vpop.f32.mrb[55].mxu1  ;;  %8073 = vst [vmem:[#allocation4 + $0xd8] sm:$0xff] %v7990_v43 }
 0x75c   : > { %v7995_v2 = vpop.f32.mrb[56].mxu1 }
 0x75d   : > { %v7997_v1 = vpop.f32.mrb[57].mxu1  ;;  %8074 = vst [vmem:[#allocation4 + $0xe0] sm:$0xff] %v7995_v2 }
 0x760   : > { %v8000_v26 = vpop.f32.mrb[58].mxu1 }
 0x761   : > { %v8002_v62 = vpop.f32.mrb[59].mxu1  ;;  %8075 = vst [vmem:[#allocation4 + $0xe8] sm:$0xff] %v8000_v26 }
 0x764   : > { %v8005_v63 = vpop.f32.mrb[60].mxu1 }
 0x765   : > { %v8007_v58 = vpop.f32.mrb[61].mxu1  ;;  %8076 = vst [vmem:[#allocation4 + $0xf0] sm:$0xff] %v8005_v63 }
 0x768   : > { %v8010_v9 = vpop.f32.mrb[62].mxu1 }
 0x769   : > { %v8012_v15 = vpop.f32.mrb[63].mxu1  ;;  %8077 = vst [vmem:[#allocation4 + $0xf8] sm:$0xff] %v8010_v9 }
 0x76c   : > { %v8279_v54 = vpop.f32.mrb[64].mxu1 }
 0x76d   : > { %v8438_v8 = vadd.f32 %v8279_v54, %v15854_v5  ;;  %v9386_v56 = vpop.f32.mrb[0].mxu0  ;;  %v8281_v32 = vpop.f32.mrb[65].mxu1 }
 0x76e   : > { %v9388_v17 = vpop.f32.mrb[1].mxu0  ;;  %v9648_v44 = vadd.f32 %v15959_v16, %v9386_v56 }
 0x76f   : > { %v8541_v38 = vadd.f32 %v15959_v16, %v8438_v8 }
 0x770   : > { %v8284_v42 = vpop.f32.mrb[66].mxu1  ;;  %9680 = vst [vmem:[%s13355_s27 + $0x8] sm:$0xff] %v9648_v44 }
 0x771   : > { %8573 = vst [vmem:[%s13355_s27] sm:$0xff] %v8541_v38  ;;  %v8439_v46 = vadd.f32 %v8284_v42, %v15861_v28  ;;  %v9391_v4 = vpop.f32.mrb[2].mxu0  ;;  %v8286_v49 = vpop.f32.mrb[67].mxu1 }
 0x772   : > { %v9393_v18 = vpop.f32.mrb[3].mxu0  ;;  %v9649_v45 = vadd.f32 %v15959_v16, %v9391_v4 }
 0x773   : > { %v8542_v5 = vadd.f32 %v15959_v16, %v8439_v46 }
 0x774   : > { %v8289_v40 = vpop.f32.mrb[68].mxu1  ;;  %9681 = vst [vmem:[%s13355_s27 + $0x18] sm:$0xff] %v9649_v45 }
 0x775   : > { %8574 = vst [vmem:[%s13355_s27 + $0x10] sm:$0xff] %v8542_v5  ;;  %v8440_v21 = vadd.f32 %v8289_v40, %v15868_v34  ;;  %v9396_v13 = vpop.f32.mrb[4].mxu0  ;;  %v8291_v6 = vpop.f32.mrb[69].mxu1 }
 0x776   : > { %v9398_v61 = vpop.f32.mrb[5].mxu0  ;;  %v9650_v48 = vadd.f32 %v15959_v16, %v9396_v13 }
 0x777   : > { %v8543_v28 = vadd.f32 %v15959_v16, %v8440_v21 }
 0x778   : > { %v8294_v25 = vpop.f32.mrb[70].mxu1  ;;  %9682 = vst [vmem:[%s13355_s27 + $0x28] sm:$0xff] %v9650_v48 }
 0x779   : > { %8575 = vst [vmem:[%s13355_s27 + $0x20] sm:$0xff] %v8543_v28  ;;  %v8441_v11 = vadd.f32 %v8294_v25, %v15875_v0  ;;  %v9401_v14 = vpop.f32.mrb[6].mxu0  ;;  %v8296_v29 = vpop.f32.mrb[71].mxu1 }
 0x77a   : > { %v9403_v36 = vpop.f32.mrb[7].mxu0  ;;  %v9651_v57 = vadd.f32 %v15959_v16, %v9401_v14 }
 0x77b   : > { %v8544_v34 = vadd.f32 %v15959_v16, %v8441_v11 }
 0x77c   : > { %v8299_v30 = vpop.f32.mrb[72].mxu1  ;;  %9683 = vst [vmem:[%s13355_s27 + $0x38] sm:$0xff] %v9651_v57 }
 0x77d   : > { %8576 = vst [vmem:[%s13355_s27 + $0x30] sm:$0xff] %v8544_v34  ;;  %v8442_v24 = vadd.f32 %v8299_v30, %v15882_v39  ;;  %v9406_v43 = vpop.f32.mrb[8].mxu0  ;;  %v8301_v51 = vpop.f32.mrb[73].mxu1 }
 0x77e   : > { %v9408_v2 = vpop.f32.mrb[9].mxu0  ;;  %v9652_v1 = vadd.f32 %v15959_v16, %v9406_v43 }
 0x77f   : > { %v8545_v0 = vadd.f32 %v15959_v16, %v8442_v24 }
 0x780   : > { %v8304_v26 = vpop.f32.mrb[74].mxu1  ;;  %9684 = vst [vmem:[%s13355_s27 + $0x48] sm:$0xff] %v9652_v1 }
 0x781   : > { %8577 = vst [vmem:[%s13355_s27 + $0x40] sm:$0xff] %v8545_v0  ;;  %v8443_v62 = vadd.f32 %v8304_v26, %v15889_v22  ;;  %v9411_v63 = vpop.f32.mrb[10].mxu0  ;;  %v8306_v58 = vpop.f32.mrb[75].mxu1 }
 0x782   : > { %v9413_v9 = vpop.f32.mrb[11].mxu0  ;;  %v9653_v15 = vadd.f32 %v15959_v16, %v9411_v63 }
 0x783   : > { %v8546_v39 = vadd.f32 %v15959_v16, %v8443_v62 }
 0x784   : > { %v8309_v54 = vpop.f32.mrb[76].mxu1  ;;  %9685 = vst [vmem:[%s13355_s27 + $0x58] sm:$0xff] %v9653_v15 }
 0x785   : > { %8578 = vst [vmem:[%s13355_s27 + $0x50] sm:$0xff] %v8546_v39  ;;  %v8444_v8 = vadd.f32 %v8309_v54, %v15896_v3  ;;  %v9416_v56 = vpop.f32.mrb[12].mxu0  ;;  %v8311_v32 = vpop.f32.mrb[77].mxu1 }
 0x786   : > { %v9418_v17 = vpop.f32.mrb[13].mxu0  ;;  %v9654_v38 = vadd.f32 %v15959_v16, %v9416_v56 }
 0x787   : > { %v8547_v22 = vadd.f32 %v15959_v16, %v8444_v8 }
 0x788   : > { %v8314_v44 = vpop.f32.mrb[78].mxu1  ;;  %9686 = vst [vmem:[%s13355_s27 + $0x68] sm:$0xff] %v9654_v38 }
 0x789   : > { %8579 = vst [vmem:[%s13355_s27 + $0x60] sm:$0xff] %v8547_v22  ;;  %v8445_v42 = vadd.f32 %v8314_v44, %v15903_v41  ;;  %v9421_v46 = vpop.f32.mrb[14].mxu0  ;;  %v8316_v4 = vpop.f32.mrb[79].mxu1 }
 0x78a   : > { %v9423_v49 = vpop.f32.mrb[15].mxu0  ;;  %v9655_v18 = vadd.f32 %v15959_v16, %v9421_v46 }
 0x78b   : > { %v8548_v3 = vadd.f32 %v15959_v16, %v8445_v42 }
 0x78c   : > { %v8319_v5 = vpop.f32.mrb[80].mxu1  ;;  %9687 = vst [vmem:[%s13355_s27 + $0x78] sm:$0xff] %v9655_v18 }
 0x78d   : > { %8580 = vst [vmem:[%s13355_s27 + $0x70] sm:$0xff] %v8548_v3  ;;  %v8446_v45 = vadd.f32 %v8319_v5, %v15910_v59  ;;  %v9426_v40 = vpop.f32.mrb[16].mxu0  ;;  %v8321_v21 = vpop.f32.mrb[81].mxu1 }
 0x78e   : > { %v9428_v13 = vpop.f32.mrb[17].mxu0  ;;  %v9656_v6 = vadd.f32 %v15959_v16, %v9426_v40 }
 0x78f   : > { %v8549_v41 = vadd.f32 %v15959_v16, %v8446_v45 }
 0x790   : > { %v8324_v61 = vpop.f32.mrb[82].mxu1  ;;  %9688 = vst [vmem:[%s13355_s27 + $0x88] sm:$0xff] %v9656_v6 }
 0x791   : > { %8581 = vst [vmem:[%s13355_s27 + $0x80] sm:$0xff] %v8549_v41  ;;  %v8447_v28 = vadd.f32 %v8324_v61, %v15917_v37  ;;  %v9431_v48 = vpop.f32.mrb[18].mxu0  ;;  %v8326_v25 = vpop.f32.mrb[83].mxu1 }
 0x792   : > { %v9433_v11 = vpop.f32.mrb[19].mxu0  ;;  %v9657_v14 = vadd.f32 %v15959_v16, %v9431_v48 }
 0x793   : > { %v8550_v59 = vadd.f32 %v15959_v16, %v8447_v28 }
 0x794   : > { %v8329_v29 = vpop.f32.mrb[84].mxu1  ;;  %9689 = vst [vmem:[%s13355_s27 + $0x98] sm:$0xff] %v9657_v14 }
 0x795   : > { %8582 = vst [vmem:[%s13355_s27 + $0x90] sm:$0xff] %v8550_v59  ;;  %v8448_v36 = vadd.f32 %v8329_v29, %v15924_v52  ;;  %v9436_v34 = vpop.f32.mrb[20].mxu0  ;;  %v8331_v57 = vpop.f32.mrb[85].mxu1 }
 0x796   : > { %v9438_v30 = vpop.f32.mrb[21].mxu0  ;;  %v9658_v24 = vadd.f32 %v15959_v16, %v9436_v34 }
 0x797   : > { %v8551_v37 = vadd.f32 %v15959_v16, %v8448_v36 }
 0x798   : > { %v8334_v43 = vpop.f32.mrb[86].mxu1  ;;  %9690 = vst [vmem:[%s13355_s27 + $0xa8] sm:$0xff] %v9658_v24 }
 0x799   : > { %8583 = vst [vmem:[%s13355_s27 + $0xa0] sm:$0xff] %v8551_v37  ;;  %v8449_v51 = vadd.f32 %v8334_v43, %v15929_v7  ;;  %v9441_v2 = vpop.f32.mrb[22].mxu0  ;;  %v8336_v0 = vpop.f32.mrb[87].mxu1 }
 0x79a   : > { %v9443_v1 = vpop.f32.mrb[23].mxu0  ;;  %v9659_v26 = vadd.f32 %v15959_v16, %v9441_v2 }
 0x79b   : > { %v8552_v52 = vadd.f32 %v15959_v16, %v8449_v51 }
 0x79c   : > { %v8339_v62 = vpop.f32.mrb[88].mxu1  ;;  %9691 = vst [vmem:[%s13355_s27 + $0xb8] sm:$0xff] %v9659_v26 }
 0x79d   : > { %8584 = vst [vmem:[%s13355_s27 + $0xb0] sm:$0xff] %v8552_v52  ;;  %v8450_v63 = vadd.f32 %v8339_v62, %v15931_v19  ;;  %v9446_v58 = vpop.f32.mrb[24].mxu0  ;;  %v8341_v9 = vpop.f32.mrb[89].mxu1 }
 0x79e   : > { %v9448_v39 = vpop.f32.mrb[25].mxu0  ;;  %v9660_v15 = vadd.f32 %v15959_v16, %v9446_v58 }
 0x79f   : > { %v8553_v7 = vadd.f32 %v15959_v16, %v8450_v63 }
 0x7a0   : > { %v8344_v54 = vpop.f32.mrb[90].mxu1  ;;  %9692 = vst [vmem:[%s13355_s27 + $0xc8] sm:$0xff] %v9660_v15 }
 0x7a1   : > { %8585 = vst [vmem:[%s13355_s27 + $0xc0] sm:$0xff] %v8553_v7  ;;  %v8451_v8 = vadd.f32 %v8344_v54, %v15933_v23  ;;  %v9451_v56 = vpop.f32.mrb[26].mxu0  ;;  %v8346_v32 = vpop.f32.mrb[91].mxu1 }
 0x7a2   : > { %v9453_v17 = vpop.f32.mrb[27].mxu0  ;;  %v9661_v22 = vadd.f32 %v15959_v16, %v9451_v56 }
 0x7a3   : > { %v8554_v19 = vadd.f32 %v15959_v16, %v8451_v8 }
 0x7a4   : > { %v8349_v38 = vpop.f32.mrb[92].mxu1  ;;  %9693 = vst [vmem:[%s13355_s27 + $0xd8] sm:$0xff] %v9661_v22 }
 0x7a5   : > { %8586 = vst [vmem:[%s13355_s27 + $0xd0] sm:$0xff] %v8554_v19  ;;  %v8452_v44 = vadd.f32 %v8349_v38, %v15935_v20  ;;  %v9456_v42 = vpop.f32.mrb[28].mxu0  ;;  %v8351_v46 = vpop.f32.mrb[93].mxu1 }
 0x7a6   : > { %v9458_v4 = vpop.f32.mrb[29].mxu0  ;;  %v9662_v49 = vadd.f32 %v15959_v16, %v9456_v42 }
 0x7a7   : > { %v8555_v23 = vadd.f32 %v15959_v16, %v8452_v44 }
 0x7a8   : > { %v8354_v3 = vpop.f32.mrb[94].mxu1  ;;  %9694 = vst [vmem:[%s13355_s27 + $0xe8] sm:$0xff] %v9662_v49 }
 0x7a9   : > { %8587 = vst [vmem:[%s13355_s27 + $0xe0] sm:$0xff] %v8555_v23  ;;  %v8453_v18 = vadd.f32 %v8354_v3, %v15937_v12  ;;  %v9461_v5 = vpop.f32.mrb[30].mxu0  ;;  %v8356_v45 = vpop.f32.mrb[95].mxu1 }
 0x7aa   : > { %v9463_v40 = vpop.f32.mrb[31].mxu0  ;;  %v9663_v21 = vadd.f32 %v15959_v16, %v9461_v5 }
 0x7ab   : > { %v8556_v20 = vadd.f32 %v15959_v16, %v8453_v18 }
 0x7ac   : > { %v8359_v13 = vpop.f32.mrb[96].mxu1  ;;  %9695 = vst [vmem:[%s13355_s27 + $0xf8] sm:$0xff] %v9663_v21 }
 0x7ad   : > { %8588 = vst [vmem:[%s13355_s27 + $0xf0] sm:$0xff] %v8556_v20  ;;  %v8454_v41 = vadd.f32 %v8359_v13, %v15939_v31  ;;  %v9466_v6 = vpop.f32.mrb[32].mxu0  ;;  %v8361_v61 = vpop.f32.mrb[97].mxu1 }
 0x7ae   : > { %v9468_v28 = vpop.f32.mrb[33].mxu0  ;;  %v9664_v48 = vadd.f32 %v15959_v16, %v9466_v6 }
 0x7af   : > { %v8557_v12 = vadd.f32 %v15959_v16, %v8454_v41 }
 0x7b0   : > { %v8364_v25 = vpop.f32.mrb[98].mxu1  ;;  %9696 = vst [vmem:[%s13355_s27 + $0x108] sm:$0xff] %v9664_v48 }
 0x7b1   : > { %8589 = vst [vmem:[%s13355_s27 + $0x100] sm:$0xff] %v8557_v12  ;;  %v8455_v11 = vadd.f32 %v8364_v25, %v15941_v35  ;;  %v9471_v59 = vpop.f32.mrb[34].mxu0  ;;  %v8366_v14 = vpop.f32.mrb[99].mxu1 }
 0x7b2   : > { %v9473_v29 = vpop.f32.mrb[35].mxu0  ;;  %v9665_v36 = vadd.f32 %v15959_v16, %v9471_v59 }
 0x7b3   : > { %v8558_v31 = vadd.f32 %v15959_v16, %v8455_v11  ;;  %v8172_v11 = vld [vmem:[#allocation4 + $0xd0] sm:$0xff] }
 0x7b4   : > { %v8369_v34 = vpop.f32.mrb[100].mxu1  ;;  %9697 = vst [vmem:[%s13355_s27 + $0x118] sm:$0xff] %v9665_v36 }
 0x7b5   : > { %8590 = vst [vmem:[%s13355_s27 + $0x110] sm:$0xff] %v8558_v31  ;;  %v8456_v57 = vadd.f32 %v8369_v34, %v15943_v47  ;;  %v9476_v30 = vpop.f32.mrb[36].mxu0  ;;  %v8371_v37 = vpop.f32.mrb[101].mxu1 }
 0x7b6   : > { %v9478_v24 = vpop.f32.mrb[37].mxu0  ;;  %v9666_v43 = vadd.f32 %v15959_v16, %v9476_v30 }
 0x7b7   : > { %v8559_v35 = vadd.f32 %v15959_v16, %v8456_v57  ;;  %v8173_v57 = vld [vmem:[#allocation4 + $0xd8] sm:$0xff] }
 0x7b8   : > { %v8374_v51 = vpop.f32.mrb[102].mxu1  ;;  %9698 = vst [vmem:[%s13355_s27 + $0x128] sm:$0xff] %v9666_v43 }
 0x7b9   : > { %8591 = vst [vmem:[%s13355_s27 + $0x120] sm:$0xff] %v8559_v35  ;;  %v8457_v2 = vadd.f32 %v8374_v51, %v15945_v50  ;;  %v9481_v0 = vpop.f32.mrb[38].mxu0  ;;  %v8376_v1 = vpop.f32.mrb[103].mxu1 }
 0x7ba   : > { %v9483_v52 = vpop.f32.mrb[39].mxu0  ;;  %v9667_v26 = vadd.f32 %v15959_v16, %v9481_v0  ;;  %v8174_v0 = vld [vmem:[#allocation4 + $0xe0] sm:$0xff] }
 0x7bb   : > { %v8560_v47 = vadd.f32 %v15959_v16, %v8457_v2 }
 0x7bc   : > { %v8379_v62 = vpop.f32.mrb[104].mxu1  ;;  %9699 = vst [vmem:[%s13355_s27 + $0x138] sm:$0xff] %v9667_v26 }
 0x7bd   : > { %8592 = vst [vmem:[%s13355_s27 + $0x130] sm:$0xff] %v8560_v47  ;;  %v8458_v63 = vadd.f32 %v8379_v62, %v15947_v55  ;;  %v9486_v58 = vpop.f32.mrb[40].mxu0  ;;  %v8381_v9 = vpop.f32.mrb[105].mxu1 }
 0x7be   : > { %v9488_v39 = vpop.f32.mrb[41].mxu0  ;;  %v9668_v7 = vadd.f32 %v15959_v16, %v9486_v58  ;;  %v8175_v9 = vld [vmem:[#allocation4 + $0xe8] sm:$0xff] }
 0x7bf   : > { %v8561_v50 = vadd.f32 %v15959_v16, %v8458_v63 }
 0x7c0   : > { %v8384_v15 = vpop.f32.mrb[106].mxu1  ;;  %9700 = vst [vmem:[%s13355_s27 + $0x148] sm:$0xff] %v9668_v7 }
 0x7c1   : > { %8593 = vst [vmem:[%s13355_s27 + $0x140] sm:$0xff] %v8561_v50  ;;  %v8459_v54 = vadd.f32 %v8384_v15, %v15949_v27  ;;  %v9491_v8 = vpop.f32.mrb[42].mxu0  ;;  %v8386_v56 = vpop.f32.mrb[107].mxu1 }
 0x7c2   : > { %v9493_v32 = vpop.f32.mrb[43].mxu0  ;;  %v9669_v17 = vadd.f32 %v15959_v16, %v9491_v8 }
 0x7c3   : > { %v8562_v55 = vadd.f32 %v15959_v16, %v8459_v54  ;;  %v8176_v32 = vld [vmem:[#allocation4 + $0xf0] sm:$0xff] }
 0x7c4   : > { %v8389_v19 = vpop.f32.mrb[108].mxu1  ;;  %9701 = vst [vmem:[%s13355_s27 + $0x158] sm:$0xff] %v9669_v17 }
 0x7c5   : > { %8594 = vst [vmem:[%s13355_s27 + $0x150] sm:$0xff] %v8562_v55  ;;  %v8460_v22 = vadd.f32 %v8389_v19, %v15951_v10  ;;  %v9496_v38 = vpop.f32.mrb[44].mxu0  ;;  %v8391_v44 = vpop.f32.mrb[109].mxu1 }
 0x7c6   : > { %v9498_v42 = vpop.f32.mrb[45].mxu0  ;;  %v9670_v46 = vadd.f32 %v15959_v16, %v9496_v38 }
 0x7c7   : > { %v8563_v27 = vadd.f32 %v15959_v16, %v8460_v22 }
 0x7c8   : > { %v8394_v4 = vpop.f32.mrb[110].mxu1  ;;  %9702 = vst [vmem:[%s13355_s27 + $0x168] sm:$0xff] %v9670_v46 }
 0x7c9   : > { %8595 = vst [vmem:[%s13355_s27 + $0x160] sm:$0xff] %v8563_v27  ;;  %v8461_v23 = vadd.f32 %v8394_v4, %v15953_v60  ;;  %v9501_v49 = vpop.f32.mrb[46].mxu0  ;;  %v8396_v3 = vpop.f32.mrb[111].mxu1  ;;  %v8177_v27 = vld [vmem:[#allocation4 + $0xf8] sm:$0xff] }
 0x7ca   : > { %v9503_v18 = vpop.f32.mrb[47].mxu0  ;;  %v9671_v5 = vadd.f32 %v15959_v16, %v9501_v49 }
 0x7cb   : > { %v8564_v10 = vadd.f32 %v15959_v16, %v8461_v23 }
 0x7cc   : > { %v8399_v45 = vpop.f32.mrb[112].mxu1  ;;  %9703 = vst [vmem:[%s13355_s27 + $0x178] sm:$0xff] %v9671_v5  ;;  %v9738_v5 = vld [vmem:[%s13355_s27 + $0x8] sm:$0xff] (%p16954_p6) }
 0x7cd   : > { %8596 = vst [vmem:[%s13355_s27 + $0x170] sm:$0xff] %v8564_v10  ;;  %v8462_v40 = vadd.f32 %v8399_v45, %v15955_v33  ;;  %v9506_v20 = vpop.f32.mrb[48].mxu0  ;;  %v8401_v21 = vpop.f32.mrb[113].mxu1  ;;  %v9740_v45 = vld [vmem:[%s13355_s27 + $0x10] sm:$0xff] (%p16954_p6)  ;;  %9739 = vst [vmem:[%s16131_s17 + $0x8] sm:$0xff] (%p16954_p6), %v9738_v5 }
 0x7ce   : > { %v9508_v13 = vpop.f32.mrb[49].mxu0  ;;  %v9672_v41 = vadd.f32 %v15959_v16, %v9506_v20  ;;  %v9744_v20 = vld [vmem:[%s13355_s27 + $0x20] sm:$0xff] (%p16954_p6)  ;;  %v9746_v21 = vld [vmem:[%s13355_s27 + $0x28] sm:$0xff] (%p16954_p6)  ;;  %9741 = vst [vmem:[%s16131_s17 + $0x10] sm:$0xff] (%p16954_p6), %v9740_v45 }
 0x7cf   : > { %v8565_v60 = vadd.f32 %v15959_v16, %v8462_v40  ;;  %v9742_v40 = vld [vmem:[%s13355_s27 + $0x18] sm:$0xff] (%p16954_p6)  ;;  %v9748_v13 = vld [vmem:[%s13355_s27 + $0x30] sm:$0xff] (%p16954_p6)  ;;  %9745 = vst [vmem:[%s16131_s17 + $0x40] sm:$0xff] (%p16954_p6), %v9744_v20  ;;  %9747 = vst [vmem:[%s16131_s17 + $0x48] sm:$0xff] (%p16954_p6), %v9746_v21 }
 0x7d0   : > { %v8404_v6 = vpop.f32.mrb[114].mxu1  ;;  %9704 = vst [vmem:[%s13355_s27 + $0x188] sm:$0xff] %v9672_v41  ;;  %v9752_v41 = vld [vmem:[%s13355_s27 + $0x40] sm:$0xff] (%p16954_p6)  ;;  %9743 = vst [vmem:[%s16131_s17 + $0x18] sm:$0xff] (%p16954_p6), %v9742_v40 }
 0x7d1   : > { %8597 = vst [vmem:[%s13355_s27 + $0x180] sm:$0xff] %v8565_v60  ;;  %v8463_v61 = vadd.f32 %v8404_v6, %v15957_v53  ;;  %v9511_v28 = vpop.f32.mrb[50].mxu0  ;;  %v8406_v12 = vpop.f32.mrb[115].mxu1  ;;  %v9750_v60 = vld [vmem:[%s13355_s27 + $0x38] sm:$0xff] (%p16954_p6)  ;;  %v9754_v6 = vld [vmem:[%s13355_s27 + $0x48] sm:$0xff] (%p16954_p6)  ;;  %9749 = vst [vmem:[%s16131_s17 + $0x50] sm:$0xff] (%p16954_p6), %v9748_v13 }
 0x7d2   : > { %v9513_v48 = vpop.f32.mrb[51].mxu0  ;;  %v9673_v25 = vadd.f32 %v15959_v16, %v9511_v28  ;;  %v9758_v28 = vld [vmem:[%s13355_s27 + $0x58] sm:$0xff] (%p16954_p6)  ;;  %9751 = vst [vmem:[%s16131_s17 + $0x58] sm:$0xff] (%p16954_p6), %v9750_v60  ;;  %9753 = vst [vmem:[%s16131_s17 + $0x80] sm:$0xff] (%p16954_p6), %v9752_v41  ;;  %v9760_v12 = vld [vmem:[%s13355_s27 + $0x60] sm:$0xff] (%p16954_p6) }
 0x7d3   : > { %v8566_v33 = vadd.f32 %v15959_v16, %v8463_v61  ;;  %v9756_v61 = vld [vmem:[%s13355_s27 + $0x50] sm:$0xff] (%p16954_p6)  ;;  %9755 = vst [vmem:[%s16131_s17 + $0x88] sm:$0xff] (%p16954_p6), %v9754_v6  ;;  %9759 = vst [vmem:[%s16131_s17 + $0x98] sm:$0xff] (%p16954_p6), %v9758_v28  ;;  %v9762_v48 = vld [vmem:[%s13355_s27 + $0x68] sm:$0xff] (%p16954_p6) }
 0x7d4   : > { %v8409_v59 = vpop.f32.mrb[116].mxu1  ;;  %9705 = vst [vmem:[%s13355_s27 + $0x198] sm:$0xff] %v9673_v25  ;;  %9757 = vst [vmem:[%s16131_s17 + $0x90] sm:$0xff] (%p16954_p6), %v9756_v61  ;;  %v9766_v25 = vld [vmem:[%s13355_s27 + $0x78] sm:$0xff] (%p16954_p6) }
 0x7d5   : > { %8598 = vst [vmem:[%s13355_s27 + $0x190] sm:$0xff] %v8566_v33  ;;  %v8464_v14 = vadd.f32 %v8409_v59, %v8172_v11  ;;  %v9516_v29 = vpop.f32.mrb[52].mxu0  ;;  %v8411_v31 = vpop.f32.mrb[117].mxu1  ;;  %v9764_v33 = vld [vmem:[%s13355_s27 + $0x70] sm:$0xff] (%p16954_p6)  ;;  %9761 = vst [vmem:[%s16131_s17 + $0xc0] sm:$0xff] (%p16954_p6), %v9760_v12  ;;  %v9768_v11 = vld [vmem:[%s13355_s27 + $0x80] sm:$0xff] (%p16954_p6) }
 0x7d6   : > { %v9518_v36 = vpop.f32.mrb[53].mxu0  ;;  %9603 = vst [vmem:[#allocation4 + $0xd0] sm:$0xff] %v9516_v29  ;;  %v9674_v34 = vadd.f32 %v15959_v16, %v9516_v29  ;;  %9763 = vst [vmem:[%s16131_s17 + $0xc8] sm:$0xff] (%p16954_p6), %v9762_v48  ;;  %v9770_v59 = vld [vmem:[%s13355_s27 + $0x88] sm:$0xff] (%p16954_p6)  ;;  %v9774_v29 = vld [vmem:[%s13355_s27 + $0x98] sm:$0xff] (%p16954_p6) }
 0x7d7   : > { %v8567_v53 = vadd.f32 %v15959_v16, %v8464_v14  ;;  %9765 = vst [vmem:[%s16131_s17 + $0xd0] sm:$0xff] (%p16954_p6), %v9764_v33  ;;  %9767 = vst [vmem:[%s16131_s17 + $0xd8] sm:$0xff] (%p16954_p6), %v9766_v25  ;;  %v9772_v14 = vld [vmem:[%s13355_s27 + $0x90] sm:$0xff] (%p16954_p6)  ;;  %v9776_v31 = vld [vmem:[%s13355_s27 + $0xa0] sm:$0xff] (%p16954_p6) }
 0x7d8   : > { %v8414_v30 = vpop.f32.mrb[118].mxu1  ;;  %9706 = vst [vmem:[%s13355_s27 + $0x1a8] sm:$0xff] %v9674_v34  ;;  %9769 = vst [vmem:[%s16131_s17 + $0x100] sm:$0xff] (%p16954_p6), %v9768_v11  ;;  %v9778_v36 = vld [vmem:[%s13355_s27 + $0xa8] sm:$0xff] (%p16954_p6)  ;;  %v9782_v34 = vld [vmem:[%s13355_s27 + $0xb8] sm:$0xff] (%p16954_p6) }
 0x7d9   : > { %8599 = vst [vmem:[%s13355_s27 + $0x1a0] sm:$0xff] %v8567_v53  ;;  %v8465_v37 = vadd.f32 %v8414_v30, %v8173_v57  ;;  %v9521_v24 = vpop.f32.mrb[54].mxu0  ;;  %v8416_v35 = vpop.f32.mrb[119].mxu1  ;;  %9771 = vst [vmem:[%s16131_s17 + $0x108] sm:$0xff] (%p16954_p6), %v9770_v59  ;;  %v9780_v53 = vld [vmem:[%s13355_s27 + $0xb0] sm:$0xff] (%p16954_p6)  ;;  %v9784_v57 = vld [vmem:[%s13355_s27 + $0xc0] sm:$0xff] (%p16954_p6) }
 0x7da   : > { %v9523_v43 = vpop.f32.mrb[55].mxu0  ;;  %9604 = vst [vmem:[#allocation4 + $0xd8] sm:$0xff] %v9521_v24  ;;  %v9675_v2 = vadd.f32 %v15959_v16, %v9521_v24  ;;  %9773 = vst [vmem:[%s16131_s17 + $0x110] sm:$0xff] (%p16954_p6), %v9772_v14  ;;  %v9786_v30 = vld [vmem:[%s13355_s27 + $0xc8] sm:$0xff] (%p16954_p6)  ;;  %v9790_v24 = vld [vmem:[%s13355_s27 + $0xd8] sm:$0xff] (%p16954_p6) }
 0x7db   : > { %v8568_v51 = vadd.f32 %v15959_v16, %v8465_v37  ;;  %9775 = vst [vmem:[%s16131_s17 + $0x118] sm:$0xff] (%p16954_p6), %v9774_v29  ;;  %9777 = vst [vmem:[%s16131_s17 + $0x140] sm:$0xff] (%p16954_p6), %v9776_v31  ;;  %v9788_v37 = vld [vmem:[%s13355_s27 + $0xd0] sm:$0xff] (%p16954_p6)  ;;  %v9792_v35 = vld [vmem:[%s13355_s27 + $0xe0] sm:$0xff] (%p16954_p6) }
 0x7dc   : > { %v8419_v1 = vpop.f32.mrb[120].mxu1  ;;  %9707 = vst [vmem:[%s13355_s27 + $0x1b8] sm:$0xff] %v9675_v2  ;;  %9779 = vst [vmem:[%s16131_s17 + $0x148] sm:$0xff] (%p16954_p6), %v9778_v36  ;;  %v9794_v43 = vld [vmem:[%s13355_s27 + $0xe8] sm:$0xff] (%p16954_p6)  ;;  %v9798_v2 = vld [vmem:[%s13355_s27 + $0xf8] sm:$0xff] (%p16954_p6) }
 0x7dd   : > { %8600 = vst [vmem:[%s13355_s27 + $0x1b0] sm:$0xff] %v8568_v51  ;;  %v8466_v52 = vadd.f32 %v8419_v1, %v8174_v0  ;;  %v9526_v47 = vpop.f32.mrb[56].mxu0  ;;  %v8421_v26 = vpop.f32.mrb[121].mxu1  ;;  %9781 = vst [vmem:[%s16131_s17 + $0x150] sm:$0xff] (%p16954_p6), %v9780_v53  ;;  %v9796_v51 = vld [vmem:[%s13355_s27 + $0xf0] sm:$0xff] (%p16954_p6)  ;;  %v9800_v0 = vld [vmem:[%s13355_s27 + $0x100] sm:$0xff] (%p16954_p6) }
 0x7de   : > { %v9528_v62 = vpop.f32.mrb[57].mxu0  ;;  %9605 = vst [vmem:[#allocation4 + $0xe0] sm:$0xff] %v9526_v47  ;;  %v9676_v58 = vadd.f32 %v15959_v16, %v9526_v47  ;;  %9783 = vst [vmem:[%s16131_s17 + $0x158] sm:$0xff] (%p16954_p6), %v9782_v34  ;;  %v9802_v1 = vld [vmem:[%s13355_s27 + $0x108] sm:$0xff] (%p16954_p6)  ;;  %v9806_v47 = vld [vmem:[%s13355_s27 + $0x118] sm:$0xff] (%p16954_p6) }
 0x7df   : > { %v8569_v63 = vadd.f32 %v15959_v16, %v8466_v52  ;;  %9785 = vst [vmem:[%s16131_s17 + $0x180] sm:$0xff] (%p16954_p6), %v9784_v57  ;;  %9787 = vst [vmem:[%s16131_s17 + $0x188] sm:$0xff] (%p16954_p6), %v9786_v30  ;;  %v9804_v52 = vld [vmem:[%s13355_s27 + $0x110] sm:$0xff] (%p16954_p6)  ;;  %v9808_v26 = vld [vmem:[%s13355_s27 + $0x120] sm:$0xff] (%p16954_p6) }
 0x7e0   : > { %v8424_v39 = vpop.f32.mrb[122].mxu1  ;;  %9708 = vst [vmem:[%s13355_s27 + $0x1c8] sm:$0xff] %v9676_v58  ;;  %9789 = vst [vmem:[%s16131_s17 + $0x190] sm:$0xff] (%p16954_p6), %v9788_v37  ;;  %v9810_v62 = vld [vmem:[%s13355_s27 + $0x128] sm:$0xff] (%p16954_p6)  ;;  %v9814_v58 = vld [vmem:[%s13355_s27 + $0x138] sm:$0xff] (%p16954_p6) }
 0x7e1   : > { %8601 = vst [vmem:[%s13355_s27 + $0x1c0] sm:$0xff] %v8569_v63  ;;  %v8467_v50 = vadd.f32 %v8424_v39, %v8175_v9  ;;  %v9531_v7 = vpop.f32.mrb[58].mxu0  ;;  %v8426_v15 = vpop.f32.mrb[123].mxu1  ;;  %9791 = vst [vmem:[%s16131_s17 + $0x198] sm:$0xff] (%p16954_p6), %v9790_v24  ;;  %v9812_v63 = vld [vmem:[%s13355_s27 + $0x130] sm:$0xff] (%p16954_p6)  ;;  %v9816_v9 = vld [vmem:[%s13355_s27 + $0x140] sm:$0xff] (%p16954_p6) }
 0x7e2   : > { %v9533_v54 = vpop.f32.mrb[59].mxu0  ;;  %9606 = vst [vmem:[#allocation4 + $0xe8] sm:$0xff] %v9531_v7  ;;  %v9677_v56 = vadd.f32 %v15959_v16, %v9531_v7  ;;  %9793 = vst [vmem:[%s16131_s17 + $0x1c0] sm:$0xff] (%p16954_p6), %v9792_v35  ;;  %v9818_v39 = vld [vmem:[%s13355_s27 + $0x148] sm:$0xff] (%p16954_p6)  ;;  %v9822_v7 = vld [vmem:[%s13355_s27 + $0x158] sm:$0xff] (%p16954_p6) }
 0x7e3   : > { %v8570_v8 = vadd.f32 %v15959_v16, %v8467_v50  ;;  %9795 = vst [vmem:[%s16131_s17 + $0x1c8] sm:$0xff] (%p16954_p6), %v9794_v43  ;;  %9797 = vst [vmem:[%s16131_s17 + $0x1d0] sm:$0xff] (%p16954_p6), %v9796_v51  ;;  %v9820_v50 = vld [vmem:[%s13355_s27 + $0x150] sm:$0xff] (%p16954_p6)  ;;  %v9824_v15 = vld [vmem:[%s13355_s27 + $0x160] sm:$0xff] (%p16954_p6) }
 0x7e4   : > { %v8429_v55 = vpop.f32.mrb[124].mxu1  ;;  %9709 = vst [vmem:[%s13355_s27 + $0x1d8] sm:$0xff] %v9677_v56  ;;  %9799 = vst [vmem:[%s16131_s17 + $0x1d8] sm:$0xff] (%p16954_p6), %v9798_v2  ;;  %v9826_v54 = vld [vmem:[%s13355_s27 + $0x168] sm:$0xff] (%p16954_p6)  ;;  %v9830_v56 = vld [vmem:[%s13355_s27 + $0x178] sm:$0xff] (%p16954_p6) }
 0x7e5   : > { %8602 = vst [vmem:[%s13355_s27 + $0x1d0] sm:$0xff] %v8570_v8  ;;  %v8468_v17 = vadd.f32 %v8429_v55, %v8176_v32  ;;  %v9536_v19 = vpop.f32.mrb[60].mxu0  ;;  %v8431_v22 = vpop.f32.mrb[125].mxu1  ;;  %9801 = vst [vmem:[%s16131_s17 + $0x200] sm:$0xff] (%p16954_p6), %v9800_v0  ;;  %v9828_v8 = vld [vmem:[%s13355_s27 + $0x170] sm:$0xff] (%p16954_p6)  ;;  %v9832_v32 = vld [vmem:[%s13355_s27 + $0x180] sm:$0xff] (%p16954_p6) }
 0x7e6   : > { %v9538_v38 = vpop.f32.mrb[61].mxu0  ;;  %9607 = vst [vmem:[#allocation4 + $0xf0] sm:$0xff] %v9536_v19  ;;  %v9678_v42 = vadd.f32 %v15959_v16, %v9536_v19  ;;  %9803 = vst [vmem:[%s16131_s17 + $0x208] sm:$0xff] (%p16954_p6), %v9802_v1  ;;  %v9834_v55 = vld [vmem:[%s13355_s27 + $0x188] sm:$0xff] (%p16954_p6)  ;;  %v9838_v19 = vld [vmem:[%s13355_s27 + $0x198] sm:$0xff] (%p16954_p6) }
 0x7e7   : > { %v8571_v44 = vadd.f32 %v15959_v16, %v8468_v17  ;;  %9718 = sbr.rel (!%p16954_p6) target bundleno = 2041 (0x7f9), region = 92  ;;  %9805 = vst [vmem:[%s16131_s17 + $0x210] sm:$0xff] (%p16954_p6), %v9804_v52  ;;  %9807 = vst [vmem:[%s16131_s17 + $0x218] sm:$0xff] (%p16954_p6), %v9806_v47  ;;  %v9836_v17 = vld [vmem:[%s13355_s27 + $0x190] sm:$0xff] (%p16954_p6)  ;;  %v9840_v22 = vld [vmem:[%s13355_s27 + $0x1a0] sm:$0xff] (%p16954_p6) }
 0x7e8   : > { %v8434_v46 = vpop.f32.mrb[126].mxu1  ;;  %9710 = vst [vmem:[%s13355_s27 + $0x1e8] sm:$0xff] %v9678_v42  ;;  %9809 = vst [vmem:[%s16131_s17 + $0x240] sm:$0xff] (%p16954_p6), %v9808_v26  ;;  %v9842_v38 = vld [vmem:[%s13355_s27 + $0x1a8] sm:$0xff] (%p16954_p6)  ;;  %v9846_v42 = vld [vmem:[%s13355_s27 + $0x1b8] sm:$0xff] (%p16954_p6) }
 0x7e9   : > { %8603 = vst [vmem:[%s13355_s27 + $0x1e0] sm:$0xff] %v8571_v44  ;;  %v8469_v4 = vadd.f32 %v8434_v46, %v8177_v27  ;;  %v9541_v23 = vpop.f32.mrb[62].mxu0  ;;  %v8436_v49 = vpop.f32.mrb[127].mxu1  ;;  %9811 = vst [vmem:[%s16131_s17 + $0x248] sm:$0xff] (%p16954_p6), %v9810_v62  ;;  %v9844_v44 = vld [vmem:[%s13355_s27 + $0x1b0] sm:$0xff] (%p16954_p6)  ;;  %v9848_v27 = vld [vmem:[%s13355_s27 + $0x1c0] sm:$0xff] (%p16954_p6) }
 0x7ea   : > { %v9543_v3 = vpop.f32.mrb[63].mxu0  ;;  %9608 = vst [vmem:[#allocation4 + $0xf8] sm:$0xff] %v9541_v23  ;;  %v9679_v10 = vadd.f32 %v15959_v16, %v9541_v23  ;;  %9813 = vst [vmem:[%s16131_s17 + $0x250] sm:$0xff] (%p16954_p6), %v9812_v63  ;;  %v9850_v46 = vld [vmem:[%s13355_s27 + $0x1c8] sm:$0xff] (%p16954_p6) }
 0x7eb   : > { %v8572_v18 = vadd.f32 %v15959_v16, %v8469_v4  ;;  %v9736_v16 = vld [vmem:[%s13355_s27] sm:$0xff] (%p16954_p6)  ;;  %9815 = vst [vmem:[%s16131_s17 + $0x258] sm:$0xff] (%p16954_p6), %v9814_v58  ;;  %9817 = vst [vmem:[%s16131_s17 + $0x280] sm:$0xff] (%p16954_p6), %v9816_v9  ;;  %v9854_v23 = vld [vmem:[%s13355_s27 + $0x1d8] sm:$0xff] (%p16954_p6) }
 0x7ec   : > { %9711 = vst [vmem:[%s13355_s27 + $0x1f8] sm:$0xff] %v9679_v10  ;;  %9737 = vst [vmem:[%s16131_s17] sm:$0xff] (%p16954_p6), %v9736_v16  ;;  %v9852_v4 = vld [vmem:[%s13355_s27 + $0x1d0] sm:$0xff] (%p16954_p6) }
 0x7ed   : > { %8604 = vst [vmem:[%s13355_s27 + $0x1f0] sm:$0xff] %v8572_v18  ;;  %9819 = vst [vmem:[%s16131_s17 + $0x288] sm:$0xff] (%p16954_p6), %v9818_v39 }
 0x7ee   : > { %9821 = vst [vmem:[%s16131_s17 + $0x290] sm:$0xff] %v9820_v50  ;;  %9823 = vst [vmem:[%s16131_s17 + $0x298] sm:$0xff] %v9822_v7 }
 0x7ef   : > { %9825 = vst [vmem:[%s16131_s17 + $0x2c0] sm:$0xff] %v9824_v15  ;;  %9827 = vst [vmem:[%s16131_s17 + $0x2c8] sm:$0xff] %v9826_v54  ;;  %v9858_v3 = vld [vmem:[%s13355_s27 + $0x1e8] sm:$0xff] }
 0x7f0   : > { %9829 = vst [vmem:[%s16131_s17 + $0x2d0] sm:$0xff] %v9828_v8  ;;  %9831 = vst [vmem:[%s16131_s17 + $0x2d8] sm:$0xff] %v9830_v56  ;;  %v9856_v49 = vld [vmem:[%s13355_s27 + $0x1e0] sm:$0xff] }
 0x7f1   : > { %9833 = vst [vmem:[%s16131_s17 + $0x300] sm:$0xff] %v9832_v32  ;;  %9835 = vst [vmem:[%s16131_s17 + $0x308] sm:$0xff] %v9834_v55 }
 0x7f2   : > { %9837 = vst [vmem:[%s16131_s17 + $0x310] sm:$0xff] %v9836_v17  ;;  %9839 = vst [vmem:[%s16131_s17 + $0x318] sm:$0xff] %v9838_v19 }
 0x7f3   : > { %9841 = vst [vmem:[%s16131_s17 + $0x340] sm:$0xff] %v9840_v22  ;;  %9843 = vst [vmem:[%s16131_s17 + $0x348] sm:$0xff] %v9842_v38  ;;  %v9862_v10 = vld [vmem:[%s13355_s27 + $0x1f8] sm:$0xff] }
 0x7f4   : > { %9845 = vst [vmem:[%s16131_s17 + $0x350] sm:$0xff] %v9844_v44  ;;  %9847 = vst [vmem:[%s16131_s17 + $0x358] sm:$0xff] %v9846_v42  ;;  %v9860_v18 = vld [vmem:[%s13355_s27 + $0x1f0] sm:$0xff] }
 0x7f5   : > { %9849 = vst [vmem:[%s16131_s17 + $0x380] sm:$0xff] %v9848_v27  ;;  %9851 = vst [vmem:[%s16131_s17 + $0x388] sm:$0xff] %v9850_v46 }
 0x7f6   : > { %9853 = vst [vmem:[%s16131_s17 + $0x390] sm:$0xff] %v9852_v4  ;;  %9855 = vst [vmem:[%s16131_s17 + $0x398] sm:$0xff] %v9854_v23 }
 0x7f7   : > { %9857 = vst [vmem:[%s16131_s17 + $0x3c0] sm:$0xff] %v9856_v49  ;;  %9859 = vst [vmem:[%s16131_s17 + $0x3c8] sm:$0xff] %v9858_v3 }
 0x7f8   : > { %9861 = vst [vmem:[%s16131_s17 + $0x3d0] sm:$0xff] %v9860_v18  ;;  %9863 = vst [vmem:[%s16131_s17 + $0x3d8] sm:$0xff] %v9862_v10 }
 0x7f9 PF: > { %s27_s14 = sadd.s32 1, %s12701_s14   ;;  %s16958_s2 = sld [smem:[#allocation28_spill]] }
 0x7fa   : > { %p24_p2 = scmp.ge.s32.totalorder %s27_s14, 6   ;;  %s16959_s20 = sld [smem:[#allocation29_spill]] }
 0x7fb   : > { %s16960_s27 = smov %s12669_s28  ;;  %s16961_s28 = smov %s13015_s26 }
 0x7fc   : > { %s16962_s29 = smov %s12677_s30  ;;  %s16963_s30 = smov %s12681_s9 }
 0x7fd   : > { %s16964_s9 = smov %s13012_s25  ;;  %s16965_s10 = smov %s12693_s12 }
 0x7fe   : > { %s16966_s11 = smov %s12697_s13  ;;  %26 = sbr.rel (!%p24_p2) target bundleno = 21 (0x15), region = 174 }
 0x7ff   : > { %s16967_s12 = smov %s16958_s2 }
 0x800   : > { %s16968_s13 = smov %s16959_s20 }
 0x805   :  { %9879 = vsyncpa [#allocation6], 1 }
 0x806   :  { %9881 = vsyncpa [#allocation6 + $0x1], 1 }
 0x807   :  { %9882 = vsyncpa [#allocation8], 1 }
 0x808   :  { %9884 = vsyncpa [#allocation8 + $0x1], 1 }
 0x809   :  { %9885 = vsyncpa [#allocation11], 1 }
 0x80a   :  { %9886 = vsyncpa [#allocation14], 1 }
 0x80b   :  { %9887 = vsyncpa [#allocation17], 1 }

</bundles_post_ra>
